<compile_context>
chip_gen: v7x
topology: tpu7x:2x2x1
jax: 0.10.0
libtpu: 0.0.40
codegen_flags: <defaults>
</compile_context>

<pallas_src>
import jax
import jax.numpy as jnp
from jax.experimental import pallas as pl
from jax.experimental.pallas import tpu as pltpu


# ----------------------------------------------------------------------------
# Small helpers
# ----------------------------------------------------------------------------
def _round_up(n, m):
    return -(-n // m) * m


def _batch_tile(B, cap=64):
    """Batch tile: multiple of 8, <= cap, padded batch, >=2 grid steps when possible."""
    tb = min(cap, _round_up(B, 8))
    if tb >= B and B > 8:
        # A single grid step would cover the whole batch; split in two (v7x has 2 TCs).
        tb = _round_up(_round_up(B, 8) // 2, 8)
    return max(tb, 8)


def _rows_down(v, n):
    # out[r] = v[r - n] (circular).  Wrapped-in rows come from the all-zero i==13 block.
    return jnp.concatenate([v[v.shape[0] - n:, :], v[:v.shape[0] - n, :]], axis=0)


def _rows_up(v, n):
    # out[r] = v[r + n] (circular).  Wrapped-in rows only land in the unused i==13 block.
    return jnp.concatenate([v[n:, :], v[:n, :]], axis=0)


# ----------------------------------------------------------------------------
# Fused kernel: conv1 + relu + conv2 + relu + maxpool + fc1 + tanh + fc2 + softmax
# ----------------------------------------------------------------------------
def _fused_kernel(xr_ref, w1_ref, b1_ref, w2a_ref, w2b_ref, b2_ref,
                  fw1_ref, fb1_ref, fw2_ref, fb2_ref, o_ref):
    f32, bf16 = jnp.float32, jnp.bfloat16
    TB = o_ref.shape[0]
    R = 14 * TB                      # rows are (i, b): r = i*TB + b; i==13 is a pad block

    # --- conv1 (1->64, 3x3, stride 2) as a single bf16 MXU matmul -------------------
    xr = xr_ref[...].reshape(R, 84).astype(bf16)       # layout-preserving merge (TB % 8 == 0)
    h = jnp.dot(xr, w1_ref[...], preferred_element_type=f32) + b1_ref[...]
    h = jnp.maximum(h, 0.0)                             # (R, 832): col = j1*64 + c
    rid = jax.lax.broadcasted_iota(jnp.int32, (R, 1), 0)
    h = jnp.where(rid < 13 * TB, h, 0.0).astype(bf16)   # zero the i==13 pad block

    # --- conv2 (64->32, 2x2, stride 1, pad 1): kw/column padding folded into weights,
    # --- kh / row padding via a tile-aligned circular row-block shift ----------------
    a2 = jnp.dot(h, w2b_ref[...], preferred_element_type=f32)     # kh = 1 term
    u0 = jnp.dot(h, w2a_ref[...], preferred_element_type=f32)     # kh = 0 term (rows at i1)
    a2 = a2 + _rows_down(u0, TB)                                   # align kh=0 to i2 = i1 + 1
    a2 = jnp.maximum(a2 + b2_ref[...], 0.0)                        # (R, 448): col = j2*32 + o

    # --- 2x2 stride-1 max pool -------------------------------------------------------
    pj = jnp.maximum(a2[:, :416], a2[:, 32:])                      # max over j2, j2+1
    pooled = jnp.maximum(pj, _rows_up(pj, TB)).astype(bf16)        # max over i2, i2+1; (R, 416)

    # --- fc1 + tanh: contract over the 13 valid row-blocks (no big reshape) ----------
    acc = jnp.zeros((TB, 256), f32) + fb1_ref[...]
    for i in range(13):
        acc = acc + jnp.dot(pooled[i * TB:(i + 1) * TB, :], fw1_ref[i],
                            preferred_element_type=f32)
    t = jnp.tanh(acc).astype(bf16)

    # --- fc2 (lane-dense N=128; pad columns carry -1e30 bias) + softmax (f32) --------
    logits = jnp.dot(t, fw2_ref[...], preferred_element_type=f32) + fb2_ref[...]
    m = jnp.max(logits, axis=-1, keepdims=True)
    e = jnp.exp(logits - m)
    denom = jnp.sum(e, axis=-1, keepdims=True)
    o_ref[...] = (e * pl.reciprocal(denom, approx=True)).astype(o_ref.dtype)


# ----------------------------------------------------------------------------
# Parameters (PyTorch layout) and one-time repack into kernel-friendly layouts
# ----------------------------------------------------------------------------
def init_params(key):
    def uni(k, shape, fan_in):
        bound = 1.0 / jnp.sqrt(float(fan_in))
        return jax.random.uniform(k, shape, jnp.float32, -bound, bound)

    ks = jax.random.split(key, 8)
    return {
        "conv1_w": uni(ks[0], (64, 1, 3, 3), 9),
        "conv1_b": uni(ks[1], (64,), 9),
        "conv2_w": uni(ks[2], (32, 64, 2, 2), 256),
        "conv2_b": uni(ks[3], (32,), 256),
        "fc1_w": uni(ks[4], (256, 5408), 5408),   # PyTorch Linear: (out, in)
        "fc1_b": uni(ks[5], (256,), 5408),
        "fc2_w": uni(ks[6], (10, 256), 256),
        "fc2_b": uni(ks[7], (10,), 256),
    }


def prepare_params(p):
    """One-time repack of PyTorch-layout weights into the kernel's structured layouts."""
    f32, bf16 = jnp.float32, jnp.bfloat16

    # conv1 -> structured (84, 832) weight: row = kh*28 + w_in, col = j1*64 + c.
    w1 = p["conv1_w"].reshape(64, 3, 3).astype(f32)          # (c, kh, kw)
    w1t = w1.transpose(1, 2, 0)                              # (kh, kw, c)
    W1 = jnp.zeros((3, 28, 13, 64), f32)
    for j in range(13):
        for kw in range(3):
            W1 = W1.at[:, 2 * j + kw, j, :].set(w1t[:, kw, :])
    w1big = W1.reshape(84, 832).astype(bf16)
    b1 = jnp.tile(p["conv1_b"].astype(f32), 13).reshape(1, 832)

    # conv2 -> per-kh structured (832, 448) weights: row = j1*64 + c, col = j2*32 + o.
    w2 = p["conv2_w"].astype(f32)                            # (o, c, kh, kw)

    def _w2big(kh):
        W = jnp.zeros((13, 64, 14, 32), f32)
        for j2 in range(14):
            for kw in range(2):
                j1 = j2 + kw - 1
                if 0 <= j1 <= 12:                            # out of range == zero padding
                    W = W.at[j1, :, j2, :].set(w2[:, :, kh, kw].T)
        return W.reshape(832, 448).astype(bf16)

    w2a, w2b = _w2big(0), _w2big(1)
    b2 = jnp.tile(p["conv2_b"].astype(f32), 14).reshape(1, 448)

    # fc1 rows reordered from PyTorch's (C,H,W) flatten to the kernel's (i, j*32+o) layout.
    fw1 = (p["fc1_w"].reshape(256, 32, 13, 13).transpose(2, 3, 1, 0)   # (i, j, o, n)
           .reshape(13, 416, 256).astype(bf16))
    fb1 = p["fc1_b"].reshape(1, 256).astype(f32)

    # fc2 padded to lane-dense N=128; pad classes get a -1e30 bias (softmax-neutral).
    fw2 = jnp.zeros((256, 128), f32).at[:, :10].set(p["fc2_w"].T).astype(bf16)
    fb2 = jnp.full((1, 128), -1e30, f32).at[0, :10].set(p["fc2_b"].astype(f32))

    return {"w1": w1big, "b1": b1, "w2a": w2a, "w2b": w2b, "b2": b2,
            "fw1": fw1, "fb1": fb1, "fw2": fw2, "fb2": fb2}


# ----------------------------------------------------------------------------
# Forward pass (matches Model.forward; dropout layers are identity in eval mode)
# ----------------------------------------------------------------------------
def _forward_impl(prep, x):
    # x: (B, 1, 28, 28) f32
    B = x.shape[0]
    tb = _batch_tile(B)
    B_pad = _round_up(B, tb)

    x2 = x[:, 0, :, :].astype(jnp.float32)                   # (B, 28, 28)
    if B_pad != B:
        x2 = jnp.pad(x2, ((0, B_pad - B), (0, 0), (0, 0)))

    # conv1 input rows: for each output row i, the 3 source image rows (2i..2i+2)
    # flattened to 84 lanes; i == 13 is a zero pad block used by conv2's row padding.
    slabs = [x2[:, 2 * i:2 * i + 3, :].reshape(B_pad, 84) for i in range(13)]
    slabs.append(jnp.zeros((B_pad, 84), jnp.float32))
    xr = jnp.stack(slabs, axis=0)                            # (14, B_pad, 84), contiguous DMA

    probs = pl.pallas_call(
        _fused_kernel,
        out_shape=jax.ShapeDtypeStruct((B_pad, 128), jnp.float32),
        grid=(B_pad // tb,),
        in_specs=[
            pl.BlockSpec((14, tb, 84), lambda g: (0, g, 0)),
            pl.BlockSpec((84, 832), lambda g: (0, 0)),
            pl.BlockSpec((1, 832), lambda g: (0, 0)),
            pl.BlockSpec((832, 448), lambda g: (0, 0)),
            pl.BlockSpec((832, 448), lambda g: (0, 0)),
            pl.BlockSpec((1, 448), lambda g: (0, 0)),
            pl.BlockSpec((13, 416, 256), lambda g: (0, 0, 0)),
            pl.BlockSpec((1, 256), lambda g: (0, 0)),
            pl.BlockSpec((256, 128), lambda g: (0, 0)),
            pl.BlockSpec((1, 128), lambda g: (0, 0)),
        ],
        out_specs=pl.BlockSpec((tb, 128), lambda g: (g, 0)),
        compiler_params=pltpu.CompilerParams(
            dimension_semantics=("parallel",),
            vmem_limit_bytes=48 * 1024 * 1024),
    )(xr, prep["w1"], prep["b1"], prep["w2a"], prep["w2b"], prep["b2"],
      prep["fw1"], prep["fb1"], prep["fw2"], prep["fb2"])

    # TODO(synk): Dropout2d(p=0.35)/Dropout(p=0.5) are identity in eval mode;
    # training-mode stochastic dropout is intentionally not reproduced.
    return probs[:B, :10]


forward = jax.jit(_forward_impl)


# ----------------------------------------------------------------------------
# Pure-JAX reference (PyTorch semantics) for a correctness sanity check
# ----------------------------------------------------------------------------
def reference_forward(p, x):
    y = jax.lax.conv_general_dilated(x, p["conv1_w"], (2, 2), "VALID",
                                     dimension_numbers=("NCHW", "OIHW", "NCHW"))
    y = jax.nn.relu(y + p["conv1_b"][None, :, None, None])
    y = jax.lax.conv_general_dilated(y, p["conv2_w"], (1, 1), ((1, 1), (1, 1)),
                                     dimension_numbers=("NCHW", "OIHW", "NCHW"))
    y = jax.nn.relu(y + p["conv2_b"][None, :, None, None])
    y = jax.lax.reduce_window(y, -jnp.inf, jax.lax.max,
                              (1, 1, 2, 2), (1, 1, 1, 1), "VALID")
    y = y.reshape(y.shape[0], 5408)
    y = jnp.tanh(y @ p["fc1_w"].T + p["fc1_b"])
    return jax.nn.softmax(y @ p["fc2_w"].T + p["fc2_b"], axis=-1)


if __name__ == "__main__":
    key = jax.random.PRNGKey(0)
    pkey, xkey = jax.random.split(key)
    params = init_params(pkey)
    prep = prepare_params(params)

    B = 2
    x = jax.random.normal(xkey, (B, 1, 28, 28), dtype=jnp.float32)

    out = jax.block_until_ready(forward(prep, x))
    assert out.shape == (B, 10), out.shape
    assert jnp.allclose(jnp.sum(out, axis=-1), 1.0, atol=5e-3), jnp.sum(out, axis=-1)

    ref = jax.block_until_ready(reference_forward(params, x))
    err = float(jnp.max(jnp.abs(out - ref)))
    assert err < 1e-2, err

    print("KERNEL_OK")
</pallas_src>

<mosaic_0001>
module attributes {stable_mosaic.version = 11 : i64} {
  func.func @_fused_kernel(%arg0: i32, %arg1: memref<14x8x84xf32, #tpu.memory_space<vmem>>, %arg2: memref<84x832xbf16, #tpu.memory_space<vmem>>, %arg3: memref<1x832xf32, #tpu.memory_space<vmem>>, %arg4: memref<832x448xbf16, #tpu.memory_space<vmem>>, %arg5: memref<832x448xbf16, #tpu.memory_space<vmem>>, %arg6: memref<1x448xf32, #tpu.memory_space<vmem>>, %arg7: memref<13x416x256xbf16, #tpu.memory_space<vmem>>, %arg8: memref<1x256xf32, #tpu.memory_space<vmem>>, %arg9: memref<256x128xbf16, #tpu.memory_space<vmem>>, %arg10: memref<1x128xf32, #tpu.memory_space<vmem>>, %arg11: memref<8x128xf32, #tpu.memory_space<vmem>>) attributes {dimension_semantics = [#tpu.dimension_semantics<parallel>], iteration_bounds = array<i64: 1>, scalar_prefetch = 0 : i64, scratch_operands = 0 : i64, tpu.core_type = #tpu.core_type<tc>, window_params = [{transform_indices = @transform_0, window_bounds = array<i64: 14, 8, 84>}, {pipeline_mode = #tpu.pipeline_mode<synchronous>, transform_indices = @transform_1, window_bounds = array<i64: 84, 832>}, {pipeline_mode = #tpu.pipeline_mode<synchronous>, transform_indices = @transform_2, window_bounds = array<i64: 1, 832>}, {pipeline_mode = #tpu.pipeline_mode<synchronous>, transform_indices = @transform_3, window_bounds = array<i64: 832, 448>}, {pipeline_mode = #tpu.pipeline_mode<synchronous>, transform_indices = @transform_4, window_bounds = array<i64: 832, 448>}, {pipeline_mode = #tpu.pipeline_mode<synchronous>, transform_indices = @transform_5, window_bounds = array<i64: 1, 448>}, {pipeline_mode = #tpu.pipeline_mode<synchronous>, transform_indices = @transform_6, window_bounds = array<i64: 13, 416, 256>}, {pipeline_mode = #tpu.pipeline_mode<synchronous>, transform_indices = @transform_7, window_bounds = array<i64: 1, 256>}, {pipeline_mode = #tpu.pipeline_mode<synchronous>, transform_indices = @transform_8, window_bounds = array<i64: 256, 128>}, {pipeline_mode = #tpu.pipeline_mode<synchronous>, transform_indices = @transform_9, window_bounds = array<i64: 1, 128>}, {transform_indices = @transform_10, window_bounds = array<i64: 8, 128>}]} {
    %c0 = arith.constant 0 : index
    %c0_0 = arith.constant 0 : index
    %c0_1 = arith.constant 0 : index
    %0 = vector.load %arg1[%c0, %c0_0, %c0_1] : memref<14x8x84xf32, #tpu.memory_space<vmem>>, vector<14x8x84xf32>
    %1 = vector.shape_cast %0 : vector<14x8x84xf32> to vector<112x84xf32>
    %2 = arith.truncf %1 : vector<112x84xf32> to vector<112x84xbf16>
    %c0_2 = arith.constant 0 : index
    %c0_3 = arith.constant 0 : index
    %3 = vector.load %arg2[%c0_2, %c0_3] : memref<84x832xbf16, #tpu.memory_space<vmem>>, vector<84x832xbf16>
    %cst = arith.constant dense<0.000000e+00> : vector<112x832xf32>
    %4 = tpu.matmul %2, %3, %cst {dimension_numbers = #tpu.dot_dimension_numbers<[1], [0], [0], [1], [0, 0, 1, 1], [], []>} : vector<112x84xbf16>, vector<84x832xbf16>, vector<112x832xf32> -> vector<112x832xf32>
    %c0_4 = arith.constant 0 : index
    %c0_5 = arith.constant 0 : index
    %5 = vector.load %arg3[%c0_4, %c0_5] : memref<1x832xf32, #tpu.memory_space<vmem>>, vector<1x832xf32>
    %6 = vector.broadcast %5 : vector<1x832xf32> to vector<112x832xf32>
    %7 = arith.addf %4, %6 : vector<112x832xf32>
    %cst_6 = arith.constant 0.000000e+00 : f32
    %8 = vector.broadcast %cst_6 : f32 to vector<112x832xf32>
    %9 = arith.maximumf %7, %8 : vector<112x832xf32>
    %10 = tpu.iota {dimensions = array<i32: 0>} : vector<112x1xi32>
    %c104_i32 = arith.constant 104 : i32
    %11 = vector.broadcast %c104_i32 : i32 to vector<112x1xi32>
    %12 = arith.cmpi slt, %10, %11 : vector<112x1xi32>
    %cst_7 = arith.constant 0.000000e+00 : f32
    %13 = vector.shape_cast %12 : vector<112x1xi1> to vector<112x1xi1>
    %14 = vector.broadcast %13 : vector<112x1xi1> to vector<112x832xi1>
    %15 = vector.broadcast %cst_7 : f32 to vector<112x832xf32>
    %16 = arith.select %14, %9, %15 : vector<112x832xi1>, vector<112x832xf32>
    %17 = arith.truncf %16 : vector<112x832xf32> to vector<112x832xbf16>
    %c0_8 = arith.constant 0 : index
    %c0_9 = arith.constant 0 : index
    %18 = vector.load %arg5[%c0_8, %c0_9] : memref<832x448xbf16, #tpu.memory_space<vmem>>, vector<832x448xbf16>
    %cst_10 = arith.constant dense<0.000000e+00> : vector<112x448xf32>
    %19 = tpu.matmul %17, %18, %cst_10 {dimension_numbers = #tpu.dot_dimension_numbers<[1], [0], [0], [1], [0, 0, 1, 1], [], []>} : vector<112x832xbf16>, vector<832x448xbf16>, vector<112x448xf32> -> vector<112x448xf32>
    %c0_11 = arith.constant 0 : index
    %c0_12 = arith.constant 0 : index
    %20 = vector.load %arg4[%c0_11, %c0_12] : memref<832x448xbf16, #tpu.memory_space<vmem>>, vector<832x448xbf16>
    %cst_13 = arith.constant dense<0.000000e+00> : vector<112x448xf32>
    %21 = tpu.matmul %17, %20, %cst_13 {dimension_numbers = #tpu.dot_dimension_numbers<[1], [0], [0], [1], [0, 0, 1, 1], [], []>} : vector<112x832xbf16>, vector<832x448xbf16>, vector<112x448xf32> -> vector<112x448xf32>
    %22 = vector.extract_strided_slice %21 {offsets = [104, 0], sizes = [8, 448], strides = [1, 1]} : vector<112x448xf32> to vector<8x448xf32>
    %23 = vector.extract_strided_slice %21 {offsets = [0, 0], sizes = [104, 448], strides = [1, 1]} : vector<112x448xf32> to vector<104x448xf32>
    %24 = tpu.concatenate %22, %23 in 0 : vector<8x448xf32>, vector<104x448xf32> -> vector<112x448xf32>
    %25 = arith.addf %19, %24 : vector<112x448xf32>
    %c0_14 = arith.constant 0 : index
    %c0_15 = arith.constant 0 : index
    %26 = vector.load %arg6[%c0_14, %c0_15] : memref<1x448xf32, #tpu.memory_space<vmem>>, vector<1x448xf32>
    %27 = vector.broadcast %26 : vector<1x448xf32> to vector<112x448xf32>
    %28 = arith.addf %25, %27 : vector<112x448xf32>
    %cst_16 = arith.constant 0.000000e+00 : f32
    %29 = vector.broadcast %cst_16 : f32 to vector<112x448xf32>
    %30 = arith.maximumf %28, %29 : vector<112x448xf32>
    %31 = vector.extract_strided_slice %30 {offsets = [0, 0], sizes = [112, 416], strides = [1, 1]} : vector<112x448xf32> to vector<112x416xf32>
    %32 = vector.extract_strided_slice %30 {offsets = [0, 32], sizes = [112, 416], strides = [1, 1]} : vector<112x448xf32> to vector<112x416xf32>
    %33 = arith.maximumf %31, %32 : vector<112x416xf32>
    %34 = vector.extract_strided_slice %33 {offsets = [8, 0], sizes = [104, 416], strides = [1, 1]} : vector<112x416xf32> to vector<104x416xf32>
    %35 = vector.extract_strided_slice %33 {offsets = [0, 0], sizes = [8, 416], strides = [1, 1]} : vector<112x416xf32> to vector<8x416xf32>
    %36 = tpu.concatenate %34, %35 in 0 : vector<104x416xf32>, vector<8x416xf32> -> vector<112x416xf32>
    %37 = arith.maximumf %33, %36 : vector<112x416xf32>
    %38 = arith.truncf %37 : vector<112x416xf32> to vector<112x416xbf16>
    %cst_17 = arith.constant 0.000000e+00 : f32
    %39 = vector.broadcast %cst_17 : f32 to vector<8x256xf32>
    %c0_18 = arith.constant 0 : index
    %c0_19 = arith.constant 0 : index
    %40 = vector.load %arg8[%c0_18, %c0_19] : memref<1x256xf32, #tpu.memory_space<vmem>>, vector<1x256xf32>
    %41 = vector.broadcast %40 : vector<1x256xf32> to vector<8x256xf32>
    %42 = arith.addf %39, %41 : vector<8x256xf32>
    %43 = vector.extract_strided_slice %38 {offsets = [0, 0], sizes = [8, 416], strides = [1, 1]} : vector<112x416xbf16> to vector<8x416xbf16>
    %c0_20 = arith.constant 0 : index
    %c0_21 = arith.constant 0 : index
    %c0_22 = arith.constant 0 : index
    %44 = vector.load %arg7[%c0_20, %c0_21, %c0_22] : memref<13x416x256xbf16, #tpu.memory_space<vmem>>, vector<1x416x256xbf16>
    %45 = vector.shape_cast %44 : vector<1x416x256xbf16> to vector<416x256xbf16>
    %cst_23 = arith.constant dense<0.000000e+00> : vector<8x256xf32>
    %46 = tpu.matmul %43, %45, %cst_23 {dimension_numbers = #tpu.dot_dimension_numbers<[1], [0], [0], [1], [0, 0, 1, 1], [], []>} : vector<8x416xbf16>, vector<416x256xbf16>, vector<8x256xf32> -> vector<8x256xf32>
    %47 = arith.addf %42, %46 : vector<8x256xf32>
    %48 = vector.extract_strided_slice %38 {offsets = [8, 0], sizes = [8, 416], strides = [1, 1]} : vector<112x416xbf16> to vector<8x416xbf16>
    %c1 = arith.constant 1 : index
    %c0_24 = arith.constant 0 : index
    %c0_25 = arith.constant 0 : index
    %49 = vector.load %arg7[%c1, %c0_24, %c0_25] : memref<13x416x256xbf16, #tpu.memory_space<vmem>>, vector<1x416x256xbf16>
    %50 = vector.shape_cast %49 : vector<1x416x256xbf16> to vector<416x256xbf16>
    %cst_26 = arith.constant dense<0.000000e+00> : vector<8x256xf32>
    %51 = tpu.matmul %48, %50, %cst_26 {dimension_numbers = #tpu.dot_dimension_numbers<[1], [0], [0], [1], [0, 0, 1, 1], [], []>} : vector<8x416xbf16>, vector<416x256xbf16>, vector<8x256xf32> -> vector<8x256xf32>
    %52 = arith.addf %47, %51 : vector<8x256xf32>
    %53 = vector.extract_strided_slice %38 {offsets = [16, 0], sizes = [8, 416], strides = [1, 1]} : vector<112x416xbf16> to vector<8x416xbf16>
    %c2 = arith.constant 2 : index
    %c0_27 = arith.constant 0 : index
    %c0_28 = arith.constant 0 : index
    %54 = vector.load %arg7[%c2, %c0_27, %c0_28] : memref<13x416x256xbf16, #tpu.memory_space<vmem>>, vector<1x416x256xbf16>
    %55 = vector.shape_cast %54 : vector<1x416x256xbf16> to vector<416x256xbf16>
    %cst_29 = arith.constant dense<0.000000e+00> : vector<8x256xf32>
    %56 = tpu.matmul %53, %55, %cst_29 {dimension_numbers = #tpu.dot_dimension_numbers<[1], [0], [0], [1], [0, 0, 1, 1], [], []>} : vector<8x416xbf16>, vector<416x256xbf16>, vector<8x256xf32> -> vector<8x256xf32>
    %57 = arith.addf %52, %56 : vector<8x256xf32>
    %58 = vector.extract_strided_slice %38 {offsets = [24, 0], sizes = [8, 416], strides = [1, 1]} : vector<112x416xbf16> to vector<8x416xbf16>
    %c3 = arith.constant 3 : index
    %c0_30 = arith.constant 0 : index
    %c0_31 = arith.constant 0 : index
    %59 = vector.load %arg7[%c3, %c0_30, %c0_31] : memref<13x416x256xbf16, #tpu.memory_space<vmem>>, vector<1x416x256xbf16>
    %60 = vector.shape_cast %59 : vector<1x416x256xbf16> to vector<416x256xbf16>
    %cst_32 = arith.constant dense<0.000000e+00> : vector<8x256xf32>
    %61 = tpu.matmul %58, %60, %cst_32 {dimension_numbers = #tpu.dot_dimension_numbers<[1], [0], [0], [1], [0, 0, 1, 1], [], []>} : vector<8x416xbf16>, vector<416x256xbf16>, vector<8x256xf32> -> vector<8x256xf32>
    %62 = arith.addf %57, %61 : vector<8x256xf32>
    %63 = vector.extract_strided_slice %38 {offsets = [32, 0], sizes = [8, 416], strides = [1, 1]} : vector<112x416xbf16> to vector<8x416xbf16>
    %c4 = arith.constant 4 : index
    %c0_33 = arith.constant 0 : index
    %c0_34 = arith.constant 0 : index
    %64 = vector.load %arg7[%c4, %c0_33, %c0_34] : memref<13x416x256xbf16, #tpu.memory_space<vmem>>, vector<1x416x256xbf16>
    %65 = vector.shape_cast %64 : vector<1x416x256xbf16> to vector<416x256xbf16>
    %cst_35 = arith.constant dense<0.000000e+00> : vector<8x256xf32>
    %66 = tpu.matmul %63, %65, %cst_35 {dimension_numbers = #tpu.dot_dimension_numbers<[1], [0], [0], [1], [0, 0, 1, 1], [], []>} : vector<8x416xbf16>, vector<416x256xbf16>, vector<8x256xf32> -> vector<8x256xf32>
    %67 = arith.addf %62, %66 : vector<8x256xf32>
    %68 = vector.extract_strided_slice %38 {offsets = [40, 0], sizes = [8, 416], strides = [1, 1]} : vector<112x416xbf16> to vector<8x416xbf16>
    %c5 = arith.constant 5 : index
    %c0_36 = arith.constant 0 : index
    %c0_37 = arith.constant 0 : index
    %69 = vector.load %arg7[%c5, %c0_36, %c0_37] : memref<13x416x256xbf16, #tpu.memory_space<vmem>>, vector<1x416x256xbf16>
    %70 = vector.shape_cast %69 : vector<1x416x256xbf16> to vector<416x256xbf16>
    %cst_38 = arith.constant dense<0.000000e+00> : vector<8x256xf32>
    %71 = tpu.matmul %68, %70, %cst_38 {dimension_numbers = #tpu.dot_dimension_numbers<[1], [0], [0], [1], [0, 0, 1, 1], [], []>} : vector<8x416xbf16>, vector<416x256xbf16>, vector<8x256xf32> -> vector<8x256xf32>
    %72 = arith.addf %67, %71 : vector<8x256xf32>
    %73 = vector.extract_strided_slice %38 {offsets = [48, 0], sizes = [8, 416], strides = [1, 1]} : vector<112x416xbf16> to vector<8x416xbf16>
    %c6 = arith.constant 6 : index
    %c0_39 = arith.constant 0 : index
    %c0_40 = arith.constant 0 : index
    %74 = vector.load %arg7[%c6, %c0_39, %c0_40] : memref<13x416x256xbf16, #tpu.memory_space<vmem>>, vector<1x416x256xbf16>
    %75 = vector.shape_cast %74 : vector<1x416x256xbf16> to vector<416x256xbf16>
    %cst_41 = arith.constant dense<0.000000e+00> : vector<8x256xf32>
    %76 = tpu.matmul %73, %75, %cst_41 {dimension_numbers = #tpu.dot_dimension_numbers<[1], [0], [0], [1], [0, 0, 1, 1], [], []>} : vector<8x416xbf16>, vector<416x256xbf16>, vector<8x256xf32> -> vector<8x256xf32>
    %77 = arith.addf %72, %76 : vector<8x256xf32>
    %78 = vector.extract_strided_slice %38 {offsets = [56, 0], sizes = [8, 416], strides = [1, 1]} : vector<112x416xbf16> to vector<8x416xbf16>
    %c7 = arith.constant 7 : index
    %c0_42 = arith.constant 0 : index
    %c0_43 = arith.constant 0 : index
    %79 = vector.load %arg7[%c7, %c0_42, %c0_43] : memref<13x416x256xbf16, #tpu.memory_space<vmem>>, vector<1x416x256xbf16>
    %80 = vector.shape_cast %79 : vector<1x416x256xbf16> to vector<416x256xbf16>
    %cst_44 = arith.constant dense<0.000000e+00> : vector<8x256xf32>
    %81 = tpu.matmul %78, %80, %cst_44 {dimension_numbers = #tpu.dot_dimension_numbers<[1], [0], [0], [1], [0, 0, 1, 1], [], []>} : vector<8x416xbf16>, vector<416x256xbf16>, vector<8x256xf32> -> vector<8x256xf32>
    %82 = arith.addf %77, %81 : vector<8x256xf32>
    %83 = vector.extract_strided_slice %38 {offsets = [64, 0], sizes = [8, 416], strides = [1, 1]} : vector<112x416xbf16> to vector<8x416xbf16>
    %c8 = arith.constant 8 : index
    %c0_45 = arith.constant 0 : index
    %c0_46 = arith.constant 0 : index
    %84 = vector.load %arg7[%c8, %c0_45, %c0_46] : memref<13x416x256xbf16, #tpu.memory_space<vmem>>, vector<1x416x256xbf16>
    %85 = vector.shape_cast %84 : vector<1x416x256xbf16> to vector<416x256xbf16>
    %cst_47 = arith.constant dense<0.000000e+00> : vector<8x256xf32>
    %86 = tpu.matmul %83, %85, %cst_47 {dimension_numbers = #tpu.dot_dimension_numbers<[1], [0], [0], [1], [0, 0, 1, 1], [], []>} : vector<8x416xbf16>, vector<416x256xbf16>, vector<8x256xf32> -> vector<8x256xf32>
    %87 = arith.addf %82, %86 : vector<8x256xf32>
    %88 = vector.extract_strided_slice %38 {offsets = [72, 0], sizes = [8, 416], strides = [1, 1]} : vector<112x416xbf16> to vector<8x416xbf16>
    %c9 = arith.constant 9 : index
    %c0_48 = arith.constant 0 : index
    %c0_49 = arith.constant 0 : index
    %89 = vector.load %arg7[%c9, %c0_48, %c0_49] : memref<13x416x256xbf16, #tpu.memory_space<vmem>>, vector<1x416x256xbf16>
    %90 = vector.shape_cast %89 : vector<1x416x256xbf16> to vector<416x256xbf16>
    %cst_50 = arith.constant dense<0.000000e+00> : vector<8x256xf32>
    %91 = tpu.matmul %88, %90, %cst_50 {dimension_numbers = #tpu.dot_dimension_numbers<[1], [0], [0], [1], [0, 0, 1, 1], [], []>} : vector<8x416xbf16>, vector<416x256xbf16>, vector<8x256xf32> -> vector<8x256xf32>
    %92 = arith.addf %87, %91 : vector<8x256xf32>
    %93 = vector.extract_strided_slice %38 {offsets = [80, 0], sizes = [8, 416], strides = [1, 1]} : vector<112x416xbf16> to vector<8x416xbf16>
    %c10 = arith.constant 10 : index
    %c0_51 = arith.constant 0 : index
    %c0_52 = arith.constant 0 : index
    %94 = vector.load %arg7[%c10, %c0_51, %c0_52] : memref<13x416x256xbf16, #tpu.memory_space<vmem>>, vector<1x416x256xbf16>
    %95 = vector.shape_cast %94 : vector<1x416x256xbf16> to vector<416x256xbf16>
    %cst_53 = arith.constant dense<0.000000e+00> : vector<8x256xf32>
    %96 = tpu.matmul %93, %95, %cst_53 {dimension_numbers = #tpu.dot_dimension_numbers<[1], [0], [0], [1], [0, 0, 1, 1], [], []>} : vector<8x416xbf16>, vector<416x256xbf16>, vector<8x256xf32> -> vector<8x256xf32>
    %97 = arith.addf %92, %96 : vector<8x256xf32>
    %98 = vector.extract_strided_slice %38 {offsets = [88, 0], sizes = [8, 416], strides = [1, 1]} : vector<112x416xbf16> to vector<8x416xbf16>
    %c11 = arith.constant 11 : index
    %c0_54 = arith.constant 0 : index
    %c0_55 = arith.constant 0 : index
    %99 = vector.load %arg7[%c11, %c0_54, %c0_55] : memref<13x416x256xbf16, #tpu.memory_space<vmem>>, vector<1x416x256xbf16>
    %100 = vector.shape_cast %99 : vector<1x416x256xbf16> to vector<416x256xbf16>
    %cst_56 = arith.constant dense<0.000000e+00> : vector<8x256xf32>
    %101 = tpu.matmul %98, %100, %cst_56 {dimension_numbers = #tpu.dot_dimension_numbers<[1], [0], [0], [1], [0, 0, 1, 1], [], []>} : vector<8x416xbf16>, vector<416x256xbf16>, vector<8x256xf32> -> vector<8x256xf32>
    %102 = arith.addf %97, %101 : vector<8x256xf32>
    %103 = vector.extract_strided_slice %38 {offsets = [96, 0], sizes = [8, 416], strides = [1, 1]} : vector<112x416xbf16> to vector<8x416xbf16>
    %c12 = arith.constant 12 : index
    %c0_57 = arith.constant 0 : index
    %c0_58 = arith.constant 0 : index
    %104 = vector.load %arg7[%c12, %c0_57, %c0_58] : memref<13x416x256xbf16, #tpu.memory_space<vmem>>, vector<1x416x256xbf16>
    %105 = vector.shape_cast %104 : vector<1x416x256xbf16> to vector<416x256xbf16>
    %cst_59 = arith.constant dense<0.000000e+00> : vector<8x256xf32>
    %106 = tpu.matmul %103, %105, %cst_59 {dimension_numbers = #tpu.dot_dimension_numbers<[1], [0], [0], [1], [0, 0, 1, 1], [], []>} : vector<8x416xbf16>, vector<416x256xbf16>, vector<8x256xf32> -> vector<8x256xf32>
    %107 = arith.addf %102, %106 : vector<8x256xf32>
    %108 = math.tanh %107 : vector<8x256xf32>
    %109 = arith.truncf %108 : vector<8x256xf32> to vector<8x256xbf16>
    %c0_60 = arith.constant 0 : index
    %c0_61 = arith.constant 0 : index
    %110 = vector.load %arg9[%c0_60, %c0_61] : memref<256x128xbf16, #tpu.memory_space<vmem>>, vector<256x128xbf16>
    %cst_62 = arith.constant dense<0.000000e+00> : vector<8x128xf32>
    %111 = tpu.matmul %109, %110, %cst_62 {dimension_numbers = #tpu.dot_dimension_numbers<[1], [0], [0], [1], [0, 0, 1, 1], [], []>} : vector<8x256xbf16>, vector<256x128xbf16>, vector<8x128xf32> -> vector<8x128xf32>
    %c0_63 = arith.constant 0 : index
    %c0_64 = arith.constant 0 : index
    %112 = vector.load %arg10[%c0_63, %c0_64] : memref<1x128xf32, #tpu.memory_space<vmem>>, vector<1x128xf32>
    %113 = vector.broadcast %112 : vector<1x128xf32> to vector<8x128xf32>
    %114 = arith.addf %111, %113 : vector<8x128xf32>
    %cst_65 = arith.constant dense<0xFF800000> : vector<8xf32>
    %115 = vector.multi_reduction <maximumf>, %114, %cst_65 [1] : vector<8x128xf32> to vector<8xf32>
    %116 = vector.shape_cast %115 : vector<8xf32> to vector<8x1xf32>
    %117 = vector.broadcast %116 : vector<8x1xf32> to vector<8x128xf32>
    %118 = arith.subf %114, %117 : vector<8x128xf32>
    %119 = math.exp %118 : vector<8x128xf32>
    %cst_66 = arith.constant dense<0.000000e+00> : vector<8xf32>
    %120 = vector.multi_reduction <add>, %119, %cst_66 [1] : vector<8x128xf32> to vector<8xf32>
    %121 = vector.shape_cast %120 : vector<8xf32> to vector<8x1xf32>
    %122 = tpu.reciprocal %121 {approx = true} : vector<8x1xf32> -> vector<8x1xf32>
    %123 = vector.broadcast %122 : vector<8x1xf32> to vector<8x128xf32>
    %124 = arith.mulf %119, %123 : vector<8x128xf32>
    %c0_67 = arith.constant 0 : index
    %c0_68 = arith.constant 0 : index
    %125 = vector.load %arg11[%c0_67, %c0_68] : memref<8x128xf32, #tpu.memory_space<vmem>>, vector<8x128xf32>
    tpu.vector_store %arg11[%c0_67, %c0_68], %124 {strides = array<i32>} : memref<8x128xf32, #tpu.memory_space<vmem>>, vector<8x128xf32>,
    return
  }
  func.func @transform_0(%arg0: i32) -> (i32, i32, i32) {
    %c0_i32 = arith.constant 0 : i32
    %c0_i32_0 = arith.constant 0 : i32
    %c0_i32_1 = arith.constant 0 : i32
    return %c0_i32, %arg0, %c0_i32_0 : i32, i32, i32
  }
  func.func @transform_1(%arg0: i32) -> (i32, i32) {
    %c0_i32 = arith.constant 0 : i32
    %c0_i32_0 = arith.constant 0 : i32
    %c0_i32_1 = arith.constant 0 : i32
    return %c0_i32, %c0_i32_0 : i32, i32
  }
  func.func @transform_2(%arg0: i32) -> (i32, i32) {
    %c0_i32 = arith.constant 0 : i32
    %c0_i32_0 = arith.constant 0 : i32
    %c0_i32_1 = arith.constant 0 : i32
    return %c0_i32, %c0_i32_0 : i32, i32
  }
  func.func @transform_3(%arg0: i32) -> (i32, i32) {
    %c0_i32 = arith.constant 0 : i32
    %c0_i32_0 = arith.constant 0 : i32
    %c0_i32_1 = arith.constant 0 : i32
    return %c0_i32, %c0_i32_0 : i32, i32
  }
  func.func @transform_4(%arg0: i32) -> (i32, i32) {
    %c0_i32 = arith.constant 0 : i32
    %c0_i32_0 = arith.constant 0 : i32
    %c0_i32_1 = arith.constant 0 : i32
    return %c0_i32, %c0_i32_0 : i32, i32
  }
  func.func @transform_5(%arg0: i32) -> (i32, i32) {
    %c0_i32 = arith.constant 0 : i32
    %c0_i32_0 = arith.constant 0 : i32
    %c0_i32_1 = arith.constant 0 : i32
    return %c0_i32, %c0_i32_0 : i32, i32
  }
  func.func @transform_6(%arg0: i32) -> (i32, i32, i32) {
    %c0_i32 = arith.constant 0 : i32
    %c0_i32_0 = arith.constant 0 : i32
    %c0_i32_1 = arith.constant 0 : i32
    %c0_i32_2 = arith.constant 0 : i32
    return %c0_i32, %c0_i32_0, %c0_i32_1 : i32, i32, i32
  }
  func.func @transform_7(%arg0: i32) -> (i32, i32) {
    %c0_i32 = arith.constant 0 : i32
    %c0_i32_0 = arith.constant 0 : i32
    %c0_i32_1 = arith.constant 0 : i32
    return %c0_i32, %c0_i32_0 : i32, i32
  }
  func.func @transform_8(%arg0: i32) -> (i32, i32) {
    %c0_i32 = arith.constant 0 : i32
    %c0_i32_0 = arith.constant 0 : i32
    %c0_i32_1 = arith.constant 0 : i32
    return %c0_i32, %c0_i32_0 : i32, i32
  }
  func.func @transform_9(%arg0: i32) -> (i32, i32) {
    %c0_i32 = arith.constant 0 : i32
    %c0_i32_0 = arith.constant 0 : i32
    %c0_i32_1 = arith.constant 0 : i32
    return %c0_i32, %c0_i32_0 : i32, i32
  }
  func.func @transform_10(%arg0: i32) -> (i32, i32) {
    %c0_i32 = arith.constant 0 : i32
    %c0_i32_0 = arith.constant 0 : i32
    return %arg0, %c0_i32 : i32, i32
  }
}

</mosaic_0001>

<bundles_post_ra>
// kernel: _forward_impl.1
= control target key start
LH: loop header
LB: loop body
LE: loop exit
PB: predicated region body
PF: predicated region fallthrough
CT: control target
= control target key end

     0   :  { %v21189_v1 = vmov 0   ;;  %vm358_vm0 = vcmask 1041408   ;;  %vm336_vm1 = vcmask 687104   ;;  %v21187_v37 = vmov 0.0   ;;  %s15472_s25 = smov 96   ;;  %s21174_s1 = inlined_call_operand.vmem [shape: bf16[84,832], index: 1, kind: input, shape index: {}]   ;;  %s21175_s0 = inlined_call_operand.vmem [shape: f32[14,8,84], index: 0, kind: input, shape index: {}]   ;;  %s21176_s3 = inlined_call_operand.vmem [shape: bf16[832,448], index: 3, kind: input, shape index: {}]   ;;  %s21177_s2 = inlined_call_operand.vmem [shape: f32[1,832], index: 2, kind: input, shape index: {}]   ;;  %s21178_s4 = inlined_call_operand.vmem [shape: bf16[832,448], index: 4, kind: input, shape index: {}]   ;;  %s21179_s6 = inlined_call_operand.vmem [shape: bf16[13,416,256], index: 6, kind: input, shape index: {}]   ;;  %s21180_s5 = inlined_call_operand.vmem [shape: f32[1,448], index: 5, kind: input, shape index: {}]   ;;  %s21181_s7 = inlined_call_operand.vmem [shape: f32[1,256], index: 7, kind: input, shape index: {}]   ;;  %s21182_s8 = inlined_call_operand.vmem [shape: bf16[256,128], index: 8, kind: input, shape index: {}]   ;;  %s21183_s9 = inlined_call_operand.vmem [shape: f32[1,128], index: 9, kind: input, shape index: {}]   ;;  %s21184_s10 = inlined_call_operand.vmem [shape: f32[8,128], index: 10, kind: output, shape index: {}]  }
   0x1   :  { %v13750_v0 = vld [vmem:[%s21174_s1 + $0x4] ss:$28 sps:$4 sm:$0xff]   ;;  %412 = vmatprep.mubr.bf16.mxu0 %v21189_v1  ;;  %555 = vmatprep.mubr.bf16.mxu1 %v21189_v1  ;;  %v13753_v3 = vld [vmem:[%s21174_s1 + $0x3c] ss:$28 sps:$4 sm:$0xff]   ;;  %v13756_v5 = vld [vmem:[%s21174_s1 + $0x74] ss:$28 sps:$4 sm:$0xff]  }
   0x2   :  { %v13752_v2 = vld [vmem:[%s21174_s1] ss:$28 sps:$4 sm:$0xff]   ;;  %380 = vmatprep.subr.bf16.mxu0 %v13750_v0  ;;  %v13755_v4 = vld [vmem:[%s21174_s1 + $0x38] ss:$28 sps:$4 sm:$0xff]   ;;  %v13758_v6 = vld [vmem:[%s21174_s1 + $0x70] ss:$28 sps:$4 sm:$0xff]  }
   0x3   :  { %381 = vmatpush1.bf16.msra.mxu0 %v13752_v2  ;;  %v13759_v7 = vld [vmem:[%s21174_s1 + $0xac] ss:$28 sps:$4 sm:$0xff]   ;;  %v13772_v10 = vld [vmem:[%s21174_s1 + $0x44] ss:$28 sps:$4 sm:$0xff]   ;;  %v97_v13 = vld [vmem:[%s21174_s1 + $0x118] sm:$0x33] }
   0x4   :  { %382 = vmatprep.subr.bf16.mxu0 %v13753_v3  ;;  %v13769_v8 = vld [vmem:[%s21174_s1 + $0xc] ss:$28 sps:$4 sm:$0xff]   ;;  %v13762_v12 = vld [vmem:[%s21174_s1 + $0xe4] ss:$28 sps:$4 sm:$0xff]   ;;  %v13775_v15 = vld [vmem:[%s21174_s1 + $0x7c] ss:$28 sps:$4 sm:$0xff]   ;;  %v11296_v17 = vcombine.high %v97_v13, %v97_v13  ;;  %v11295_v18 = vcombine.low %v97_v13, %v97_v13 }
   0x5   :  { %v13767_v9 = vld [vmem:[%s21174_s1 + $0x8] ss:$28 sps:$4 sm:$0xff]   ;;  %13182 = vmatprep.subr.bf16.mxu1 %v13769_v8  ;;  %v13770_v14 = vld [vmem:[%s21174_s1 + $0x40] ss:$28 sps:$4 sm:$0xff]   ;;  %v13773_v19 = vld [vmem:[%s21174_s1 + $0x78] ss:$28 sps:$4 sm:$0xff]  }
   0x6   :  { %v13761_v11 = vld [vmem:[%s21174_s1 + $0xa8] ss:$28 sps:$4 sm:$0xff]   ;;  %13188 = vmatpush1.bf16.msra.mxu1 %v13767_v9  ;;  %v13764_v16 = vld [vmem:[%s21174_s1 + $0xe0] ss:$28 sps:$4 sm:$0xff]   ;;  %v13778_v20 = vld [vmem:[%s21174_s1 + $0xb4] ss:$28 sps:$4 sm:$0xff]  }
   0x7   :  { %383 = vmatpush1.bf16.msra.mxu0 %v13755_v4  ;;  %13183 = vmatprep.subr.bf16.mxu1 %v13772_v10  ;;  %v36_v21 = vld [vmem:[%s21175_s0] sm:$0xff]  ;;  %v37_v22 = vld [vmem:[%s21175_s0 + $0x8] sm:$0xff]  ;;  %v360_v23 = vsel %vm358_vm0, %v11295_v18, 0  ;;  %v38_v28 = vld [vmem:[%s21175_s0 + $0x10] sm:$0xff]  ;;  %vm15471_vm2 = vmmov 0   ;;  %vm2536_vm3 = vcmask 523264  }
   0x8   :  { %384 = vmatprep.subr.bf16.mxu0 %v13756_v5  ;;  %v13776_v24 = vld [vmem:[%s21174_s1 + $0xb0] ss:$28 sps:$4 sm:$0xff]   ;;  %v15595_v25 = vpack.c.bf16 %v37_v22, %v36_v21  ;;  %v98_v27 = vld [vmem:[%s21174_s1 + $0x120] sm:$0x33]  ;;  %v39_v30 = vld [vmem:[%s21175_s0 + $0x18] sm:$0xff]  ;;  %vm5548_vm4 = vcmask 785408  }
   0x9   :  { %v13781_v26 = vld [vmem:[%s21174_s1 + $0xec] ss:$28 sps:$4 sm:$0xff]   ;;  %v11298_v31 = vcombine.high %v98_v27, %v98_v27  ;;  %v11297_v32 = vcombine.low %v98_v27, %v98_v27  ;;  %v15616_v33 = vpack.c.bf16 %v39_v30, %v38_v28  ;;  %v44_v34 = vld [vmem:[%s21175_s0 + $0x40] sm:$0xff]  ;;  %v13790_v38 = vld [vmem:[%s21174_s1 + $0x18] ss:$28 sps:$4 sm:$0xff]   ;;  %vm6113_vm5 = vcmask 261120  }
   0xa   :  { %13189 = vmatpush1.bf16.msra.mxu1 %v13770_v14  ;;  %v13779_v29 = vld [vmem:[%s21174_s1 + $0xe8] ss:$28 sps:$4 sm:$0xff]   ;;  %v13791_v42 = vld [vmem:[%s21174_s1 + $0x50] ss:$28 sps:$4 sm:$0xff]   ;;  %v47_v45 = vld [vmem:[%s21175_s0 + $0x58] sm:$0xff] }
   0xb   :  { %385 = vmatpush1.bf16.msra.mxu0 %v13758_v6  ;;  %13184 = vmatprep.subr.bf16.mxu1 %v13775_v15  ;;  %v45_v35 = vld [vmem:[%s21175_s0 + $0x48] sm:$0xff]  ;;  %v366_v36 = vsel %vm358_vm0, %v11297_v32, 0  ;;  %v40_v39 = vld [vmem:[%s21175_s0 + $0x20] sm:$0xff]  ;;  %v46_v44 = vld [vmem:[%s21175_s0 + $0x50] sm:$0xff] }
   0xc   :  { %386 = vmatprep.subr.bf16.mxu0 %v13759_v7  ;;  %v15634_v40 = vpack.c.bf16 %v45_v35, %v44_v34  ;;  %v41_v41 = vld [vmem:[%s21175_s0 + $0x28] sm:$0xff]  ;;  %v42_v47 = vld [vmem:[%s21175_s0 + $0x30] sm:$0xff]  ;;  %v15663_v48 = vpack.c.bf16 %v47_v45, %v46_v44  ;;  %v43_v49 = vld [vmem:[%s21175_s0 + $0x38] sm:$0xff] }
   0xd   :  { %v15646_v43 = vpack.c.bf16 %v41_v41, %v40_v39  ;;  %v13795_v46 = vld [vmem:[%s21174_s1 + $0x88] ss:$28 sps:$4 sm:$0xff]   ;;  %v13786_v50 = vld [vmem:[%s21174_s1 + $0x14] ss:$28 sps:$4 sm:$0xff]   ;;  %v13799_v51 = vld [vmem:[%s21174_s1 + $0xc0] ss:$28 sps:$4 sm:$0xff]   ;;  %v15680_v52 = vpack.c.bf16 %v43_v49, %v42_v47 }
   0xe   :  { %13190 = vmatpush1.bf16.msra.mxu1 %v13773_v19  ;;  %v48_v53 = vld [vmem:[%s21175_s0 + $0x60] sm:$0xff]  ;;  %v49_v54 = vld [vmem:[%s21175_s0 + $0x68] sm:$0xff]  ;;  %v13803_v55 = vld [vmem:[%s21174_s1 + $0xf8] ss:$28 sps:$4 sm:$0xff]  }
   0xf   :  { %387 = vmatpush1.bf16.msra.mxu0 %v13761_v11  ;;  %13185 = vmatprep.subr.bf16.mxu1 %v13778_v20  ;;  %v15694_v56 = vpack.c.bf16 %v49_v54, %v48_v53  ;;  %v13806_v57 = vld [vmem:[%s21174_s1 + $0x130] ss:$0 sps:$4 sm:$0x33]   ;;  %v13789_v60 = vld [vmem:[%s21174_s1 + $0x4c] ss:$28 sps:$4 sm:$0xff]  }
  0x10   :  { %388 = vmatprep.subr.bf16.mxu0 %v13762_v12  ;;  %v378_v58 = vsel %vm358_vm0, %v13806_v57, 0  ;;  %v13784_v59 = vld [vmem:[%s21174_s1 + $0x10] ss:$28 sps:$4 sm:$0xff]   ;;  %v13787_v61 = vld [vmem:[%s21174_s1 + $0x48] ss:$28 sps:$4 sm:$0xff]  }
  0x11   :  { %v13794_v62 = vld [vmem:[%s21174_s1 + $0x84] ss:$28 sps:$4 sm:$0xff]   ;;  %v13798_v0 = vld [vmem:[%s21174_s1 + $0xbc] ss:$28 sps:$4 sm:$0xff]   ;;  %v13802_v3 = vld [vmem:[%s21174_s1 + $0xf4] ss:$28 sps:$4 sm:$0xff]  }
  0x12   :  { %13191 = vmatpush1.bf16.msra.mxu1 %v13776_v24  ;;  %v13792_v63 = vld [vmem:[%s21174_s1 + $0x80] ss:$28 sps:$4 sm:$0xff]   ;;  %v13796_v2 = vld [vmem:[%s21174_s1 + $0xb8] ss:$28 sps:$4 sm:$0xff]   ;;  %v99_v4 = vld [vmem:[%s21174_s1 + $0x128] sm:$0x33] }
  0x13   :  { %389 = vmatpush1.bf16.msra.mxu0 %v13764_v16  ;;  %13186 = vmatprep.subr.bf16.mxu1 %v13781_v26  ;;  %v13800_v5 = vld [vmem:[%s21174_s1 + $0xf0] ss:$28 sps:$4 sm:$0xff]   ;;  %v11300_v6 = vcombine.high %v99_v4, %v99_v4  ;;  %v11299_v7 = vcombine.low %v99_v4, %v99_v4  ;;  %v13812_v11 = vld [vmem:[%s21176_s3 + $0x24] ss:$16 sps:$4 sm:$0xff]   ;;  %v13936_v44 = vld [vmem:[%s21176_s3 + $0x608] ss:$16 sps:$4 sm:$0xff]  }
  0x14   :  { %11302 = vmatprep.subr.msk.bf16.mxu0 %vm358_vm0, %v11296_v17  ;;  %v13810_v12 = vld [vmem:[%s21176_s3 + $0x20] ss:$16 sps:$4 sm:$0xff]   ;;  %v13815_v13 = vld [vmem:[%s21176_s3 + $0x44] ss:$16 sps:$4 sm:$0xff]   ;;  %v13938_v45 = vld [vmem:[%s21176_s3 + $0x60c] ss:$16 sps:$4 sm:$0xff]  }
  0x15   :  { %v13816_v16 = vld [vmem:[%s21176_s3 + $0x60] ss:$16 sps:$4 sm:$0xff]   ;;  %v13821_v17 = vld [vmem:[%s21176_s3 + $0x84] ss:$16 sps:$4 sm:$0xff]   ;;  %v13942_v47 = vld [vmem:[%s21176_s3 + $0x628] ss:$16 sps:$4 sm:$0xff]  }
  0x16   :  { %13192 = vmatpush1.bf16.msra.mxu1 %v13779_v29  ;;  %v13819_v18 = vld [vmem:[%s21176_s3 + $0x80] ss:$16 sps:$4 sm:$0xff]   ;;  %v13827_v21 = vld [vmem:[%s21176_s3 + $0xc4] ss:$16 sps:$4 sm:$0xff]   ;;  %v13950_v54 = vld [vmem:[%s21176_s3 + $0x64c] ss:$16 sps:$4 sm:$0xff]  }
  0x17   :  { %391 = vmatpush1.bf16.msra.mxu0 %v360_v23  ;;  %13187 = vmatprep.subr.msk.bf16.mxu1 %vm358_vm0, %v11298_v31  ;;  %v13825_v22 = vld [vmem:[%s21176_s3 + $0xc0] ss:$16 sps:$4 sm:$0xff]   ;;  %v13830_v23 = vld [vmem:[%s21176_s3 + $0xe4] ss:$16 sps:$4 sm:$0xff]   ;;  %v13954_v57 = vld [vmem:[%s21176_s3 + $0x668] ss:$16 sps:$4 sm:$0xff]  }
  0x18   :  { %483 = vmatprep.subr.bf16.mxu0 %v13769_v8  ;;  %v13809_v8 = vld [vmem:[%s21176_s3 + $0x4] ss:$16 sps:$4 sm:$0xff]   ;;  %v13834_v28 = vld [vmem:[%s21176_s3 + $0x120] ss:$16 sps:$4 sm:$0xff]  }
  0x19   :  { %v13836_v27 = vld [vmem:[%s21176_s3 + $0x124] ss:$16 sps:$4 sm:$0xff]   ;;  %v13837_v30 = vld [vmem:[%s21176_s3 + $0x140] ss:$16 sps:$4 sm:$0xff]  }
  0x1a   :  { %11303 = vmatmul.mubr.msk.bf16.vlgmr.msra.gmra.mrb[0].mxu0 %vm336_vm1, %v15595_v25  ;;  %13193 = vmatpush1.bf16.msra.mxu1 %v366_v36  ;;  %v13840_v32 = vld [vmem:[%s21176_s3 + $0x160] ss:$16 sps:$4 sm:$0xff]   ;;  %v13848_v35 = vld [vmem:[%s21176_s3 + $0x1a4] ss:$16 sps:$4 sm:$0xff]  }
  0x1b   :  { %484 = vmatpush1.bf16.msra.mxu0 %v13767_v9  ;;  %422 = vmatprep.mubr.bf16.mxu0 %v21189_v1  ;;  %v372_v9 = vsel %vm358_vm0, %v11299_v7, 0  ;;  %v13843_v34 = vld [vmem:[%s21176_s3 + $0x180] ss:$16 sps:$4 sm:$0xff]  }
  0x1c   :  { %485 = vmatprep.subr.bf16.mxu0 %v13772_v10  ;;  %13142 = vmatprep.subr.bf16.mxu1 %v21187_v37  ;;  %v13807_v10 = vld [vmem:[%s21176_s3] ss:$16 sps:$4 sm:$0xff]  }
  0x1d   :  { %11315 = vmatmul.mubr.msk.bf16.vlgmr.msra.gmra.mrb[0].mxu1 %vm336_vm1, %v15634_v40  ;;  %v13849_v39 = vld [vmem:[%s21176_s3 + $0x1c0] ss:$16 sps:$4 sm:$0xff]  }
  0x1e   :  { %13143 = vmatpush3.bf16.msra.mxu1 %v13790_v38  ;;  %565 = vmatprep.mubr.bf16.mxu1 %v21189_v1  ;;  %v13851_v38 = vld [vmem:[%s21176_s3 + $0x1c4] ss:$16 sps:$4 sm:$0xff]   ;;  %v13852_v41 = vld [vmem:[%s21176_s3 + $0x1e0] ss:$16 sps:$4 sm:$0xff]  }
  0x1f   :  { %486 = vmatpush1.bf16.msra.mxu0 %v13770_v14  ;;  %13144 = vmatprep.subr.bf16.mxu1 %v21187_v37  ;;  %v13813_v14 = vld [vmem:[%s21176_s3 + $0x40] ss:$16 sps:$4 sm:$0xff]  }
  0x20   :  { %487 = vmatprep.subr.bf16.mxu0 %v13775_v15  ;;  %v13818_v15 = vld [vmem:[%s21176_s3 + $0x64] ss:$16 sps:$4 sm:$0xff]  }
  0x22   :  { %11304 = vmatmul.mubr.msk.bf16.gmra.mrb[4].mxu0 %vm336_vm1, %v15616_v33  ;;  %13145 = vmatpush3.bf16.msra.mxu1 %v13791_v42  ;;  %v13857_v42 = vld [vmem:[%s21176_s3 + $0x204] ss:$16 sps:$4 sm:$0xff]  }
  0x23   :  { %432 = vmatprep.mubr.bf16.mxu0 %v21189_v1  ;;  %488 = vmatpush1.bf16.msra.mxu0 %v13773_v19  ;;  %v13824_v19 = vld [vmem:[%s21176_s3 + $0xa4] ss:$16 sps:$4 sm:$0xff]  }
  0x24   :  { %489 = vmatprep.subr.bf16.mxu0 %v13778_v20  ;;  %13146 = vmatprep.subr.bf16.mxu1 %v21187_v37  ;;  %v13822_v20 = vld [vmem:[%s21176_s3 + $0xa0] ss:$16 sps:$4 sm:$0xff]  }
  0x25   :  { %11316 = vmatmul.mubr.msk.bf16.gmra.mrb[4].mxu1 %vm336_vm1, %v15663_v48 }
  0x26   :  { %13147 = vmatpush3.bf16.msra.mxu1 %v13795_v46  ;;  %575 = vmatprep.mubr.bf16.mxu1 %v21189_v1 }
  0x27   :  { %490 = vmatpush1.bf16.msra.mxu0 %v13776_v24  ;;  %13148 = vmatprep.subr.bf16.mxu1 %v21187_v37  ;;  %v13828_v24 = vld [vmem:[%s21176_s3 + $0xe0] ss:$16 sps:$4 sm:$0xff]  }
  0x28   :  { %491 = vmatprep.subr.bf16.mxu0 %v13781_v26  ;;  %v13831_v26 = vld [vmem:[%s21176_s3 + $0x100] ss:$16 sps:$4 sm:$0xff]  }
  0x2a   :  { %11305 = vmatmul.mubr.msk.bf16.gmra.mrb[8].mxu0 %vm336_vm1, %v15646_v43  ;;  %13149 = vmatpush3.bf16.msra.mxu1 %v13799_v51 }
  0x2b   :  { %442 = vmatprep.mubr.bf16.mxu0 %v21189_v1  ;;  %492 = vmatpush1.bf16.msra.mxu0 %v13779_v29  ;;  %v13839_v29 = vld [vmem:[%s21176_s3 + $0x144] ss:$16 sps:$4 sm:$0xff]  }
  0x2c   :  { %11310 = vmatprep.subr.msk.bf16.mxu0 %vm358_vm0, %v11298_v31  ;;  %13150 = vmatprep.subr.bf16.mxu1 %v21187_v37  ;;  %v13842_v31 = vld [vmem:[%s21176_s3 + $0x164] ss:$16 sps:$4 sm:$0xff]  }
  0x2d   :  { %11317 = vmatmul.mubr.msk.bf16.gmra.mrb[8].mxu1 %vm336_vm1, %v15694_v56 }
  0x2e   :  { %13151 = vmatpush3.bf16.msra.mxu1 %v13803_v55  ;;  %13154 = vmatprep.mubr.msk.bf16.mxu1 %vm15471_vm2, %v21187_v37 }
  0x2f   :  { %494 = vmatpush1.bf16.msra.mxu0 %v366_v36  ;;  %13152 = vmatprep.subr.bf16.mxu1 %v21187_v37  ;;  %v13846_v36 = vld [vmem:[%s21176_s3 + $0x1a0] ss:$16 sps:$4 sm:$0xff]  }
  0x30   :  { %586 = vmatprep.subr.bf16.mxu0 %v13786_v50  ;;  %v15926_v50 = vld [vmem:[%s21177_s2] sm:$0x7f] }
  0x32   :  { %11306 = vmatmul.mubr.msk.bf16.gmra.mrb[12].mxu0 %vm336_vm1, %v15680_v52  ;;  %13153 = vmatpush3.bf16.msra.mxu1 %v378_v58  ;;  %v13956_v58 = vld [vmem:[%s21176_s3 + $0x66c] ss:$16 sps:$4 sm:$0xff]  }
  0x33   :  { %452 = vmatprep.mubr.bf16.mxu0 %v21189_v1  ;;  %3279 = vmatprep.subr.bf16.mxu1 %v13938_v45 }
  0x35   :  { %13155 = vmatmul.mubr.msk.bf16.vlgmr.msra.gmra.mrb[12].mxu1 %vm336_vm1, %v15595_v25 }
  0x36   :  { %13158 = vmatprep.mubr.msk.bf16.mxu1 %vm15471_vm2, %v21187_v37  ;;  %3280 = vmatpush1.bf16.msra.mxu1 %v13936_v44 }
  0x3a   :  { %11307 = vmatmul.mubr.msk.bf16.gmra.mrb[16].mxu0 %vm336_vm1, %v15634_v40 }
  0x3b   :  { %462 = vmatprep.mubr.bf16.mxu0 %v21189_v1 }
  0x3d   :  { %13159 = vmatmul.mubr.msk.bf16.gmra.mrb[16].mxu1 %vm336_vm1, %v15616_v33 }
  0x3e   :  { %13162 = vmatprep.mubr.msk.bf16.mxu1 %vm15471_vm2, %v21187_v37 }
  0x42   :  { %11308 = vmatmul.mubr.msk.bf16.gmra.mrb[20].mxu0 %vm336_vm1, %v15663_v48 }
  0x43   :  { %472 = vmatprep.mubr.bf16.mxu0 %v21189_v1 }
  0x45   :  { %13163 = vmatmul.mubr.msk.bf16.gmra.mrb[20].mxu1 %vm336_vm1, %v15646_v43 }
  0x46   :  { %13166 = vmatprep.mubr.msk.bf16.mxu1 %vm15471_vm2, %v21187_v37 }
  0x4a   :  { %11309 = vmatmul.mubr.msk.bf16.gmra.mrb[24].mxu0 %vm336_vm1, %v15694_v56 }
  0x4b   :  { %515 = vmatprep.mubr.bf16.mxu0 %v21189_v1 }
  0x4d   :  { %13167 = vmatmul.mubr.msk.bf16.gmra.mrb[24].mxu1 %vm336_vm1, %v15680_v52 }
  0x4e   :  { %13170 = vmatprep.mubr.msk.bf16.mxu1 %vm15471_vm2, %v21187_v37 }
  0x52   :  { %11311 = vmatmul.mubr.msk.bf16.vlgmr.msra.gmra.mrb[28].mxu0 %vm336_vm1, %v15595_v25 }
  0x53   :  { %525 = vmatprep.mubr.bf16.mxu0 %v21189_v1  ;;  %587 = vmatpush1.bf16.msra.mxu0 %v13784_v59 }
  0x54   :  { %588 = vmatprep.subr.bf16.mxu0 %v13789_v60 }
  0x55   :  { %13171 = vmatmul.mubr.msk.bf16.gmra.mrb[28].mxu1 %vm336_vm1, %v15634_v40 }
  0x56   :  { %13174 = vmatprep.mubr.msk.bf16.mxu1 %vm15471_vm2, %v21187_v37 }
  0x57   :  { %589 = vmatpush1.bf16.msra.mxu0 %v13787_v61 }
  0x58   :  { %590 = vmatprep.subr.bf16.mxu0 %v13794_v62 }
  0x5a   :  { %11312 = vmatmul.mubr.msk.bf16.gmra.mrb[32].mxu0 %vm336_vm1, %v15616_v33 }
  0x5b   :  { %535 = vmatprep.mubr.bf16.mxu0 %v21189_v1  ;;  %591 = vmatpush1.bf16.msra.mxu0 %v13792_v63 }
  0x5c   :  { %592 = vmatprep.subr.bf16.mxu0 %v13798_v0 }
  0x5d   :  { %13175 = vmatmul.mubr.msk.bf16.gmra.mrb[32].mxu1 %vm336_vm1, %v15663_v48 }
  0x5e   :  { %13178 = vmatprep.mubr.msk.bf16.mxu1 %vm15471_vm2, %v21187_v37 }
  0x5f   :  { %593 = vmatpush1.bf16.msra.mxu0 %v13796_v2 }
  0x60   :  { %594 = vmatprep.subr.bf16.mxu0 %v13802_v3 }
  0x62   :  { %11313 = vmatmul.mubr.msk.bf16.gmra.mrb[36].mxu0 %vm336_vm1, %v15646_v43 }
  0x63   :  { %545 = vmatprep.mubr.bf16.mxu0 %v21189_v1  ;;  %595 = vmatpush1.bf16.msra.mxu0 %v13800_v5 }
  0x64   :  { %11318 = vmatprep.subr.msk.bf16.mxu0 %vm358_vm0, %v11300_v6 }
  0x65   :  { %13179 = vmatmul.mubr.msk.bf16.gmra.mrb[36].mxu1 %vm336_vm1, %v15694_v56 }
  0x66   :  { %3311 = vmatprep.mubr.bf16.mxu1 %v21189_v1 }
  0x67   :  { %597 = vmatpush1.bf16.msra.mxu0 %v372_v9 }
  0x68   :  { %2558 = vmatprep.subr.bf16.mxu0 %v13809_v8 }
  0x6a   :  { %11314 = vmatmul.mubr.msk.bf16.gmra.mrb[40].mxu0 %vm336_vm1, %v15680_v52 }
  0x6b   :  { %618 = vmatprep.mubr.bf16.mxu0 %v21189_v1 }
  0x72   :  { %11319 = vmatmul.mubr.msk.bf16.vlgmr.msra.gmra.mrb[44].mxu0 %vm336_vm1, %v15595_v25  ;;  %v13833_v25 = vld [vmem:[%s21176_s3 + $0x104] ss:$16 sps:$4 sm:$0xff]  }
  0x73   :  { %628 = vmatprep.mubr.bf16.mxu0 %v21189_v1  ;;  %2559 = vmatpush1.bf16.msra.mxu0 %v13807_v10 }
  0x74   :  { %2560 = vmatprep.subr.bf16.mxu0 %v13812_v11  ;;  %v13855_v11 = vld [vmem:[%s21176_s3 + $0x200] ss:$16 sps:$4 sm:$0xff]  }
  0x77   :  { %2561 = vmatpush1.bf16.msra.mxu0 %v13810_v12 }
  0x78   :  { %2562 = vmatprep.subr.bf16.mxu0 %v13815_v13 }
  0x7a   :  { %11320 = vmatmul.mubr.msk.bf16.gmra.mrb[48].mxu0 %vm336_vm1, %v15616_v33  ;;  %v13845_v33 = vld [vmem:[%s21176_s3 + $0x184] ss:$16 sps:$4 sm:$0xff]  }
  0x7b   :  { %638 = vmatprep.mubr.bf16.mxu0 %v21189_v1  ;;  %2563 = vmatpush1.bf16.msra.mxu0 %v13813_v14 }
  0x7c   :  { %2564 = vmatprep.subr.bf16.mxu0 %v13818_v15  ;;  %v13860_v15 = vld [vmem:[%s21176_s3 + $0x224] ss:$16 sps:$4 sm:$0xff]  }
  0x7f   :  { %2565 = vmatpush1.bf16.msra.mxu0 %v13816_v16 }
  0x80   :  { %2566 = vmatprep.subr.bf16.mxu0 %v13821_v17 }
  0x82   :  { %11321 = vmatmul.mubr.msk.bf16.gmra.mrb[52].mxu0 %vm336_vm1, %v15646_v43  ;;  %v103_v43 = vlaneseq }
  0x83   :  { %648 = vmatprep.mubr.bf16.mxu0 %v21189_v1  ;;  %2567 = vmatpush1.bf16.msra.mxu0 %v13819_v18 }
  0x84   :  { %2568 = vmatprep.subr.bf16.mxu0 %v13824_v19  ;;  %v15912_v46 = vshrl.u32 %v103_v43, 7  ;;  %v13861_v43 = vld [vmem:[%s21176_s3 + $0x240] ss:$16 sps:$4 sm:$0xff]  }
  0x86   :  { %21285 = vst [vmem:[#allocation2_spill] sm:$0xff] %v15912_v46  ;;  %v15921_v49 = vsub.s32 0, %v15912_v46  ;;  %v15929_v51 = vsub.s32 1, %v15912_v46  ;;  %v21186_v5 = vsub.s32 2, %v15912_v46  ;;  %v21185_v8 = vsub.s32 3, %v15912_v46 }
  0x87   :  { %2569 = vmatpush1.bf16.msra.mxu0 %v13822_v20 }
  0x88   :  { %2570 = vmatprep.subr.bf16.mxu0 %v13827_v21  ;;  %21286 = vst [vmem:[#allocation3_spill] sm:$0xff] %v15921_v49  ;;  %21287 = vst [vmem:[#allocation4_spill] sm:$0xff] %v15929_v51  ;;  %v15936_v53 = vrot.slane %v15926_v50, %v15921_v49  ;;  %v15943_v55 = vrot.slane %v15926_v50, %v15929_v51  ;;  %v15971_v16 = vrot.slane %v15926_v50, %v21186_v5 }
  0x89   :  { %v15978_v19 = vrot.slane %v15926_v50, %v21185_v8 }
  0x8a   :  { %11322 = vmatmul.mubr.msk.bf16.gmra.mrb[56].mxu0 %vm336_vm1, %v15680_v52  ;;  %v13948_v52 = vld [vmem:[%s21176_s3 + $0x648] ss:$16 sps:$4 sm:$0xff]  }
  0x8b   :  { %658 = vmatprep.mubr.bf16.mxu0 %v21189_v1  ;;  %2571 = vmatpush1.bf16.msra.mxu0 %v13825_v22 }
  0x8c   :  { %2572 = vmatprep.subr.bf16.mxu0 %v13830_v23 }
  0x8f   :  { %2573 = vmatpush1.bf16.msra.mxu0 %v13828_v24 }
  0x90   :  { %2574 = vmatprep.subr.bf16.mxu0 %v13833_v25 }
  0x92   :  { %11323 = vmatmul.mubr.msk.bf16.gmra.mrb[60].mxu0 %vm336_vm1, %v15634_v40  ;;  %v13854_v40 = vld [vmem:[%s21176_s3 + $0x1e4] ss:$16 sps:$4 sm:$0xff]  }
  0x93   :  { %668 = vmatprep.mubr.bf16.mxu0 %v21189_v1  ;;  %2575 = vmatpush1.bf16.msra.mxu0 %v13831_v26 }
  0x94   :  { %2576 = vmatprep.subr.bf16.mxu0 %v13836_v27  ;;  %v13858_v27 = vld [vmem:[%s21176_s3 + $0x220] ss:$16 sps:$4 sm:$0xff]  }
  0x97   :  { %2577 = vmatpush1.bf16.msra.mxu0 %v13834_v28 }
  0x98   :  { %2578 = vmatprep.subr.bf16.mxu0 %v13839_v29 }
  0x9a   :  { %11324 = vmatmul.mubr.msk.bf16.gmra.mrb[64].mxu0 %vm336_vm1, %v15663_v48  ;;  %v13944_v48 = vld [vmem:[%s21176_s3 + $0x62c] ss:$16 sps:$4 sm:$0xff]  }
  0x9b   :  { %678 = vmatprep.mubr.bf16.mxu0 %v21189_v1  ;;  %2579 = vmatpush1.bf16.msra.mxu0 %v13837_v30 }
  0x9c   :  { %2580 = vmatprep.subr.bf16.mxu0 %v13842_v31  ;;  %3281 = vmatprep.subr.bf16.mxu1 %v13944_v48 }
  0x9d   :  { %3282 = vmatpush1.bf16.msra.mxu1 %v13942_v47 }
  0x9e   :  { %3283 = vmatprep.subr.bf16.mxu1 %v13950_v54 }
  0x9f   :  { %2581 = vmatpush1.bf16.msra.mxu0 %v13840_v32  ;;  %v13863_v32 = vld [vmem:[%s21176_s3 + $0x244] ss:$16 sps:$4 sm:$0xff]  }
  0xa0   :  { %2582 = vmatprep.subr.bf16.mxu0 %v13845_v33 }
  0xa1   :  { %3284 = vmatpush1.bf16.msra.mxu1 %v13948_v52  ;;  %v13866_v52 = vld [vmem:[%s21176_s3 + $0x264] ss:$16 sps:$4 sm:$0xff]  }
  0xa2   :  { %11325 = vmatmul.mubr.msk.bf16.gmra.mrb[68].mxu0 %vm336_vm1, %v15694_v56  ;;  %3285 = vmatprep.subr.bf16.mxu1 %v13956_v58 }
  0xa3   :  { %2583 = vmatpush1.bf16.msra.mxu0 %v13843_v34 }
  0xa4   :  { %2584 = vmatprep.subr.bf16.mxu0 %v13848_v35 }
  0xa5   :  { %3286 = vmatpush1.bf16.msra.mxu1 %v13954_v57 }
  0xa7   :  { %2585 = vmatpush1.bf16.msra.mxu0 %v13846_v36 }
  0xa8   :  { %2586 = vmatprep.subr.bf16.mxu0 %v13851_v38 }
  0xab   :  { %2587 = vmatpush1.bf16.msra.mxu0 %v13849_v39 }
  0xac   :  { %2588 = vmatprep.subr.bf16.mxu0 %v13854_v40 }
  0xaf   :  { %2589 = vmatpush1.bf16.msra.mxu0 %v13852_v41 }
  0xb0   :  { %2661 = vmatprep.subr.bf16.mxu0 %v13857_v42 }
  0xed   :  { %v414_v56 = vpop.f32.mrb[0].mxu0 }
  0xee   :  { %v415_v59 = vadd.f32 %v414_v56, %v15936_v53  ;;  %v416_v60 = vpop.f32.mrb[1].mxu0 }
  0xef   :  { %v417_v61 = vadd.f32 %v416_v60, %v15943_v55  ;;  %v418_v62 = vpop.f32.mrb[2].mxu0 }
  0xf0   :  { %v419_v63 = vadd.f32 %v418_v62, %v15936_v53  ;;  %v420_v0 = vpop.f32.mrb[3].mxu0  ;;  %v778_v3 = vmax.f32 %v415_v59, 0.0  ;;  %v557_v20 = vpop.f32.mrb[0].mxu1 }
  0xf1   :  { %v421_v2 = vadd.f32 %v420_v0, %v15943_v55  ;;  %v779_v6 = vmax.f32 %v417_v61, 0.0  ;;  %v558_v24 = vadd.f32 %v557_v20, %v15971_v16  ;;  %v559_v25 = vpop.f32.mrb[1].mxu1 }
  0xf2   :  { %v785_v4 = vmax.f32 %v419_v63, 0.0  ;;  %v560_v29 = vadd.f32 %v559_v25, %v15978_v19  ;;  %v561_v30 = vpop.f32.mrb[2].mxu1 }
  0xf3   :  { %v786_v7 = vmax.f32 %v421_v2, 0.0  ;;  %v836_v33 = vmax.f32 %v558_v24, 0.0  ;;  %v562_v34 = vadd.f32 %v561_v30, %v15971_v16  ;;  %v563_v35 = vpop.f32.mrb[3].mxu1  ;;  %v13867_v24 = vld [vmem:[%s21176_s3 + $0x280] ss:$16 sps:$4 sm:$0xff]  }
  0xf4   :  { %v15957_v9 = vpack.c.bf16 %v785_v4, %v778_v3  ;;  %v837_v38 = vmax.f32 %v560_v29, 0.0  ;;  %v564_v39 = vadd.f32 %v563_v35, %v15978_v19  ;;  %v13864_v3 = vld [vmem:[%s21176_s3 + $0x260] ss:$16 sps:$4 sm:$0xff]   ;;  %v13872_v29 = vld [vmem:[%s21176_s3 + $0x2a4] ss:$16 sps:$4 sm:$0xff]  }
  0xf5   :  { %v15959_v10 = vpack.c.bf16 %v786_v7, %v779_v6  ;;  %v424_v12 = vpop.f32.mrb[4].mxu0  ;;  %v843_v41 = vmax.f32 %v562_v34, 0.0 }
  0xf6   :  { %v425_v13 = vadd.f32 %v424_v12, %v15936_v53  ;;  %v426_v14 = vpop.f32.mrb[5].mxu0  ;;  %v844_v45 = vmax.f32 %v564_v39, 0.0  ;;  %v13869_v12 = vld [vmem:[%s21176_s3 + $0x284] ss:$16 sps:$4 sm:$0xff]  }
  0xf7   :  { %2590 = vmatprep.mubr.bf16.mxu0 %v15959_v10  ;;  %v427_v17 = vadd.f32 %v426_v14, %v15943_v55  ;;  %v428_v18 = vpop.f32.mrb[6].mxu0  ;;  %v16004_v54 = vpack.c.bf16 %v843_v41, %v836_v33  ;;  %v129_v41 = vsub.s32 6, %v15912_v46 }
  0xf8   :  { %2591 = vmatmul.mubr.bf16.vlgmr.msra.gmra.mrb[72].mxu0 %v15957_v9  ;;  %v792_v21 = vmax.f32 %v425_v13, 0.0  ;;  %v429_v22 = vadd.f32 %v428_v18, %v15936_v53  ;;  %v430_v23 = vpop.f32.mrb[7].mxu0  ;;  %v16008_v58 = vpack.c.bf16 %v844_v45, %v837_v38  ;;  %v567_v59 = vpop.f32.mrb[4].mxu1 }
  0xf9   :  { %2662 = vmatpush1.bf16.msra.mxu0 %v13855_v11  ;;  %v793_v26 = vmax.f32 %v427_v17, 0.0  ;;  %v431_v28 = vadd.f32 %v430_v23, %v15943_v55  ;;  %v568_v63 = vadd.f32 %v567_v59, %v15971_v16  ;;  %v569_v0 = vpop.f32.mrb[5].mxu1 }
  0xfa   :  { %v799_v31 = vmax.f32 %v429_v22, 0.0  ;;  %2663 = vmatprep.subr.bf16.mxu0 %v13860_v15  ;;  %v570_v6 = vadd.f32 %v569_v0, %v15978_v19  ;;  %v571_v7 = vpop.f32.mrb[6].mxu1 }
  0xfb   :  { %v800_v36 = vmax.f32 %v431_v28, 0.0  ;;  %v850_v13 = vmax.f32 %v568_v63, 0.0  ;;  %v572_v14 = vadd.f32 %v571_v7, %v15971_v16  ;;  %v573_v15 = vpop.f32.mrb[7].mxu1 }
  0xfc   :  { %v15993_v40 = vpack.c.bf16 %v799_v31, %v792_v21  ;;  %v851_v18 = vmax.f32 %v570_v6, 0.0  ;;  %v574_v20 = vadd.f32 %v573_v15, %v15978_v19 }
  0xfd   :  { %v15995_v42 = vpack.c.bf16 %v800_v36, %v793_v26  ;;  %2664 = vmatpush1.bf16.msra.mxu0 %v13858_v27  ;;  %v434_v44 = vpop.f32.mrb[8].mxu0  ;;  %v857_v22 = vmax.f32 %v572_v14, 0.0 }
  0xfe   :  { %2665 = vmatprep.subr.bf16.mxu0 %v13863_v32  ;;  %v435_v47 = vadd.f32 %v434_v44, %v15936_v53  ;;  %v436_v48 = vpop.f32.mrb[9].mxu0  ;;  %v858_v26 = vmax.f32 %v574_v20, 0.0  ;;  %v13870_v44 = vld [vmem:[%s21176_s3 + $0x2a0] ss:$16 sps:$4 sm:$0xff]  }
  0xff   :  { %v437_v56 = vadd.f32 %v436_v48, %v15943_v55  ;;  %v438_v57 = vpop.f32.mrb[10].mxu0  ;;  %2600 = vmatprep.mubr.bf16.mxu0 %v15995_v42  ;;  %v16034_v30 = vpack.c.bf16 %v857_v22, %v850_v13 }
 0x100   :  { %v806_v60 = vmax.f32 %v435_v47, 0.0  ;;  %v439_v61 = vadd.f32 %v438_v57, %v15936_v53  ;;  %v440_v62 = vpop.f32.mrb[11].mxu0  ;;  %2601 = vmatmul.mubr.bf16.gmra.mrb[76].mxu0 %v15993_v40  ;;  %v16038_v33 = vpack.c.bf16 %v858_v26, %v851_v18  ;;  %v16040_v34 = vpop.f32.mrb[8].mxu1  ;;  %v13876_v18 = vld [vmem:[%s21176_s3 + $0x2e0] ss:$16 sps:$4 sm:$0xff]  }
 0x101   :  { %2666 = vmatpush1.bf16.msra.mxu0 %v13861_v43  ;;  %v807_v2 = vmax.f32 %v437_v56, 0.0  ;;  %v441_v4 = vadd.f32 %v440_v62, %v15943_v55  ;;  %v16044_v39 = vpop.f32.mrb[9].mxu1  ;;  %v13873_v62 = vld [vmem:[%s21176_s3 + $0x2c0] ss:$16 sps:$4 sm:$0xff]  }
 0x102   :  { %v813_v11 = vmax.f32 %v439_v61, 0.0  ;;  %2667 = vmatprep.subr.bf16.mxu0 %v13866_v52  ;;  %v581_v47 = vpop.f32.mrb[10].mxu1  ;;  %v13875_v52 = vld [vmem:[%s21176_s3 + $0x2c4] ss:$16 sps:$4 sm:$0xff]  }
 0x103   :  { %v814_v17 = vmax.f32 %v441_v4, 0.0  ;;  %v583_v56 = vpop.f32.mrb[11].mxu1 }
 0x104   :  { %v16023_v21 = vpack.c.bf16 %v813_v11, %v806_v60  ;;  %v16057_v60 = vrot.slane %v15926_v50, %v129_v41 }
 0x105   :  { %v16025_v23 = vpack.c.bf16 %v814_v17, %v807_v2  ;;  %2668 = vmatpush1.bf16.msra.mxu0 %v13864_v3  ;;  %v444_v25 = vpop.f32.mrb[12].mxu0  ;;  %v13878_v3 = vld [vmem:[%s21176_s3 + $0x2e4] ss:$16 sps:$4 sm:$0xff]  }
 0x106   :  { %2669 = vmatprep.subr.bf16.mxu0 %v13869_v12  ;;  %v445_v27 = vadd.f32 %v444_v25, %v15936_v53  ;;  %v446_v28 = vpop.f32.mrb[13].mxu0  ;;  %v13881_v25 = vld [vmem:[%s21176_s3 + $0x304] ss:$16 sps:$4 sm:$0xff]  }
 0x107   :  { %v447_v31 = vadd.f32 %v446_v28, %v15943_v55  ;;  %v448_v32 = vpop.f32.mrb[14].mxu0  ;;  %2610 = vmatprep.mubr.bf16.mxu0 %v16025_v23 }
 0x108   :  { %v820_v35 = vmax.f32 %v445_v27, 0.0  ;;  %v449_v36 = vadd.f32 %v448_v32, %v15936_v53  ;;  %v450_v38 = vpop.f32.mrb[15].mxu0  ;;  %2611 = vmatmul.mubr.bf16.gmra.mrb[80].mxu0 %v16023_v21  ;;  %v723_v7 = vpop.f32.mrb[12].mxu1 }
 0x109   :  { %2670 = vmatpush1.bf16.msra.mxu0 %v13867_v24  ;;  %v821_v43 = vmax.f32 %v447_v31, 0.0  ;;  %v451_v45 = vadd.f32 %v450_v38, %v15943_v55  ;;  %v724_v14 = vadd.f32 %v723_v7, %v16057_v60  ;;  %v13156_v15 = vpop.f32.mrb[13].mxu1 }
 0x10a   :  { %v827_v48 = vmax.f32 %v449_v36, 0.0  ;;  %2671 = vmatprep.subr.bf16.mxu0 %v13872_v29  ;;  %v726_v22 = vpop.f32.mrb[14].mxu1  ;;  %v13879_v36 = vld [vmem:[%s21176_s3 + $0x300] ss:$16 sps:$4 sm:$0xff]  }
 0x10b   :  { %v828_v57 = vmax.f32 %v451_v45, 0.0  ;;  %v784_v26 = vmax.f32 %v724_v14, 0.0  ;;  %v727_v27 = vadd.f32 %v726_v22, %v16057_v60  ;;  %v13157_v28 = vpop.f32.mrb[15].mxu1  ;;  %v13977_v22 = vld [vmem:[%s21178_s4 + $0x624] ss:$16 sps:$4 sm:$0xff]  }
 0x10c   :  { %v16054_v59 = vpack.c.bf16 %v827_v48, %v820_v35 }
 0x10d   :  { %v16059_v61 = vpack.c.bf16 %v828_v57, %v821_v43  ;;  %2672 = vmatpush1.bf16.msra.mxu0 %v13870_v44  ;;  %v454_v63 = vpop.f32.mrb[16].mxu0  ;;  %v791_v32 = vmax.f32 %v727_v27, 0.0  ;;  %v13884_v44 = vld [vmem:[%s21176_s3 + $0x324] ss:$16 sps:$4 sm:$0xff]   ;;  %v13975_v27 = vld [vmem:[%s21178_s4 + $0x620] ss:$16 sps:$4 sm:$0xff]  }
 0x10e   :  { %2673 = vmatprep.subr.bf16.mxu0 %v13875_v52  ;;  %v455_v0 = vadd.f32 %v454_v63, %v15936_v53  ;;  %v456_v2 = vpop.f32.mrb[17].mxu0  ;;  %v13882_v52 = vld [vmem:[%s21176_s3 + $0x320] ss:$16 sps:$4 sm:$0xff]  }
 0x10f   :  { %v457_v4 = vadd.f32 %v456_v2, %v15943_v55  ;;  %v458_v6 = vpop.f32.mrb[18].mxu0  ;;  %2620 = vmatprep.mubr.bf16.mxu0 %v16059_v61  ;;  %v16092_v45 = vpack.c.bf16 %v791_v32, %v784_v26 }
 0x110   :  { %v834_v11 = vmax.f32 %v455_v0, 0.0  ;;  %v459_v12 = vadd.f32 %v458_v6, %v15936_v53  ;;  %v460_v13 = vpop.f32.mrb[19].mxu0  ;;  %2621 = vmatmul.mubr.bf16.gmra.mrb[84].mxu0 %v16054_v59  ;;  %v731_v56 = vpop.f32.mrb[16].mxu1  ;;  %v13887_v0 = vld [vmem:[%s21176_s3 + $0x344] ss:$16 sps:$4 sm:$0xff]  }
 0x111   :  { %2674 = vmatpush1.bf16.msra.mxu0 %v13873_v62  ;;  %v835_v17 = vmax.f32 %v457_v4, 0.0  ;;  %v461_v20 = vadd.f32 %v460_v13, %v15943_v55  ;;  %21288 = vst [vmem:[#allocation5_spill] sm:$0xff] %v16092_v45  ;;  %v732_v2 = vadd.f32 %v731_v56, %v16057_v60  ;;  %11548 = vmatmul.mubr.msk.bf16.vlgmr.msra.gmra.mrb[40].mxu1 %vm2536_vm3, %v16092_v45 }
 0x112   :  { %v841_v24 = vmax.f32 %v459_v12, 0.0  ;;  %2675 = vmatprep.subr.bf16.mxu0 %v13878_v3  ;;  %v13160_v3 = vpop.f32.mrb[17].mxu1  ;;  %3321 = vmatprep.mubr.bf16.mxu1 %v21189_v1 }
 0x113   :  { %v842_v29 = vmax.f32 %v461_v20, 0.0  ;;  %v734_v7 = vpop.f32.mrb[18].mxu1  ;;  %v798_v13 = vmax.f32 %v732_v2, 0.0  ;;  %v13885_v20 = vld [vmem:[%s21176_s3 + $0x340] ss:$16 sps:$4 sm:$0xff]  }
 0x114   :  { %v16081_v31 = vpack.c.bf16 %v841_v24, %v834_v11  ;;  %v13972_v11 = vld [vmem:[%s21178_s4 + $0x600] ss:$16 sps:$4 sm:$0xff]   ;;  %v735_v14 = vadd.f32 %v734_v7, %v16057_v60  ;;  %v13161_v15 = vpop.f32.mrb[19].mxu1 }
 0x115   :  { %v16083_v35 = vpack.c.bf16 %v842_v29, %v835_v17  ;;  %2676 = vmatpush1.bf16.msra.mxu0 %v13876_v18  ;;  %v464_v38 = vpop.f32.mrb[20].mxu0  ;;  %v13974_v17 = vld [vmem:[%s21178_s4 + $0x604] ss:$16 sps:$4 sm:$0xff]   ;;  %v13981_v3 = vld [vmem:[%s21178_s4 + $0x640] ss:$16 sps:$4 sm:$0xff]  }
 0x116   :  { %2677 = vmatprep.subr.bf16.mxu0 %v13881_v25  ;;  %v465_v41 = vadd.f32 %v464_v38, %v15936_v53  ;;  %v466_v43 = vpop.f32.mrb[21].mxu0  ;;  %v13890_v25 = vld [vmem:[%s21176_s3 + $0x364] ss:$16 sps:$4 sm:$0xff]   ;;  %v805_v26 = vmax.f32 %v735_v14, 0.0  ;;  %4731 = vmatprep.subr.bf16.mxu1 %v13974_v17  ;;  %v13891_v7 = vld [vmem:[%s21176_s3 + $0x380] ss:$16 sps:$4 sm:$0xff]  }
 0x117   :  { %v467_v47 = vadd.f32 %v466_v43, %v15943_v55  ;;  %v468_v48 = vpop.f32.mrb[22].mxu0  ;;  %2630 = vmatprep.mubr.bf16.mxu0 %v16083_v35  ;;  %4732 = vmatpush1.bf16.msra.mxu1 %v13972_v11  ;;  %v13986_v11 = vld [vmem:[%s21178_s4 + $0x664] ss:$16 sps:$4 sm:$0xff]   ;;  %v13984_v15 = vld [vmem:[%s21178_s4 + $0x660] ss:$16 sps:$4 sm:$0xff]  }
 0x118   :  { %v848_v57 = vmax.f32 %v465_v41, 0.0  ;;  %v469_v62 = vadd.f32 %v468_v48, %v15936_v53  ;;  %v470_v63 = vpop.f32.mrb[23].mxu0  ;;  %2631 = vmatmul.mubr.bf16.gmra.mrb[88].mxu0 %v16081_v31  ;;  %v16133_v38 = vpack.c.bf16 %v805_v26, %v798_v13  ;;  %4733 = vmatprep.subr.bf16.mxu1 %v13977_v22  ;;  %v13896_v13 = vld [vmem:[%s21176_s3 + $0x3a4] ss:$16 sps:$4 sm:$0xff]  }
 0x119   :  { %2678 = vmatpush1.bf16.msra.mxu0 %v13879_v36  ;;  %v849_v4 = vmax.f32 %v467_v47, 0.0  ;;  %v471_v6 = vadd.f32 %v470_v63, %v15943_v55 }
 0x11a   :  { %v855_v12 = vmax.f32 %v469_v62, 0.0  ;;  %2679 = vmatprep.subr.bf16.mxu0 %v13884_v44  ;;  %21289 = vst [vmem:[#allocation6_spill] sm:$0xff] %v16133_v38  ;;  %v739_v44 = vpop.f32.mrb[20].mxu1  ;;  %11549 = vmatmul.mubr.msk.bf16.gmra.mrb[44].mxu1 %vm2536_vm3, %v16133_v38 }
 0x11b   :  { %v856_v18 = vmax.f32 %v471_v6, 0.0  ;;  %v13164_v56 = vpop.f32.mrb[21].mxu1  ;;  %3331 = vmatprep.mubr.bf16.mxu1 %v21189_v1  ;;  %4734 = vmatpush1.bf16.msra.mxu1 %v13975_v27 }
 0x11c   :  { %v16122_v24 = vpack.c.bf16 %v855_v12, %v848_v57  ;;  %v13893_v57 = vld [vmem:[%s21176_s3 + $0x384] ss:$16 sps:$4 sm:$0xff]   ;;  %v742_v62 = vpop.f32.mrb[22].mxu1 }
 0x11d   :  { %v16130_v28 = vpack.c.bf16 %v856_v18, %v849_v4  ;;  %2680 = vmatpush1.bf16.msra.mxu0 %v13882_v52  ;;  %v474_v29 = vpop.f32.mrb[24].mxu0  ;;  %v740_v52 = vadd.f32 %v739_v44, %v16057_v60  ;;  %v13165_v2 = vpop.f32.mrb[23].mxu1  ;;  %v13983_v4 = vld [vmem:[%s21178_s4 + $0x644] ss:$16 sps:$4 sm:$0xff]  }
 0x11e   :  { %2681 = vmatprep.subr.bf16.mxu0 %v13887_v0  ;;  %v475_v32 = vadd.f32 %v474_v29, %v15936_v53  ;;  %v476_v36 = vpop.f32.mrb[25].mxu0  ;;  %v743_v0 = vadd.f32 %v742_v62, %v16057_v60  ;;  %4735 = vmatprep.subr.bf16.mxu1 %v13983_v4 }
 0x11f   :  { %v477_v41 = vadd.f32 %v476_v36, %v15943_v55  ;;  %2640 = vmatprep.mubr.bf16.mxu0 %v16130_v28  ;;  %v478_v43 = vpop.f32.mrb[26].mxu0  ;;  %v13888_v55 = vld [vmem:[%s21176_s3 + $0x360] ss:$16 sps:$4 sm:$0xff]   ;;  %v812_v63 = vmax.f32 %v740_v52, 0.0  ;;  %4736 = vmatpush1.bf16.msra.mxu1 %v13981_v3  ;;  %v13899_v52 = vld [vmem:[%s21176_s3 + $0x3c4] ss:$16 sps:$4 sm:$0xff]  }
 0x120   :  { %v862_v47 = vmax.f32 %v475_v32, 0.0  ;;  %2641 = vmatmul.mubr.bf16.gmra.mrb[92].mxu0 %v16122_v24  ;;  %v480_v48 = vpop.f32.mrb[27].mxu0  ;;  %v819_v14 = vmax.f32 %v743_v0, 0.0  ;;  %v747_v27 = vpop.f32.mrb[24].mxu1  ;;  %4737 = vmatprep.subr.bf16.mxu1 %v13986_v11  ;;  %v13897_v0 = vld [vmem:[%s21176_s3 + $0x3c0] ss:$16 sps:$4 sm:$0xff]  }
 0x121   :  { %2682 = vmatpush1.bf16.msra.mxu0 %v13885_v20  ;;  %v863_v53 = vmax.f32 %v477_v41, 0.0  ;;  %v748_v41 = vadd.f32 %v747_v27, %v16057_v60  ;;  %v13168_v43 = vpop.f32.mrb[25].mxu1  ;;  %v13902_v3 = vld [vmem:[%s21176_s3 + $0x3e4] ss:$16 sps:$4 sm:$0xff]  }
 0x122   :  { %2683 = vmatprep.subr.bf16.mxu0 %v13890_v25  ;;  %v16165_v12 = vpack.c.bf16 %v21187_v37, %v862_v47  ;;  %v16175_v22 = vpack.c.bf16 %v819_v14, %v812_v63  ;;  %v13894_v47 = vld [vmem:[%s21176_s3 + $0x3a0] ss:$16 sps:$4 sm:$0xff]   ;;  %v750_v56 = vpop.f32.mrb[26].mxu1 }
 0x123   :  { %v16156_v6 = vpack.c.bf16 %v21187_v37, %v863_v53  ;;  %v13169_v62 = vpop.f32.mrb[27].mxu1  ;;  %4738 = vmatpush1.bf16.msra.mxu1 %v13984_v15 }
 0x124   :  { %21290 = vst [vmem:[#allocation7_spill] sm:$0xff] %v16175_v22  ;;  %11550 = vmatmul.mubr.msk.bf16.gmra.mrb[48].mxu1 %vm2536_vm3, %v16175_v22 }
 0x125   :  { %2684 = vmatpush1.bf16.msra.mxu0 %v13888_v55  ;;  %v517_v17 = vpop.f32.mrb[28].mxu0  ;;  %2650 = vmatprep.mubr.bf16.mxu0 %v16156_v6  ;;  %v826_v55 = vmax.f32 %v748_v41, 0.0  ;;  %v13905_v41 = vld [vmem:[%s21176_s3 + $0x404] ss:$16 sps:$4 sm:$0xff]  }
 0x126   :  { %2685 = vmatprep.subr.bf16.mxu0 %v13893_v57  ;;  %v518_v18 = vadd.f32 %v517_v17, %v15971_v16  ;;  %v519_v20 = vpop.f32.mrb[29].mxu0  ;;  %3341 = vmatprep.mubr.bf16.mxu1 %v21189_v1  ;;  %v751_v57 = vadd.f32 %v750_v56, %v16057_v60 }
 0x127   :  { %v520_v25 = vadd.f32 %v519_v20, %v15978_v19  ;;  %v521_v26 = vpop.f32.mrb[30].mxu0 }
 0x128   :  { %v780_v29 = vmax.f32 %v518_v18, 0.0  ;;  %v522_v32 = vadd.f32 %v521_v26, %v15971_v16  ;;  %2651 = vmatmul.mubr.bf16.gmra.mrb[96].mxu0 %v16165_v12  ;;  %v523_v36 = vpop.f32.mrb[31].mxu0  ;;  %v833_v4 = vmax.f32 %v751_v57, 0.0  ;;  %v755_v20 = vpop.f32.mrb[28].mxu1 }
 0x129   :  { %2686 = vmatpush1.bf16.msra.mxu0 %v13891_v7  ;;  %v781_v44 = vmax.f32 %v520_v25, 0.0  ;;  %v524_v48 = vadd.f32 %v523_v36, %v15978_v19  ;;  %v13900_v36 = vld [vmem:[%s21176_s3 + $0x3e0] ss:$16 sps:$4 sm:$0xff]  }
 0x12a   :  { %2687 = vmatprep.subr.bf16.mxu0 %v13896_v13  ;;  %v787_v53 = vmax.f32 %v522_v32, 0.0  ;;  %v16203_v15 = vpack.c.bf16 %v833_v4, %v826_v55  ;;  %v13172_v32 = vpop.f32.mrb[29].mxu1 }
 0x12b   :  { %v788_v63 = vmax.f32 %v524_v48, 0.0 }
 0x12c   :  { %v16195_v2 = vpack.c.bf16 %v787_v53, %v780_v29  ;;  %21291 = vst [vmem:[#allocation8_spill] sm:$0xff] %v16203_v15  ;;  %v756_v29 = vadd.f32 %v755_v20, %v16057_v60  ;;  %11551 = vmatmul.mubr.msk.bf16.gmra.mrb[52].mxu1 %vm2536_vm3, %v16203_v15 }
 0x12d   :  { %2688 = vmatpush1.bf16.msra.mxu0 %v13894_v47  ;;  %v16200_v7 = vpack.c.bf16 %v788_v63, %v781_v44  ;;  %v527_v11 = vpop.f32.mrb[32].mxu0  ;;  %v758_v47 = vpop.f32.mrb[30].mxu1  ;;  %3351 = vmatprep.mubr.bf16.mxu1 %v21189_v1  ;;  %v13903_v63 = vld [vmem:[%s21176_s3 + $0x400] ss:$16 sps:$4 sm:$0xff]  }
 0x12e   :  { %2689 = vmatprep.subr.bf16.mxu0 %v13899_v52  ;;  %v528_v13 = vadd.f32 %v527_v11, %v15971_v16  ;;  %v529_v14 = vpop.f32.mrb[33].mxu0  ;;  %v840_v52 = vmax.f32 %v756_v29, 0.0  ;;  %v759_v56 = vadd.f32 %v758_v47, %v16057_v60  ;;  %v13173_v53 = vpop.f32.mrb[31].mxu1 }
 0x12f   :  { %2693 = vmatprep.mubr.bf16.mxu0 %v16200_v7  ;;  %v530_v17 = vadd.f32 %v529_v14, %v15978_v19  ;;  %v531_v18 = vpop.f32.mrb[34].mxu0 }
 0x130   :  { %v794_v25 = vmax.f32 %v528_v13, 0.0  ;;  %v532_v26 = vadd.f32 %v531_v18, %v15971_v16  ;;  %v533_v27 = vpop.f32.mrb[35].mxu0  ;;  %v847_v62 = vmax.f32 %v759_v56, 0.0  ;;  %v763_v20 = vpop.f32.mrb[32].mxu1 }
 0x131   :  { %2690 = vmatpush1.bf16.msra.mxu0 %v13897_v0  ;;  %v795_v43 = vmax.f32 %v530_v17, 0.0  ;;  %v534_v44 = vadd.f32 %v533_v27, %v15978_v19  ;;  %v764_v29 = vadd.f32 %v763_v20, %v16057_v60  ;;  %v13176_v32 = vpop.f32.mrb[33].mxu1  ;;  %v121_v20 = vsub.s32 4, %v15912_v46 }
 0x132   :  { %2691 = vmatprep.subr.bf16.mxu0 %v13902_v3  ;;  %v801_v48 = vmax.f32 %v532_v26, 0.0  ;;  %v13908_v3 = vld [vmem:[%s21176_s3 + $0x424] ss:$16 sps:$4 sm:$0xff]   ;;  %v16231_v14 = vpack.c.bf16 %v847_v62, %v840_v52  ;;  %v766_v47 = vpop.f32.mrb[34].mxu1 }
 0x133   :  { %v802_v55 = vmax.f32 %v534_v44, 0.0  ;;  %v854_v52 = vmax.f32 %v764_v29, 0.0  ;;  %v767_v56 = vadd.f32 %v766_v47, %v16057_v60  ;;  %v13177_v53 = vpop.f32.mrb[35].mxu1  ;;  %v125_v29 = vsub.s32 5, %v15912_v46 }
 0x134   :  { %v16220_v57 = vpack.c.bf16 %v801_v48, %v794_v25  ;;  %21292 = vst [vmem:[#allocation9_spill] sm:$0xff] %v16231_v14  ;;  %11552 = vmatmul.mubr.msk.bf16.gmra.mrb[56].mxu1 %vm2536_vm3, %v16231_v14 }
 0x135   :  { %2692 = vmatpush1.bf16.msra.mxu0 %v13900_v36  ;;  %v16225_v0 = vpack.c.bf16 %v802_v55, %v795_v43  ;;  %v537_v4 = vpop.f32.mrb[36].mxu0  ;;  %v13906_v36 = vld [vmem:[%s21176_s3 + $0x420] ss:$16 sps:$4 sm:$0xff]   ;;  %3361 = vmatprep.mubr.bf16.mxu1 %v21189_v1 }
 0x136   :  { %2764 = vmatprep.subr.bf16.mxu0 %v13905_v41  ;;  %v538_v11 = vadd.f32 %v537_v4, %v15971_v16  ;;  %v539_v13 = vpop.f32.mrb[37].mxu0  ;;  %v13911_v41 = vld [vmem:[%s21176_s3 + $0x444] ss:$16 sps:$4 sm:$0xff]   ;;  %v13909_v4 = vld [vmem:[%s21176_s3 + $0x440] ss:$16 sps:$4 sm:$0xff]  }
 0x137   :  { %v540_v17 = vadd.f32 %v539_v13, %v15978_v19  ;;  %v541_v18 = vpop.f32.mrb[38].mxu0 }
 0x138   :  { %2694 = vmatmul.mubr.bf16.vlgmr.msra.gmra.mrb[72].mxu0 %v16195_v2  ;;  %v808_v25 = vmax.f32 %v538_v11, 0.0  ;;  %v542_v26 = vadd.f32 %v541_v18, %v15971_v16  ;;  %v543_v27 = vpop.f32.mrb[39].mxu0  ;;  %v771_v32 = vpop.f32.mrb[36].mxu1 }
 0x139   :  { %2765 = vmatpush1.bf16.msra.mxu0 %v13903_v63  ;;  %v809_v43 = vmax.f32 %v540_v17, 0.0  ;;  %2703 = vmatprep.mubr.bf16.mxu0 %v16225_v0  ;;  %v544_v44 = vadd.f32 %v543_v27, %v15978_v19  ;;  %v861_v63 = vmax.f32 %v767_v56, 0.0  ;;  %v13180_v47 = vpop.f32.mrb[37].mxu1 }
 0x13a   :  { %2766 = vmatprep.subr.bf16.mxu0 %v13908_v3  ;;  %v815_v48 = vmax.f32 %v542_v26, 0.0  ;;  %v13914_v3 = vld [vmem:[%s21176_s3 + $0x464] ss:$16 sps:$4 sm:$0xff]  }
 0x13b   :  { %v816_v55 = vmax.f32 %v544_v44, 0.0 }
 0x13c   :  { %v16249_v62 = vpack.c.bf16 %v815_v48, %v808_v25  ;;  %v16261_v25 = vpack.c.bf16 %v861_v63, %v854_v52  ;;  %v13912_v48 = vld [vmem:[%s21176_s3 + $0x460] ss:$16 sps:$4 sm:$0xff]   ;;  %v13917_v52 = vld [vmem:[%s21176_s3 + $0x484] ss:$16 sps:$4 sm:$0xff]  }
 0x13d   :  { %2767 = vmatpush1.bf16.msra.mxu0 %v13906_v36  ;;  %v16254_v11 = vpack.c.bf16 %v816_v55, %v809_v43  ;;  %v547_v13 = vpop.f32.mrb[40].mxu0  ;;  %v774_v55 = vpop.f32.mrb[38].mxu1 }
 0x13e   :  { %2768 = vmatprep.subr.bf16.mxu0 %v13911_v41  ;;  %v548_v17 = vadd.f32 %v547_v13, %v15971_v16  ;;  %v549_v18 = vpop.f32.mrb[41].mxu0  ;;  %21293 = vst [vmem:[#allocation10_spill] sm:$0xff] %v16261_v25  ;;  %11553 = vmatmul.mubr.msk.bf16.gmra.mrb[60].mxu1 %vm2536_vm3, %v16261_v25  ;;  %v772_v41 = vadd.f32 %v771_v32, %v16057_v60  ;;  %v13181_v13 = vpop.f32.mrb[39].mxu1  ;;  %v13920_v32 = vld [vmem:[%s21176_s3 + $0x4a4] ss:$16 sps:$4 sm:$0xff]  }
 0x13f   :  { %v550_v26 = vadd.f32 %v549_v18, %v15978_v19  ;;  %v551_v27 = vpop.f32.mrb[42].mxu0  ;;  %v16279_v60 = vrot.slane %v15926_v50, %v121_v20  ;;  %3371 = vmatprep.mubr.bf16.mxu1 %v21189_v1  ;;  %v16283_v18 = vrot.slane %v15926_v50, %v125_v29 }
 0x140   :  { %2704 = vmatmul.mubr.bf16.gmra.mrb[76].mxu0 %v16220_v57  ;;  %v822_v36 = vmax.f32 %v548_v17, 0.0  ;;  %v552_v43 = vadd.f32 %v551_v27, %v15971_v16  ;;  %v553_v44 = vpop.f32.mrb[43].mxu0 }
 0x141   :  { %2769 = vmatpush1.bf16.msra.mxu0 %v13909_v4  ;;  %v823_v56 = vmax.f32 %v550_v26, 0.0  ;;  %2713 = vmatprep.mubr.bf16.mxu0 %v16254_v11  ;;  %v554_v53 = vadd.f32 %v553_v44, %v15978_v19  ;;  %v868_v4 = vmax.f32 %v772_v41, 0.0 }
 0x142   :  { %2770 = vmatprep.subr.bf16.mxu0 %v13914_v3  ;;  %v829_v63 = vmax.f32 %v552_v43, 0.0  ;;  %v13915_v3 = vld [vmem:[%s21176_s3 + $0x480] ss:$16 sps:$4 sm:$0xff]  }
 0x143   :  { %v830_v17 = vmax.f32 %v554_v53, 0.0  ;;  %v16288_v26 = vpack.c.bf16 %v21187_v37, %v868_v4 }
 0x144   :  { %v16285_v27 = vpack.c.bf16 %v829_v63, %v822_v36 }
 0x145   :  { %21294 = vst [vmem:[#allocation11_spill] sm:$0xff] %v16288_v26  ;;  %2771 = vmatpush1.bf16.msra.mxu0 %v13912_v48  ;;  %v16293_v20 = vpack.c.bf16 %v830_v17, %v823_v56  ;;  %v620_v43 = vpop.f32.mrb[44].mxu0  ;;  %v13923_v56 = vld [vmem:[%s21176_s3 + $0x4c4] ss:$16 sps:$4 sm:$0xff]   ;;  %v13921_v17 = vld [vmem:[%s21176_s3 + $0x4c0] ss:$16 sps:$4 sm:$0xff]  }
 0x146   :  { %2772 = vmatprep.subr.bf16.mxu0 %v13917_v52  ;;  %v621_v50 = vadd.f32 %v620_v43, %v16279_v60  ;;  %v622_v29 = vpop.f32.mrb[45].mxu0  ;;  %11554 = vmatmul.mubr.msk.bf16.gmra.mrb[64].mxu1 %vm2536_vm3, %v16288_v26  ;;  %v13918_v52 = vld [vmem:[%s21176_s3 + $0x4a0] ss:$16 sps:$4 sm:$0xff]  }
 0x147   :  { %v623_v36 = vadd.f32 %v622_v29, %v16283_v18  ;;  %v624_v44 = vpop.f32.mrb[46].mxu0  ;;  %4763 = vmatprep.mubr.bf16.mxu1 %v21189_v1 }
 0x148   :  { %2714 = vmatmul.mubr.bf16.gmra.mrb[80].mxu0 %v16249_v62  ;;  %v782_v41 = vmax.f32 %v621_v50, 0.0  ;;  %v625_v47 = vadd.f32 %v624_v44, %v16279_v60  ;;  %v626_v48 = vpop.f32.mrb[47].mxu0 }
 0x149   :  { %2773 = vmatpush1.bf16.msra.mxu0 %v13915_v3  ;;  %2723 = vmatprep.mubr.bf16.mxu0 %v16293_v20  ;;  %v783_v53 = vmax.f32 %v623_v36, 0.0  ;;  %v627_v55 = vadd.f32 %v626_v48, %v16283_v18  ;;  %v13926_v3 = vld [vmem:[%s21176_s3 + $0x4e4] ss:$16 sps:$4 sm:$0xff]  }
 0x14a   :  { %2774 = vmatprep.subr.bf16.mxu0 %v13920_v32  ;;  %v789_v63 = vmax.f32 %v625_v47, 0.0 }
 0x14b   :  { %v790_v4 = vmax.f32 %v627_v55, 0.0 }
 0x14c   :  { %v16313_v13 = vpack.c.bf16 %v789_v63, %v782_v41 }
 0x14d   :  { %2775 = vmatpush1.bf16.msra.mxu0 %v13918_v52  ;;  %v16321_v43 = vpack.c.bf16 %v790_v4, %v783_v53  ;;  %v630_v50 = vpop.f32.mrb[48].mxu0  ;;  %v13924_v52 = vld [vmem:[%s21176_s3 + $0x4e0] ss:$16 sps:$4 sm:$0xff]  }
 0x14e   :  { %2776 = vmatprep.subr.bf16.mxu0 %v13923_v56  ;;  %v631_v32 = vadd.f32 %v630_v50, %v16279_v60  ;;  %v632_v29 = vpop.f32.mrb[49].mxu0  ;;  %11763 = vmatmul.mubr.msk.bf16.vlgmr.msra.gmra.mrb[68].mxu1 %vm2536_vm3, %v16092_v45  ;;  %v13929_v56 = vld [vmem:[%s21176_s3 + $0x504] ss:$16 sps:$4 sm:$0xff]  }
 0x14f   :  { %v633_v36 = vadd.f32 %v632_v29, %v16283_v18  ;;  %v634_v44 = vpop.f32.mrb[50].mxu0  ;;  %4773 = vmatprep.mubr.bf16.mxu1 %v21189_v1  ;;  %v580_v29 = vadd.f32 %v16044_v39, %v15978_v19  ;;  %v13935_v39 = vld [vmem:[%s21176_s3 + $0x544] ss:$16 sps:$4 sm:$0xff]  }
 0x150   :  { %2724 = vmatmul.mubr.bf16.gmra.mrb[84].mxu0 %v16285_v27  ;;  %v796_v41 = vmax.f32 %v631_v32, 0.0  ;;  %v635_v47 = vadd.f32 %v634_v44, %v16279_v60  ;;  %v636_v48 = vpop.f32.mrb[51].mxu0  ;;  %v13932_v32 = vld [vmem:[%s21176_s3 + $0x524] ss:$16 sps:$4 sm:$0xff]  }
 0x151   :  { %2777 = vmatpush1.bf16.msra.mxu0 %v13921_v17  ;;  %2733 = vmatprep.mubr.bf16.mxu0 %v16008_v58  ;;  %v797_v53 = vmax.f32 %v633_v36, 0.0  ;;  %v637_v55 = vadd.f32 %v636_v48, %v16283_v18  ;;  %v13927_v17 = vld [vmem:[%s21176_s3 + $0x500] ss:$16 sps:$4 sm:$0xff]  }
 0x152   :  { %2778 = vmatprep.subr.bf16.mxu0 %v13926_v3  ;;  %v803_v63 = vmax.f32 %v635_v47, 0.0  ;;  %v13930_v47 = vld [vmem:[%s21176_s3 + $0x520] ss:$16 sps:$4 sm:$0xff]  }
 0x153   :  { %v804_v4 = vmax.f32 %v637_v55, 0.0 }
 0x154   :  { %v16338_v50 = vpack.c.bf16 %v803_v63, %v796_v41 }
 0x155   :  { %2779 = vmatpush1.bf16.msra.mxu0 %v13924_v52  ;;  %v16348_v36 = vpack.c.bf16 %v804_v4, %v797_v53  ;;  %v640_v3 = vpop.f32.mrb[52].mxu0 }
 0x156   :  { %21295 = vst [vmem:[#allocation12_spill] sm:$0xff] %v16338_v50  ;;  %2780 = vmatprep.subr.bf16.mxu0 %v13929_v56  ;;  %v641_v44 = vadd.f32 %v640_v3, %v16279_v60  ;;  %v642_v41 = vpop.f32.mrb[53].mxu0  ;;  %11764 = vmatmul.mubr.msk.bf16.gmra.mrb[72].mxu1 %vm2536_vm3, %v16133_v38  ;;  %v865_v56 = vmax.f32 %v580_v29, 0.0  ;;  %v13941_v29 = vld [vmem:[%s21176_s3 + $0x564] ss:$16 sps:$4 sm:$0xff]  }
 0x157   :  { %v643_v48 = vadd.f32 %v642_v41, %v16283_v18  ;;  %v644_v52 = vpop.f32.mrb[54].mxu0  ;;  %4783 = vmatprep.mubr.bf16.mxu1 %v21189_v1  ;;  %v578_v41 = vadd.f32 %v16040_v34, %v15971_v16 }
 0x158   :  { %2734 = vmatmul.mubr.bf16.gmra.mrb[88].mxu0 %v16004_v54  ;;  %v810_v55 = vmax.f32 %v641_v44, 0.0  ;;  %v645_v63 = vadd.f32 %v644_v52, %v16279_v60  ;;  %v646_v19 = vpop.f32.mrb[55].mxu0 }
 0x159   :  { %2781 = vmatpush1.bf16.msra.mxu0 %v13927_v17  ;;  %2743 = vmatprep.mubr.bf16.mxu0 %v16038_v33  ;;  %v811_v53 = vmax.f32 %v643_v48, 0.0  ;;  %v647_v4 = vadd.f32 %v646_v19, %v16283_v18  ;;  %v13933_v17 = vld [vmem:[%s21176_s3 + $0x540] ss:$16 sps:$4 sm:$0xff]   ;;  %v864_v19 = vmax.f32 %v578_v41, 0.0 }
 0x15a   :  { %2782 = vmatprep.subr.bf16.mxu0 %v13932_v32  ;;  %v817_v3 = vmax.f32 %v645_v63, 0.0  ;;  %v16376_v32 = vpack.c.bf16 %v21187_v37, %v865_v56  ;;  %v13947_v56 = vld [vmem:[%s21176_s3 + $0x584] ss:$16 sps:$4 sm:$0xff]  }
 0x15b   :  { %v818_v44 = vmax.f32 %v647_v4, 0.0 }
 0x15c   :  { %v16367_v52 = vpack.c.bf16 %v817_v3, %v810_v55 }
 0x15d   :  { %2783 = vmatpush1.bf16.msra.mxu0 %v13930_v47  ;;  %v16378_v48 = vpack.c.bf16 %v818_v44, %v811_v53  ;;  %v650_v63 = vpop.f32.mrb[56].mxu0 }
 0x15e   :  { %21296 = vst [vmem:[#allocation13_spill] sm:$0xff] %v16367_v52  ;;  %2784 = vmatprep.subr.bf16.mxu0 %v13935_v39  ;;  %v651_v16 = vadd.f32 %v650_v63, %v16279_v60  ;;  %v652_v34 = vpop.f32.mrb[57].mxu0  ;;  %11765 = vmatmul.mubr.msk.bf16.gmra.mrb[76].mxu1 %vm2536_vm3, %v16175_v22  ;;  %v13939_v39 = vld [vmem:[%s21176_s3 + $0x560] ss:$16 sps:$4 sm:$0xff]  }
 0x15f   :  { %21297 = vst [vmem:[#allocation14_spill] sm:$0xff] %v16378_v48  ;;  %v653_v47 = vadd.f32 %v652_v34, %v16283_v18  ;;  %v654_v55 = vpop.f32.mrb[58].mxu0  ;;  %4793 = vmatprep.mubr.bf16.mxu1 %v21189_v1  ;;  %v13945_v34 = vld [vmem:[%s21176_s3 + $0x580] ss:$16 sps:$4 sm:$0xff]  }
 0x160   :  { %2744 = vmatmul.mubr.bf16.gmra.mrb[92].mxu0 %v16034_v30  ;;  %v824_v4 = vmax.f32 %v651_v16, 0.0  ;;  %v655_v3 = vadd.f32 %v654_v55, %v16279_v60  ;;  %v656_v8 = vpop.f32.mrb[59].mxu0 }
 0x161   :  { %2785 = vmatpush1.bf16.msra.mxu0 %v13933_v17  ;;  %2753 = vmatprep.mubr.bf16.mxu0 %v16376_v32  ;;  %v825_v53 = vmax.f32 %v653_v47, 0.0  ;;  %v657_v44 = vadd.f32 %v656_v8, %v16283_v18  ;;  %v16396_v17 = vpack.c.bf16 %v21187_v37, %v864_v19  ;;  %v13953_v47 = vld [vmem:[%s21176_s3 + $0x5a4] ss:$16 sps:$4 sm:$0xff]  }
 0x162   :  { %2786 = vmatprep.subr.bf16.mxu0 %v13941_v29  ;;  %v831_v41 = vmax.f32 %v655_v3, 0.0 }
 0x163   :  { %v832_v63 = vmax.f32 %v657_v44, 0.0 }
 0x164   :  { %v16398_v16 = vpack.c.bf16 %v831_v41, %v824_v4 }
 0x165   :  { %2787 = vmatpush1.bf16.msra.mxu0 %v13939_v39  ;;  %v16406_v8 = vpack.c.bf16 %v832_v63, %v825_v53  ;;  %v660_v29 = vpop.f32.mrb[60].mxu0  ;;  %v13959_v53 = vld [vmem:[%s21176_s3 + $0x5c4] ss:$16 sps:$4 sm:$0xff]  }
 0x166   :  { %2788 = vmatprep.subr.bf16.mxu0 %v13947_v56  ;;  %v661_v55 = vadd.f32 %v660_v29, %v16279_v60  ;;  %v662_v3 = vpop.f32.mrb[61].mxu0  ;;  %11766 = vmatmul.mubr.msk.bf16.gmra.mrb[80].mxu1 %vm2536_vm3, %v16203_v15  ;;  %v13951_v56 = vld [vmem:[%s21176_s3 + $0x5a0] ss:$16 sps:$4 sm:$0xff]  }
 0x167   :  { %21298 = vst [vmem:[#allocation15_spill] sm:$0xff] %v16406_v8  ;;  %v663_v19 = vadd.f32 %v662_v3, %v16283_v18  ;;  %v664_v4 = vpop.f32.mrb[62].mxu0  ;;  %4803 = vmatprep.mubr.bf16.mxu1 %v21189_v1 }
 0x168   :  { %2754 = vmatmul.mubr.bf16.gmra.mrb[96].mxu0 %v16396_v17  ;;  %v838_v39 = vmax.f32 %v661_v55, 0.0  ;;  %v665_v44 = vadd.f32 %v664_v4, %v16279_v60  ;;  %v666_v41 = vpop.f32.mrb[63].mxu0 }
 0x169   :  { %2789 = vmatpush1.bf16.msra.mxu0 %v13945_v34  ;;  %2796 = vmatprep.mubr.bf16.mxu0 %v16321_v43  ;;  %v839_v63 = vmax.f32 %v663_v19, 0.0  ;;  %v667_v29 = vadd.f32 %v666_v41, %v16283_v18  ;;  %v13957_v34 = vld [vmem:[%s21176_s3 + $0x5c0] ss:$16 sps:$4 sm:$0xff]   ;;  %v13962_v19 = vld [vmem:[%s21176_s3 + $0x5e4] ss:$16 sps:$4 sm:$0xff]  }
 0x16a   :  { %2790 = vmatprep.subr.bf16.mxu0 %v13953_v47  ;;  %v845_v55 = vmax.f32 %v665_v44, 0.0 }
 0x16b   :  { %v846_v3 = vmax.f32 %v667_v29, 0.0 }
 0x16c   :  { %v16426_v4 = vpack.c.bf16 %v845_v55, %v838_v39  ;;  %v13965_v55 = vld [vmem:[%s21176_s3 + $0x604] ss:$16 sps:$4 sm:$0xff]  }
 0x16d   :  { %2791 = vmatpush1.bf16.msra.mxu0 %v13951_v56  ;;  %v16428_v5 = vpack.c.bf16 %v846_v3, %v839_v63  ;;  %v670_v37 = vpop.f32.mrb[64].mxu0  ;;  %v13960_v56 = vld [vmem:[%s21176_s3 + $0x5e0] ss:$16 sps:$4 sm:$0xff]  }
 0x16e   :  { %2792 = vmatprep.subr.bf16.mxu0 %v13959_v53  ;;  %v671_v47 = vadd.f32 %v670_v37, %v16279_v60  ;;  %v672_v44 = vpop.f32.mrb[65].mxu0  ;;  %11767 = vmatmul.mubr.msk.bf16.gmra.mrb[84].mxu1 %vm2536_vm3, %v16231_v14  ;;  %v21299_v37 = vmov 0  }
 0x16f   :  { %v673_v41 = vadd.f32 %v672_v44, %v16283_v18  ;;  %v674_v1 = vpop.f32.mrb[66].mxu0  ;;  %4813 = vmatprep.mubr.bf16.mxu1 %v21299_v37 }
 0x170   :  { %v852_v49 = vmax.f32 %v671_v47, 0.0  ;;  %v675_v29 = vadd.f32 %v674_v1, %v16279_v60  ;;  %v676_v39 = vpop.f32.mrb[67].mxu0 }
 0x171   :  { %2793 = vmatpush1.bf16.msra.mxu0 %v13957_v34  ;;  %v853_v53 = vmax.f32 %v673_v41, 0.0  ;;  %v677_v63 = vadd.f32 %v676_v39, %v16283_v18  ;;  %v13963_v34 = vld [vmem:[%s21176_s3 + $0x600] ss:$16 sps:$4 sm:$0xff]  }
 0x172   :  { %2794 = vmatprep.subr.bf16.mxu0 %v13962_v19  ;;  %v859_v1 = vmax.f32 %v675_v29, 0.0  ;;  %v13968_v19 = vld [vmem:[%s21176_s3 + $0x624] ss:$16 sps:$4 sm:$0xff]  }
 0x173   :  { %v860_v3 = vmax.f32 %v677_v63, 0.0  ;;  %v13978_v63 = vld [vmem:[%s21176_s3 + $0x660] ss:$16 sps:$4 sm:$0xff]  }
 0x174   :  { %v16446_v47 = vpack.c.bf16 %v859_v1, %v852_v49  ;;  %v13966_v49 = vld [vmem:[%s21176_s3 + $0x620] ss:$16 sps:$4 sm:$0xff]  }
 0x175   :  { %2795 = vmatpush1.bf16.msra.mxu0 %v13960_v56  ;;  %v16451_v44 = vpack.c.bf16 %v860_v3, %v853_v53  ;;  %v680_v41 = vpop.f32.mrb[68].mxu0  ;;  %v13971_v56 = vld [vmem:[%s21176_s3 + $0x644] ss:$16 sps:$4 sm:$0xff]  }
 0x176   :  { %2867 = vmatprep.subr.bf16.mxu0 %v13965_v55  ;;  %v682_v39 = vpop.f32.mrb[69].mxu0  ;;  %11768 = vmatmul.mubr.msk.bf16.gmra.mrb[88].mxu1 %vm2536_vm3, %v16261_v25  ;;  %v13980_v53 = vld [vmem:[%s21176_s3 + $0x664] ss:$16 sps:$4 sm:$0xff]   ;;  %v13989_v55 = vld [vmem:[%s21176_s3 + $0xc] ss:$16 sps:$4 sm:$0xff]  }
 0x177   :  { %v684_v46 = vpop.f32.mrb[70].mxu0  ;;  %4823 = vmatprep.mubr.bf16.mxu1 %v21299_v37  ;;  %v683_v1 = vadd.f32 %v682_v39, %v16283_v18  ;;  %v13987_v18 = vld [vmem:[%s21176_s3 + $0x8] ss:$16 sps:$4 sm:$0xff]   ;;  %v13995_v39 = vld [vmem:[%s21176_s3 + $0x4c] ss:$16 sps:$4 sm:$0xff]  }
 0x178   :  { %2797 = vmatmul.mubr.bf16.vlgmr.msra.gmra.mrb[72].mxu0 %v16313_v13  ;;  %v686_v29 = vpop.f32.mrb[71].mxu0  ;;  %v13969_v46 = vld [vmem:[%s21176_s3 + $0x640] ss:$16 sps:$4 sm:$0xff]  }
 0x179   :  { %2868 = vmatpush1.bf16.msra.mxu0 %v13963_v34  ;;  %2806 = vmatprep.mubr.bf16.mxu0 %v16348_v36  ;;  %v867_v3 = vmax.f32 %v683_v1, 0.0  ;;  %v21300_v34 = vmov 0.0   ;;  %v681_v29 = vadd.f32 %v680_v41, %v16279_v60  ;;  %v13992_v60 = vld [vmem:[%s21176_s3 + $0x2c] ss:$16 sps:$4 sm:$0xff]   ;;  %v13990_v41 = vld [vmem:[%s21176_s3 + $0x28] ss:$16 sps:$4 sm:$0xff]  }
 0x17a   :  { %2869 = vmatprep.subr.bf16.mxu0 %v13968_v19  ;;  %v13999_v1 = vld [vmem:[%s21176_s3 + $0x88] ss:$16 sps:$4 sm:$0xff]  }
 0x17b   :  { %v16491_v19 = vpack.c.bf16 %v21300_v34, %v867_v3  ;;  %v14004_v3 = vld [vmem:[%s21176_s3 + $0xac] ss:$16 sps:$4 sm:$0xff]  }
 0x17d   :  { %2870 = vmatpush1.bf16.msra.mxu0 %v13966_v49  ;;  %v866_v49 = vmax.f32 %v681_v29, 0.0  ;;  %v14007_v29 = vld [vmem:[%s21176_s3 + $0xcc] ss:$16 sps:$4 sm:$0xff]  }
 0x17e   :  { %2871 = vmatprep.subr.bf16.mxu0 %v13971_v56  ;;  %11769 = vmatmul.mubr.msk.bf16.gmra.mrb[92].mxu1 %vm2536_vm3, %v16288_v26 }
 0x17f   :  { %v16497_v56 = vpack.c.bf16 %v21300_v34, %v866_v49  ;;  %v14002_v34 = vld [vmem:[%s21176_s3 + $0xa8] ss:$16 sps:$4 sm:$0xff]  }
 0x180   :  { %2807 = vmatmul.mubr.bf16.gmra.mrb[76].mxu0 %v16338_v50  ;;  %v14005_v49 = vld [vmem:[%s21176_s3 + $0xc8] ss:$16 sps:$4 sm:$0xff]  }
 0x181   :  { %2816 = vmatprep.mubr.bf16.mxu0 %v16378_v48  ;;  %2872 = vmatpush1.bf16.msra.mxu0 %v13969_v46  ;;  %v13993_v46 = vld [vmem:[%s21176_s3 + $0x48] ss:$16 sps:$4 sm:$0xff]  }
 0x182   :  { %2873 = vmatprep.subr.bf16.mxu0 %v13980_v53  ;;  %v13998_v53 = vld [vmem:[%s21176_s3 + $0x6c] ss:$16 sps:$4 sm:$0xff]  }
 0x185   :  { %2874 = vmatpush1.bf16.msra.mxu0 %v13978_v63  ;;  %v13996_v63 = vld [vmem:[%s21176_s3 + $0x68] ss:$16 sps:$4 sm:$0xff]  }
 0x186   :  { %2970 = vmatprep.subr.bf16.mxu0 %v13989_v55  ;;  %v14001_v55 = vld [vmem:[%s21176_s3 + $0x8c] ss:$16 sps:$4 sm:$0xff]  }
 0x188   :  { %2817 = vmatmul.mubr.bf16.gmra.mrb[80].mxu0 %v16367_v52 }
 0x189   :  { %2826 = vmatprep.mubr.bf16.mxu0 %v16406_v8 }
 0x190   :  { %2827 = vmatmul.mubr.bf16.gmra.mrb[84].mxu0 %v16398_v16 }
 0x191   :  { %2836 = vmatprep.mubr.bf16.mxu0 %v16428_v5 }
 0x198   :  { %2837 = vmatmul.mubr.bf16.gmra.mrb[88].mxu0 %v16426_v4 }
 0x199   :  { %2846 = vmatprep.mubr.bf16.mxu0 %v16451_v44 }
 0x1a0   :  { %2847 = vmatmul.mubr.bf16.gmra.mrb[92].mxu0 %v16446_v47 }
 0x1a1   :  { %2856 = vmatprep.mubr.bf16.mxu0 %v16491_v19 }
 0x1a8   :  { %2857 = vmatmul.mubr.bf16.gmra.mrb[96].mxu0 %v16497_v56 }
 0x1a9   :  { %2899 = vmatprep.mubr.bf16.mxu0 %v21299_v37 }
 0x1b0   :  { %11541 = vmatmul.mubr.msk.bf16.vlgmr.msra.gmra.mrb[72].mxu0 %vm2536_vm3, %v16092_v45 }
 0x1b1   :  { %2971 = vmatpush1.bf16.msra.mxu0 %v13987_v18  ;;  %2909 = vmatprep.mubr.bf16.mxu0 %v21299_v37  ;;  %v14010_v18 = vld [vmem:[%s21176_s3 + $0xec] ss:$16 sps:$4 sm:$0xff]  }
 0x1b2   :  { %2972 = vmatprep.subr.bf16.mxu0 %v13992_v60  ;;  %v14008_v60 = vld [vmem:[%s21176_s3 + $0xe8] ss:$16 sps:$4 sm:$0xff]  }
 0x1b5   :  { %2973 = vmatpush1.bf16.msra.mxu0 %v13990_v41  ;;  %v14013_v41 = vld [vmem:[%s21176_s3 + $0x10c] ss:$16 sps:$4 sm:$0xff]  }
 0x1b6   :  { %2974 = vmatprep.subr.bf16.mxu0 %v13995_v39  ;;  %v14011_v39 = vld [vmem:[%s21176_s3 + $0x108] ss:$16 sps:$4 sm:$0xff]  }
 0x1b8   :  { %11542 = vmatmul.mubr.msk.bf16.gmra.mrb[76].mxu0 %vm2536_vm3, %v16133_v38 }
 0x1b9   :  { %2975 = vmatpush1.bf16.msra.mxu0 %v13993_v46  ;;  %2919 = vmatprep.mubr.bf16.mxu0 %v21299_v37  ;;  %v14016_v46 = vld [vmem:[%s21176_s3 + $0x12c] ss:$16 sps:$4 sm:$0xff]  }
 0x1ba   :  { %2976 = vmatprep.subr.bf16.mxu0 %v13998_v53  ;;  %v14014_v53 = vld [vmem:[%s21176_s3 + $0x128] ss:$16 sps:$4 sm:$0xff]  }
 0x1bd   :  { %2977 = vmatpush1.bf16.msra.mxu0 %v13996_v63  ;;  %v14019_v63 = vld [vmem:[%s21176_s3 + $0x14c] ss:$16 sps:$4 sm:$0xff]  }
 0x1be   :  { %2978 = vmatprep.subr.bf16.mxu0 %v14001_v55  ;;  %v14017_v55 = vld [vmem:[%s21176_s3 + $0x148] ss:$16 sps:$4 sm:$0xff]  }
 0x1c0   :  { %11543 = vmatmul.mubr.msk.bf16.gmra.mrb[80].mxu0 %vm2536_vm3, %v16175_v22  ;;  %v14053_v22 = vld [vmem:[%s21176_s3 + $0x2c8] ss:$16 sps:$4 sm:$0xff]  }
 0x1c1   :  { %2979 = vmatpush1.bf16.msra.mxu0 %v13999_v1  ;;  %2929 = vmatprep.mubr.bf16.mxu0 %v21299_v37  ;;  %v14022_v1 = vld [vmem:[%s21176_s3 + $0x16c] ss:$16 sps:$4 sm:$0xff]  }
 0x1c2   :  { %2980 = vmatprep.subr.bf16.mxu0 %v14004_v3  ;;  %v14020_v3 = vld [vmem:[%s21176_s3 + $0x168] ss:$16 sps:$4 sm:$0xff]  }
 0x1c5   :  { %2981 = vmatpush1.bf16.msra.mxu0 %v14002_v34  ;;  %v14025_v34 = vld [vmem:[%s21176_s3 + $0x18c] ss:$16 sps:$4 sm:$0xff]  }
 0x1c6   :  { %2982 = vmatprep.subr.bf16.mxu0 %v14007_v29  ;;  %v14023_v29 = vld [vmem:[%s21176_s3 + $0x188] ss:$16 sps:$4 sm:$0xff]  }
 0x1c8   :  { %11544 = vmatmul.mubr.msk.bf16.gmra.mrb[84].mxu0 %vm2536_vm3, %v16203_v15 }
 0x1c9   :  { %2983 = vmatpush1.bf16.msra.mxu0 %v14005_v49  ;;  %2939 = vmatprep.mubr.bf16.mxu0 %v21299_v37  ;;  %v14028_v49 = vld [vmem:[%s21176_s3 + $0x1ac] ss:$16 sps:$4 sm:$0xff]  }
 0x1ca   :  { %2984 = vmatprep.subr.bf16.mxu0 %v14010_v18  ;;  %v14026_v18 = vld [vmem:[%s21176_s3 + $0x1a8] ss:$16 sps:$4 sm:$0xff]  }
 0x1cd   :  { %2985 = vmatpush1.bf16.msra.mxu0 %v14008_v60  ;;  %v14031_v60 = vld [vmem:[%s21176_s3 + $0x1cc] ss:$16 sps:$4 sm:$0xff]  }
 0x1ce   :  { %2986 = vmatprep.subr.bf16.mxu0 %v14013_v41  ;;  %v14029_v41 = vld [vmem:[%s21176_s3 + $0x1c8] ss:$16 sps:$4 sm:$0xff]  }
 0x1d0   :  { %11545 = vmatmul.mubr.msk.bf16.gmra.mrb[88].mxu0 %vm2536_vm3, %v16231_v14 }
 0x1d1   :  { %2987 = vmatpush1.bf16.msra.mxu0 %v14011_v39  ;;  %2949 = vmatprep.mubr.bf16.mxu0 %v21299_v37  ;;  %v14034_v39 = vld [vmem:[%s21176_s3 + $0x1ec] ss:$16 sps:$4 sm:$0xff]  }
 0x1d2   :  { %2988 = vmatprep.subr.bf16.mxu0 %v14016_v46  ;;  %v14032_v46 = vld [vmem:[%s21176_s3 + $0x1e8] ss:$16 sps:$4 sm:$0xff]  }
 0x1d5   :  { %2989 = vmatpush1.bf16.msra.mxu0 %v14014_v53  ;;  %v14037_v53 = vld [vmem:[%s21176_s3 + $0x20c] ss:$16 sps:$4 sm:$0xff]  }
 0x1d6   :  { %2990 = vmatprep.subr.bf16.mxu0 %v14019_v63 }
 0x1d8   :  { %11546 = vmatmul.mubr.msk.bf16.gmra.mrb[92].mxu0 %vm2536_vm3, %v16261_v25 }
 0x1d9   :  { %2991 = vmatpush1.bf16.msra.mxu0 %v14017_v55  ;;  %2959 = vmatprep.mubr.bf16.mxu0 %v21299_v37 }
 0x1da   :  { %2992 = vmatprep.subr.bf16.mxu0 %v14022_v1  ;;  %v14035_v1 = vld [vmem:[%s21176_s3 + $0x208] ss:$16 sps:$4 sm:$0xff]  }
 0x1dd   :  { %2993 = vmatpush1.bf16.msra.mxu0 %v14020_v3 }
 0x1de   :  { %2994 = vmatprep.subr.bf16.mxu0 %v14025_v34  ;;  %v14040_v34 = vld [vmem:[%s21176_s3 + $0x22c] ss:$16 sps:$4 sm:$0xff]  }
 0x1e0   :  { %11547 = vmatmul.mubr.msk.bf16.gmra.mrb[96].mxu0 %vm2536_vm3, %v16288_v26  ;;  %v14047_v26 = vld [vmem:[%s21176_s3 + $0x288] ss:$16 sps:$4 sm:$0xff]  }
 0x1e1   :  { %2995 = vmatpush1.bf16.msra.mxu0 %v14023_v29  ;;  %3002 = vmatprep.mubr.bf16.mxu0 %v15959_v10 }
 0x1e2   :  { %2996 = vmatprep.subr.bf16.mxu0 %v14028_v49  ;;  %v14038_v49 = vld [vmem:[%s21176_s3 + $0x228] ss:$16 sps:$4 sm:$0xff]  }
 0x1e4   :  { %v16618_v63 = vpop.f32.mrb[40].mxu1 }
 0x1e5   :  { %2997 = vmatpush1.bf16.msra.mxu0 %v14026_v18  ;;  %v16620_v55 = vpop.f32.mrb[41].mxu1  ;;  %v14043_v18 = vld [vmem:[%s21176_s3 + $0x24c] ss:$16 sps:$4 sm:$0xff]  }
 0x1e6   :  { %2998 = vmatprep.subr.bf16.mxu0 %v14031_v60  ;;  %v16625_v3 = vpop.f32.mrb[42].mxu1 }
 0x1e7   :  { %v16630_v29 = vpop.f32.mrb[43].mxu1 }
 0x1e9   :  { %2999 = vmatpush1.bf16.msra.mxu0 %v14029_v41 }
 0x1ea   :  { %3000 = vmatprep.subr.bf16.mxu0 %v14034_v39  ;;  %v14041_v39 = vld [vmem:[%s21176_s3 + $0x248] ss:$16 sps:$4 sm:$0xff]  }
 0x1ed   :  { %3001 = vmatpush1.bf16.msra.mxu0 %v14032_v46  ;;  %v16640_v60 = vpop.f32.mrb[44].mxu1 }
 0x1ee   :  { %3073 = vmatprep.subr.bf16.mxu0 %v14037_v53  ;;  %v16642_v41 = vpop.f32.mrb[45].mxu1  ;;  %v14046_v53 = vld [vmem:[%s21176_s3 + $0x26c] ss:$16 sps:$4 sm:$0xff]  }
 0x1ef   :  { %v16647_v46 = vpop.f32.mrb[46].mxu1 }
 0x1f0   :  { %3003 = vmatmul.mubr.bf16.vlgmr.msra.gmra.mrb[100].mxu0 %v15957_v9 }
 0x1f1   :  { %3012 = vmatprep.mubr.bf16.mxu0 %v15995_v42  ;;  %3074 = vmatpush1.bf16.msra.mxu0 %v14035_v1  ;;  %v16652_v1 = vpop.f32.mrb[47].mxu1 }
 0x1f2   :  { %3075 = vmatprep.subr.bf16.mxu0 %v14040_v34  ;;  %v14044_v34 = vld [vmem:[%s21176_s3 + $0x268] ss:$16 sps:$4 sm:$0xff]  }
 0x1f5   :  { %3076 = vmatpush1.bf16.msra.mxu0 %v14038_v49  ;;  %v14049_v49 = vld [vmem:[%s21176_s3 + $0x28c] ss:$16 sps:$4 sm:$0xff]  }
 0x1f6   :  { %3077 = vmatprep.subr.bf16.mxu0 %v14043_v18 }
 0x1f7   :  { %v16662_v18 = vpop.f32.mrb[48].mxu1 }
 0x1f8   :  { %3013 = vmatmul.mubr.bf16.gmra.mrb[104].mxu0 %v15993_v40  ;;  %v16664_v51 = vpop.f32.mrb[49].mxu1 }
 0x1f9   :  { %3022 = vmatprep.mubr.bf16.mxu0 %v16025_v23  ;;  %3078 = vmatpush1.bf16.msra.mxu0 %v14041_v39  ;;  %v16669_v25 = vpop.f32.mrb[50].mxu1  ;;  %v14052_v39 = vld [vmem:[%s21176_s3 + $0x2ac] ss:$16 sps:$4 sm:$0xff]  }
 0x1fa   :  { %3079 = vmatprep.subr.bf16.mxu0 %v14046_v53  ;;  %v16674_v53 = vpop.f32.mrb[51].mxu1 }
 0x1fd   :  { %3080 = vmatpush1.bf16.msra.mxu0 %v14044_v34  ;;  %v14050_v34 = vld [vmem:[%s21176_s3 + $0x2a8] ss:$16 sps:$4 sm:$0xff]  }
 0x1fe   :  { %3081 = vmatprep.subr.bf16.mxu0 %v14049_v49  ;;  %v14055_v49 = vld [vmem:[%s21176_s3 + $0x2cc] ss:$16 sps:$4 sm:$0xff]  }
 0x1ff   :  { %v16684_v14 = vpop.f32.mrb[52].mxu1 }
 0x200   :  { %3023 = vmatmul.mubr.bf16.gmra.mrb[108].mxu0 %v16023_v21  ;;  %v16686_v15 = vpop.f32.mrb[53].mxu1 }
 0x201   :  { %3032 = vmatprep.mubr.bf16.mxu0 %v16059_v61  ;;  %3082 = vmatpush1.bf16.msra.mxu0 %v14047_v26  ;;  %v16691_v38 = vpop.f32.mrb[54].mxu1  ;;  %v14058_v26 = vld [vmem:[%s21176_s3 + $0x2ec] ss:$16 sps:$4 sm:$0xff]  }
 0x202   :  { %3083 = vmatprep.subr.bf16.mxu0 %v14052_v39  ;;  %21301 = vst [vmem:[#allocation16_spill] sm:$0xff] %v16691_v38  ;;  %v16696_v39 = vpop.f32.mrb[55].mxu1 }
 0x203   :  { %21302 = vst [vmem:[#allocation17_spill] sm:$0xff] %v16696_v39  ;;  %v14059_v39 = vld [vmem:[%s21176_s3 + $0x308] ss:$16 sps:$4 sm:$0xff]  }
 0x205   :  { %3084 = vmatpush1.bf16.msra.mxu0 %v14050_v34  ;;  %v14056_v34 = vld [vmem:[%s21176_s3 + $0x2e8] ss:$16 sps:$4 sm:$0xff]  }
 0x206   :  { %3085 = vmatprep.subr.bf16.mxu0 %v14055_v49  ;;  %v14061_v49 = vld [vmem:[%s21176_s3 + $0x30c] ss:$16 sps:$4 sm:$0xff]  }
 0x207   :  { %v16706_v45 = vpop.f32.mrb[56].mxu1 }
 0x208   :  { %3033 = vmatmul.mubr.bf16.gmra.mrb[112].mxu0 %v16054_v59  ;;  %21303 = vst [vmem:[#allocation18_spill] sm:$0xff] %v16706_v45  ;;  %v16708_v37 = vpop.f32.mrb[57].mxu1 }
 0x209   :  { %3042 = vmatprep.mubr.bf16.mxu0 %v16083_v35  ;;  %3086 = vmatpush1.bf16.msra.mxu0 %v14053_v22  ;;  %21304 = vst [vmem:[#allocation19_spill] sm:$0xff] %v16708_v37  ;;  %v16713_v38 = vpop.f32.mrb[58].mxu1  ;;  %v14064_v22 = vld [vmem:[%s21176_s3 + $0x32c] ss:$16 sps:$4 sm:$0xff]  }
 0x20a   :  { %3087 = vmatprep.subr.bf16.mxu0 %v14058_v26  ;;  %21305 = vst [vmem:[#allocation20_spill] sm:$0xff] %v16713_v38  ;;  %v16718_v26 = vpop.f32.mrb[59].mxu1 }
 0x20b   :  { %21306 = vst [vmem:[#allocation21_spill] sm:$0xff] %v16718_v26  ;;  %v14065_v26 = vld [vmem:[%s21176_s3 + $0x348] ss:$16 sps:$4 sm:$0xff]  }
 0x20d   :  { %3088 = vmatpush1.bf16.msra.mxu0 %v14056_v34  ;;  %v14062_v34 = vld [vmem:[%s21176_s3 + $0x328] ss:$16 sps:$4 sm:$0xff]  }
 0x20e   :  { %3089 = vmatprep.subr.bf16.mxu0 %v14061_v49  ;;  %v14067_v49 = vld [vmem:[%s21176_s3 + $0x34c] ss:$16 sps:$4 sm:$0xff]  }
 0x210   :  { %3043 = vmatmul.mubr.bf16.gmra.mrb[116].mxu0 %v16081_v31 }
 0x211   :  { %3052 = vmatprep.mubr.bf16.mxu0 %v16130_v28  ;;  %3090 = vmatpush1.bf16.msra.mxu0 %v14059_v39  ;;  %v16728_v38 = vpop.f32.mrb[60].mxu1  ;;  %v14070_v39 = vld [vmem:[%s21176_s3 + $0x36c] ss:$16 sps:$4 sm:$0xff]  }
 0x212   :  { %3091 = vmatprep.subr.bf16.mxu0 %v14064_v22  ;;  %21307 = vst [vmem:[#allocation22_spill] sm:$0xff] %v16728_v38  ;;  %v16730_v37 = vpop.f32.mrb[61].mxu1 }
 0x213   :  { %21308 = vst [vmem:[#allocation23_spill] sm:$0xff] %v16730_v37  ;;  %v16735_v45 = vpop.f32.mrb[62].mxu1 }
 0x214   :  { %21309 = vst [vmem:[#allocation24_spill] sm:$0xff] %v16735_v45  ;;  %v16740_v22 = vpop.f32.mrb[63].mxu1 }
 0x215   :  { %3092 = vmatpush1.bf16.msra.mxu0 %v14062_v34  ;;  %21310 = vst [vmem:[#allocation25_spill] sm:$0xff] %v16740_v22  ;;  %v14068_v34 = vld [vmem:[%s21176_s3 + $0x368] ss:$16 sps:$4 sm:$0xff]  }
 0x216   :  { %3093 = vmatprep.subr.bf16.mxu0 %v14067_v49  ;;  %v14073_v49 = vld [vmem:[%s21176_s3 + $0x38c] ss:$16 sps:$4 sm:$0xff]   ;;  %v14071_v22 = vld [vmem:[%s21176_s3 + $0x388] ss:$16 sps:$4 sm:$0xff]  }
 0x218   :  { %3053 = vmatmul.mubr.bf16.gmra.mrb[120].mxu0 %v16122_v24 }
 0x219   :  { %3062 = vmatprep.mubr.bf16.mxu0 %v16156_v6  ;;  %3094 = vmatpush1.bf16.msra.mxu0 %v14065_v26  ;;  %v16750_v45 = vpop.f32.mrb[64].mxu1  ;;  %v14076_v26 = vld [vmem:[%s21176_s3 + $0x3ac] ss:$16 sps:$4 sm:$0xff]  }
 0x21a   :  { %3095 = vmatprep.subr.bf16.mxu0 %v14070_v39  ;;  %21311 = vst [vmem:[#allocation26_spill] sm:$0xff] %v16750_v45  ;;  %v16752_v37 = vpop.f32.mrb[65].mxu1 }
 0x21b   :  { %21312 = vst [vmem:[#allocation27_spill] sm:$0xff] %v16752_v37  ;;  %v16757_v38 = vpop.f32.mrb[66].mxu1 }
 0x21c   :  { %21313 = vst [vmem:[#allocation28_spill] sm:$0xff] %v16757_v38  ;;  %v16762_v39 = vpop.f32.mrb[67].mxu1 }
 0x21d   :  { %3096 = vmatpush1.bf16.msra.mxu0 %v14068_v34  ;;  %21314 = vst [vmem:[#allocation29_spill] sm:$0xff] %v16762_v39  ;;  %v14074_v34 = vld [vmem:[%s21176_s3 + $0x3a8] ss:$16 sps:$4 sm:$0xff]  }
 0x21e   :  { %3097 = vmatprep.subr.bf16.mxu0 %v14073_v49  ;;  %v14079_v49 = vld [vmem:[%s21176_s3 + $0x3cc] ss:$16 sps:$4 sm:$0xff]  }
 0x220   :  { %3063 = vmatmul.mubr.bf16.gmra.mrb[124].mxu0 %v16165_v12 }
 0x221   :  { %3098 = vmatpush1.bf16.msra.mxu0 %v14071_v22  ;;  %3105 = vmatprep.mubr.bf16.mxu0 %v16200_v7  ;;  %v16772_v38 = vpop.f32.mrb[68].mxu1  ;;  %v14077_v22 = vld [vmem:[%s21176_s3 + $0x3c8] ss:$16 sps:$4 sm:$0xff]  }
 0x222   :  { %3099 = vmatprep.subr.bf16.mxu0 %v14076_v26  ;;  %21315 = vst [vmem:[#allocation30_spill] sm:$0xff] %v16772_v38  ;;  %v16774_v37 = vpop.f32.mrb[69].mxu1  ;;  %v14082_v26 = vld [vmem:[%s21176_s3 + $0x3ec] ss:$16 sps:$4 sm:$0xff]   ;;  %v14080_v38 = vld [vmem:[%s21176_s3 + $0x3e8] ss:$16 sps:$4 sm:$0xff]  }
 0x223   :  { %21316 = vst [vmem:[#allocation31_spill] sm:$0xff] %v16774_v37  ;;  %v16779_v39 = vpop.f32.mrb[70].mxu1 }
 0x224   :  { %21317 = vst [vmem:[#allocation32_spill] sm:$0xff] %v16779_v39  ;;  %v16784_v45 = vpop.f32.mrb[71].mxu1 }
 0x225   :  { %3100 = vmatpush1.bf16.msra.mxu0 %v14074_v34  ;;  %21318 = vst [vmem:[#allocation33_spill] sm:$0xff] %v16784_v45  ;;  %v14085_v34 = vld [vmem:[%s21176_s3 + $0x40c] ss:$16 sps:$4 sm:$0xff]  }
 0x226   :  { %3101 = vmatprep.subr.bf16.mxu0 %v14079_v49  ;;  %v14083_v49 = vld [vmem:[%s21176_s3 + $0x408] ss:$16 sps:$4 sm:$0xff]  }
 0x229   :  { %3102 = vmatpush1.bf16.msra.mxu0 %v14077_v22  ;;  %v16792_v37 = vpop.f32.mrb[72].mxu1  ;;  %v14088_v22 = vld [vmem:[%s21176_s3 + $0x42c] ss:$16 sps:$4 sm:$0xff]  }
 0x22a   :  { %3103 = vmatprep.subr.bf16.mxu0 %v14082_v26  ;;  %21319 = vst [vmem:[#allocation34_spill] sm:$0xff] %v16792_v37  ;;  %v16794_v39 = vpop.f32.mrb[73].mxu1 }
 0x22b   :  { %21320 = vst [vmem:[#allocation35_spill] sm:$0xff] %v16794_v39  ;;  %v16799_v45 = vpop.f32.mrb[74].mxu1 }
 0x22c   :  { %21321 = vst [vmem:[#allocation36_spill] sm:$0xff] %v16799_v45  ;;  %v16804_v26 = vpop.f32.mrb[75].mxu1 }
 0x22d   :  { %3104 = vmatpush1.bf16.msra.mxu0 %v14080_v38  ;;  %21322 = vst [vmem:[#allocation37_spill] sm:$0xff] %v16804_v26  ;;  %v14086_v38 = vld [vmem:[%s21176_s3 + $0x428] ss:$16 sps:$4 sm:$0xff]  }
 0x22e   :  { %3176 = vmatprep.subr.bf16.mxu0 %v14085_v34  ;;  %v14091_v34 = vld [vmem:[%s21176_s3 + $0x44c] ss:$16 sps:$4 sm:$0xff]   ;;  %v14089_v26 = vld [vmem:[%s21176_s3 + $0x448] ss:$16 sps:$4 sm:$0xff]  }
 0x230   :  { %3106 = vmatmul.mubr.bf16.vlgmr.msra.gmra.mrb[100].mxu0 %v16195_v2 }
 0x231   :  { %3115 = vmatprep.mubr.bf16.mxu0 %v16225_v0  ;;  %3177 = vmatpush1.bf16.msra.mxu0 %v14083_v49  ;;  %v16814_v45 = vpop.f32.mrb[76].mxu1  ;;  %v14094_v49 = vld [vmem:[%s21176_s3 + $0x46c] ss:$16 sps:$4 sm:$0xff]  }
 0x232   :  { %3178 = vmatprep.subr.bf16.mxu0 %v14088_v22  ;;  %21323 = vst [vmem:[#allocation38_spill] sm:$0xff] %v16814_v45  ;;  %v16816_v39 = vpop.f32.mrb[77].mxu1 }
 0x233   :  { %21324 = vst [vmem:[#allocation39_spill] sm:$0xff] %v16816_v39  ;;  %v16821_v37 = vpop.f32.mrb[78].mxu1 }
 0x234   :  { %21325 = vst [vmem:[#allocation40_spill] sm:$0xff] %v16821_v37  ;;  %v16826_v22 = vpop.f32.mrb[79].mxu1 }
 0x235   :  { %3179 = vmatpush1.bf16.msra.mxu0 %v14086_v38  ;;  %21326 = vst [vmem:[#allocation41_spill] sm:$0xff] %v16826_v22  ;;  %v14092_v38 = vld [vmem:[%s21176_s3 + $0x468] ss:$16 sps:$4 sm:$0xff]  }
 0x236   :  { %3180 = vmatprep.subr.bf16.mxu0 %v14091_v34  ;;  %v14097_v34 = vld [vmem:[%s21176_s3 + $0x48c] ss:$16 sps:$4 sm:$0xff]   ;;  %v14095_v22 = vld [vmem:[%s21176_s3 + $0x488] ss:$16 sps:$4 sm:$0xff]  }
 0x238   :  { %3116 = vmatmul.mubr.bf16.gmra.mrb[104].mxu0 %v16220_v57 }
 0x239   :  { %3125 = vmatprep.mubr.bf16.mxu0 %v16254_v11  ;;  %3181 = vmatpush1.bf16.msra.mxu0 %v14089_v26  ;;  %v16836_v37 = vpop.f32.mrb[80].mxu1  ;;  %v14100_v26 = vld [vmem:[%s21176_s3 + $0x4ac] ss:$16 sps:$4 sm:$0xff]  }
 0x23a   :  { %3182 = vmatprep.subr.bf16.mxu0 %v14094_v49  ;;  %21327 = vst [vmem:[#allocation42_spill] sm:$0xff] %v16836_v37  ;;  %v16838_v39 = vpop.f32.mrb[81].mxu1 }
 0x23b   :  { %21328 = vst [vmem:[#allocation43_spill] sm:$0xff] %v16838_v39  ;;  %v16843_v45 = vpop.f32.mrb[82].mxu1 }
 0x23c   :  { %21329 = vst [vmem:[#allocation44_spill] sm:$0xff] %v16843_v45  ;;  %v16848_v49 = vpop.f32.mrb[83].mxu1 }
 0x23d   :  { %3183 = vmatpush1.bf16.msra.mxu0 %v14092_v38  ;;  %21330 = vst [vmem:[#allocation45_spill] sm:$0xff] %v16848_v49  ;;  %v14098_v38 = vld [vmem:[%s21176_s3 + $0x4a8] ss:$16 sps:$4 sm:$0xff]  }
 0x23e   :  { %3184 = vmatprep.subr.bf16.mxu0 %v14097_v34  ;;  %v14103_v34 = vld [vmem:[%s21176_s3 + $0x4cc] ss:$16 sps:$4 sm:$0xff]   ;;  %v14101_v49 = vld [vmem:[%s21176_s3 + $0x4c8] ss:$16 sps:$4 sm:$0xff]  }
 0x240   :  { %3126 = vmatmul.mubr.bf16.gmra.mrb[108].mxu0 %v16249_v62 }
 0x241   :  { %3135 = vmatprep.mubr.bf16.mxu0 %v16293_v20  ;;  %3185 = vmatpush1.bf16.msra.mxu0 %v14095_v22  ;;  %v16858_v45 = vpop.f32.mrb[84].mxu1  ;;  %v14106_v22 = vld [vmem:[%s21176_s3 + $0x4ec] ss:$16 sps:$4 sm:$0xff]  }
 0x242   :  { %3186 = vmatprep.subr.bf16.mxu0 %v14100_v26  ;;  %21331 = vst [vmem:[#allocation46_spill] sm:$0xff] %v16858_v45  ;;  %v16860_v39 = vpop.f32.mrb[85].mxu1 }
 0x243   :  { %21332 = vst [vmem:[#allocation47_spill] sm:$0xff] %v16860_v39  ;;  %v16865_v37 = vpop.f32.mrb[86].mxu1 }
 0x244   :  { %21333 = vst [vmem:[#allocation48_spill] sm:$0xff] %v16865_v37  ;;  %v16870_v26 = vpop.f32.mrb[87].mxu1 }
 0x245   :  { %3187 = vmatpush1.bf16.msra.mxu0 %v14098_v38  ;;  %21334 = vst [vmem:[#allocation49_spill] sm:$0xff] %v16870_v26  ;;  %v14104_v38 = vld [vmem:[%s21176_s3 + $0x4e8] ss:$16 sps:$4 sm:$0xff]  }
 0x246   :  { %3188 = vmatprep.subr.bf16.mxu0 %v14103_v34  ;;  %v14109_v34 = vld [vmem:[%s21176_s3 + $0x50c] ss:$16 sps:$4 sm:$0xff]   ;;  %v14107_v26 = vld [vmem:[%s21176_s3 + $0x508] ss:$16 sps:$4 sm:$0xff]  }
 0x248   :  { %3136 = vmatmul.mubr.bf16.gmra.mrb[112].mxu0 %v16285_v27 }
 0x249   :  { %3145 = vmatprep.mubr.bf16.mxu0 %v16008_v58  ;;  %3189 = vmatpush1.bf16.msra.mxu0 %v14101_v49  ;;  %v16880_v37 = vpop.f32.mrb[88].mxu1  ;;  %v14112_v49 = vld [vmem:[%s21176_s3 + $0x52c] ss:$16 sps:$4 sm:$0xff]  }
 0x24a   :  { %3190 = vmatprep.subr.bf16.mxu0 %v14106_v22  ;;  %21335 = vst [vmem:[#allocation50_spill] sm:$0xff] %v16880_v37  ;;  %v16882_v39 = vpop.f32.mrb[89].mxu1 }
 0x24b   :  { %21336 = vst [vmem:[#allocation51_spill] sm:$0xff] %v16882_v39  ;;  %v16887_v45 = vpop.f32.mrb[90].mxu1 }
 0x24c   :  { %21337 = vst [vmem:[#allocation52_spill] sm:$0xff] %v16887_v45  ;;  %v16892_v22 = vpop.f32.mrb[91].mxu1 }
 0x24d   :  { %3191 = vmatpush1.bf16.msra.mxu0 %v14104_v38  ;;  %21338 = vst [vmem:[#allocation53_spill] sm:$0xff] %v16892_v22  ;;  %v14110_v38 = vld [vmem:[%s21176_s3 + $0x528] ss:$16 sps:$4 sm:$0xff]  }
 0x24e   :  { %3192 = vmatprep.subr.bf16.mxu0 %v14109_v34  ;;  %v14115_v34 = vld [vmem:[%s21176_s3 + $0x54c] ss:$16 sps:$4 sm:$0xff]   ;;  %v14113_v22 = vld [vmem:[%s21176_s3 + $0x548] ss:$16 sps:$4 sm:$0xff]  }
 0x250   :  { %3146 = vmatmul.mubr.bf16.gmra.mrb[116].mxu0 %v16004_v54 }
 0x251   :  { %3155 = vmatprep.mubr.bf16.mxu0 %v16038_v33  ;;  %3193 = vmatpush1.bf16.msra.mxu0 %v14107_v26  ;;  %v16902_v45 = vpop.f32.mrb[92].mxu1  ;;  %v14118_v26 = vld [vmem:[%s21176_s3 + $0x56c] ss:$16 sps:$4 sm:$0xff]  }
 0x252   :  { %3194 = vmatprep.subr.bf16.mxu0 %v14112_v49  ;;  %21339 = vst [vmem:[#allocation54_spill] sm:$0xff] %v16902_v45  ;;  %v16904_v39 = vpop.f32.mrb[93].mxu1 }
 0x253   :  { %21340 = vst [vmem:[#allocation55_spill] sm:$0xff] %v16904_v39  ;;  %v16909_v37 = vpop.f32.mrb[94].mxu1 }
 0x254   :  { %21341 = vst [vmem:[#allocation56_spill] sm:$0xff] %v16909_v37  ;;  %v16914_v49 = vpop.f32.mrb[95].mxu1  ;;  %v14119_v37 = vld [vmem:[%s21176_s3 + $0x588] ss:$16 sps:$4 sm:$0xff]  }
 0x255   :  { %3195 = vmatpush1.bf16.msra.mxu0 %v14110_v38  ;;  %21342 = vst [vmem:[#allocation57_spill] sm:$0xff] %v16914_v49  ;;  %v14116_v38 = vld [vmem:[%s21176_s3 + $0x568] ss:$16 sps:$4 sm:$0xff]   ;;  %v14124_v49 = vld [vmem:[%s21176_s3 + $0x5ac] ss:$16 sps:$4 sm:$0xff]  }
 0x256   :  { %3196 = vmatprep.subr.bf16.mxu0 %v14115_v34  ;;  %v14121_v34 = vld [vmem:[%s21176_s3 + $0x58c] ss:$16 sps:$4 sm:$0xff]  }
 0x258   :  { %3156 = vmatmul.mubr.bf16.gmra.mrb[120].mxu0 %v16034_v30 }
 0x259   :  { %3165 = vmatprep.mubr.bf16.mxu0 %v16376_v32  ;;  %3197 = vmatpush1.bf16.msra.mxu0 %v14113_v22  ;;  %v14122_v22 = vld [vmem:[%s21176_s3 + $0x5a8] ss:$16 sps:$4 sm:$0xff]  }
 0x25a   :  { %3198 = vmatprep.subr.bf16.mxu0 %v14118_v26  ;;  %v14127_v26 = vld [vmem:[%s21176_s3 + $0x5cc] ss:$16 sps:$4 sm:$0xff]  }
 0x25d   :  { %3199 = vmatpush1.bf16.msra.mxu0 %v14116_v38  ;;  %v14125_v38 = vld [vmem:[%s21176_s3 + $0x5c8] ss:$16 sps:$4 sm:$0xff]  }
 0x25e   :  { %3200 = vmatprep.subr.bf16.mxu0 %v14121_v34  ;;  %v14128_v34 = vld [vmem:[%s21176_s3 + $0x5e8] ss:$16 sps:$4 sm:$0xff]  }
 0x260   :  { %3166 = vmatmul.mubr.bf16.gmra.mrb[124].mxu0 %v16396_v17 }
 0x261   :  { %3201 = vmatpush1.bf16.msra.mxu0 %v14119_v37  ;;  %3208 = vmatprep.mubr.bf16.mxu0 %v16321_v43  ;;  %v14130_v37 = vld [vmem:[%s21176_s3 + $0x5ec] ss:$16 sps:$4 sm:$0xff]  }
 0x262   :  { %3202 = vmatprep.subr.bf16.mxu0 %v14124_v49  ;;  %v14133_v49 = vld [vmem:[%s21178_s4 + $0x4] ss:$16 sps:$4 sm:$0xff]  }
 0x265   :  { %3203 = vmatpush1.bf16.msra.mxu0 %v14122_v22  ;;  %v14131_v22 = vld [vmem:[%s21178_s4] ss:$16 sps:$4 sm:$0xff]  }
 0x266   :  { %3204 = vmatprep.subr.bf16.mxu0 %v14127_v26  ;;  %v14136_v26 = vld [vmem:[%s21178_s4 + $0x24] ss:$16 sps:$4 sm:$0xff]  }
 0x269   :  { %3205 = vmatpush1.bf16.msra.mxu0 %v14125_v38  ;;  %v14134_v38 = vld [vmem:[%s21178_s4 + $0x20] ss:$16 sps:$4 sm:$0xff]  }
 0x26a   :  { %3206 = vmatprep.subr.bf16.mxu0 %v14130_v37  ;;  %v14139_v37 = vld [vmem:[%s21178_s4 + $0x44] ss:$16 sps:$4 sm:$0xff]  }
 0x26d   :  { %3207 = vmatpush1.bf16.msra.mxu0 %v14128_v34  ;;  %v14137_v34 = vld [vmem:[%s21178_s4 + $0x40] ss:$16 sps:$4 sm:$0xff]  }
 0x26e   :  { %4422 = vmatprep.subr.bf16.mxu0 %v14133_v49  ;;  %v14142_v49 = vld [vmem:[%s21178_s4 + $0x64] ss:$16 sps:$4 sm:$0xff]  }
 0x270   :  { %3209 = vmatmul.mubr.bf16.vlgmr.msra.gmra.mrb[100].mxu0 %v16313_v13 }
 0x271   :  { %3218 = vmatprep.mubr.bf16.mxu0 %v16348_v36  ;;  %4423 = vmatpush1.bf16.msra.mxu0 %v14131_v22  ;;  %v14140_v22 = vld [vmem:[%s21178_s4 + $0x60] ss:$16 sps:$4 sm:$0xff]  }
 0x272   :  { %4424 = vmatprep.subr.bf16.mxu0 %v14136_v26  ;;  %v14145_v26 = vld [vmem:[%s21178_s4 + $0x84] ss:$16 sps:$4 sm:$0xff]  }
 0x275   :  { %4425 = vmatpush1.bf16.msra.mxu0 %v14134_v38  ;;  %v14143_v38 = vld [vmem:[%s21178_s4 + $0x80] ss:$16 sps:$4 sm:$0xff]  }
 0x276   :  { %4426 = vmatprep.subr.bf16.mxu0 %v14139_v37  ;;  %v14148_v37 = vld [vmem:[%s21178_s4 + $0xa4] ss:$16 sps:$4 sm:$0xff]  }
 0x278   :  { %3219 = vmatmul.mubr.bf16.gmra.mrb[104].mxu0 %v16338_v50 }
 0x279   :  { %3228 = vmatprep.mubr.bf16.mxu0 %v16378_v48  ;;  %4427 = vmatpush1.bf16.msra.mxu0 %v14137_v34  ;;  %v14146_v34 = vld [vmem:[%s21178_s4 + $0xa0] ss:$16 sps:$4 sm:$0xff]  }
 0x27a   :  { %4428 = vmatprep.subr.bf16.mxu0 %v14142_v49  ;;  %v14151_v49 = vld [vmem:[%s21178_s4 + $0xc4] ss:$16 sps:$4 sm:$0xff]  }
 0x27d   :  { %4429 = vmatpush1.bf16.msra.mxu0 %v14140_v22 }
 0x27e   :  { %4430 = vmatprep.subr.bf16.mxu0 %v14145_v26 }
 0x280   :  { %3229 = vmatmul.mubr.bf16.gmra.mrb[108].mxu0 %v16367_v52 }
 0x281   :  { %3238 = vmatprep.mubr.bf16.mxu0 %v16406_v8  ;;  %4431 = vmatpush1.bf16.msra.mxu0 %v14143_v38  ;;  %v14149_v38 = vld [vmem:[%s21178_s4 + $0xc0] ss:$16 sps:$4 sm:$0xff]  }
 0x282   :  { %4432 = vmatprep.subr.bf16.mxu0 %v14148_v37  ;;  %v14154_v37 = vld [vmem:[%s21178_s4 + $0xe4] ss:$16 sps:$4 sm:$0xff]  }
 0x283   :  { %v16992_v22 = vpop.f32.mrb[72].mxu0 }
 0x284   :  { %21343 = vst [vmem:[#allocation58_spill] sm:$0xff] %v16992_v22  ;;  %v16994_v26 = vpop.f32.mrb[73].mxu0 }
 0x285   :  { %21344 = vst [vmem:[#allocation59_spill] sm:$0xff] %v16994_v26  ;;  %4433 = vmatpush1.bf16.msra.mxu0 %v14146_v34  ;;  %v16996_v39 = vpop.f32.mrb[74].mxu0  ;;  %v14152_v34 = vld [vmem:[%s21178_s4 + $0xe0] ss:$16 sps:$4 sm:$0xff]  }
 0x286   :  { %21345 = vst [vmem:[#allocation60_spill] sm:$0xff] %v16996_v39  ;;  %v17001_v45 = vpop.f32.mrb[75].mxu0  ;;  %4434 = vmatprep.subr.bf16.mxu0 %v14151_v49  ;;  %v14157_v39 = vld [vmem:[%s21178_s4 + $0x104] ss:$16 sps:$4 sm:$0xff]  }
 0x287   :  { %21346 = vst [vmem:[#allocation61_spill] sm:$0xff] %v17001_v45 }
 0x288   :  { %3239 = vmatmul.mubr.bf16.gmra.mrb[112].mxu0 %v16398_v16 }
 0x289   :  { %3248 = vmatprep.mubr.bf16.mxu0 %v16428_v5  ;;  %4435 = vmatpush1.bf16.msra.mxu0 %v14149_v38  ;;  %v14155_v38 = vld [vmem:[%s21178_s4 + $0x100] ss:$16 sps:$4 sm:$0xff]  }
 0x28a   :  { %4436 = vmatprep.subr.bf16.mxu0 %v14154_v37  ;;  %v14160_v37 = vld [vmem:[%s21178_s4 + $0x124] ss:$16 sps:$4 sm:$0xff]  }
 0x28b   :  { %v17014_v45 = vpop.f32.mrb[76].mxu0 }
 0x28c   :  { %21347 = vst [vmem:[#allocation62_spill] sm:$0xff] %v17014_v45  ;;  %v17016_v49 = vpop.f32.mrb[77].mxu0 }
 0x28d   :  { %21348 = vst [vmem:[#allocation63_spill] sm:$0xff] %v17016_v49  ;;  %4437 = vmatpush1.bf16.msra.mxu0 %v14152_v34  ;;  %v17018_v26 = vpop.f32.mrb[78].mxu0  ;;  %v14158_v34 = vld [vmem:[%s21178_s4 + $0x120] ss:$16 sps:$4 sm:$0xff]  }
 0x28e   :  { %21349 = vst [vmem:[#allocation64_spill] sm:$0xff] %v17018_v26  ;;  %v17023_v22 = vpop.f32.mrb[79].mxu0  ;;  %4438 = vmatprep.subr.bf16.mxu0 %v14157_v39  ;;  %v14163_v26 = vld [vmem:[%s21178_s4 + $0x144] ss:$16 sps:$4 sm:$0xff]  }
 0x28f   :  { %21350 = vst [vmem:[#allocation65_spill] sm:$0xff] %v17023_v22 }
 0x290   :  { %3249 = vmatmul.mubr.bf16.gmra.mrb[116].mxu0 %v16426_v4 }
 0x291   :  { %3258 = vmatprep.mubr.bf16.mxu0 %v16451_v44  ;;  %4439 = vmatpush1.bf16.msra.mxu0 %v14155_v38  ;;  %v14161_v38 = vld [vmem:[%s21178_s4 + $0x140] ss:$16 sps:$4 sm:$0xff]  }
 0x292   :  { %4440 = vmatprep.subr.bf16.mxu0 %v14160_v37  ;;  %v14166_v37 = vld [vmem:[%s21178_s4 + $0x164] ss:$16 sps:$4 sm:$0xff]  }
 0x293   :  { %v17036_v22 = vpop.f32.mrb[80].mxu0 }
 0x294   :  { %21351 = vst [vmem:[#allocation66_spill] sm:$0xff] %v17036_v22  ;;  %v17038_v39 = vpop.f32.mrb[81].mxu0 }
 0x295   :  { %21352 = vst [vmem:[#allocation67_spill] sm:$0xff] %v17038_v39  ;;  %4441 = vmatpush1.bf16.msra.mxu0 %v14158_v34  ;;  %v17040_v49 = vpop.f32.mrb[82].mxu0  ;;  %v14164_v34 = vld [vmem:[%s21178_s4 + $0x160] ss:$16 sps:$4 sm:$0xff]  }
 0x296   :  { %21353 = vst [vmem:[#allocation68_spill] sm:$0xff] %v17040_v49  ;;  %v17045_v45 = vpop.f32.mrb[83].mxu0  ;;  %4442 = vmatprep.subr.bf16.mxu0 %v14163_v26  ;;  %v14169_v49 = vld [vmem:[%s21178_s4 + $0x184] ss:$16 sps:$4 sm:$0xff]  }
 0x297   :  { %21354 = vst [vmem:[#allocation69_spill] sm:$0xff] %v17045_v45 }
 0x298   :  { %3259 = vmatmul.mubr.bf16.gmra.mrb[120].mxu0 %v16446_v47 }
 0x299   :  { %3268 = vmatprep.mubr.bf16.mxu0 %v16491_v19  ;;  %4443 = vmatpush1.bf16.msra.mxu0 %v14161_v38  ;;  %v14167_v38 = vld [vmem:[%s21178_s4 + $0x180] ss:$16 sps:$4 sm:$0xff]  }
 0x29a   :  { %4444 = vmatprep.subr.bf16.mxu0 %v14166_v37  ;;  %v14172_v37 = vld [vmem:[%s21178_s4 + $0x1a4] ss:$16 sps:$4 sm:$0xff]  }
 0x29b   :  { %v17058_v45 = vpop.f32.mrb[84].mxu0 }
 0x29c   :  { %21355 = vst [vmem:[#allocation70_spill] sm:$0xff] %v17058_v45  ;;  %v17060_v26 = vpop.f32.mrb[85].mxu0 }
 0x29d   :  { %21356 = vst [vmem:[#allocation71_spill] sm:$0xff] %v17060_v26  ;;  %4445 = vmatpush1.bf16.msra.mxu0 %v14164_v34  ;;  %v17062_v39 = vpop.f32.mrb[86].mxu0  ;;  %v14170_v34 = vld [vmem:[%s21178_s4 + $0x1a0] ss:$16 sps:$4 sm:$0xff]  }
 0x29e   :  { %21357 = vst [vmem:[#allocation72_spill] sm:$0xff] %v17062_v39  ;;  %v17067_v22 = vpop.f32.mrb[87].mxu0  ;;  %4446 = vmatprep.subr.bf16.mxu0 %v14169_v49  ;;  %v14175_v39 = vld [vmem:[%s21178_s4 + $0x1c4] ss:$16 sps:$4 sm:$0xff]  }
 0x29f   :  { %21358 = vst [vmem:[#allocation73_spill] sm:$0xff] %v17067_v22 }
 0x2a0   :  { %3269 = vmatmul.mubr.bf16.gmra.mrb[124].mxu0 %v16497_v56 }
 0x2a1   :  { %4447 = vmatpush1.bf16.msra.mxu0 %v14167_v38  ;;  %4454 = vmatprep.mubr.bf16.mxu0 %v15959_v10  ;;  %v14173_v38 = vld [vmem:[%s21178_s4 + $0x1c0] ss:$16 sps:$4 sm:$0xff]  }
 0x2a2   :  { %4448 = vmatprep.subr.bf16.mxu0 %v14172_v37  ;;  %v14178_v37 = vld [vmem:[%s21178_s4 + $0x1e4] ss:$16 sps:$4 sm:$0xff]  }
 0x2a3   :  { %v17080_v22 = vpop.f32.mrb[88].mxu0 }
 0x2a4   :  { %21359 = vst [vmem:[#allocation74_spill] sm:$0xff] %v17080_v22  ;;  %v17082_v49 = vpop.f32.mrb[89].mxu0  ;;  %v14176_v22 = vld [vmem:[%s21178_s4 + $0x1e0] ss:$16 sps:$4 sm:$0xff]  }
 0x2a5   :  { %21360 = vst [vmem:[#allocation75_spill] sm:$0xff] %v17082_v49  ;;  %4449 = vmatpush1.bf16.msra.mxu0 %v14170_v34  ;;  %v17084_v26 = vpop.f32.mrb[90].mxu0  ;;  %v14181_v34 = vld [vmem:[%s21178_s4 + $0x204] ss:$16 sps:$4 sm:$0xff]  }
 0x2a6   :  { %21361 = vst [vmem:[#allocation76_spill] sm:$0xff] %v17084_v26  ;;  %v17089_v45 = vpop.f32.mrb[91].mxu0  ;;  %4450 = vmatprep.subr.bf16.mxu0 %v14175_v39 }
 0x2a7   :  { %21362 = vst [vmem:[#allocation77_spill] sm:$0xff] %v17089_v45 }
 0x2a9   :  { %4451 = vmatpush1.bf16.msra.mxu0 %v14173_v38  ;;  %v14179_v38 = vld [vmem:[%s21178_s4 + $0x200] ss:$16 sps:$4 sm:$0xff]  }
 0x2aa   :  { %4452 = vmatprep.subr.bf16.mxu0 %v14178_v37  ;;  %v14184_v37 = vld [vmem:[%s21178_s4 + $0x224] ss:$16 sps:$4 sm:$0xff]  }
 0x2ab   :  { %v17100_v26 = vpop.f32.mrb[92].mxu0 }
 0x2ac   :  { %21363 = vst [vmem:[#allocation78_spill] sm:$0xff] %v17100_v26  ;;  %v17102_v49 = vpop.f32.mrb[93].mxu0 }
 0x2ad   :  { %21364 = vst [vmem:[#allocation79_spill] sm:$0xff] %v17102_v49  ;;  %4453 = vmatpush1.bf16.msra.mxu0 %v14176_v22  ;;  %v17104_v39 = vpop.f32.mrb[94].mxu0  ;;  %v14182_v22 = vld [vmem:[%s21178_s4 + $0x220] ss:$16 sps:$4 sm:$0xff]  }
 0x2ae   :  { %21365 = vst [vmem:[#allocation80_spill] sm:$0xff] %v17104_v39  ;;  %v17109_v45 = vpop.f32.mrb[95].mxu0  ;;  %4525 = vmatprep.subr.bf16.mxu0 %v14181_v34  ;;  %v14187_v39 = vld [vmem:[%s21178_s4 + $0x244] ss:$16 sps:$4 sm:$0xff]  }
 0x2af   :  { %21366 = vst [vmem:[#allocation81_spill] sm:$0xff] %v17109_v45 }
 0x2b0   :  { %4455 = vmatmul.mubr.bf16.vlgmr.msra.gmra.mrb[128].mxu0 %v15957_v9 }
 0x2b1   :  { %4464 = vmatprep.mubr.bf16.mxu0 %v15995_v42  ;;  %4526 = vmatpush1.bf16.msra.mxu0 %v14179_v38  ;;  %v14185_v38 = vld [vmem:[%s21178_s4 + $0x240] ss:$16 sps:$4 sm:$0xff]  }
 0x2b2   :  { %4527 = vmatprep.subr.bf16.mxu0 %v14184_v37  ;;  %v14190_v37 = vld [vmem:[%s21178_s4 + $0x264] ss:$16 sps:$4 sm:$0xff]  }
 0x2b3   :  { %v17122_v45 = vpop.f32.mrb[96].mxu0 }
 0x2b4   :  { %21367 = vst [vmem:[#allocation82_spill] sm:$0xff] %v17122_v45  ;;  %v17124_v34 = vpop.f32.mrb[97].mxu0  ;;  %v14196_v45 = vld [vmem:[%s21178_s4 + $0x2a4] ss:$16 sps:$4 sm:$0xff]  }
 0x2b5   :  { %21368 = vst [vmem:[#allocation83_spill] sm:$0xff] %v17124_v34  ;;  %4528 = vmatpush1.bf16.msra.mxu0 %v14182_v22  ;;  %v17126_v49 = vpop.f32.mrb[98].mxu0  ;;  %v14188_v22 = vld [vmem:[%s21178_s4 + $0x260] ss:$16 sps:$4 sm:$0xff]   ;;  %v14193_v34 = vld [vmem:[%s21178_s4 + $0x284] ss:$16 sps:$4 sm:$0xff]  }
 0x2b6   :  { %v17131_v26 = vpop.f32.mrb[99].mxu0  ;;  %4529 = vmatprep.subr.bf16.mxu0 %v14187_v39  ;;  %v14191_v39 = vld [vmem:[%s21178_s4 + $0x280] ss:$16 sps:$4 sm:$0xff]  }
 0x2b8   :  { %4465 = vmatmul.mubr.bf16.gmra.mrb[132].mxu0 %v15993_v40 }
 0x2b9   :  { %4474 = vmatprep.mubr.bf16.mxu0 %v16025_v23  ;;  %4530 = vmatpush1.bf16.msra.mxu0 %v14185_v38  ;;  %v14194_v38 = vld [vmem:[%s21178_s4 + $0x2a0] ss:$16 sps:$4 sm:$0xff]  }
 0x2ba   :  { %4531 = vmatprep.subr.bf16.mxu0 %v14190_v37  ;;  %v14199_v37 = vld [vmem:[%s21178_s4 + $0x2c4] ss:$16 sps:$4 sm:$0xff]  }
 0x2bd   :  { %4532 = vmatpush1.bf16.msra.mxu0 %v14188_v22  ;;  %v14202_v22 = vld [vmem:[%s21178_s4 + $0x2e4] ss:$16 sps:$4 sm:$0xff]  }
 0x2be   :  { %4533 = vmatprep.subr.bf16.mxu0 %v14193_v34  ;;  %v14197_v34 = vld [vmem:[%s21178_s4 + $0x2c0] ss:$16 sps:$4 sm:$0xff]  }
 0x2c0   :  { %4475 = vmatmul.mubr.bf16.gmra.mrb[136].mxu0 %v16023_v21 }
 0x2c1   :  { %4484 = vmatprep.mubr.bf16.mxu0 %v16059_v61  ;;  %4534 = vmatpush1.bf16.msra.mxu0 %v14191_v39  ;;  %v14205_v39 = vld [vmem:[%s21178_s4 + $0x304] ss:$16 sps:$4 sm:$0xff]  }
 0x2c2   :  { %4535 = vmatprep.subr.bf16.mxu0 %v14196_v45  ;;  %v14200_v45 = vld [vmem:[%s21178_s4 + $0x2e0] ss:$16 sps:$4 sm:$0xff]  }
 0x2c5   :  { %4536 = vmatpush1.bf16.msra.mxu0 %v14194_v38  ;;  %v14203_v38 = vld [vmem:[%s21178_s4 + $0x300] ss:$16 sps:$4 sm:$0xff]  }
 0x2c6   :  { %4537 = vmatprep.subr.bf16.mxu0 %v14199_v37  ;;  %v14208_v37 = vld [vmem:[%s21178_s4 + $0x324] ss:$16 sps:$4 sm:$0xff]  }
 0x2c8   :  { %4485 = vmatmul.mubr.bf16.gmra.mrb[140].mxu0 %v16054_v59 }
 0x2c9   :  { %4494 = vmatprep.mubr.bf16.mxu0 %v16083_v35  ;;  %4538 = vmatpush1.bf16.msra.mxu0 %v14197_v34  ;;  %v14206_v34 = vld [vmem:[%s21178_s4 + $0x320] ss:$16 sps:$4 sm:$0xff]  }
 0x2ca   :  { %4539 = vmatprep.subr.bf16.mxu0 %v14202_v22  ;;  %v14211_v22 = vld [vmem:[%s21178_s4 + $0x344] ss:$16 sps:$4 sm:$0xff]  }
 0x2cd   :  { %4540 = vmatpush1.bf16.msra.mxu0 %v14200_v45  ;;  %v14209_v45 = vld [vmem:[%s21178_s4 + $0x340] ss:$16 sps:$4 sm:$0xff]  }
 0x2ce   :  { %4541 = vmatprep.subr.bf16.mxu0 %v14205_v39  ;;  %v14214_v39 = vld [vmem:[%s21178_s4 + $0x364] ss:$16 sps:$4 sm:$0xff]  }
 0x2d0   :  { %4495 = vmatmul.mubr.bf16.gmra.mrb[144].mxu0 %v16081_v31 }
 0x2d1   :  { %4504 = vmatprep.mubr.bf16.mxu0 %v16130_v28  ;;  %4542 = vmatpush1.bf16.msra.mxu0 %v14203_v38  ;;  %v14212_v38 = vld [vmem:[%s21178_s4 + $0x360] ss:$16 sps:$4 sm:$0xff]  }
 0x2d2   :  { %4543 = vmatprep.subr.bf16.mxu0 %v14208_v37  ;;  %v14217_v37 = vld [vmem:[%s21178_s4 + $0x384] ss:$16 sps:$4 sm:$0xff]  }
 0x2d5   :  { %4544 = vmatpush1.bf16.msra.mxu0 %v14206_v34  ;;  %v14215_v34 = vld [vmem:[%s21178_s4 + $0x380] ss:$16 sps:$4 sm:$0xff]  }
 0x2d6   :  { %4545 = vmatprep.subr.bf16.mxu0 %v14211_v22  ;;  %v14220_v22 = vld [vmem:[%s21178_s4 + $0x3a4] ss:$16 sps:$4 sm:$0xff]  }
 0x2d8   :  { %4505 = vmatmul.mubr.bf16.gmra.mrb[148].mxu0 %v16122_v24 }
 0x2d9   :  { %4514 = vmatprep.mubr.bf16.mxu0 %v16156_v6  ;;  %4546 = vmatpush1.bf16.msra.mxu0 %v14209_v45  ;;  %v14218_v45 = vld [vmem:[%s21178_s4 + $0x3a0] ss:$16 sps:$4 sm:$0xff]  }
 0x2da   :  { %4547 = vmatprep.subr.bf16.mxu0 %v14214_v39  ;;  %v14223_v39 = vld [vmem:[%s21178_s4 + $0x3c4] ss:$16 sps:$4 sm:$0xff]  }
 0x2dd   :  { %4548 = vmatpush1.bf16.msra.mxu0 %v14212_v38  ;;  %v14221_v38 = vld [vmem:[%s21178_s4 + $0x3c0] ss:$16 sps:$4 sm:$0xff]  }
 0x2de   :  { %4549 = vmatprep.subr.bf16.mxu0 %v14217_v37  ;;  %v14226_v37 = vld [vmem:[%s21178_s4 + $0x3e4] ss:$16 sps:$4 sm:$0xff]  }
 0x2e0   :  { %4515 = vmatmul.mubr.bf16.gmra.mrb[152].mxu0 %v16165_v12 }
 0x2e1   :  { %4550 = vmatpush1.bf16.msra.mxu0 %v14215_v34  ;;  %4557 = vmatprep.mubr.bf16.mxu0 %v16200_v7  ;;  %v14224_v34 = vld [vmem:[%s21178_s4 + $0x3e0] ss:$16 sps:$4 sm:$0xff]  }
 0x2e2   :  { %4551 = vmatprep.subr.bf16.mxu0 %v14220_v22  ;;  %v14229_v22 = vld [vmem:[%s21178_s4 + $0x404] ss:$16 sps:$4 sm:$0xff]  }
 0x2e5   :  { %4552 = vmatpush1.bf16.msra.mxu0 %v14218_v45  ;;  %v14227_v45 = vld [vmem:[%s21178_s4 + $0x400] ss:$16 sps:$4 sm:$0xff]  }
 0x2e6   :  { %4553 = vmatprep.subr.bf16.mxu0 %v14223_v39  ;;  %v14232_v39 = vld [vmem:[%s21178_s4 + $0x424] ss:$16 sps:$4 sm:$0xff]  }
 0x2e9   :  { %4554 = vmatpush1.bf16.msra.mxu0 %v14221_v38  ;;  %v14230_v38 = vld [vmem:[%s21178_s4 + $0x420] ss:$16 sps:$4 sm:$0xff]  }
 0x2ea   :  { %4555 = vmatprep.subr.bf16.mxu0 %v14226_v37  ;;  %v14235_v37 = vld [vmem:[%s21178_s4 + $0x444] ss:$16 sps:$4 sm:$0xff]  }
 0x2ed   :  { %4556 = vmatpush1.bf16.msra.mxu0 %v14224_v34  ;;  %v14233_v34 = vld [vmem:[%s21178_s4 + $0x440] ss:$16 sps:$4 sm:$0xff]  }
 0x2ee   :  { %4628 = vmatprep.subr.bf16.mxu0 %v14229_v22  ;;  %v14238_v22 = vld [vmem:[%s21178_s4 + $0x464] ss:$16 sps:$4 sm:$0xff]  }
 0x2f0   :  { %4558 = vmatmul.mubr.bf16.vlgmr.msra.gmra.mrb[156].mxu0 %v16195_v2 }
 0x2f1   :  { %4567 = vmatprep.mubr.bf16.mxu0 %v16225_v0  ;;  %4629 = vmatpush1.bf16.msra.mxu0 %v14227_v45  ;;  %v14236_v45 = vld [vmem:[%s21178_s4 + $0x460] ss:$16 sps:$4 sm:$0xff]  }
 0x2f2   :  { %4630 = vmatprep.subr.bf16.mxu0 %v14232_v39  ;;  %v14241_v39 = vld [vmem:[%s21178_s4 + $0x484] ss:$16 sps:$4 sm:$0xff]  }
 0x2f5   :  { %4631 = vmatpush1.bf16.msra.mxu0 %v14230_v38  ;;  %v14239_v38 = vld [vmem:[%s21178_s4 + $0x480] ss:$16 sps:$4 sm:$0xff]  }
 0x2f6   :  { %4632 = vmatprep.subr.bf16.mxu0 %v14235_v37  ;;  %v14244_v37 = vld [vmem:[%s21178_s4 + $0x4a4] ss:$16 sps:$4 sm:$0xff]  }
 0x2f8   :  { %4568 = vmatmul.mubr.bf16.gmra.mrb[160].mxu0 %v16220_v57 }
 0x2f9   :  { %4577 = vmatprep.mubr.bf16.mxu0 %v16254_v11  ;;  %4633 = vmatpush1.bf16.msra.mxu0 %v14233_v34  ;;  %v14242_v34 = vld [vmem:[%s21178_s4 + $0x4a0] ss:$16 sps:$4 sm:$0xff]  }
 0x2fa   :  { %4634 = vmatprep.subr.bf16.mxu0 %v14238_v22  ;;  %v14247_v22 = vld [vmem:[%s21178_s4 + $0x4c4] ss:$16 sps:$4 sm:$0xff]  }
 0x2fd   :  { %4635 = vmatpush1.bf16.msra.mxu0 %v14236_v45  ;;  %v14245_v45 = vld [vmem:[%s21178_s4 + $0x4c0] ss:$16 sps:$4 sm:$0xff]  }
 0x2fe   :  { %4636 = vmatprep.subr.bf16.mxu0 %v14241_v39  ;;  %v14250_v39 = vld [vmem:[%s21178_s4 + $0x4e4] ss:$16 sps:$4 sm:$0xff]  }
 0x300   :  { %4578 = vmatmul.mubr.bf16.gmra.mrb[164].mxu0 %v16249_v62 }
 0x301   :  { %4587 = vmatprep.mubr.bf16.mxu0 %v16293_v20  ;;  %4637 = vmatpush1.bf16.msra.mxu0 %v14239_v38  ;;  %v14248_v38 = vld [vmem:[%s21178_s4 + $0x4e0] ss:$16 sps:$4 sm:$0xff]  }
 0x302   :  { %4638 = vmatprep.subr.bf16.mxu0 %v14244_v37  ;;  %v14253_v37 = vld [vmem:[%s21178_s4 + $0x504] ss:$16 sps:$4 sm:$0xff]  }
 0x305   :  { %4639 = vmatpush1.bf16.msra.mxu0 %v14242_v34  ;;  %v14251_v34 = vld [vmem:[%s21178_s4 + $0x500] ss:$16 sps:$4 sm:$0xff]  }
 0x306   :  { %4640 = vmatprep.subr.bf16.mxu0 %v14247_v22  ;;  %v14256_v22 = vld [vmem:[%s21178_s4 + $0x524] ss:$16 sps:$4 sm:$0xff]  }
 0x308   :  { %4588 = vmatmul.mubr.bf16.gmra.mrb[168].mxu0 %v16285_v27 }
 0x309   :  { %4597 = vmatprep.mubr.bf16.mxu0 %v16008_v58  ;;  %4641 = vmatpush1.bf16.msra.mxu0 %v14245_v45  ;;  %v14254_v45 = vld [vmem:[%s21178_s4 + $0x520] ss:$16 sps:$4 sm:$0xff]  }
 0x30a   :  { %4642 = vmatprep.subr.bf16.mxu0 %v14250_v39  ;;  %v14259_v39 = vld [vmem:[%s21178_s4 + $0x544] ss:$16 sps:$4 sm:$0xff]  }
 0x30d   :  { %4643 = vmatpush1.bf16.msra.mxu0 %v14248_v38  ;;  %v14257_v38 = vld [vmem:[%s21178_s4 + $0x540] ss:$16 sps:$4 sm:$0xff]  }
 0x30e   :  { %4644 = vmatprep.subr.bf16.mxu0 %v14253_v37  ;;  %v14262_v37 = vld [vmem:[%s21178_s4 + $0x564] ss:$16 sps:$4 sm:$0xff]  }
 0x310   :  { %4598 = vmatmul.mubr.bf16.gmra.mrb[172].mxu0 %v16004_v54 }
 0x311   :  { %4607 = vmatprep.mubr.bf16.mxu0 %v16038_v33  ;;  %4645 = vmatpush1.bf16.msra.mxu0 %v14251_v34  ;;  %v14260_v34 = vld [vmem:[%s21178_s4 + $0x560] ss:$16 sps:$4 sm:$0xff]  }
 0x312   :  { %4646 = vmatprep.subr.bf16.mxu0 %v14256_v22  ;;  %v14265_v22 = vld [vmem:[%s21178_s4 + $0x584] ss:$16 sps:$4 sm:$0xff]  }
 0x315   :  { %4647 = vmatpush1.bf16.msra.mxu0 %v14254_v45  ;;  %v14263_v45 = vld [vmem:[%s21178_s4 + $0x580] ss:$16 sps:$4 sm:$0xff]  }
 0x316   :  { %4648 = vmatprep.subr.bf16.mxu0 %v14259_v39  ;;  %v14268_v39 = vld [vmem:[%s21178_s4 + $0x5a4] ss:$16 sps:$4 sm:$0xff]  }
 0x318   :  { %4608 = vmatmul.mubr.bf16.gmra.mrb[176].mxu0 %v16034_v30 }
 0x319   :  { %4617 = vmatprep.mubr.bf16.mxu0 %v16376_v32  ;;  %4649 = vmatpush1.bf16.msra.mxu0 %v14257_v38  ;;  %v14266_v38 = vld [vmem:[%s21178_s4 + $0x5a0] ss:$16 sps:$4 sm:$0xff]  }
 0x31a   :  { %4650 = vmatprep.subr.bf16.mxu0 %v14262_v37  ;;  %v14271_v37 = vld [vmem:[%s21178_s4 + $0x5c4] ss:$16 sps:$4 sm:$0xff]  }
 0x31d   :  { %4651 = vmatpush1.bf16.msra.mxu0 %v14260_v34  ;;  %v14269_v34 = vld [vmem:[%s21178_s4 + $0x5c0] ss:$16 sps:$4 sm:$0xff]  }
 0x31e   :  { %4652 = vmatprep.subr.bf16.mxu0 %v14265_v22  ;;  %v14274_v22 = vld [vmem:[%s21178_s4 + $0x5e4] ss:$16 sps:$4 sm:$0xff]  }
 0x320   :  { %4618 = vmatmul.mubr.bf16.gmra.mrb[180].mxu0 %v16396_v17 }
 0x321   :  { %4653 = vmatpush1.bf16.msra.mxu0 %v14263_v45  ;;  %4660 = vmatprep.mubr.bf16.mxu0 %v16321_v43  ;;  %v14272_v45 = vld [vmem:[%s21178_s4 + $0x5e0] ss:$16 sps:$4 sm:$0xff]  }
 0x322   :  { %4654 = vmatprep.subr.bf16.mxu0 %v14268_v39  ;;  %v14277_v39 = vld [vmem:[%s21178_s4 + $0xc] ss:$16 sps:$4 sm:$0xff]  }
 0x325   :  { %4655 = vmatpush1.bf16.msra.mxu0 %v14266_v38  ;;  %v14275_v38 = vld [vmem:[%s21178_s4 + $0x8] ss:$16 sps:$4 sm:$0xff]  }
 0x326   :  { %4656 = vmatprep.subr.bf16.mxu0 %v14271_v37  ;;  %v14280_v37 = vld [vmem:[%s21178_s4 + $0x2c] ss:$16 sps:$4 sm:$0xff]  }
 0x329   :  { %4657 = vmatpush1.bf16.msra.mxu0 %v14269_v34  ;;  %v14278_v34 = vld [vmem:[%s21178_s4 + $0x28] ss:$16 sps:$4 sm:$0xff]  }
 0x32a   :  { %4658 = vmatprep.subr.bf16.mxu0 %v14274_v22  ;;  %v14283_v22 = vld [vmem:[%s21178_s4 + $0x4c] ss:$16 sps:$4 sm:$0xff]  }
 0x32d   :  { %4659 = vmatpush1.bf16.msra.mxu0 %v14272_v45  ;;  %v14281_v45 = vld [vmem:[%s21178_s4 + $0x48] ss:$16 sps:$4 sm:$0xff]  }
 0x32e   :  { %4834 = vmatprep.subr.bf16.mxu0 %v14277_v39  ;;  %v14286_v39 = vld [vmem:[%s21178_s4 + $0x6c] ss:$16 sps:$4 sm:$0xff]  }
 0x330   :  { %4661 = vmatmul.mubr.bf16.vlgmr.msra.gmra.mrb[156].mxu0 %v16313_v13 }
 0x331   :  { %4670 = vmatprep.mubr.bf16.mxu0 %v16348_v36  ;;  %4835 = vmatpush1.bf16.msra.mxu0 %v14275_v38  ;;  %v14284_v38 = vld [vmem:[%s21178_s4 + $0x68] ss:$16 sps:$4 sm:$0xff]  }
 0x332   :  { %4836 = vmatprep.subr.bf16.mxu0 %v14280_v37  ;;  %v14289_v37 = vld [vmem:[%s21178_s4 + $0x8c] ss:$16 sps:$4 sm:$0xff]  }
 0x335   :  { %4837 = vmatpush1.bf16.msra.mxu0 %v14278_v34  ;;  %v14287_v34 = vld [vmem:[%s21178_s4 + $0x88] ss:$16 sps:$4 sm:$0xff]  }
 0x336   :  { %4838 = vmatprep.subr.bf16.mxu0 %v14283_v22  ;;  %v14292_v22 = vld [vmem:[%s21178_s4 + $0xac] ss:$16 sps:$4 sm:$0xff]  }
 0x338   :  { %4671 = vmatmul.mubr.bf16.gmra.mrb[160].mxu0 %v16338_v50 }
 0x339   :  { %4680 = vmatprep.mubr.bf16.mxu0 %v16378_v48  ;;  %4839 = vmatpush1.bf16.msra.mxu0 %v14281_v45  ;;  %v14290_v45 = vld [vmem:[%s21178_s4 + $0xa8] ss:$16 sps:$4 sm:$0xff]  }
 0x33a   :  { %4840 = vmatprep.subr.bf16.mxu0 %v14286_v39  ;;  %v14295_v39 = vld [vmem:[%s21178_s4 + $0xcc] ss:$16 sps:$4 sm:$0xff]  }
 0x33d   :  { %4841 = vmatpush1.bf16.msra.mxu0 %v14284_v38 }
 0x33e   :  { %4842 = vmatprep.subr.bf16.mxu0 %v14289_v37 }
 0x340   :  { %4681 = vmatmul.mubr.bf16.gmra.mrb[164].mxu0 %v16367_v52 }
 0x341   :  { %4690 = vmatprep.mubr.bf16.mxu0 %v16406_v8  ;;  %4843 = vmatpush1.bf16.msra.mxu0 %v14287_v34  ;;  %v14293_v34 = vld [vmem:[%s21178_s4 + $0xc8] ss:$16 sps:$4 sm:$0xff]  }
 0x342   :  { %4844 = vmatprep.subr.bf16.mxu0 %v14292_v22 }
 0x343   :  { %v3210_v38 = vpop.f32.mrb[100].mxu0 }
 0x344   :  { %v17379_v37 = vadd.f32 %v16618_v63, %v3210_v38  ;;  %v3212_v48 = vpop.f32.mrb[101].mxu0  ;;  %v14298_v63 = vld [vmem:[%s21178_s4 + $0xec] ss:$16 sps:$4 sm:$0xff]  }
 0x345   :  { %v17382_v50 = vadd.f32 %v16620_v55, %v3212_v48  ;;  %v3214_v52 = vpop.f32.mrb[102].mxu0  ;;  %4845 = vmatpush1.bf16.msra.mxu0 %v14290_v45  ;;  %v14296_v48 = vld [vmem:[%s21178_s4 + $0xe8] ss:$16 sps:$4 sm:$0xff]  }
 0x346   :  { %v17388_v22 = vadd.f32 %v16625_v3, %v3214_v52  ;;  %v3216_v8 = vpop.f32.mrb[103].mxu0  ;;  %4846 = vmatprep.subr.bf16.mxu0 %v14295_v39  ;;  %v14301_v52 = vld [vmem:[%s21178_s4 + $0x10c] ss:$16 sps:$4 sm:$0xff]   ;;  %v14299_v39 = vld [vmem:[%s21178_s4 + $0x108] ss:$16 sps:$4 sm:$0xff]  }
 0x347   :  { %v17394_v38 = vadd.f32 %v16630_v29, %v3216_v8 }
 0x348   :  { %4691 = vmatmul.mubr.bf16.gmra.mrb[168].mxu0 %v16398_v16 }
 0x349   :  { %21369 = vst [vmem:[#allocation84_spill] sm:$0xff] %v17394_v38  ;;  %4700 = vmatprep.mubr.bf16.mxu0 %v16428_v5  ;;  %4847 = vmatpush1.bf16.msra.mxu0 %v14293_v34 }
 0x34a   :  { %4848 = vmatprep.subr.bf16.mxu0 %v14298_v63 }
 0x34b   :  { %v3220_v55 = vpop.f32.mrb[104].mxu0 }
 0x34c   :  { %v17405_v3 = vadd.f32 %v16640_v60, %v3220_v55  ;;  %v3222_v8 = vpop.f32.mrb[105].mxu0  ;;  %v14304_v60 = vld [vmem:[%s21178_s4 + $0x12c] ss:$16 sps:$4 sm:$0xff]  }
 0x34d   :  { %v17408_v29 = vadd.f32 %v16642_v41, %v3222_v8  ;;  %v3224_v45 = vpop.f32.mrb[106].mxu0  ;;  %4849 = vmatpush1.bf16.msra.mxu0 %v14296_v48  ;;  %v14302_v41 = vld [vmem:[%s21178_s4 + $0x128] ss:$16 sps:$4 sm:$0xff]  }
 0x34e   :  { %21370 = vst [vmem:[#allocation85_spill] sm:$0xff] %v17405_v3  ;;  %v17414_v34 = vadd.f32 %v16647_v46, %v3224_v45  ;;  %v3226_v63 = vpop.f32.mrb[107].mxu0  ;;  %4850 = vmatprep.subr.bf16.mxu0 %v14301_v52  ;;  %v14307_v46 = vld [vmem:[%s21178_s4 + $0x14c] ss:$16 sps:$4 sm:$0xff]  }
 0x34f   :  { %21371 = vst [vmem:[#allocation86_spill] sm:$0xff] %v17408_v29  ;;  %v17420_v55 = vadd.f32 %v16652_v1, %v3226_v63 }
 0x350   :  { %21372 = vst [vmem:[#allocation87_spill] sm:$0xff] %v17414_v34  ;;  %4701 = vmatmul.mubr.bf16.gmra.mrb[172].mxu0 %v16426_v4 }
 0x351   :  { %21373 = vst [vmem:[#allocation88_spill] sm:$0xff] %v17420_v55  ;;  %4710 = vmatprep.mubr.bf16.mxu0 %v16451_v44  ;;  %4851 = vmatpush1.bf16.msra.mxu0 %v14299_v39  ;;  %v14305_v39 = vld [vmem:[%s21178_s4 + $0x148] ss:$16 sps:$4 sm:$0xff]  }
 0x352   :  { %4852 = vmatprep.subr.bf16.mxu0 %v14304_v60 }
 0x353   :  { %v3230_v48 = vpop.f32.mrb[108].mxu0 }
 0x354   :  { %v17431_v52 = vadd.f32 %v16662_v18, %v3230_v48  ;;  %v3232_v1 = vpop.f32.mrb[109].mxu0  ;;  %v14310_v18 = vld [vmem:[%s21178_s4 + $0x16c] ss:$16 sps:$4 sm:$0xff]  }
 0x355   :  { %v17434_v8 = vadd.f32 %v16664_v51, %v3232_v1  ;;  %v3234_v45 = vpop.f32.mrb[110].mxu0  ;;  %4853 = vmatpush1.bf16.msra.mxu0 %v14302_v41  ;;  %v14308_v51 = vld [vmem:[%s21178_s4 + $0x168] ss:$16 sps:$4 sm:$0xff]  }
 0x356   :  { %21374 = vst [vmem:[#allocation89_spill] sm:$0xff] %v17431_v52  ;;  %v17440_v63 = vadd.f32 %v16669_v25, %v3234_v45  ;;  %v3236_v60 = vpop.f32.mrb[111].mxu0  ;;  %4854 = vmatprep.subr.bf16.mxu0 %v14307_v46  ;;  %v14313_v25 = vld [vmem:[%s21178_s4 + $0x18c] ss:$16 sps:$4 sm:$0xff]  }
 0x357   :  { %21375 = vst [vmem:[#allocation90_spill] sm:$0xff] %v17434_v8  ;;  %v17446_v48 = vadd.f32 %v16674_v53, %v3236_v60  ;;  %v21380_v60 = vld [vmem:[#allocation16_spill] sm:$0xff]  ;;  %v21425_v52 = vld [vmem:[#allocation77_spill] sm:$0xff] }
 0x358   :  { %21376 = vst [vmem:[#allocation91_spill] sm:$0xff] %v17440_v63  ;;  %4711 = vmatmul.mubr.bf16.gmra.mrb[176].mxu0 %v16446_v47 }
 0x359   :  { %21377 = vst [vmem:[#allocation92_spill] sm:$0xff] %v17446_v48  ;;  %4720 = vmatprep.mubr.bf16.mxu0 %v16491_v19  ;;  %4855 = vmatpush1.bf16.msra.mxu0 %v14305_v39  ;;  %v14311_v39 = vld [vmem:[%s21178_s4 + $0x188] ss:$16 sps:$4 sm:$0xff]  }
 0x35a   :  { %4856 = vmatprep.subr.bf16.mxu0 %v14310_v18 }
 0x35b   :  { %v3240_v41 = vpop.f32.mrb[112].mxu0 }
 0x35c   :  { %v17457_v46 = vadd.f32 %v16684_v14, %v3240_v41  ;;  %v3242_v53 = vpop.f32.mrb[113].mxu0  ;;  %v14316_v14 = vld [vmem:[%s21178_s4 + $0x1ac] ss:$16 sps:$4 sm:$0xff]  }
 0x35d   :  { %v17460_v1 = vadd.f32 %v16686_v15, %v3242_v53  ;;  %v3244_v45 = vpop.f32.mrb[114].mxu0  ;;  %4857 = vmatpush1.bf16.msra.mxu0 %v14308_v51  ;;  %v21382_v41 = vld [vmem:[#allocation17_spill] sm:$0xff]  ;;  %v21384_v53 = vld [vmem:[#allocation18_spill] sm:$0xff] }
 0x35e   :  { %21378 = vst [vmem:[#allocation93_spill] sm:$0xff] %v17457_v46  ;;  %v17466_v18 = vadd.f32 %v21380_v60, %v3244_v45  ;;  %v3246_v48 = vpop.f32.mrb[115].mxu0  ;;  %4858 = vmatprep.subr.bf16.mxu0 %v14313_v25  ;;  %v14314_v15 = vld [vmem:[%s21178_s4 + $0x1a8] ss:$16 sps:$4 sm:$0xff]   ;;  %v14319_v51 = vld [vmem:[%s21178_s4 + $0x1cc] ss:$16 sps:$4 sm:$0xff]  }
 0x35f   :  { %21379 = vst [vmem:[#allocation94_spill] sm:$0xff] %v17460_v1  ;;  %v17472_v46 = vadd.f32 %v21382_v41, %v3246_v48  ;;  %v21386_v60 = vld [vmem:[#allocation19_spill] sm:$0xff] }
 0x360   :  { %21381 = vst [vmem:[#allocation16_spill] sm:$0xff] %v17466_v18  ;;  %4721 = vmatmul.mubr.bf16.gmra.mrb[180].mxu0 %v16497_v56 }
 0x361   :  { %21383 = vst [vmem:[#allocation17_spill] sm:$0xff] %v17472_v46  ;;  %4859 = vmatpush1.bf16.msra.mxu0 %v14311_v39  ;;  %4866 = vmatprep.mubr.bf16.mxu0 %v15959_v10  ;;  %v14317_v10 = vld [vmem:[%s21178_s4 + $0x1c8] ss:$16 sps:$4 sm:$0xff]   ;;  %v21388_v46 = vld [vmem:[#allocation20_spill] sm:$0xff] }
 0x362   :  { %4860 = vmatprep.subr.bf16.mxu0 %v14316_v14 }
 0x363   :  { %v3250_v25 = vpop.f32.mrb[116].mxu0 }
 0x364   :  { %v17483_v45 = vadd.f32 %v21384_v53, %v3250_v25  ;;  %v3252_v48 = vpop.f32.mrb[117].mxu0  ;;  %v14322_v25 = vld [vmem:[%s21178_s4 + $0x1ec] ss:$16 sps:$4 sm:$0xff]  }
 0x365   :  { %v17486_v41 = vadd.f32 %v21386_v60, %v3252_v48  ;;  %v3254_v39 = vpop.f32.mrb[118].mxu0  ;;  %4861 = vmatpush1.bf16.msra.mxu0 %v14314_v15  ;;  %v21390_v53 = vld [vmem:[#allocation21_spill] sm:$0xff]  ;;  %v21392_v60 = vld [vmem:[#allocation22_spill] sm:$0xff] }
 0x366   :  { %21385 = vst [vmem:[#allocation18_spill] sm:$0xff] %v17483_v45  ;;  %v17492_v14 = vadd.f32 %v21388_v46, %v3254_v39  ;;  %v3256_v18 = vpop.f32.mrb[119].mxu0  ;;  %4862 = vmatprep.subr.bf16.mxu0 %v14319_v51  ;;  %v14320_v15 = vld [vmem:[%s21178_s4 + $0x1e8] ss:$16 sps:$4 sm:$0xff]   ;;  %v14325_v46 = vld [vmem:[%s21178_s4 + $0x20c] ss:$16 sps:$4 sm:$0xff]  }
 0x367   :  { %21387 = vst [vmem:[#allocation19_spill] sm:$0xff] %v17486_v41  ;;  %v17498_v45 = vadd.f32 %v21390_v53, %v3256_v18  ;;  %v21396_v53 = vld [vmem:[#allocation24_spill] sm:$0xff] }
 0x368   :  { %21389 = vst [vmem:[#allocation20_spill] sm:$0xff] %v17492_v14  ;;  %v21394_v14 = vld [vmem:[#allocation23_spill] sm:$0xff] }
 0x369   :  { %21391 = vst [vmem:[#allocation21_spill] sm:$0xff] %v17498_v45  ;;  %4863 = vmatpush1.bf16.msra.mxu0 %v14317_v10  ;;  %v14323_v10 = vld [vmem:[%s21178_s4 + $0x208] ss:$16 sps:$4 sm:$0xff]  }
 0x36a   :  { %4864 = vmatprep.subr.bf16.mxu0 %v14322_v25 }
 0x36b   :  { %v3260_v48 = vpop.f32.mrb[120].mxu0 }
 0x36c   :  { %v17507_v51 = vadd.f32 %v21392_v60, %v3260_v48  ;;  %v3262_v39 = vpop.f32.mrb[121].mxu0  ;;  %v14328_v48 = vld [vmem:[%s21178_s4 + $0x22c] ss:$16 sps:$4 sm:$0xff]  }
 0x36d   :  { %v17510_v41 = vadd.f32 %v21394_v14, %v3262_v39  ;;  %v3264_v18 = vpop.f32.mrb[122].mxu0  ;;  %4865 = vmatpush1.bf16.msra.mxu0 %v14320_v15  ;;  %v21398_v60 = vld [vmem:[#allocation25_spill] sm:$0xff]  ;;  %v21400_v39 = vld [vmem:[#allocation26_spill] sm:$0xff] }
 0x36e   :  { %21393 = vst [vmem:[#allocation22_spill] sm:$0xff] %v17507_v51  ;;  %v17516_v25 = vadd.f32 %v21396_v53, %v3264_v18  ;;  %v3266_v45 = vpop.f32.mrb[123].mxu0  ;;  %4937 = vmatprep.subr.bf16.mxu0 %v14325_v46  ;;  %v14326_v14 = vld [vmem:[%s21178_s4 + $0x228] ss:$16 sps:$4 sm:$0xff]   ;;  %v14331_v15 = vld [vmem:[%s21178_s4 + $0x24c] ss:$16 sps:$4 sm:$0xff]  }
 0x36f   :  { %21395 = vst [vmem:[#allocation23_spill] sm:$0xff] %v17510_v41  ;;  %v17522_v51 = vadd.f32 %v21398_v60, %v3266_v45  ;;  %v21402_v53 = vld [vmem:[#allocation27_spill] sm:$0xff] }
 0x370   :  { %21397 = vst [vmem:[#allocation24_spill] sm:$0xff] %v17516_v25  ;;  %4867 = vmatmul.mubr.bf16.vlgmr.msra.gmra.mrb[184].mxu0 %v15957_v9 }
 0x371   :  { %21399 = vst [vmem:[#allocation25_spill] sm:$0xff] %v17522_v51  ;;  %4876 = vmatprep.mubr.bf16.mxu0 %v15995_v42  ;;  %4938 = vmatpush1.bf16.msra.mxu0 %v14323_v10  ;;  %v14329_v42 = vld [vmem:[%s21178_s4 + $0x248] ss:$16 sps:$4 sm:$0xff]   ;;  %v21404_v10 = vld [vmem:[#allocation28_spill] sm:$0xff] }
 0x372   :  { %4939 = vmatprep.subr.bf16.mxu0 %v14328_v48 }
 0x373   :  { %v3270_v46 = vpop.f32.mrb[124].mxu0 }
 0x374   :  { %v17533_v18 = vadd.f32 %v21400_v39, %v3270_v46  ;;  %v3272_v45 = vpop.f32.mrb[125].mxu0  ;;  %v14334_v46 = vld [vmem:[%s21178_s4 + $0x26c] ss:$16 sps:$4 sm:$0xff]  }
 0x375   :  { %v17536_v60 = vadd.f32 %v21402_v53, %v3272_v45  ;;  %v3274_v9 = vpop.f32.mrb[126].mxu0  ;;  %4940 = vmatpush1.bf16.msra.mxu0 %v14326_v14  ;;  %v21405_v39 = vld [vmem:[#allocation29_spill] sm:$0xff] }
 0x376   :  { %21401 = vst [vmem:[#allocation26_spill] sm:$0xff] %v17533_v18  ;;  %v17542_v48 = vadd.f32 %v21404_v10, %v3274_v9  ;;  %v3276_v51 = vpop.f32.mrb[127].mxu0  ;;  %4941 = vmatprep.subr.bf16.mxu0 %v14331_v15  ;;  %v14332_v14 = vld [vmem:[%s21178_s4 + $0x268] ss:$16 sps:$4 sm:$0xff]   ;;  %v14337_v15 = vld [vmem:[%s21178_s4 + $0x28c] ss:$16 sps:$4 sm:$0xff]  }
 0x377   :  { %21403 = vst [vmem:[#allocation27_spill] sm:$0xff] %v17536_v60  ;;  %v17548_v18 = vadd.f32 %v21405_v39, %v3276_v51  ;;  %v14335_v51 = vld [vmem:[%s21178_s4 + $0x288] ss:$16 sps:$4 sm:$0xff]   ;;  %v14343_v45 = vld [vmem:[%s21178_s4 + $0x2cc] ss:$16 sps:$4 sm:$0xff]  }
 0x378   :  { %4877 = vmatmul.mubr.bf16.gmra.mrb[188].mxu0 %v15993_v40  ;;  %v14340_v40 = vld [vmem:[%s21178_s4 + $0x2ac] ss:$16 sps:$4 sm:$0xff]  }
 0x379   :  { %4886 = vmatprep.mubr.bf16.mxu0 %v16025_v23  ;;  %4942 = vmatpush1.bf16.msra.mxu0 %v14329_v42  ;;  %v14338_v23 = vld [vmem:[%s21178_s4 + $0x2a8] ss:$16 sps:$4 sm:$0xff]  }
 0x37a   :  { %4943 = vmatprep.subr.bf16.mxu0 %v14334_v46  ;;  %v21406_v46 = vld [vmem:[#allocation58_spill] sm:$0xff] }
 0x37d   :  { %4944 = vmatpush1.bf16.msra.mxu0 %v14332_v14 }
 0x37e   :  { %4945 = vmatprep.subr.bf16.mxu0 %v14337_v15  ;;  %v21407_v15 = vld [vmem:[#allocation59_spill] sm:$0xff] }
 0x380   :  { %4887 = vmatmul.mubr.bf16.gmra.mrb[192].mxu0 %v16023_v21 }
 0x381   :  { %4896 = vmatprep.mubr.bf16.mxu0 %v16059_v61  ;;  %4946 = vmatpush1.bf16.msra.mxu0 %v14335_v51  ;;  %v14341_v61 = vld [vmem:[%s21178_s4 + $0x2c8] ss:$16 sps:$4 sm:$0xff]  }
 0x382   :  { %4947 = vmatprep.subr.bf16.mxu0 %v14340_v40  ;;  %v14349_v40 = vld [vmem:[%s21178_s4 + $0x30c] ss:$16 sps:$4 sm:$0xff]  }
 0x383   :  { %v4456_v53 = vpop.f32.mrb[128].mxu0 }
 0x384   :  { %v17573_v9 = vadd.f32 %v4456_v53, %v17126_v49  ;;  %v4458_v42 = vpop.f32.mrb[129].mxu0  ;;  %v14346_v49 = vld [vmem:[%s21178_s4 + $0x2ec] ss:$16 sps:$4 sm:$0xff]  }
 0x385   :  { %v17576_v10 = vadd.f32 %v4458_v42, %v17131_v26  ;;  %v4460_v21 = vpop.f32.mrb[130].mxu0  ;;  %4948 = vmatpush1.bf16.msra.mxu0 %v14338_v23  ;;  %v14344_v26 = vld [vmem:[%s21178_s4 + $0x2e8] ss:$16 sps:$4 sm:$0xff]  }
 0x386   :  { %v17582_v39 = vadd.f32 %v4460_v21, %v21406_v46  ;;  %v4462_v14 = vpop.f32.mrb[131].mxu0  ;;  %4949 = vmatprep.subr.bf16.mxu0 %v14343_v45  ;;  %v21408_v45 = vld [vmem:[#allocation60_spill] sm:$0xff]  ;;  %v21409_v21 = vld [vmem:[#allocation61_spill] sm:$0xff] }
 0x387   :  { %v17588_v51 = vadd.f32 %v4462_v14, %v21407_v15  ;;  %v14352_v15 = vld [vmem:[%s21178_s4 + $0x32c] ss:$16 sps:$4 sm:$0xff]  }
 0x388   :  { %4897 = vmatmul.mubr.bf16.gmra.mrb[196].mxu0 %v16054_v59 }
 0x389   :  { %4906 = vmatprep.mubr.bf16.mxu0 %v16083_v35  ;;  %4950 = vmatpush1.bf16.msra.mxu0 %v14341_v61  ;;  %v14347_v35 = vld [vmem:[%s21178_s4 + $0x308] ss:$16 sps:$4 sm:$0xff]   ;;  %v21410_v61 = vld [vmem:[#allocation62_spill] sm:$0xff] }
 0x38a   :  { %4951 = vmatprep.subr.bf16.mxu0 %v14346_v49 }
 0x38b   :  { %v4466_v23 = vpop.f32.mrb[132].mxu0 }
 0x38c   :  { %v17599_v53 = vadd.f32 %v4466_v23, %v21408_v45  ;;  %v4468_v42 = vpop.f32.mrb[133].mxu0  ;;  %v21411_v23 = vld [vmem:[#allocation63_spill] sm:$0xff] }
 0x38d   :  { %v17602_v46 = vadd.f32 %v4468_v42, %v21409_v21  ;;  %v4470_v59 = vpop.f32.mrb[134].mxu0  ;;  %4952 = vmatpush1.bf16.msra.mxu0 %v14344_v26  ;;  %v14350_v26 = vld [vmem:[%s21178_s4 + $0x328] ss:$16 sps:$4 sm:$0xff]   ;;  %v21412_v21 = vld [vmem:[#allocation64_spill] sm:$0xff] }
 0x38e   :  { %v17608_v14 = vadd.f32 %v4470_v59, %v21410_v61  ;;  %v4472_v49 = vpop.f32.mrb[135].mxu0  ;;  %4953 = vmatprep.subr.bf16.mxu0 %v14349_v40  ;;  %v14355_v40 = vld [vmem:[%s21178_s4 + $0x34c] ss:$16 sps:$4 sm:$0xff]  }
 0x38f   :  { %v17614_v45 = vadd.f32 %v4472_v49, %v21411_v23  ;;  %v21413_v49 = vld [vmem:[#allocation65_spill] sm:$0xff] }
 0x390   :  { %4907 = vmatmul.mubr.bf16.gmra.mrb[200].mxu0 %v16081_v31 }
 0x391   :  { %4916 = vmatprep.mubr.bf16.mxu0 %v16130_v28  ;;  %4954 = vmatpush1.bf16.msra.mxu0 %v14347_v35  ;;  %v14353_v28 = vld [vmem:[%s21178_s4 + $0x348] ss:$16 sps:$4 sm:$0xff]   ;;  %v21414_v35 = vld [vmem:[#allocation66_spill] sm:$0xff] }
 0x392   :  { %4955 = vmatprep.subr.bf16.mxu0 %v14352_v15 }
 0x393   :  { %v4476_v42 = vpop.f32.mrb[136].mxu0 }
 0x394   :  { %v17625_v59 = vadd.f32 %v4476_v42, %v21412_v21  ;;  %v4478_v61 = vpop.f32.mrb[137].mxu0  ;;  %v14358_v42 = vld [vmem:[%s21178_s4 + $0x36c] ss:$16 sps:$4 sm:$0xff]  }
 0x395   :  { %v17628_v23 = vadd.f32 %v4478_v61, %v21413_v49  ;;  %v4480_v31 = vpop.f32.mrb[138].mxu0  ;;  %4956 = vmatpush1.bf16.msra.mxu0 %v14350_v26  ;;  %v21415_v21 = vld [vmem:[#allocation67_spill] sm:$0xff]  ;;  %v21416_v49 = vld [vmem:[#allocation68_spill] sm:$0xff] }
 0x396   :  { %v17634_v15 = vadd.f32 %v4480_v31, %v21414_v35  ;;  %v4482_v60 = vpop.f32.mrb[139].mxu0  ;;  %4957 = vmatprep.subr.bf16.mxu0 %v14355_v40  ;;  %v14356_v26 = vld [vmem:[%s21178_s4 + $0x368] ss:$16 sps:$4 sm:$0xff]   ;;  %v14361_v40 = vld [vmem:[%s21178_s4 + $0x38c] ss:$16 sps:$4 sm:$0xff]  }
 0x397   :  { %v17640_v25 = vadd.f32 %v4482_v60, %v21415_v21  ;;  %v21417_v35 = vld [vmem:[#allocation69_spill] sm:$0xff] }
 0x398   :  { %4917 = vmatmul.mubr.bf16.gmra.mrb[204].mxu0 %v16122_v24 }
 0x399   :  { %4926 = vmatprep.mubr.bf16.mxu0 %v16156_v6  ;;  %4958 = vmatpush1.bf16.msra.mxu0 %v14353_v28  ;;  %v14359_v6 = vld [vmem:[%s21178_s4 + $0x388] ss:$16 sps:$4 sm:$0xff]   ;;  %v21418_v28 = vld [vmem:[#allocation70_spill] sm:$0xff] }
 0x39a   :  { %4959 = vmatprep.subr.bf16.mxu0 %v14358_v42 }
 0x39b   :  { %v4486_v61 = vpop.f32.mrb[140].mxu0 }
 0x39c   :  { %v17651_v31 = vadd.f32 %v4486_v61, %v21416_v49  ;;  %v4488_v60 = vpop.f32.mrb[141].mxu0  ;;  %v14364_v61 = vld [vmem:[%s21178_s4 + $0x3ac] ss:$16 sps:$4 sm:$0xff]  }
 0x39d   :  { %v17654_v21 = vadd.f32 %v4488_v60, %v21417_v35  ;;  %v4490_v24 = vpop.f32.mrb[142].mxu0  ;;  %4960 = vmatpush1.bf16.msra.mxu0 %v14356_v26  ;;  %v21419_v49 = vld [vmem:[#allocation71_spill] sm:$0xff]  ;;  %v21420_v35 = vld [vmem:[#allocation72_spill] sm:$0xff] }
 0x39e   :  { %v17660_v42 = vadd.f32 %v4490_v24, %v21418_v28  ;;  %v4492_v41 = vpop.f32.mrb[143].mxu0  ;;  %4961 = vmatprep.subr.bf16.mxu0 %v14361_v40  ;;  %v14362_v26 = vld [vmem:[%s21178_s4 + $0x3a8] ss:$16 sps:$4 sm:$0xff]   ;;  %v14367_v40 = vld [vmem:[%s21178_s4 + $0x3cc] ss:$16 sps:$4 sm:$0xff]  }
 0x39f   :  { %v17666_v1 = vadd.f32 %v4492_v41, %v21419_v49  ;;  %v21421_v28 = vld [vmem:[#allocation73_spill] sm:$0xff] }
 0x3a0   :  { %4927 = vmatmul.mubr.bf16.gmra.mrb[208].mxu0 %v16165_v12 }
 0x3a1   :  { %4962 = vmatpush1.bf16.msra.mxu0 %v14359_v6  ;;  %4969 = vmatprep.mubr.bf16.mxu0 %v16200_v7  ;;  %v14365_v7 = vld [vmem:[%s21178_s4 + $0x3c8] ss:$16 sps:$4 sm:$0xff]   ;;  %v21422_v6 = vld [vmem:[#allocation74_spill] sm:$0xff] }
 0x3a2   :  { %4963 = vmatprep.subr.bf16.mxu0 %v14364_v61 }
 0x3a3   :  { %v4496_v60 = vpop.f32.mrb[144].mxu0 }
 0x3a4   :  { %v17677_v24 = vadd.f32 %v4496_v60, %v21420_v35  ;;  %v4498_v41 = vpop.f32.mrb[145].mxu0  ;;  %v14370_v60 = vld [vmem:[%s21178_s4 + $0x3ec] ss:$16 sps:$4 sm:$0xff]  }
 0x3a5   :  { %v17680_v49 = vadd.f32 %v4498_v41, %v21421_v28  ;;  %v4500_v12 = vpop.f32.mrb[146].mxu0  ;;  %4964 = vmatpush1.bf16.msra.mxu0 %v14362_v26  ;;  %v21423_v35 = vld [vmem:[#allocation75_spill] sm:$0xff] }
 0x3a6   :  { %v17686_v61 = vadd.f32 %v4500_v12, %v21422_v6  ;;  %v4502_v63 = vpop.f32.mrb[147].mxu0  ;;  %4965 = vmatprep.subr.bf16.mxu0 %v14367_v40  ;;  %v14368_v26 = vld [vmem:[%s21178_s4 + $0x3e8] ss:$16 sps:$4 sm:$0xff]   ;;  %v14373_v41 = vld [vmem:[%s21178_s4 + $0x40c] ss:$16 sps:$4 sm:$0xff]   ;;  %v21424_v12 = vld [vmem:[#allocation76_spill] sm:$0xff] }
 0x3a7   :  { %v17692_v8 = vadd.f32 %v4502_v63, %v21423_v35  ;;  %v21426_v35 = vld [vmem:[#allocation78_spill] sm:$0xff] }
 0x3a9   :  { %4966 = vmatpush1.bf16.msra.mxu0 %v14365_v7  ;;  %v14371_v7 = vld [vmem:[%s21178_s4 + $0x408] ss:$16 sps:$4 sm:$0xff]  }
 0x3aa   :  { %4967 = vmatprep.subr.bf16.mxu0 %v14370_v60 }
 0x3ab   :  { %v4506_v28 = vpop.f32.mrb[148].mxu0 }
 0x3ac   :  { %v17701_v40 = vadd.f32 %v4506_v28, %v21424_v12  ;;  %v4508_v6 = vpop.f32.mrb[149].mxu0  ;;  %v14376_v28 = vld [vmem:[%s21178_s4 + $0x42c] ss:$16 sps:$4 sm:$0xff]  }
 0x3ad   :  { %v17704_v55 = vadd.f32 %v4508_v6, %v21425_v52  ;;  %v4510_v63 = vpop.f32.mrb[150].mxu0  ;;  %4968 = vmatpush1.bf16.msra.mxu0 %v14368_v26  ;;  %v21427_v12 = vld [vmem:[#allocation79_spill] sm:$0xff]  ;;  %v21428_v6 = vld [vmem:[#allocation80_spill] sm:$0xff] }
 0x3ae   :  { %v17710_v60 = vadd.f32 %v4510_v63, %v21426_v35  ;;  %v4512_v34 = vpop.f32.mrb[151].mxu0  ;;  %5040 = vmatprep.subr.bf16.mxu0 %v14373_v41  ;;  %v14374_v52 = vld [vmem:[%s21178_s4 + $0x428] ss:$16 sps:$4 sm:$0xff]   ;;  %v14379_v26 = vld [vmem:[%s21178_s4 + $0x44c] ss:$16 sps:$4 sm:$0xff]  }
 0x3af   :  { %v17716_v29 = vadd.f32 %v4512_v34, %v21427_v12  ;;  %v21429_v35 = vld [vmem:[#allocation81_spill] sm:$0xff] }
 0x3b0   :  { %4970 = vmatmul.mubr.bf16.vlgmr.msra.gmra.mrb[212].mxu0 %v16195_v2 }
 0x3b1   :  { %4979 = vmatprep.mubr.bf16.mxu0 %v16225_v0  ;;  %5041 = vmatpush1.bf16.msra.mxu0 %v14371_v7  ;;  %v14377_v0 = vld [vmem:[%s21178_s4 + $0x448] ss:$16 sps:$4 sm:$0xff]   ;;  %v21430_v7 = vld [vmem:[#allocation82_spill] sm:$0xff] }
 0x3b2   :  { %5042 = vmatprep.subr.bf16.mxu0 %v14376_v28 }
 0x3b3   :  { %v4516_v41 = vpop.f32.mrb[152].mxu0 }
 0x3b4   :  { %v17727_v63 = vadd.f32 %v4516_v41, %v21428_v6  ;;  %v4518_v34 = vpop.f32.mrb[153].mxu0  ;;  %v14382_v41 = vld [vmem:[%s21178_s4 + $0x46c] ss:$16 sps:$4 sm:$0xff]  }
 0x3b5   :  { %v17730_v12 = vadd.f32 %v4518_v34, %v21429_v35  ;;  %v4520_v2 = vpop.f32.mrb[154].mxu0  ;;  %5043 = vmatpush1.bf16.msra.mxu0 %v14374_v52  ;;  %v21431_v6 = vld [vmem:[#allocation83_spill] sm:$0xff] }
 0x3b6   :  { %v17736_v28 = vadd.f32 %v4520_v2, %v21430_v7  ;;  %v4522_v3 = vpop.f32.mrb[155].mxu0  ;;  %5044 = vmatprep.subr.bf16.mxu0 %v14379_v26  ;;  %v14380_v52 = vld [vmem:[%s21178_s4 + $0x468] ss:$16 sps:$4 sm:$0xff]   ;;  %v14385_v26 = vld [vmem:[%s21178_s4 + $0x48c] ss:$16 sps:$4 sm:$0xff]  }
 0x3b7   :  { %v17742_v38 = vadd.f32 %v4522_v3, %v21431_v6  ;;  %v14383_v3 = vld [vmem:[%s21178_s4 + $0x488] ss:$16 sps:$4 sm:$0xff]   ;;  %v14391_v34 = vld [vmem:[%s21178_s4 + $0x4cc] ss:$16 sps:$4 sm:$0xff]  }
 0x3b8   :  { %4980 = vmatmul.mubr.bf16.gmra.mrb[216].mxu0 %v16220_v57  ;;  %v14388_v57 = vld [vmem:[%s21178_s4 + $0x4ac] ss:$16 sps:$4 sm:$0xff]   ;;  %v14389_v35 = vld [vmem:[%s21178_s4 + $0x4c8] ss:$16 sps:$4 sm:$0xff]  }
 0x3b9   :  { %4989 = vmatprep.mubr.bf16.mxu0 %v16254_v11  ;;  %5045 = vmatpush1.bf16.msra.mxu0 %v14377_v0  ;;  %v14386_v11 = vld [vmem:[%s21178_s4 + $0x4a8] ss:$16 sps:$4 sm:$0xff]   ;;  %v14397_v2 = vld [vmem:[%s21178_s4 + $0x50c] ss:$16 sps:$4 sm:$0xff]  }
 0x3ba   :  { %5046 = vmatprep.subr.bf16.mxu0 %v14382_v41  ;;  %v14395_v0 = vld [vmem:[%s21178_s4 + $0x508] ss:$16 sps:$4 sm:$0xff]   ;;  %v14403_v7 = vld [vmem:[%s21178_s4 + $0x54c] ss:$16 sps:$4 sm:$0xff]  }
 0x3bb   :  { %v14401_v41 = vld [vmem:[%s21178_s4 + $0x548] ss:$16 sps:$4 sm:$0xff]   ;;  %v14409_v6 = vld [vmem:[%s21178_s4 + $0x58c] ss:$16 sps:$4 sm:$0xff]  }
 0x3bd   :  { %5047 = vmatpush1.bf16.msra.mxu0 %v14380_v52  ;;  %v14407_v52 = vld [vmem:[%s21178_s4 + $0x588] ss:$16 sps:$4 sm:$0xff]  }
 0x3be   :  { %5048 = vmatprep.subr.bf16.mxu0 %v14385_v26  ;;  %v14415_v26 = vld [vmem:[%s21178_s4 + $0x5cc] ss:$16 sps:$4 sm:$0xff]  }
 0x3c0   :  { %4990 = vmatmul.mubr.bf16.gmra.mrb[220].mxu0 %v16249_v62  ;;  %v14394_v62 = vld [vmem:[%s21178_s4 + $0x4ec] ss:$16 sps:$4 sm:$0xff]  }
 0x3c1   :  { %4999 = vmatprep.mubr.bf16.mxu0 %v16293_v20  ;;  %5049 = vmatpush1.bf16.msra.mxu0 %v14383_v3  ;;  %v14392_v20 = vld [vmem:[%s21178_s4 + $0x4e8] ss:$16 sps:$4 sm:$0xff]  }
 0x3c2   :  { %5050 = vmatprep.subr.bf16.mxu0 %v14388_v57  ;;  %v14413_v3 = vld [vmem:[%s21178_s4 + $0x5c8] ss:$16 sps:$4 sm:$0xff]   ;;  %v14421_v57 = vld [vmem:[%s21178_s4 + $0x60c] ss:$16 sps:$4 sm:$0xff]  }
 0x3c5   :  { %5051 = vmatpush1.bf16.msra.mxu0 %v14386_v11  ;;  %v14419_v11 = vld [vmem:[%s21178_s4 + $0x608] ss:$16 sps:$4 sm:$0xff]  }
 0x3c6   :  { %5052 = vmatprep.subr.bf16.mxu0 %v14391_v34  ;;  %v14424_v34 = vld [vmem:[%s21178_s4 + $0x62c] ss:$16 sps:$4 sm:$0xff]  }
 0x3c8   :  { %5000 = vmatmul.mubr.bf16.gmra.mrb[224].mxu0 %v16285_v27  ;;  %v14398_v27 = vld [vmem:[%s21178_s4 + $0x528] ss:$16 sps:$4 sm:$0xff]  }
 0x3c9   :  { %5009 = vmatprep.mubr.bf16.mxu0 %v16008_v58  ;;  %5053 = vmatpush1.bf16.msra.mxu0 %v14389_v35  ;;  %v14400_v58 = vld [vmem:[%s21178_s4 + $0x52c] ss:$16 sps:$4 sm:$0xff]   ;;  %v14422_v35 = vld [vmem:[%s21178_s4 + $0x628] ss:$16 sps:$4 sm:$0xff]  }
 0x3ca   :  { %5054 = vmatprep.subr.bf16.mxu0 %v14394_v62  ;;  %v14427_v62 = vld [vmem:[%s21178_s4 + $0x64c] ss:$16 sps:$4 sm:$0xff]  }
 0x3cd   :  { %5055 = vmatpush1.bf16.msra.mxu0 %v14392_v20  ;;  %v14425_v20 = vld [vmem:[%s21178_s4 + $0x648] ss:$16 sps:$4 sm:$0xff]  }
 0x3ce   :  { %5056 = vmatprep.subr.bf16.mxu0 %v14397_v2  ;;  %v21433_v2 = vld [vmem:[#allocation14_spill] sm:$0xff] }
 0x3d0   :  { %5010 = vmatmul.mubr.bf16.gmra.mrb[228].mxu0 %v16004_v54  ;;  %v14406_v54 = vld [vmem:[%s21178_s4 + $0x56c] ss:$16 sps:$4 sm:$0xff]  }
 0x3d1   :  { %5019 = vmatprep.mubr.bf16.mxu0 %v16038_v33  ;;  %5057 = vmatpush1.bf16.msra.mxu0 %v14395_v0  ;;  %v14404_v33 = vld [vmem:[%s21178_s4 + $0x568] ss:$16 sps:$4 sm:$0xff]  }
 0x3d2   :  { %5058 = vmatprep.subr.bf16.mxu0 %v14400_v58  ;;  %v14428_v0 = vld [vmem:[%s21178_s4 + $0x668] ss:$16 sps:$4 sm:$0xff]  }
 0x3d3   :  { %v21434_v58 = vld [vmem:[#allocation13_spill] sm:$0xff] }
 0x3d5   :  { %5059 = vmatpush1.bf16.msra.mxu0 %v14398_v27  ;;  %v21435_v27 = vld [vmem:[#allocation15_spill] sm:$0xff] }
 0x3d6   :  { %5060 = vmatprep.subr.bf16.mxu0 %v14403_v7 }
 0x3d8   :  { %5020 = vmatmul.mubr.bf16.gmra.mrb[232].mxu0 %v16034_v30  ;;  %v14412_v30 = vld [vmem:[%s21178_s4 + $0x5ac] ss:$16 sps:$4 sm:$0xff]  }
 0x3d9   :  { %5029 = vmatprep.mubr.bf16.mxu0 %v16376_v32  ;;  %5061 = vmatpush1.bf16.msra.mxu0 %v14401_v41  ;;  %v14410_v32 = vld [vmem:[%s21178_s4 + $0x5a8] ss:$16 sps:$4 sm:$0xff]  }
 0x3da   :  { %5062 = vmatprep.subr.bf16.mxu0 %v14406_v54 }
 0x3dd   :  { %5063 = vmatpush1.bf16.msra.mxu0 %v14404_v33 }
 0x3de   :  { %5064 = vmatprep.subr.bf16.mxu0 %v14409_v6 }
 0x3e0   :  { %5030 = vmatmul.mubr.bf16.gmra.mrb[236].mxu0 %v16396_v17  ;;  %v14418_v17 = vld [vmem:[%s21178_s4 + $0x5ec] ss:$16 sps:$4 sm:$0xff]  }
 0x3e1   :  { %5065 = vmatpush1.bf16.msra.mxu0 %v14407_v52  ;;  %5072 = vmatprep.mubr.bf16.mxu0 %v16321_v43  ;;  %v14416_v43 = vld [vmem:[%s21178_s4 + $0x5e8] ss:$16 sps:$4 sm:$0xff]   ;;  %v21436_v52 = vld [vmem:[#allocation30_spill] sm:$0xff] }
 0x3e2   :  { %5066 = vmatprep.subr.bf16.mxu0 %v14412_v30 }
 0x3e5   :  { %5067 = vmatpush1.bf16.msra.mxu0 %v14410_v32 }
 0x3e6   :  { %5068 = vmatprep.subr.bf16.mxu0 %v14415_v26 }
 0x3e9   :  { %5069 = vmatpush1.bf16.msra.mxu0 %v14413_v3  ;;  %v21437_v3 = vld [vmem:[#allocation31_spill] sm:$0xff] }
 0x3ea   :  { %5070 = vmatprep.subr.bf16.mxu0 %v14418_v17 }
 0x3ed   :  { %5071 = vmatpush1.bf16.msra.mxu0 %v14416_v43 }
 0x3ee   :  { %5143 = vmatprep.subr.bf16.mxu0 %v14421_v57  ;;  %v21438_v57 = vld [vmem:[#allocation32_spill] sm:$0xff] }
 0x3f0   :  { %5073 = vmatmul.mubr.bf16.vlgmr.msra.gmra.mrb[212].mxu0 %v16313_v13  ;;  %v14430_v13 = vld [vmem:[%s21178_s4 + $0x66c] ss:$16 sps:$4 sm:$0xff]  }
 0x3f1   :  { %5082 = vmatprep.mubr.bf16.mxu0 %v16348_v36  ;;  %5144 = vmatpush1.bf16.msra.mxu0 %v14419_v11  ;;  %v21432_v36 = vld [vmem:[#allocation12_spill] sm:$0xff] }
 0x3f2   :  { %5145 = vmatprep.subr.bf16.mxu0 %v14424_v34 }
 0x3f5   :  { %5146 = vmatpush1.bf16.msra.mxu0 %v14422_v35 }
 0x3f6   :  { %5147 = vmatprep.subr.bf16.mxu0 %v14427_v62 }
 0x3f8   :  { %5083 = vmatmul.mubr.bf16.gmra.mrb[216].mxu0 %v21432_v36 }
 0x3f9   :  { %5092 = vmatprep.mubr.bf16.mxu0 %v21433_v2  ;;  %5148 = vmatpush1.bf16.msra.mxu0 %v14425_v20 }
 0x3fa   :  { %5149 = vmatprep.subr.bf16.mxu0 %v14430_v13  ;;  %v21440_v13 = vld [vmem:[#allocation34_spill] sm:$0xff] }
 0x3fd   :  { %5150 = vmatpush1.bf16.msra.mxu0 %v14428_v0  ;;  %v21441_v0 = vld [vmem:[#allocation35_spill] sm:$0xff] }
 0x400   :  { %5093 = vmatmul.mubr.bf16.gmra.mrb[220].mxu0 %v21434_v58 }
 0x401   :  { %5102 = vmatprep.mubr.bf16.mxu0 %v21435_v27  ;;  %v21442_v27 = vld [vmem:[#allocation36_spill] sm:$0xff] }
 0x403   :  { %v4662_v7 = vpop.f32.mrb[156].mxu0 }
 0x404   :  { %v13222_v41 = vadd.f32 %v4662_v7, %v17573_v9  ;;  %v4664_v54 = vpop.f32.mrb[157].mxu0  ;;  %v21439_v9 = vld [vmem:[#allocation33_spill] sm:$0xff] }
 0x405   :  { %v13224_v33 = vadd.f32 %v4664_v54, %v17576_v10  ;;  %v4666_v6 = vpop.f32.mrb[158].mxu0 }
 0x406   :  { %v17864_v30 = vadd.f32 %v13222_v41, %v21436_v52  ;;  %v13226_v32 = vadd.f32 %v4666_v6, %v17582_v39  ;;  %v4668_v26 = vpop.f32.mrb[159].mxu0  ;;  %v21446_v6 = vld [vmem:[#allocation38_spill] sm:$0xff] }
 0x407   :  { %v17868_v17 = vadd.f32 %v13224_v33, %v21437_v3  ;;  %v13228_v43 = vadd.f32 %v4668_v26, %v17588_v51  ;;  %v21447_v26 = vld [vmem:[#allocation39_spill] sm:$0xff] }
 0x408   :  { %v17872_v11 = vadd.f32 %v13226_v32, %v21438_v57  ;;  %5103 = vmatmul.mubr.bf16.gmra.mrb[224].mxu0 %v16398_v16 }
 0x409   :  { %v17876_v34 = vadd.f32 %v13228_v43, %v21439_v9  ;;  %5112 = vmatprep.mubr.bf16.mxu0 %v16428_v5  ;;  %v21448_v43 = vld [vmem:[#allocation40_spill] sm:$0xff] }
 0x40b   :  { %v4672_v10 = vpop.f32.mrb[160].mxu0 }
 0x40c   :  { %v13230_v35 = vadd.f32 %v4672_v10, %v17599_v53  ;;  %v4674_v39 = vpop.f32.mrb[161].mxu0  ;;  %v21444_v53 = vld [vmem:[#allocation37_spill] sm:$0xff] }
 0x40d   :  { %v13232_v62 = vadd.f32 %v4674_v39, %v17602_v46  ;;  %v4676_v20 = vpop.f32.mrb[162].mxu0  ;;  %v21450_v39 = vld [vmem:[#allocation42_spill] sm:$0xff] }
 0x40e   :  { %v17882_v36 = vadd.f32 %v13230_v35, %v21440_v13  ;;  %v13234_v51 = vadd.f32 %v4676_v20, %v17608_v14  ;;  %v4678_v2 = vpop.f32.mrb[163].mxu0  ;;  %v21451_v13 = vld [vmem:[#allocation43_spill] sm:$0xff] }
 0x40f   :  { %v17886_v16 = vadd.f32 %v13232_v62, %v21441_v0  ;;  %v13236_v58 = vadd.f32 %v4678_v2, %v17614_v45  ;;  %v21452_v2 = vld [vmem:[#allocation44_spill] sm:$0xff] }
 0x410   :  { %v17890_v5 = vadd.f32 %v13234_v51, %v21442_v27  ;;  %5113 = vmatmul.mubr.bf16.gmra.mrb[228].mxu0 %v16426_v4 }
 0x411   :  { %v17894_v7 = vadd.f32 %v13236_v58, %v21444_v53  ;;  %5122 = vmatprep.mubr.bf16.mxu0 %v16451_v44 }
 0x412   :  { %21443 = vst [vmem:[#allocation28_spill] sm:$0xff] %v17890_v5 }
 0x413   :  { %21445 = vst [vmem:[#allocation29_spill] sm:$0xff] %v17894_v7  ;;  %v4682_v46 = vpop.f32.mrb[164].mxu0  ;;  %v21500_v7 = vld [vmem:[#allocation27_spill] sm:$0xff] }
 0x414   :  { %v13238_v41 = vadd.f32 %v4682_v46, %v17625_v59  ;;  %v4684_v14 = vpop.f32.mrb[165].mxu0  ;;  %v21449_v59 = vld [vmem:[#allocation41_spill] sm:$0xff] }
 0x415   :  { %v13240_v54 = vadd.f32 %v4684_v14, %v17628_v23  ;;  %v4686_v33 = vpop.f32.mrb[166].mxu0 }
 0x416   :  { %v17900_v52 = vadd.f32 %v13238_v41, %v21446_v6  ;;  %v13242_v45 = vadd.f32 %v4686_v33, %v17634_v15  ;;  %v4688_v32 = vpop.f32.mrb[167].mxu0  ;;  %v21455_v41 = vld [vmem:[#allocation46_spill] sm:$0xff]  ;;  %v21456_v33 = vld [vmem:[#allocation47_spill] sm:$0xff] }
 0x417   :  { %v17904_v4 = vadd.f32 %v13240_v54, %v21447_v26  ;;  %v13244_v3 = vadd.f32 %v4688_v32, %v17640_v25  ;;  %v21458_v26 = vld [vmem:[#allocation5_spill] sm:$0xff] }
 0x418   :  { %v17908_v44 = vadd.f32 %v13242_v45, %v21448_v43  ;;  %5123 = vmatmul.mubr.bf16.gmra.mrb[232].mxu0 %v16446_v47  ;;  %v21457_v45 = vld [vmem:[#allocation48_spill] sm:$0xff] }
 0x419   :  { %v17912_v57 = vadd.f32 %v13244_v3, %v21449_v59  ;;  %5132 = vmatprep.mubr.bf16.mxu0 %v16491_v19 }
 0x41b   :  { %v4692_v23 = vpop.f32.mrb[168].mxu0 }
 0x41c   :  { %v13246_v9 = vadd.f32 %v4692_v23, %v17651_v31  ;;  %v4694_v15 = vpop.f32.mrb[169].mxu0  ;;  %v21453_v31 = vld [vmem:[#allocation45_spill] sm:$0xff] }
 0x41d   :  { %v13248_v10 = vadd.f32 %v4694_v15, %v17654_v21  ;;  %v4696_v35 = vpop.f32.mrb[170].mxu0  ;;  %v21454_v21 = vmov 0  }
 0x41e   :  { %v17918_v62 = vadd.f32 %v13246_v9, %v21450_v39  ;;  %v13250_v25 = vadd.f32 %v4696_v35, %v17660_v42  ;;  %v4698_v20 = vpop.f32.mrb[171].mxu0  ;;  %v21460_v9 = vld [vmem:[#allocation50_spill] sm:$0xff]  ;;  %v21461_v35 = vld [vmem:[#allocation51_spill] sm:$0xff] }
 0x41f   :  { %v17922_v47 = vadd.f32 %v13248_v10, %v21451_v13  ;;  %v13252_v51 = vadd.f32 %v4698_v20, %v17666_v1  ;;  %v21462_v20 = vld [vmem:[#allocation52_spill] sm:$0xff] }
 0x420   :  { %v17926_v19 = vadd.f32 %v13250_v25, %v21452_v2  ;;  %5133 = vmatmul.mubr.bf16.gmra.mrb[236].mxu0 %v16497_v56 }
 0x421   :  { %v17930_v0 = vadd.f32 %v13252_v51, %v21453_v31  ;;  %5175 = vmatprep.mubr.bf16.mxu0 %v21454_v21  ;;  %v21464_v51 = vld [vmem:[#allocation6_spill] sm:$0xff] }
 0x423   :  { %v4702_v58 = vpop.f32.mrb[172].mxu0 }
 0x424   :  { %v13254_v27 = vadd.f32 %v4702_v58, %v17677_v24  ;;  %v4704_v42 = vpop.f32.mrb[173].mxu0  ;;  %v21459_v24 = vld [vmem:[#allocation49_spill] sm:$0xff] }
 0x425   :  { %v13256_v53 = vadd.f32 %v4704_v42, %v17680_v49  ;;  %v4706_v46 = vpop.f32.mrb[174].mxu0  ;;  %v21466_v42 = vld [vmem:[#allocation54_spill] sm:$0xff] }
 0x426   :  { %v17936_v14 = vadd.f32 %v13254_v27, %v21455_v41  ;;  %v13258_v1 = vadd.f32 %v4706_v46, %v17686_v61  ;;  %v4708_v54 = vpop.f32.mrb[175].mxu0  ;;  %v21467_v41 = vld [vmem:[#allocation55_spill] sm:$0xff] }
 0x427   :  { %v17940_v56 = vadd.f32 %v13256_v53, %v21456_v33  ;;  %v13260_v6 = vadd.f32 %v4708_v54, %v17692_v8  ;;  %v21469_v33 = vld [vmem:[#allocation56_spill] sm:$0xff] }
 0x428   :  { %v17944_v32 = vadd.f32 %v13258_v1, %v21457_v45  ;;  %11770 = vmatmul.mubr.msk.bf16.vlgmr.msra.gmra.mrb[212].mxu0 %vm2536_vm3, %v21458_v26  ;;  %v21471_v45 = vld [vmem:[#allocation7_spill] sm:$0xff]  ;;  %v21474_v26 = vld [vmem:[#allocation8_spill] sm:$0xff] }
 0x429   :  { %v17949_v49 = vadd.f32 %v13260_v6, %v21459_v24  ;;  %5185 = vmatprep.mubr.bf16.mxu0 %v21454_v21 }
 0x42b   :  { %v4712_v3 = vpop.f32.mrb[176].mxu0 }
 0x42c   :  { %v13262_v61 = vadd.f32 %v4712_v3, %v17701_v40  ;;  %v4714_v43 = vpop.f32.mrb[177].mxu0  ;;  %v21465_v40 = vld [vmem:[#allocation53_spill] sm:$0xff] }
 0x42d   :  { %v13264_v59 = vadd.f32 %v4714_v43, %v17704_v55  ;;  %v4716_v23 = vpop.f32.mrb[178].mxu0 }
 0x42e   :  { %v17955_v8 = vadd.f32 %v13262_v61, %v21460_v9  ;;  %v13266_v15 = vadd.f32 %v4716_v23, %v17710_v60  ;;  %v4718_v10 = vpop.f32.mrb[179].mxu0  ;;  %v21475_v9 = vld [vmem:[#allocation9_spill] sm:$0xff] }
 0x42f   :  { %v17959_v39 = vadd.f32 %v13264_v59, %v21461_v35  ;;  %v13268_v25 = vadd.f32 %v4718_v10, %v17716_v29 }
 0x430   :  { %v17963_v13 = vadd.f32 %v13266_v15, %v21462_v20  ;;  %11771 = vmatmul.mubr.msk.bf16.gmra.mrb[216].mxu0 %vm2536_vm3, %v21464_v51 }
 0x431   :  { %v17968_v55 = vadd.f32 %v13268_v25, %v21465_v40  ;;  %5195 = vmatprep.mubr.bf16.mxu0 %v21454_v21 }
 0x432   :  { %21463 = vst [vmem:[#allocation58_spill] sm:$0xff] %v17963_v13 }
 0x433   :  { %v4722_v2 = vpop.f32.mrb[180].mxu0 }
 0x434   :  { %v13270_v60 = vadd.f32 %v4722_v2, %v17727_v63  ;;  %v4724_v31 = vpop.f32.mrb[181].mxu0  ;;  %v21472_v63 = vld [vmem:[#allocation57_spill] sm:$0xff]  ;;  %v21479_v2 = vld [vmem:[#allocation10_spill] sm:$0xff] }
 0x435   :  { %v13272_v58 = vadd.f32 %v4724_v31, %v17730_v12  ;;  %v4726_v27 = vpop.f32.mrb[182].mxu0 }
 0x436   :  { %v17974_v29 = vadd.f32 %v13270_v60, %v21466_v42  ;;  %v13274_v53 = vadd.f32 %v4726_v27, %v17736_v28  ;;  %v4728_v46 = vpop.f32.mrb[183].mxu0  ;;  %v21481_v27 = vld [vmem:[#allocation88_spill] sm:$0xff] }
 0x437   :  { %v17978_v1 = vadd.f32 %v13272_v58, %v21467_v41  ;;  %v13276_v54 = vadd.f32 %v4728_v46, %v17742_v38  ;;  %v21482_v46 = vld [vmem:[#allocation89_spill] sm:$0xff] }
 0x438   :  { %v17982_v6 = vadd.f32 %v13274_v53, %v21469_v33  ;;  %11772 = vmatmul.mubr.msk.bf16.gmra.mrb[220].mxu0 %vm2536_vm3, %v21471_v45  ;;  %v21483_v33 = vld [vmem:[#allocation90_spill] sm:$0xff] }
 0x439   :  { %21468 = vst [vmem:[#allocation59_spill] sm:$0xff] %v17978_v1  ;;  %v17987_v12 = vadd.f32 %v13276_v54, %v21472_v63  ;;  %5205 = vmatprep.mubr.bf16.mxu0 %v21454_v21  ;;  %v21484_v63 = vld [vmem:[#allocation11_spill] sm:$0xff] }
 0x43a   :  { %21470 = vst [vmem:[#allocation60_spill] sm:$0xff] %v17982_v6  ;;  %v21498_v6 = vld [vmem:[#allocation25_spill] sm:$0xff] }
 0x43b   :  { %21473 = vst [vmem:[#allocation61_spill] sm:$0xff] %v17987_v12  ;;  %v21499_v12 = vld [vmem:[#allocation26_spill] sm:$0xff] }
 0x440   :  { %11773 = vmatmul.mubr.msk.bf16.gmra.mrb[224].mxu0 %vm2536_vm3, %v21474_v26  ;;  %v21485_v26 = vld [vmem:[#allocation91_spill] sm:$0xff] }
 0x441   :  { %5215 = vmatprep.mubr.bf16.mxu0 %v21454_v21 }
 0x443   :  { %v4868_v28 = vpop.f32.mrb[184].mxu0 }
 0x444   :  { %v17994_v24 = vadd.f32 %v17542_v48, %v4868_v28  ;;  %v4870_v38 = vpop.f32.mrb[185].mxu0 }
 0x445   :  { %v17997_v3 = vadd.f32 %v17548_v18, %v4870_v38  ;;  %v4872_v61 = vpop.f32.mrb[186].mxu0  ;;  %v21476_v18 = vld [vmem:[#allocation84_spill] sm:$0xff] }
 0x446   :  { %v18000_v43 = vadd.f32 %v17379_v37, %v4872_v61  ;;  %v4874_v59 = vpop.f32.mrb[187].mxu0  ;;  %v21477_v37 = vld [vmem:[#allocation85_spill] sm:$0xff]  ;;  %v21486_v61 = vld [vmem:[#allocation92_spill] sm:$0xff] }
 0x447   :  { %v18003_v23 = vadd.f32 %v17382_v50, %v4874_v59  ;;  %v21478_v50 = vld [vmem:[#allocation86_spill] sm:$0xff] }
 0x448   :  { %11774 = vmatmul.mubr.msk.bf16.gmra.mrb[228].mxu0 %vm2536_vm3, %v21475_v9 }
 0x449   :  { %5225 = vmatprep.mubr.bf16.mxu0 %v21454_v21 }
 0x44b   :  { %v4878_v15 = vpop.f32.mrb[188].mxu0 }
 0x44c   :  { %v18009_v48 = vadd.f32 %v17388_v22, %v4878_v15  ;;  %v4880_v10 = vpop.f32.mrb[189].mxu0  ;;  %v21480_v22 = vld [vmem:[#allocation87_spill] sm:$0xff]  ;;  %v21487_v15 = vld [vmem:[#allocation93_spill] sm:$0xff] }
 0x44d   :  { %v18012_v35 = vadd.f32 %v21476_v18, %v4880_v10  ;;  %v4882_v25 = vpop.f32.mrb[190].mxu0 }
 0x44e   :  { %v18015_v20 = vadd.f32 %v21477_v37, %v4882_v25  ;;  %v4884_v51 = vpop.f32.mrb[191].mxu0  ;;  %v21488_v25 = vld [vmem:[#allocation94_spill] sm:$0xff] }
 0x44f   :  { %v18018_v40 = vadd.f32 %v21478_v50, %v4884_v51  ;;  %v21489_v50 = vld [vmem:[#allocation16_spill] sm:$0xff] }
 0x450   :  { %11775 = vmatmul.mubr.msk.bf16.gmra.mrb[232].mxu0 %vm2536_vm3, %v21479_v2 }
 0x451   :  { %5235 = vmatprep.mubr.bf16.mxu0 %v21454_v21 }
 0x453   :  { %v4888_v60 = vpop.f32.mrb[192].mxu0 }
 0x454   :  { %v18024_v31 = vadd.f32 %v21480_v22, %v4888_v60  ;;  %v4890_v58 = vpop.f32.mrb[193].mxu0  ;;  %v21490_v22 = vld [vmem:[#allocation17_spill] sm:$0xff] }
 0x455   :  { %v18027_v42 = vadd.f32 %v21481_v27, %v4890_v58  ;;  %v4892_v53 = vpop.f32.mrb[194].mxu0 }
 0x456   :  { %v18030_v41 = vadd.f32 %v21482_v46, %v4892_v53  ;;  %v4894_v54 = vpop.f32.mrb[195].mxu0  ;;  %v21491_v53 = vld [vmem:[#allocation18_spill] sm:$0xff] }
 0x457   :  { %v18033_v45 = vadd.f32 %v21483_v33, %v4894_v54  ;;  %v21492_v33 = vld [vmem:[#allocation19_spill] sm:$0xff] }
 0x458   :  { %11776 = vmatmul.mubr.msk.bf16.gmra.mrb[236].mxu0 %vm2536_vm3, %v21484_v63 }
 0x45b   :  { %v4898_v21 = vpop.f32.mrb[196].mxu0 }
 0x45c   :  { %v18038_v28 = vadd.f32 %v21485_v26, %v4898_v21  ;;  %v4900_v38 = vpop.f32.mrb[197].mxu0  ;;  %v21493_v26 = vld [vmem:[#allocation20_spill] sm:$0xff] }
 0x45d   :  { %v18041_v59 = vadd.f32 %v21486_v61, %v4900_v38  ;;  %v4902_v9 = vpop.f32.mrb[198].mxu0 }
 0x45e   :  { %v18044_v10 = vadd.f32 %v21487_v15, %v4902_v9  ;;  %v4904_v18 = vpop.f32.mrb[199].mxu0  ;;  %v21494_v9 = vld [vmem:[#allocation21_spill] sm:$0xff] }
 0x45f   :  { %v18047_v37 = vadd.f32 %v21488_v25, %v4904_v18  ;;  %v21495_v25 = vld [vmem:[#allocation22_spill] sm:$0xff] }
 0x463   :  { %v4908_v51 = vpop.f32.mrb[200].mxu0 }
 0x464   :  { %v18050_v2 = vadd.f32 %v21489_v50, %v4908_v51  ;;  %v4910_v60 = vpop.f32.mrb[201].mxu0 }
 0x465   :  { %v18053_v58 = vadd.f32 %v21490_v22, %v4910_v60  ;;  %v4912_v27 = vpop.f32.mrb[202].mxu0  ;;  %v21496_v60 = vld [vmem:[#allocation23_spill] sm:$0xff] }
 0x466   :  { %v18056_v46 = vadd.f32 %v21491_v53, %v4912_v27  ;;  %v4914_v54 = vpop.f32.mrb[203].mxu0  ;;  %v21497_v53 = vld [vmem:[#allocation24_spill] sm:$0xff] }
 0x467   :  { %v18059_v63 = vadd.f32 %v21492_v33, %v4914_v54 }
 0x46b   :  { %v4918_v21 = vpop.f32.mrb[204].mxu0 }
 0x46c   :  { %v18062_v38 = vadd.f32 %v21493_v26, %v4918_v21  ;;  %v4920_v61 = vpop.f32.mrb[205].mxu0 }
 0x46d   :  { %v18065_v15 = vadd.f32 %v21494_v9, %v4920_v61  ;;  %v4922_v18 = vpop.f32.mrb[206].mxu0 }
 0x46e   :  { %v18068_v51 = vadd.f32 %v21495_v25, %v4922_v18  ;;  %v4924_v50 = vpop.f32.mrb[207].mxu0  ;;  %v14431_v25 = vld [vmem:[%s21179_s6] ss:$8 sps:$4 sm:$0xff]  }
 0x46f   :  { %v18071_v22 = vadd.f32 %v21496_v60, %v4924_v50  ;;  %v14433_v50 = vld [vmem:[%s21179_s6 + $0x4] ss:$8 sps:$4 sm:$0xff]   ;;  %v14439_v60 = vld [vmem:[%s21179_s6 + $0x14] ss:$8 sps:$4 sm:$0xff]  }
 0x470   :  { %6117 = vmatprep.subr.bf16.mxu1 %v14433_v50  ;;  %v14451_v50 = vld [vmem:[%s21179_s6 + $0x34] ss:$8 sps:$4 sm:$0xff]  }
 0x471   :  { %6118 = vmatpush1.bf16.msra.mxu1 %v14431_v25  ;;  %v14446_v25 = vld [vmem:[%s21179_s6 + $0x1c0] ss:$8 sps:$4 sm:$0xff]  }
 0x472   :  { %6119 = vmatprep.subr.bf16.mxu1 %v14439_v60  ;;  %v14457_v60 = vld [vmem:[%s21179_s6 + $0x44] ss:$8 sps:$4 sm:$0xff]  }
 0x473   :  { %v4928_v27 = vpop.f32.mrb[208].mxu0 }
 0x474   :  { %v18074_v54 = vadd.f32 %v21497_v53, %v4928_v27  ;;  %v4930_v33 = vpop.f32.mrb[209].mxu0  ;;  %v14440_v27 = vld [vmem:[%s21179_s6 + $0x1b0] ss:$8 sps:$4 sm:$0xff]   ;;  %v14442_v53 = vld [vmem:[%s21179_s6 + $0x1b4] ss:$8 sps:$4 sm:$0xff]  }
 0x475   :  { %v18077_v21 = vadd.f32 %v21498_v6, %v4930_v33  ;;  %v4932_v26 = vpop.f32.mrb[210].mxu0  ;;  %v14434_v6 = vld [vmem:[%s21179_s6 + $0x1a0] ss:$8 sps:$4 sm:$0xff]   ;;  %v14445_v33 = vld [vmem:[%s21179_s6 + $0x24] ss:$8 sps:$4 sm:$0xff]  }
 0x476   :  { %v18080_v61 = vadd.f32 %v21499_v12, %v4932_v26  ;;  %v4934_v9 = vpop.f32.mrb[211].mxu0  ;;  %v14436_v12 = vld [vmem:[%s21179_s6 + $0x1a4] ss:$8 sps:$4 sm:$0xff]   ;;  %v14443_v26 = vld [vmem:[%s21179_s6 + $0x20] ss:$8 sps:$4 sm:$0xff]  }
 0x477   :  { %v18083_v18 = vadd.f32 %v21500_v7, %v4934_v9  ;;  %v14437_v7 = vld [vmem:[%s21179_s6 + $0x10] ss:$8 sps:$4 sm:$0xff]   ;;  %6528 = vmatprep.subr.bf16.mxu0 %v14436_v12  ;;  %v14448_v9 = vld [vmem:[%s21179_s6 + $0x1c4] ss:$8 sps:$4 sm:$0xff]  }
 0x478   :  { %6529 = vmatpush1.bf16.msra.mxu0 %v14434_v6  ;;  %6120 = vmatpush1.bf16.msra.mxu1 %v14437_v7  ;;  %v14454_v6 = vld [vmem:[%s21179_s6 + $0x1d4] ss:$8 sps:$4 sm:$0xff]   ;;  %v14449_v12 = vld [vmem:[%s21179_s6 + $0x30] ss:$8 sps:$4 sm:$0xff]  }
 0x479   :  { %21501 = vst [vmem:[#allocation62_spill] sm:$0xff] %v18083_v18  ;;  %6530 = vmatprep.subr.bf16.mxu0 %v14442_v53  ;;  %6121 = vmatprep.subr.bf16.mxu1 %v14445_v33  ;;  %v14452_v7 = vld [vmem:[%s21179_s6 + $0x1d0] ss:$8 sps:$4 sm:$0xff]   ;;  %v14455_v53 = vld [vmem:[%s21179_s6 + $0x40] ss:$8 sps:$4 sm:$0xff]  }
 0x47a   :  { %v14458_v33 = vld [vmem:[%s21179_s6 + $0x1e0] ss:$8 sps:$4 sm:$0xff]  }
 0x47c   :  { %6531 = vmatpush1.bf16.msra.mxu0 %v14440_v27  ;;  %6122 = vmatpush1.bf16.msra.mxu1 %v14443_v26  ;;  %v14460_v27 = vld [vmem:[%s21179_s6 + $0x1e4] ss:$8 sps:$4 sm:$0xff]   ;;  %v14463_v26 = vld [vmem:[%s21179_s6 + $0x54] ss:$8 sps:$4 sm:$0xff]  }
 0x47d   :  { %6532 = vmatprep.subr.bf16.mxu0 %v14448_v9  ;;  %6123 = vmatprep.subr.bf16.mxu1 %v14451_v50  ;;  %v14466_v9 = vld [vmem:[%s21179_s6 + $0x1f4] ss:$8 sps:$4 sm:$0xff]   ;;  %v14464_v50 = vld [vmem:[%s21179_s6 + $0x1f0] ss:$8 sps:$4 sm:$0xff]  }
 0x480   :  { %6533 = vmatpush1.bf16.msra.mxu0 %v14446_v25  ;;  %6124 = vmatpush1.bf16.msra.mxu1 %v14449_v12  ;;  %v14461_v25 = vld [vmem:[%s21179_s6 + $0x50] ss:$8 sps:$4 sm:$0xff]   ;;  %v14472_v12 = vld [vmem:[%s21179_s6 + $0x204] ss:$8 sps:$4 sm:$0xff]  }
 0x481   :  { %6534 = vmatprep.subr.bf16.mxu0 %v14454_v6  ;;  %6125 = vmatprep.subr.bf16.mxu1 %v14457_v60  ;;  %v14469_v6 = vld [vmem:[%s21179_s6 + $0x64] ss:$8 sps:$4 sm:$0xff]   ;;  %v14470_v60 = vld [vmem:[%s21179_s6 + $0x200] ss:$8 sps:$4 sm:$0xff]  }
 0x484   :  { %6535 = vmatpush1.bf16.msra.mxu0 %v14452_v7  ;;  %6126 = vmatpush1.bf16.msra.mxu1 %v14455_v53  ;;  %v14467_v7 = vld [vmem:[%s21179_s6 + $0x60] ss:$8 sps:$4 sm:$0xff]   ;;  %v14478_v53 = vld [vmem:[%s21179_s6 + $0x214] ss:$8 sps:$4 sm:$0xff]  }
 0x485   :  { %6536 = vmatprep.subr.bf16.mxu0 %v14460_v27  ;;  %6127 = vmatprep.subr.bf16.mxu1 %v14463_v26  ;;  %v14475_v27 = vld [vmem:[%s21179_s6 + $0x74] ss:$8 sps:$4 sm:$0xff]   ;;  %v14476_v26 = vld [vmem:[%s21179_s6 + $0x210] ss:$8 sps:$4 sm:$0xff]  }
 0x488   :  { %6537 = vmatpush1.bf16.msra.mxu0 %v14458_v33  ;;  %6128 = vmatpush1.bf16.msra.mxu1 %v14461_v25  ;;  %v14473_v33 = vld [vmem:[%s21179_s6 + $0x70] ss:$8 sps:$4 sm:$0xff]   ;;  %v14484_v25 = vld [vmem:[%s21179_s6 + $0x224] ss:$8 sps:$4 sm:$0xff]  }
 0x489   :  { %6538 = vmatprep.subr.bf16.mxu0 %v14466_v9  ;;  %6129 = vmatprep.subr.bf16.mxu1 %v14469_v6  ;;  %v14481_v9 = vld [vmem:[%s21179_s6 + $0x84] ss:$8 sps:$4 sm:$0xff]   ;;  %v14482_v6 = vld [vmem:[%s21179_s6 + $0x220] ss:$8 sps:$4 sm:$0xff]  }
 0x48c   :  { %6539 = vmatpush1.bf16.msra.mxu0 %v14464_v50  ;;  %6130 = vmatpush1.bf16.msra.mxu1 %v14467_v7  ;;  %v14479_v50 = vld [vmem:[%s21179_s6 + $0x80] ss:$8 sps:$4 sm:$0xff]   ;;  %v14490_v7 = vld [vmem:[%s21179_s6 + $0x234] ss:$8 sps:$4 sm:$0xff]  }
 0x48d   :  { %6540 = vmatprep.subr.bf16.mxu0 %v14472_v12  ;;  %6131 = vmatprep.subr.bf16.mxu1 %v14475_v27  ;;  %v14487_v12 = vld [vmem:[%s21179_s6 + $0x94] ss:$8 sps:$4 sm:$0xff]   ;;  %v14488_v27 = vld [vmem:[%s21179_s6 + $0x230] ss:$8 sps:$4 sm:$0xff]  }
 0x490   :  { %6541 = vmatpush1.bf16.msra.mxu0 %v14470_v60  ;;  %6132 = vmatpush1.bf16.msra.mxu1 %v14473_v33  ;;  %v14485_v60 = vld [vmem:[%s21179_s6 + $0x90] ss:$8 sps:$4 sm:$0xff]   ;;  %v14496_v33 = vld [vmem:[%s21179_s6 + $0x244] ss:$8 sps:$4 sm:$0xff]  }
 0x491   :  { %6542 = vmatprep.subr.bf16.mxu0 %v14478_v53  ;;  %6133 = vmatprep.subr.bf16.mxu1 %v14481_v9  ;;  %v14493_v53 = vld [vmem:[%s21179_s6 + $0xa4] ss:$8 sps:$4 sm:$0xff]   ;;  %v14494_v9 = vld [vmem:[%s21179_s6 + $0x240] ss:$8 sps:$4 sm:$0xff]  }
 0x494   :  { %6543 = vmatpush1.bf16.msra.mxu0 %v14476_v26  ;;  %6134 = vmatpush1.bf16.msra.mxu1 %v14479_v50  ;;  %v14491_v26 = vld [vmem:[%s21179_s6 + $0xa0] ss:$8 sps:$4 sm:$0xff]   ;;  %v14499_v50 = vld [vmem:[%s21179_s6 + $0xb4] ss:$8 sps:$4 sm:$0xff]  }
 0x495   :  { %6544 = vmatprep.subr.bf16.mxu0 %v14484_v25  ;;  %6135 = vmatprep.subr.bf16.mxu1 %v14487_v12  ;;  %v5246_v25 = vld [vmem:[%s21180_s5] sm:$0xf]  ;;  %v14502_v12 = vld [vmem:[%s21179_s6 + $0x254] ss:$8 sps:$4 sm:$0xff]  }
 0x498   :  { %6545 = vmatpush1.bf16.msra.mxu0 %v14482_v6  ;;  %6136 = vmatpush1.bf16.msra.mxu1 %v14485_v60  ;;  %v14497_v6 = vld [vmem:[%s21179_s6 + $0xb0] ss:$8 sps:$4 sm:$0xff]  }
 0x499   :  { %6546 = vmatprep.subr.bf16.mxu0 %v14490_v7  ;;  %6137 = vmatprep.subr.bf16.mxu1 %v14493_v53  ;;  %v21502_v7 = vld [vmem:[#allocation4_spill] sm:$0xff]  ;;  %v14505_v53 = vld [vmem:[%s21179_s6 + $0xc4] ss:$8 sps:$4 sm:$0xff]  }
 0x49a   :  { %v18230_v60 = vrot.slane %v5246_v25, %v21502_v7 }
 0x49c   :  { %6547 = vmatpush1.bf16.msra.mxu0 %v14488_v27  ;;  %6138 = vmatpush1.bf16.msra.mxu1 %v14491_v26  ;;  %v14500_v27 = vld [vmem:[%s21179_s6 + $0x250] ss:$8 sps:$4 sm:$0xff]  }
 0x49d   :  { %6548 = vmatprep.subr.bf16.mxu0 %v14496_v33  ;;  %6139 = vmatprep.subr.bf16.mxu1 %v14499_v50  ;;  %v21503_v33 = vld [vmem:[#allocation2_spill] sm:$0xff] }
 0x49e   :  { %v21504_v26 = vsub.s32 2, %v21503_v33  ;;  %v14503_v50 = vld [vmem:[%s21179_s6 + $0xc0] ss:$8 sps:$4 sm:$0xff]  }
 0x4a0   :  { %6549 = vmatpush1.bf16.msra.mxu0 %v14494_v9  ;;  %6140 = vmatpush1.bf16.msra.mxu1 %v14497_v6  ;;  %v18240_v9 = vrot.slane %v5246_v25, %v21504_v26  ;;  %v21505_v6 = vsub.s32 3, %v21503_v33  ;;  %v14506_v33 = vld [vmem:[%s21179_s6 + $0x260] ss:$8 sps:$4 sm:$0xff]  }
 0x4a1   :  { %6550 = vmatprep.subr.bf16.mxu0 %v14502_v12  ;;  %6141 = vmatprep.subr.bf16.mxu1 %v14505_v53  ;;  %v14508_v12 = vld [vmem:[%s21179_s6 + $0x264] ss:$8 sps:$4 sm:$0xff]   ;;  %v14511_v53 = vld [vmem:[%s21179_s6 + $0xd4] ss:$8 sps:$4 sm:$0xff]  }
 0x4a2   :  { %v18247_v7 = vrot.slane %v5246_v25, %v21505_v6 }
 0x4a4   :  { %6551 = vmatpush1.bf16.msra.mxu0 %v14500_v27  ;;  %v18255_v27 = vadd.f32 %v17868_v17, %v18230_v60  ;;  %6142 = vmatpush1.bf16.msra.mxu1 %v14503_v50  ;;  %v14509_v50 = vld [vmem:[%s21179_s6 + $0xd0] ss:$8 sps:$4 sm:$0xff]  }
 0x4a5   :  { %6552 = vmatprep.subr.bf16.mxu0 %v14508_v12  ;;  %6143 = vmatprep.subr.bf16.mxu1 %v14511_v53 }
 0x4a6   :  { %21506 = vst [vmem:[#allocation63_spill] sm:$0xff] %v18255_v27 }
 0x4a8   :  { %6553 = vmatpush1.bf16.msra.mxu0 %v14506_v33  ;;  %v21212_v33 = vmax.f32 %v18255_v27, 0.0  ;;  %6144 = vmatpush1.bf16.msra.mxu1 %v14509_v50 }
 0x4fb   :  { %v5177_v5 = vpop.f32.mrb[212].mxu0 }
 0x4fc   :  { %v13278_v13 = vadd.f32 %v5177_v5, %v17994_v24  ;;  %v5179_v1 = vpop.f32.mrb[213].mxu0 }
 0x4fd   :  { %v13279_v26 = vadd.f32 %v5179_v1, %v17997_v3  ;;  %v5181_v6 = vpop.f32.mrb[214].mxu0  ;;  %v14514_v3 = vld [vmem:[%s21179_s6 + $0x274] ss:$8 sps:$4 sm:$0xff]  }
 0x4fe   :  { %v18265_v5 = vadd.f32 %v13278_v13, %v18240_v9  ;;  %v13280_v24 = vadd.f32 %v5181_v6, %v18000_v43  ;;  %v5183_v17 = vpop.f32.mrb[215].mxu0  ;;  %v18280_v13 = vadd.f32 %v17876_v34, %v18230_v60  ;;  %6554 = vmatprep.subr.bf16.mxu0 %v14514_v3  ;;  %v14517_v34 = vld [vmem:[%s21179_s6 + $0xe4] ss:$8 sps:$4 sm:$0xff]  }
 0x4ff   :  { %v18272_v18 = vadd.f32 %v13279_v26, %v18247_v7  ;;  %v13281_v1 = vadd.f32 %v5183_v17, %v18003_v23  ;;  %v14512_v23 = vld [vmem:[%s21179_s6 + $0x270] ss:$8 sps:$4 sm:$0xff]   ;;  %v21508_v17 = vld [vmem:[#allocation3_spill] sm:$0xff]  ;;  %6145 = vmatprep.subr.bf16.mxu1 %v14517_v34 }
 0x500   :  { %21507 = vst [vmem:[#allocation64_spill] sm:$0xff] %v18265_v5  ;;  %v21211_v43 = vmax.f32 %v18265_v5, 0.0  ;;  %v18284_v12 = vadd.f32 %v13280_v24, %v18240_v9  ;;  %6555 = vmatpush1.bf16.msra.mxu0 %v14512_v23  ;;  %v14515_v24 = vld [vmem:[%s21179_s6 + $0xe0] ss:$8 sps:$4 sm:$0xff]   ;;  %v18305_v50 = vrot.slane %v5246_v25, %v21508_v17  ;;  %v14520_v3 = vld [vmem:[%s21179_s6 + $0x284] ss:$8 sps:$4 sm:$0xff]   ;;  %v18315_v23 = vadd.f32 %v17886_v16, %v18230_v60 }
 0x501   :  { %v18291_v26 = vadd.f32 %v13281_v1, %v18247_v7  ;;  %v21215_v6 = vmax.f32 %v18280_v13, 0.0  ;;  %6146 = vmatpush1.bf16.msra.mxu1 %v14515_v24  ;;  %v14518_v25 = vld [vmem:[%s21179_s6 + $0x280] ss:$8 sps:$4 sm:$0xff]   ;;  %6556 = vmatprep.subr.bf16.mxu0 %v14520_v3 }
 0x502   :  { %v13620_v53 = vpack.i.bf16 %v21211_v43, %v21212_v33  ;;  %v18322_v34 = vadd.f32 %v17872_v11, %v18305_v50  ;;  %v21509_v33 = vmax.f32 %v18284_v12, 0.0  ;;  %v18349_v3 = vadd.f32 %v17864_v30, %v18305_v50  ;;  %v14524_v30 = vld [vmem:[%s21179_s6 + $0x290] ss:$8 sps:$4 sm:$0xff]  }
 0x503   :  { %v5187_v1 = vpop.f32.mrb[216].mxu0 }
 0x504   :  { %v13282_v27 = vadd.f32 %v5187_v1, %v18009_v48  ;;  %v5189_v5 = vpop.f32.mrb[217].mxu0  ;;  %13621 = vrot.lane.b32.xlu0 %v13620_v53, %s15472_s25  ;;  %v14523_v53 = vld [vmem:[%s21179_s6 + $0xf4] ss:$8 sps:$4 sm:$0xff]   ;;  %v13625_v11 = vpack.i.bf16 %v21509_v33, %v21215_v6  ;;  %6557 = vmatpush1.bf16.msra.mxu0 %v14518_v25  ;;  %v21214_v25 = vmax.f32 %v18315_v23, 0.0 }
 0x505   :  { %v13283_v43 = vadd.f32 %v5189_v5, %v18012_v35  ;;  %v5191_v48 = vpop.f32.mrb[218].mxu0  ;;  %v18338_v35 = vadd.f32 %v17882_v36, %v18305_v50  ;;  %v14521_v5 = vld [vmem:[%s21179_s6 + $0xf0] ss:$8 sps:$4 sm:$0xff]   ;;  %6147 = vmatprep.subr.bf16.mxu1 %v14523_v53 }
 0x506   :  { %v18329_v16 = vadd.f32 %v13282_v27, %v18240_v9  ;;  %v13284_v24 = vadd.f32 %v5191_v48, %v18015_v20  ;;  %v5193_v1 = vpop.f32.mrb[219].mxu0  ;;  %6148 = vmatpush1.bf16.msra.mxu1 %v14521_v5  ;;  %v21218_v48 = vmax.f32 %v18322_v34, 0.0 }
 0x507   :  { %v18344_v27 = vadd.f32 %v13283_v43, %v18247_v7  ;;  %v13285_v20 = vadd.f32 %v5193_v1, %v18018_v40  ;;  %v14526_v43 = vld [vmem:[%s21179_s6 + $0x294] ss:$8 sps:$4 sm:$0xff]  }
 0x508   :  { %v21213_v33 = vmax.f32 %v18329_v16, 0.0  ;;  %v18353_v36 = vadd.f32 %v13284_v24, %v18240_v9  ;;  %13626 = vrot.lane.b32.xlu0 %v13625_v11, %s15472_s25  ;;  %v21216_v24 = vmax.f32 %v18338_v35, 0.0  ;;  %6558 = vmatprep.subr.bf16.mxu0 %v14526_v43  ;;  %v21217_v11 = vmax.f32 %v18349_v3, 0.0 }
 0x509   :  { %v18361_v40 = vadd.f32 %v13285_v20, %v18247_v7  ;;  %6559 = vmatpush1.bf16.msra.mxu0 %v14524_v30  ;;  %v21219_v6 = vmax.f32 %v18344_v27, 0.0 }
 0x50a   :  { %v13630_v53 = vpack.i.bf16 %v21213_v33, %v21214_v25  ;;  %v14529_v33 = vld [vmem:[%s21179_s6 + $0x104] ss:$8 sps:$4 sm:$0xff]  }
 0x50b   :  { %v5197_v1 = vpop.f32.mrb[220].mxu0  ;;  %6158 = vmatprep.subr.bf16.mxu1 %v14529_v33  ;;  %v14532_v25 = vld [vmem:[%s21179_s6 + $0x344] ss:$8 sps:$4 sm:$0xff]   ;;  %v21223_v33 = vmax.f32 %v18353_v36, 0.0 }
 0x50c   :  { %v13286_v5 = vadd.f32 %v5197_v1, %v18024_v31  ;;  %v5199_v20 = vpop.f32.mrb[221].mxu0  ;;  %13631 = vrot.lane.b32.xlu1 %v13630_v53, %s15472_s25  ;;  %5452 = vrot.lane.b32.xlu0 %v21216_v24, %s15472_s25  ;;  %v13635_v24 = vpack.i.bf16 %v21218_v48, %v21217_v11 }
 0x50d   :  { %v13287_v43 = vadd.f32 %v5199_v20, %v18027_v42  ;;  %v5201_v30 = vpop.f32.mrb[222].mxu0  ;;  %6928 = vmatprep.subr.bf16.mxu0 %v14532_v25  ;;  %v18430_v25 = vadd.f32 %v17922_v47, %v18230_v60 }
 0x50e   :  { %v18385_v31 = vadd.f32 %v13286_v5, %v18240_v9  ;;  %v13288_v53 = vadd.f32 %v5201_v30, %v18030_v41  ;;  %v5203_v1 = vpop.f32.mrb[223].mxu0  ;;  %v21220_v5 = vmax.f32 %v18272_v18, 0.0 }
 0x50f   :  { %v18396_v42 = vadd.f32 %v13287_v43, %v18247_v7  ;;  %v13289_v20 = vadd.f32 %v5203_v1, %v18033_v45 }
 0x510   :  { %v21221_v41 = vmax.f32 %v18385_v31, 0.0  ;;  %v18402_v30 = vadd.f32 %v13288_v53, %v18240_v9  ;;  %5458 = vrot.lane.b32.xlu0 %v21219_v6, %s15472_s25  ;;  %13636 = vrot.lane.b32.xlu1 %v13635_v24, %s15472_s25  ;;  %v21510_v53 = vmax.f32 %v18291_v26, 0.0 }
 0x511   :  { %v21222_v11 = vmax.f32 %v18396_v42, 0.0  ;;  %v18412_v45 = vadd.f32 %v13289_v20, %v18247_v7  ;;  %v18426_v20 = vadd.f32 %v17912_v57, %v18230_v60 }
 0x512   :  { %v13640_v1 = vpack.i.bf16 %v21510_v53, %v21220_v5 }
 0x513   :  { %v5207_v48 = vpop.f32.mrb[224].mxu0  ;;  %v13650_v24 = vpack.i.bf16 %v21222_v11, %v21221_v41  ;;  %v21225_v41 = vmax.f32 %v18412_v45, 0.0 }
 0x514   :  { %v13290_v6 = vadd.f32 %v5207_v48, %v18038_v28  ;;  %v5209_v43 = vpop.f32.mrb[225].mxu0  ;;  %13641 = vrot.lane.b32.xlu1 %v13640_v1, %s15472_s25  ;;  %v21511_v28 = vmax.f32 %v18361_v40, 0.0  ;;  %v21224_v1 = vmax.f32 %v18402_v30, 0.0 }
 0x515   :  { %v13291_v53 = vadd.f32 %v5209_v43, %v18041_v59  ;;  %v5211_v5 = vpop.f32.mrb[226].mxu0  ;;  %13651 = vrot.lane.b32.xlu0 %v13650_v24, %s15472_s25  ;;  %v18446_v59 = vadd.f32 %v17904_v4, %v18230_v60 }
 0x516   :  { %v13645_v48 = vpack.i.bf16 %v21511_v28, %v21223_v33  ;;  %v18441_v57 = vadd.f32 %v13290_v6, %v18240_v9  ;;  %v13292_v47 = vadd.f32 %v5211_v5, %v18044_v10  ;;  %v5213_v11 = vpop.f32.mrb[227].mxu0  ;;  %v18454_v28 = vadd.f32 %v17900_v52, %v18305_v50 }
 0x517   :  { %v18449_v43 = vadd.f32 %v13291_v53, %v18247_v7  ;;  %v13293_v24 = vadd.f32 %v5213_v11, %v18047_v37  ;;  %v18468_v37 = vadd.f32 %v17918_v62, %v18305_v50  ;;  %v13655_v11 = vpack.i.bf16 %v21225_v41, %v21224_v1 }
 0x518   :  { %v21226_v33 = vmax.f32 %v18441_v57, 0.0  ;;  %v18458_v6 = vadd.f32 %v13292_v47, %v18240_v9  ;;  %13646 = vrot.lane.b32.xlu1 %v13645_v48, %s15472_s25  ;;  %v18483_v62 = vadd.f32 %v17908_v44, %v18305_v50  ;;  %v18489_v1 = vadd.f32 %v17930_v0, %v18230_v60 }
 0x519   :  { %v21227_v4 = vmax.f32 %v18449_v43, 0.0  ;;  %v18464_v5 = vadd.f32 %v13293_v24, %v18247_v7  ;;  %v21229_v24 = vmax.f32 %v18468_v37, 0.0  ;;  %v21515_v0 = vmax.f32 %v18430_v25, 0.0 }
 0x51a   :  { %v21231_v17 = vmax.f32 %v18458_v6, 0.0 }
 0x51b   :  { %21512 = vst [vmem:[#allocation65_spill] sm:$0xff] %v18464_v5  ;;  %v5217_v48 = vpop.f32.mrb[228].mxu0  ;;  %v13660_v47 = vpack.i.bf16 %v21227_v4, %v21226_v33  ;;  %v21513_v33 = vmax.f32 %v18446_v59, 0.0  ;;  %v21514_v4 = vmax.f32 %v18426_v20, 0.0 }
 0x51c   :  { %v13294_v52 = vadd.f32 %v5217_v48, %v18050_v2  ;;  %v5219_v10 = vpop.f32.mrb[229].mxu0  ;;  %13656 = vrot.lane.b32.xlu1 %v13655_v11, %s15472_s25 }
 0x51d   :  { %v13295_v41 = vadd.f32 %v5219_v10, %v18053_v58  ;;  %v5221_v53 = vpop.f32.mrb[230].mxu0  ;;  %13661 = vrot.lane.b32.xlu0 %v13660_v47, %s15472_s25  ;;  %v13665_v44 = vpack.i.bf16 %v21514_v4, %v21513_v33  ;;  %v21516_v58 = vmax.f32 %v18454_v28, 0.0  ;;  %v18508_v47 = vadd.f32 %v17936_v14, %v18305_v50 }
 0x51e   :  { %v18499_v2 = vadd.f32 %v13294_v52, %v18240_v9  ;;  %v13296_v11 = vadd.f32 %v5221_v53, %v18056_v46  ;;  %v5223_v48 = vpop.f32.mrb[231].mxu0  ;;  %v21228_v52 = vmax.f32 %v18483_v62, 0.0  ;;  %v18518_v46 = vadd.f32 %v17926_v19, %v18305_v50 }
 0x51f   :  { %v13670_v10 = vpack.i.bf16 %v21516_v58, %v21515_v0  ;;  %v18512_v33 = vadd.f32 %v13295_v41, %v18247_v7  ;;  %v13297_v4 = vadd.f32 %v5223_v48, %v18059_v63  ;;  %v18522_v53 = vadd.f32 %v17940_v56, %v18230_v60 }
 0x520   :  { %v18525_v14 = vadd.f32 %v13296_v11, %v18240_v9  ;;  %13666 = vrot.lane.b32.xlu1 %v13665_v44, %s15472_s25  ;;  %v21230_v41 = vmax.f32 %v18489_v1, 0.0  ;;  %v21233_v63 = vmax.f32 %v18499_v2, 0.0  ;;  %v13675_v19 = vpack.i.bf16 %v21229_v24, %v21228_v52 }
 0x521   :  { %21517 = vst [vmem:[#allocation66_spill] sm:$0xff] %v18512_v33  ;;  %v18530_v0 = vadd.f32 %v13297_v4, %v18247_v7  ;;  %13671 = vrot.lane.b32.xlu0 %v13670_v10, %s15472_s25  ;;  %v21234_v48 = vmax.f32 %v18518_v46, 0.0  ;;  %v21232_v58 = vmax.f32 %v18522_v53, 0.0  ;;  %v18549_v52 = vadd.f32 %v17944_v32, %v18305_v50 }
 0x522   :  { %v13680_v44 = vpack.i.bf16 %v21231_v17, %v21230_v41  ;;  %v18553_v24 = vadd.f32 %v17949_v49, %v18230_v60  ;;  %v18557_v41 = vadd.f32 %v17955_v8, %v18305_v50  ;;  %v21237_v8 = vmax.f32 %v18525_v14, 0.0 }
 0x523   :  { %21518 = vst [vmem:[#allocation67_spill] sm:$0xff] %v18530_v0  ;;  %v5227_v11 = vpop.f32.mrb[232].mxu0  ;;  %v13685_v49 = vpack.i.bf16 %v21233_v63, %v21232_v58 }
 0x524   :  { %v13298_v10 = vadd.f32 %v5227_v11, %v18062_v38  ;;  %v5229_v4 = vpop.f32.mrb[233].mxu0  ;;  %13676 = vrot.lane.b32.xlu1 %v13675_v19, %s15472_s25  ;;  %v21236_v38 = vmax.f32 %v18512_v33, 0.0 }
 0x525   :  { %v13299_v17 = vadd.f32 %v5229_v4, %v18065_v15  ;;  %v5231_v56 = vpop.f32.mrb[234].mxu0  ;;  %13681 = vrot.lane.b32.xlu0 %v13680_v44, %s15472_s25 }
 0x526   :  { %v18563_v19 = vadd.f32 %v13298_v10, %v18240_v9  ;;  %v13300_v32 = vadd.f32 %v5231_v56, %v18068_v51  ;;  %v5233_v11 = vpop.f32.mrb[235].mxu0  ;;  %v21520_v10 = vmax.f32 %v18508_v47, 0.0  ;;  %v18581_v51 = vadd.f32 %v17959_v39, %v18230_v60 }
 0x527   :  { %v18572_v15 = vadd.f32 %v13299_v17, %v18247_v7  ;;  %v13301_v44 = vadd.f32 %v5233_v11, %v18071_v22  ;;  %v21235_v56 = vmax.f32 %v18464_v5, 0.0  ;;  %v21238_v17 = vmax.f32 %v18553_v24, 0.0 }
 0x528   :  { %v13690_v4 = vpack.i.bf16 %v21520_v10, %v21234_v48  ;;  %v18585_v58 = vadd.f32 %v13300_v32, %v18240_v9  ;;  %13686 = vrot.lane.b32.xlu1 %v13685_v49, %s15472_s25  ;;  %v21240_v22 = vmax.f32 %v18557_v41, 0.0  ;;  %v21239_v32 = vmax.f32 %v18549_v52, 0.0 }
 0x529   :  { %21519 = vst [vmem:[#allocation68_spill] sm:$0xff] %v18572_v15  ;;  %v18591_v11 = vadd.f32 %v13301_v44, %v18247_v7  ;;  %v13695_v39 = vpack.i.bf16 %v21236_v38, %v21235_v56  ;;  %v13700_v49 = vpack.i.bf16 %v21237_v8, %v21238_v17  ;;  %v21242_v44 = vmax.f32 %v18581_v51, 0.0  ;;  %v21526_v17 = vld [vmem:[#allocation59_spill] sm:$0xff] }
 0x52a   :  { %13691 = vrot.lane.b32.xlu0 %v13690_v4, %s15472_s25  ;;  %v18609_v10 = vadd.f32 %v17968_v55, %v18230_v60  ;;  %v13710_v8 = vpack.i.bf16 %v21240_v22, %v21239_v32  ;;  %v21523_v55 = vmax.f32 %v18563_v19, 0.0  ;;  %v21525_v22 = vld [vmem:[#allocation62_spill] sm:$0xff] }
 0x52b   :  { %21521 = vst [vmem:[#allocation69_spill] sm:$0xff] %v18591_v11  ;;  %v5237_v63 = vpop.f32.mrb[236].mxu0 }
 0x52c   :  { %v13302_v48 = vadd.f32 %v5237_v63, %v18074_v54  ;;  %v5239_v4 = vpop.f32.mrb[237].mxu0  ;;  %13696 = vrot.lane.b32.xlu1 %v13695_v39, %s15472_s25 }
 0x52d   :  { %v13303_v56 = vadd.f32 %v5239_v4, %v18077_v21  ;;  %v5241_v38 = vpop.f32.mrb[238].mxu0  ;;  %v13705_v21 = vpack.i.bf16 %v21523_v55, %v21242_v44  ;;  %v21244_v4 = vmax.f32 %v18585_v58, 0.0 }
 0x52e   :  { %13701 = vrot.lane.b32.xlu0 %v13700_v49, %s15472_s25  ;;  %v18619_v54 = vadd.f32 %v13302_v48, %v18240_v9  ;;  %v13304_v63 = vadd.f32 %v5241_v38, %v18080_v61  ;;  %v5243_v39 = vpop.f32.mrb[239].mxu0  ;;  %v18628_v49 = vadd.f32 %v17974_v29, %v18305_v50  ;;  %v18637_v61 = vadd.f32 %v21526_v17, %v18230_v60  ;;  %v21529_v29 = vld [vmem:[#allocation58_spill] sm:$0xff] }
 0x52f   :  { %v18632_v32 = vadd.f32 %v13303_v56, %v18247_v7  ;;  %v13305_v48 = vadd.f32 %v5243_v39, %v21525_v22  ;;  %v21243_v38 = vmax.f32 %v18530_v0, 0.0  ;;  %v18646_v55 = vadd.f32 %v21529_v29, %v18305_v50 }
 0x530   :  { %21522 = vst [vmem:[#allocation70_spill] sm:$0xff] %v18619_v54  ;;  %21527 = vst [vmem:[#allocation72_spill] sm:$0xff] %v18637_v61  ;;  %v18641_v5 = vadd.f32 %v13304_v63, %v18240_v9  ;;  %13706 = vrot.lane.b32.xlu1 %v13705_v21, %s15472_s25  ;;  %v21245_v56 = vmax.f32 %v18609_v10, 0.0  ;;  %v21247_v17 = vmax.f32 %v18619_v54, 0.0  ;;  %v21531_v9 = vmax.f32 %v18572_v15, 0.0  ;;  %v21532_v63 = vld [vmem:[#allocation28_spill] sm:$0xff] }
 0x531   :  { %21524 = vst [vmem:[#allocation71_spill] sm:$0xff] %v18632_v32  ;;  %v18650_v44 = vadd.f32 %v13305_v48, %v18247_v7  ;;  %v18660_v39 = vadd.f32 %v21532_v63, %v18305_v50  ;;  %v21533_v21 = vld [vmem:[#allocation29_spill] sm:$0xff]  ;;  %v21248_v48 = vmax.f32 %v18637_v61, 0.0  ;;  %v21254_v63 = vmax.f32 %v18632_v32, 0.0 }
 0x532   :  { %21528 = vst [vmem:[#allocation73_spill] sm:$0xff] %v18641_v5  ;;  %13711 = vrot.lane.b32.xlu0 %v13710_v8, %s15472_s25  ;;  %v13715_v22 = vpack.i.bf16 %v21531_v9, %v21243_v38  ;;  %v18664_v29 = vadd.f32 %v21533_v21, %v18230_v60  ;;  %v13720_v8 = vpack.i.bf16 %v21244_v4, %v21245_v56  ;;  %v21257_v9 = vmax.f32 %v18646_v55, 0.0  ;;  %v21536_v56 = vld [vmem:[#allocation61_spill] sm:$0xff] }
 0x533   :  { %21530 = vst [vmem:[#allocation74_spill] sm:$0xff] %v18650_v44  ;;  %v13725_v21 = vpack.i.bf16 %v21247_v17, %v21248_v48  ;;  %v21256_v38 = vmax.f32 %v18660_v39, 0.0  ;;  %v21535_v4 = vmax.f32 %v18628_v49, 0.0  ;;  %v18688_v0 = vadd.f32 %v21536_v56, %v18230_v60  ;;  %v21538_v60 = vld [vmem:[#allocation60_spill] sm:$0xff] }
 0x534   :  { %21534 = vst [vmem:[#allocation75_spill] sm:$0xff] %v18664_v29  ;;  %13716 = vrot.lane.b32.xlu1 %v13715_v22, %s15472_s25  ;;  %v21253_v7 = vmax.f32 %v18664_v29, 0.0  ;;  %v21250_v17 = vmax.f32 %v18641_v5, 0.0  ;;  %v18704_v56 = vadd.f32 %v21538_v60, %v18305_v50  ;;  %v21255_v50 = vmax.f32 %v18650_v44, 0.0  ;;  %v21541_v5 = vld [vmem:[#allocation63_spill] sm:$0xff] }
 0x535   :  { %v13730_v22 = vpack.i.bf16 %v21535_v4, %v21257_v9  ;;  %21537 = vst [vmem:[#allocation76_spill] sm:$0xff] %v18688_v0  ;;  %v21542_v44 = vmax.f32 %v21541_v5, 0.0 }
 0x536   :  { %13721 = vrot.lane.b32.xlu0 %v13720_v8, %s15472_s25  ;;  %v21249_v8 = vmax.f32 %v18591_v11, 0.0  ;;  %v13740_v4 = vpack.i.bf16 %v21256_v38, %v21253_v7  ;;  %21539 = vst [vmem:[#allocation77_spill] sm:$0xff] %v18704_v56  ;;  %v21540_v11 = vmax.f32 %v18280_v13, 0.0 }
 0x538   :  { %13726 = vrot.lane.b32.xlu1 %v13725_v21, %s15472_s25  ;;  %v13735_v48 = vpack.i.bf16 %v21254_v63, %v21249_v8  ;;  %v21251_v21 = vmax.f32 %v18688_v0, 0.0  ;;  %v21252_v8 = vmax.f32 %v18704_v56, 0.0  ;;  %v21544_v0 = vmax.f32 %v18315_v23, 0.0 }
 0x539   :  { %v21547_v23 = vmax.f32 %v18322_v34, 0.0 }
 0x53a   :  { %13731 = vrot.lane.b32.xlu0 %v13730_v22, %s15472_s25  ;;  %v13745_v22 = vpack.i.bf16 %v21250_v17, %v21251_v21 }
 0x53c   :  { %13736 = vrot.lane.b32.xlu1 %v13735_v48, %s15472_s25 }
 0x53e   :  { %13741 = vrot.lane.b32.xlu0 %v13740_v4, %s15472_s25 }
 0x540   :  { %13746 = vrot.lane.b32.xlu1 %v13745_v22, %s15472_s25 }
 0x542   :  { %5540 = vrot.lane.b32.xlu0 %v21252_v8, %s15472_s25 }
 0x544   :  { %5546 = vrot.lane.b32.xlu1 %v21255_v50, %s15472_s25 }
 0x576   :  { %v18722_v48 = vpop.permute.xlu0 %13621 }
 0x577   :  { %v21269_v60 = vunpack.i.h.bf16 %v18722_v48  ;;  %v13623_v17 = vunpack.i.l.bf16 %v18722_v48 }
 0x579   :  { %v5550_v50 = vsel %vm5548_vm4, %v13623_v17, %v21269_v60 }
 0x57a   :  { %v18724_v4 = vpop.permute.xlu0 %13626  ;;  %v18741_v56 = vmax.f32 %v21542_v44, %v5550_v50  ;;  %v21546_v44 = vmax.f32 %v18338_v35, 0.0 }
 0x57b   :  { %v21265_v22 = vunpack.i.h.bf16 %v18724_v4  ;;  %v13628_v21 = vunpack.i.l.bf16 %v18724_v4 }
 0x57c   :  { %21543 = vst [vmem:[#allocation78_spill] sm:$0xff] %v18741_v56 }
 0x57d   :  { %v5553_v8 = vsel %vm5548_vm4, %v13628_v21, %v21265_v22 }
 0x57e   :  { %v13632_v7 = vpop.permute.xlu1 %13631  ;;  %v5453_v63 = vpop.permute.xlu0 %5452  ;;  %v5652_v15 = vmax.f32 %v21540_v11, %v5553_v8 }
 0x57f   :  { %v13634_v38 = vunpack.i.h.bf16 %v13632_v7  ;;  %v13633_v9 = vunpack.i.l.bf16 %v13632_v7 }
 0x580   :  { %v5704_v7 = vmax.f32 %v18741_v56, %v5652_v15 }
 0x581   :  { %v5556_v33 = vsel %vm5548_vm4, %v13633_v9, %v13634_v38  ;;  %v5555_v32 = vsel %vm5548_vm4, %v5453_v63, %v13633_v9 }
 0x582   :  { %v18745_v22 = vmax.f32 %v21544_v0, %v5556_v33  ;;  %v5459_v54 = vpop.permute.xlu0 %5458  ;;  %v13637_v29 = vpop.permute.xlu1 %13636  ;;  %v18754_v8 = vmax.f32 %v21546_v44, %v5555_v32  ;;  %v21548_v0 = vmax.f32 %v18349_v3, 0.0  ;;  %v21550_v3 = vmax.f32 %v18344_v27, 0.0  ;;  %v14535_v27 = vld [vmem:[%s21179_s6 + $0x114] ss:$8 sps:$4 sm:$0xff]  }
 0x583   :  { %v13639_v60 = vunpack.i.h.bf16 %v13637_v29  ;;  %v13638_v61 = vunpack.i.l.bf16 %v13637_v29  ;;  %v5557_v44 = vsel %vm5548_vm4, %v13634_v38, %v5459_v54 }
 0x584   :  { %21545 = vst [vmem:[#allocation79_spill] sm:$0xff] %v18745_v22  ;;  %v5708_v13 = vmax.f32 %v5652_v15, %v18745_v22 }
 0x585   :  { %v5552_v11 = vsel %vm5548_vm4, %v13639_v60, %v13628_v21  ;;  %v5549_v5 = vsel %vm5548_vm4, %v13638_v61, %v13623_v17  ;;  %v18774_v17 = vmax.f32 %v21550_v3, %v5459_v54  ;;  %v21551_v60 = vmax.f32 %v18291_v26, 0.0  ;;  %v14530_v26 = vld [vmem:[%s21179_s6 + $0x340] ss:$8 sps:$4 sm:$0xff]   ;;  %v14533_v54 = vld [vmem:[%s21179_s6 + $0x110] ss:$8 sps:$4 sm:$0xff]  }
 0x586   :  { %v5651_v33 = vmax.f32 %v21547_v23, %v5552_v11  ;;  %v18760_v9 = vmax.f32 %v21548_v0, %v5549_v5  ;;  %v18762_v29 = vpop.permute.xlu1 %13641  ;;  %v5760_v63 = vpack.c.bf16 %v5708_v13, %v5704_v7  ;;  %v21552_v13 = vmax.f32 %v18272_v18, 0.0  ;;  %v14527_v5 = vld [vmem:[%s21179_s6 + $0x100] ss:$8 sps:$4 sm:$0xff]  }
 0x587   :  { %v21272_v15 = vunpack.i.h.bf16 %v18762_v29  ;;  %v21271_v21 = vunpack.i.l.bf16 %v18762_v29  ;;  %v18766_v50 = vpop.permute.xlu0 %13651 }
 0x588   :  { %21549 = vst [vmem:[#allocation80_spill] sm:$0xff] %v18760_v9  ;;  %v5707_v35 = vmax.f32 %v5651_v33, %v18754_v8  ;;  %v5703_v32 = vmax.f32 %v18760_v9, %v5651_v33  ;;  %v13654_v34 = vunpack.i.h.bf16 %v18766_v50  ;;  %v21273_v61 = vunpack.i.l.bf16 %v18766_v50  ;;  %6149 = vmatprep.mubr.bf16.mxu1 %v5760_v63 }
 0x589   :  { %v5654_v7 = vmax.f32 %v21551_v60, %v21272_v15  ;;  %v18784_v11 = vmax.f32 %v21552_v13, %v21271_v21  ;;  %v6259_v60 = vrot.slane %v5760_v63, 4  ;;  %v21554_v21 = vmax.f32 %v18329_v16, 0.0 }
 0x58a   :  { %v5759_v23 = vpack.c.bf16 %v5707_v35, %v5703_v32  ;;  %v18793_v33 = vpop.permute.xlu1 %13646  ;;  %v5563_v3 = vsel %vm5548_vm4, %v21273_v61, %v13654_v34  ;;  %v14538_v35 = vld [vmem:[%s21179_s6 + $0x354] ss:$8 sps:$4 sm:$0xff]   ;;  %v14541_v32 = vld [vmem:[%s21179_s6 + $0x124] ss:$8 sps:$4 sm:$0xff]   ;;  %v21555_v61 = vmax.f32 %v18361_v40, 0.0  ;;  %v21556_v9 = vmax.f32 %v18396_v42, 0.0 }
 0x58b   :  { %21553 = vst [vmem:[#allocation81_spill] sm:$0xff] %v18784_v11  ;;  %v5710_v18 = vmax.f32 %v5654_v7, %v18774_v17  ;;  %v5706_v0 = vmax.f32 %v18784_v11, %v5654_v7  ;;  %v13649_v38 = vunpack.i.h.bf16 %v18793_v33  ;;  %6560 = vmatprep.mubr.bf16.mxu0 %v6259_v60  ;;  %v21278_v7 = vunpack.i.l.bf16 %v18793_v33 }
 0x58c   :  { %6150 = vmatmul.mubr.bf16.vlgmr.msra.gmra.mrb[96].mxu1 %v5759_v23  ;;  %v6258_v63 = vrot.slane %v5759_v23, 4  ;;  %v18818_v15 = vmax.f32 %v21554_v21, %v5557_v44  ;;  %v18824_v22 = vmax.f32 %v21556_v9, %v13654_v34  ;;  %v21557_v16 = vmax.f32 %v18385_v31, 0.0 }
 0x58d   :  { %6159 = vmatpush1.bf16.msra.mxu1 %v14527_v5  ;;  %v18814_v13 = vpack.c.bf16 %v5710_v18, %v5706_v0  ;;  %v5662_v56 = vmax.f32 %v21555_v61, %v13649_v38  ;;  %v5560_v5 = vsel %vm5548_vm4, %v21278_v7, %v13649_v38  ;;  %v21558_v42 = vmax.f32 %v18353_v36, 0.0  ;;  %v14536_v61 = vld [vmem:[%s21179_s6 + $0x350] ss:$8 sps:$4 sm:$0xff]  }
 0x58e   :  { %v13657_v11 = vpop.permute.xlu1 %13656  ;;  %6160 = vmatprep.subr.bf16.mxu1 %v14535_v27  ;;  %6561 = vmatmul.mubr.bf16.vlgmr.msra.gmra.mrb[240].mxu0 %v6258_v63  ;;  %v18833_v40 = vmax.f32 %v21557_v16, %v5563_v3  ;;  %v21559_v31 = vmax.f32 %v18412_v45, 0.0  ;;  %v14547_v3 = vld [vmem:[%s21179_s6 + $0x134] ss:$8 sps:$4 sm:$0xff]   ;;  %v21560_v45 = vmax.f32 %v18402_v30, 0.0  ;;  %v21561_v63 = vmax.f32 %v18449_v43, 0.0 }
 0x58f   :  { %v13659_v23 = vunpack.i.h.bf16 %v13657_v11  ;;  %v13658_v18 = vunpack.i.l.bf16 %v13657_v11  ;;  %v13662_v0 = vpop.permute.xlu0 %13661  ;;  %11829 = vmatprep.mubr.msk.bf16.mxu1 %vm6113_vm5, %v18814_v13  ;;  %v5714_v21 = vmax.f32 %v18774_v17, %v5662_v56  ;;  %v5661_v9 = vmax.f32 %v21558_v42, %v5560_v5  ;;  %6929 = vmatpush1.bf16.msra.mxu0 %v14530_v26  ;;  %v14539_v11 = vld [vmem:[%s21179_s6 + $0x120] ss:$8 sps:$4 sm:$0xff]   ;;  %v14544_v26 = vld [vmem:[%s21179_s6 + $0x364] ss:$8 sps:$4 sm:$0xff]  }
 0x590   :  { %v13664_v34 = vunpack.i.h.bf16 %v13662_v0  ;;  %v5718_v27 = vmax.f32 %v5662_v56, %v18824_v22  ;;  %v13663_v36 = vunpack.i.l.bf16 %v13662_v0  ;;  %6930 = vmatprep.subr.bf16.mxu0 %v14538_v35  ;;  %v21563_v30 = vmax.f32 %v18441_v57, 0.0 }
 0x591   :  { %v18847_v44 = vmax.f32 %v21559_v31, %v13659_v23  ;;  %v5566_v17 = vsel %vm5548_vm4, %v13658_v18, %v13659_v23  ;;  %6161 = vmatpush1.bf16.msra.mxu1 %v14533_v54  ;;  %v5713_v60 = vmax.f32 %v18818_v15, %v5661_v9  ;;  %v5717_v56 = vmax.f32 %v5661_v9, %v18833_v40 }
 0x592   :  { %v18860_v38 = vmax.f32 %v21560_v45, %v5566_v17  ;;  %v18864_v54 = vmax.f32 %v21561_v63, %v13664_v34  ;;  %v13667_v35 = vpop.permute.xlu1 %13666  ;;  %6162 = vmatprep.subr.bf16.mxu1 %v14541_v32  ;;  %v5569_v23 = vsel %vm5548_vm4, %v13663_v36, %v13664_v34  ;;  %v14542_v17 = vld [vmem:[%s21179_s6 + $0x360] ss:$8 sps:$4 sm:$0xff]   ;;  %v14545_v34 = vld [vmem:[%s21179_s6 + $0x130] ss:$8 sps:$4 sm:$0xff]   ;;  %v21564_v45 = vunpack.i.l.bf16 %v18766_v50 }
 0x593   :  { %v13669_v0 = vunpack.i.h.bf16 %v13667_v35  ;;  %v13668_v16 = vunpack.i.l.bf16 %v13667_v35  ;;  %v13672_v42 = vpop.permute.xlu0 %13671  ;;  %v18873_v31 = vmax.f32 %v21563_v30, %v5569_v23  ;;  %6931 = vmatpush1.bf16.msra.mxu0 %v14536_v61  ;;  %v14550_v61 = vld [vmem:[%s21179_s6 + $0x374] ss:$8 sps:$4 sm:$0xff]   ;;  %v14553_v23 = vld [vmem:[%s21179_s6 + $0x144] ss:$8 sps:$4 sm:$0xff]   ;;  %v18893_v30 = vpack.c.bf16 %v5718_v27, %v5714_v21 }
 0x594   :  { %21562 = vst [vmem:[#allocation82_spill] sm:$0xff] %v18864_v54  ;;  %v5726_v43 = vmax.f32 %v18847_v44, %v18864_v54  ;;  %v13674_v32 = vunpack.i.h.bf16 %v13672_v42  ;;  %v13673_v35 = vunpack.i.l.bf16 %v13672_v42  ;;  %6932 = vmatprep.subr.bf16.mxu0 %v14544_v26  ;;  %v21567_v5 = vmax.f32 %v18454_v28, 0.0  ;;  %v14551_v28 = vld [vmem:[%s21179_s6 + $0x140] ss:$8 sps:$4 sm:$0xff]  }
 0x595   :  { %v5562_v63 = vsel %vm5548_vm4, %v13668_v16, %v21564_v45  ;;  %v5565_v57 = vsel %vm5548_vm4, %v13669_v0, %v13658_v18  ;;  %6163 = vmatpush1.bf16.msra.mxu1 %v14539_v11  ;;  %v21565_v45 = vmax.f32 %v18446_v59, 0.0  ;;  %v21566_v18 = vmax.f32 %v18426_v20, 0.0 }
 0x596   :  { %v5561_v26 = vsel %vm5548_vm4, %v13674_v32, %v13668_v16  ;;  %v13677_v42 = vpop.permute.xlu1 %13676  ;;  %6164 = vmatprep.subr.bf16.mxu1 %v14547_v3  ;;  %v5568_v9 = vsel %vm5548_vm4, %v13673_v35, %v13663_v36  ;;  %v21568_v59 = vmax.f32 %v18430_v25, 0.0  ;;  %v14548_v3 = vld [vmem:[%s21179_s6 + $0x370] ss:$8 sps:$4 sm:$0xff]   ;;  %v18919_v36 = vpack.c.bf16 %v5717_v56, %v5713_v60  ;;  %v14556_v25 = vld [vmem:[%s21179_s6 + $0x384] ss:$8 sps:$4 sm:$0xff]  }
 0x597   :  { %v18899_v7 = vmax.f32 %v21565_v45, %v5562_v63  ;;  %v5668_v11 = vmax.f32 %v21566_v18, %v5565_v57  ;;  %v18907_v21 = vmax.f32 %v21567_v5, %v5561_v26  ;;  %v13679_v27 = vunpack.i.h.bf16 %v13677_v42  ;;  %v13682_v50 = vpop.permute.xlu0 %13681  ;;  %6933 = vmatpush1.bf16.msra.mxu0 %v14542_v17 }
 0x598   :  { %v13678_v54 = vunpack.i.l.bf16 %v13677_v42  ;;  %v18911_v63 = vmax.f32 %v21568_v59, %v5568_v9  ;;  %v13684_v20 = vunpack.i.h.bf16 %v13682_v50  ;;  %v13683_v57 = vunpack.i.l.bf16 %v13682_v50  ;;  %6934 = vmatprep.subr.bf16.mxu0 %v14550_v61  ;;  %v14559_v9 = vld [vmem:[%s21179_s6 + $0x154] ss:$8 sps:$4 sm:$0xff]  }
 0x599   :  { %v5567_v5 = vsel %vm5548_vm4, %v13679_v27, %v13673_v35  ;;  %6165 = vmatpush1.bf16.msra.mxu1 %v14545_v34  ;;  %v5720_v32 = vmax.f32 %v18899_v7, %v5668_v11  ;;  %v21569_v17 = vmax.f32 %v18468_v37, 0.0  ;;  %v21570_v56 = vmax.f32 %v18483_v62, 0.0  ;;  %v14554_v62 = vld [vmem:[%s21179_s6 + $0x380] ss:$8 sps:$4 sm:$0xff]   ;;  %v14562_v59 = vld [vmem:[%s21179_s6 + $0x394] ss:$8 sps:$4 sm:$0xff]  }
 0x59a   :  { %v5564_v16 = vsel %vm5548_vm4, %v13678_v54, %v13669_v0  ;;  %v5571_v54 = vsel %vm5548_vm4, %v13683_v57, %v13684_v20  ;;  %v18937_v0 = vpop.permute.xlu1 %13686  ;;  %6166 = vmatprep.subr.bf16.mxu1 %v14553_v23  ;;  %v5724_v34 = vmax.f32 %v5668_v11, %v18911_v63  ;;  %v14557_v23 = vld [vmem:[%s21179_s6 + $0x150] ss:$8 sps:$4 sm:$0xff]   ;;  %v21571_v11 = vunpack.i.h.bf16 %v18762_v29 }
 0x59b   :  { %v18932_v60 = vmax.f32 %v21569_v17, %v5567_v5  ;;  %v5667_v35 = vmax.f32 %v21570_v56, %v5564_v16  ;;  %v13688_v61 = vunpack.i.l.bf16 %v18937_v0  ;;  %6935 = vmatpush1.bf16.msra.mxu0 %v14548_v3  ;;  %v21572_v42 = vunpack.i.h.bf16 %v18724_v4  ;;  %v14565_v3 = vld [vmem:[%s21179_s6 + $0x164] ss:$8 sps:$4 sm:$0xff]  }
 0x59c   :  { %v13692_v50 = vpop.permute.xlu0 %13691  ;;  %6936 = vmatprep.subr.bf16.mxu0 %v14556_v25  ;;  %v18960_v5 = vpack.c.bf16 %v5724_v34, %v5720_v32  ;;  %v21573_v16 = vmax.f32 %v18824_v22, %v18847_v44  ;;  %v21574_v4 = vunpack.i.l.bf16 %v18762_v29  ;;  %v21576_v22 = vmax.f32 %v18518_v46, 0.0  ;;  %v14560_v46 = vld [vmem:[%s21179_s6 + $0x390] ss:$8 sps:$4 sm:$0xff]  }
 0x59d   :  { %v5719_v45 = vmax.f32 %v18907_v21, %v5667_v35  ;;  %v5723_v18 = vmax.f32 %v5667_v35, %v18932_v60  ;;  %v13694_v37 = vunpack.i.h.bf16 %v13692_v50  ;;  %v13693_v26 = vunpack.i.l.bf16 %v13692_v50  ;;  %6167 = vmatpush1.bf16.msra.mxu1 %v14551_v28 }
 0x59e   :  { %v5554_v27 = vsel %vm5548_vm4, %v21572_v42, %v21571_v11  ;;  %v18965_v17 = vpack.c.bf16 %v5726_v43, %v21573_v16  ;;  %v21575_v28 = vunpack.i.h.bf16 %v18722_v48  ;;  %v18976_v50 = vpop.permute.xlu1 %13696  ;;  %6168 = vmatprep.subr.bf16.mxu1 %v14559_v9  ;;  %v21577_v29 = vmax.f32 %v18508_v47, 0.0  ;;  %v14563_v47 = vld [vmem:[%s21179_s6 + $0x160] ss:$8 sps:$4 sm:$0xff]  }
 0x59f   :  { %v5570_v56 = vsel %vm5548_vm4, %v13693_v26, %v13683_v57  ;;  %v5573_v35 = vsel %vm5548_vm4, %v13694_v37, %v13688_v61  ;;  %v18978_v32 = vpack.c.bf16 %v5723_v18, %v5719_v45  ;;  %v21281_v43 = vunpack.i.h.bf16 %v18976_v50  ;;  %6937 = vmatpush1.bf16.msra.mxu0 %v14554_v62 }
 0x5a0   :  { %v5551_v25 = vsel %vm5548_vm4, %v21575_v28, %v21574_v4  ;;  %v18982_v44 = vmax.f32 %v21576_v22, %v5570_v56  ;;  %v18986_v48 = vmax.f32 %v21577_v29, %v5573_v35  ;;  %v21280_v57 = vunpack.i.l.bf16 %v18976_v50  ;;  %v13702_v34 = vpop.permute.xlu0 %13701  ;;  %6938 = vmatprep.subr.bf16.mxu0 %v14562_v59  ;;  %v14566_v59 = vld [vmem:[%s21179_s6 + $0x3a0] ss:$8 sps:$4 sm:$0xff]  }
 0x5a1   :  { %v13689_v37 = vunpack.i.h.bf16 %v18937_v0  ;;  %v13704_v26 = vunpack.i.h.bf16 %v13702_v34  ;;  %v13703_v9 = vunpack.i.l.bf16 %v13702_v34  ;;  %v21578_v45 = vmax.f32 %v18833_v40, %v18860_v38  ;;  %6169 = vmatpush1.bf16.msra.mxu1 %v14557_v23  ;;  %v14568_v40 = vld [vmem:[%s21179_s6 + $0x3a4] ss:$8 sps:$4 sm:$0xff]  }
 0x5a2   :  { %v21579_v18 = vmax.f32 %v18860_v38, %v18873_v31  ;;  %v21580_v62 = vmax.f32 %v18284_v12, 0.0  ;;  %v5727_v16 = vmax.f32 %v18932_v60, %v18982_v44  ;;  %v5731_v4 = vmax.f32 %v18982_v44, %v18986_v48  ;;  %v14571_v12 = vld [vmem:[%s21179_s6 + $0x174] ss:$8 sps:$4 sm:$0xff]   ;;  %v13707_v29 = vpop.permute.xlu1 %13706  ;;  %6170 = vmatprep.subr.bf16.mxu1 %v14565_v3 }
 0x5a3   :  { %v5572_v28 = vsel %vm5548_vm4, %v13684_v20, %v21280_v57  ;;  %v21581_v38 = vld [vmem:[#allocation64_spill] sm:$0xff]  ;;  %v5575_v35 = vsel %vm5548_vm4, %v13689_v37, %v21281_v43  ;;  %v21583_v22 = vmax.f32 %v18458_v6, 0.0  ;;  %v5577_v23 = vsel %vm5548_vm4, %v13703_v9, %v13704_v26  ;;  %6939 = vmatpush1.bf16.msra.mxu0 %v14560_v46 }
 0x5a4   :  { %v19003_v11 = vpack.c.bf16 %v21579_v18, %v21578_v45  ;;  %v19007_v42 = vmax.f32 %v21580_v62, %v5554_v27  ;;  %v21582_v27 = vmax.f32 %v21581_v38, 0.0  ;;  %v21584_v34 = vmax.f32 %v18499_v2, 0.0  ;;  %v13712_v62 = vpop.permute.xlu0 %13711  ;;  %v14569_v2 = vld [vmem:[%s21179_s6 + $0x170] ss:$8 sps:$4 sm:$0xff]   ;;  %6940 = vmatprep.subr.bf16.mxu0 %v14568_v40  ;;  %v14574_v46 = vld [vmem:[%s21179_s6 + $0x3b4] ss:$8 sps:$4 sm:$0xff]  }
 0x5a5   :  { %v19031_v20 = vmax.f32 %v21583_v22, %v5572_v28  ;;  %v13708_v18 = vunpack.i.l.bf16 %v13707_v29  ;;  %v13714_v28 = vunpack.i.h.bf16 %v13712_v62  ;;  %6171 = vmatpush1.bf16.msra.mxu1 %v14563_v47  ;;  %v13709_v22 = vunpack.i.h.bf16 %v13707_v29 }
 0x5a6   :  { %v19024_v56 = vmax.f32 %v21582_v27, %v5551_v25  ;;  %v19036_v45 = vmax.f32 %v21584_v34, %v5575_v35  ;;  %v21585_v25 = vmax.f32 %v18489_v1, 0.0  ;;  %v5709_v3 = vmax.f32 %v19007_v42, %v18818_v15  ;;  %v14577_v27 = vld [vmem:[%s21179_s6 + $0x184] ss:$8 sps:$4 sm:$0xff]   ;;  %v19066_v47 = vpop.permute.xlu1 %13716  ;;  %6172 = vmatprep.subr.bf16.mxu1 %v14571_v12 }
 0x5a7   :  { %v5729_v6 = vmax.f32 %v18873_v31, %v19031_v20  ;;  %v5574_v15 = vsel %vm5548_vm4, %v13688_v61, %v13689_v37  ;;  %v5579_v34 = vsel %vm5548_vm4, %v13714_v28, %v13708_v18  ;;  %v21283_v57 = vunpack.i.h.bf16 %v19066_v47  ;;  %6941 = vmatpush1.bf16.msra.mxu0 %v14566_v59 }
 0x5a8   :  { %v19040_v38 = vmax.f32 %v21585_v25, %v5571_v54  ;;  %v5733_v1 = vmax.f32 %v19031_v20, %v19036_v45  ;;  %v13713_v54 = vunpack.i.l.bf16 %v13712_v62  ;;  %v5705_v35 = vmax.f32 %v19024_v56, %v19007_v42  ;;  %v19075_v43 = vpop.permute.xlu0 %13721  ;;  %6942 = vmatprep.subr.bf16.mxu0 %v14574_v46  ;;  %v14578_v46 = vld [vmem:[%s21179_s6 + $0x3c0] ss:$8 sps:$4 sm:$0xff]  }
 0x5a9   :  { %v21586_v62 = vmax.f32 %v18557_v41, 0.0  ;;  %v21282_v42 = vunpack.i.l.bf16 %v19066_v47  ;;  %v21587_v0 = vmax.f32 %v18549_v52, 0.0  ;;  %v13724_v37 = vunpack.i.h.bf16 %v19075_v43  ;;  %v14572_v41 = vld [vmem:[%s21179_s6 + $0x3b0] ss:$8 sps:$4 sm:$0xff]   ;;  %6173 = vmatpush1.bf16.msra.mxu1 %v14569_v2 }
 0x5aa   :  { %v5576_v40 = vsel %vm5548_vm4, %v13713_v54, %v13703_v9  ;;  %v13723_v12 = vunpack.i.l.bf16 %v19075_v43  ;;  %v14575_v9 = vld [vmem:[%s21179_s6 + $0x180] ss:$8 sps:$4 sm:$0xff]   ;;  %v5728_v29 = vmax.f32 %v18911_v63, %v19040_v38  ;;  %v21588_v52 = vmax.f32 %v18522_v53, 0.0  ;;  %v14583_v53 = vld [vmem:[%s21179_s6 + $0x194] ss:$8 sps:$4 sm:$0xff]   ;;  %6174 = vmatprep.subr.bf16.mxu1 %v14577_v27 }
 0x5ab   :  { %v19071_v25 = vmax.f32 %v21586_v62, %v5579_v34  ;;  %v19079_v61 = vmax.f32 %v21587_v0, %v5576_v40  ;;  %v21589_v59 = vmax.f32 %v18553_v24, 0.0  ;;  %v5578_v34 = vsel %vm5548_vm4, %v13704_v26, %v21282_v42  ;;  %v14580_v62 = vld [vmem:[%s21179_s6 + $0x3c4] ss:$8 sps:$4 sm:$0xff]   ;;  %6943 = vmatpush1.bf16.msra.mxu0 %v14572_v41  ;;  %v14586_v27 = vld [vmem:[%s21179_s6 + $0x3d4] ss:$8 sps:$4 sm:$0xff]  }
 0x5ac   :  { %v19093_v28 = vmax.f32 %v21588_v52, %v5574_v15  ;;  %v5581_v40 = vsel %vm5548_vm4, %v13709_v22, %v21283_v57  ;;  %v21590_v26 = vmax.f32 %v18525_v14, 0.0  ;;  %v21591_v2 = vmax.f32 %v18563_v19, 0.0  ;;  %v13727_v52 = vpop.permute.xlu1 %13726  ;;  %v13732_v57 = vpop.permute.xlu0 %13731  ;;  %6944 = vmatprep.subr.bf16.mxu0 %v14580_v62  ;;  %v14589_v41 = vld [vmem:[%s21179_s6 + $0x2a4] ss:$8 sps:$4 sm:$0xff]   ;;  %v21599_v43 = vld [vmem:[#allocation72_spill] sm:$0xff] }
 0x5ad   :  { %v19097_v54 = vmax.f32 %v21589_v59, %v5577_v23  ;;  %v5580_v59 = vsel %vm5548_vm4, %v13708_v18, %v13709_v22  ;;  %v5583_v42 = vsel %vm5548_vm4, %v13723_v12, %v13724_v37  ;;  %v13729_v19 = vunpack.i.h.bf16 %v13727_v52  ;;  %v14581_v18 = vld [vmem:[%s21179_s6 + $0x190] ss:$8 sps:$4 sm:$0xff]   ;;  %6175 = vmatpush1.bf16.msra.mxu1 %v14575_v9  ;;  %v21611_v23 = vld [vmem:[#allocation74_spill] sm:$0xff] }
 0x5ae   :  { %v19117_v15 = vmax.f32 %v21590_v26, %v5578_v34  ;;  %v19121_v0 = vmax.f32 %v21591_v2, %v5581_v40  ;;  %v13728_v34 = vunpack.i.l.bf16 %v13727_v52  ;;  %v13734_v22 = vunpack.i.h.bf16 %v13732_v57  ;;  %6176 = vmatprep.subr.bf16.mxu1 %v14583_v53 }
 0x5af   :  { %v13733_v40 = vunpack.i.l.bf16 %v13732_v57  ;;  %v19151_v57 = vpack.c.bf16 %v5731_v4, %v5727_v16  ;;  %v19155_v62 = vpack.c.bf16 %v5709_v3, %v5705_v35  ;;  %v19160_v2 = vpack.c.bf16 %v5733_v1, %v5729_v6  ;;  %6945 = vmatpush1.bf16.msra.mxu0 %v14578_v46  ;;  %v14587_v1 = vld [vmem:[%s21179_s6 + $0x2a0] ss:$8 sps:$4 sm:$0xff]  }
 0x5b0   :  { %v19153_v9 = vpop.permute.xlu1 %13736  ;;  %v21592_v60 = vmax.f32 %v18581_v51, 0.0  ;;  %v5585_v16 = vsel %vm5548_vm4, %v13734_v22, %v13728_v34  ;;  %v13742_v3 = vpop.permute.xlu0 %13741  ;;  %v21593_v35 = vmax.f32 %v18646_v55, 0.0  ;;  %v14584_v51 = vld [vmem:[%s21179_s6 + $0x3d0] ss:$8 sps:$4 sm:$0xff]   ;;  %6946 = vmatprep.subr.bf16.mxu0 %v14586_v27  ;;  %v21594_v55 = vmax.f32 %v18628_v49, 0.0 }
 0x5b1   :  { %v5582_v44 = vsel %vm5548_vm4, %v13733_v40, %v13723_v12  ;;  %v13739_v4 = vunpack.i.h.bf16 %v19153_v9  ;;  %v21284_v31 = vunpack.i.l.bf16 %v19153_v9  ;;  %v13744_v20 = vunpack.i.h.bf16 %v13742_v3  ;;  %6177 = vmatpush1.bf16.msra.mxu1 %v14581_v18  ;;  %v14592_v40 = vld [vmem:[%s21179_s6 + $0x3e4] ss:$8 sps:$4 sm:$0xff]  }
 0x5b2   :  { %v19166_v14 = vmax.f32 %v21592_v60, %v5580_v59  ;;  %v19173_v53 = vmax.f32 %v21593_v35, %v5582_v44  ;;  %v13743_v6 = vunpack.i.l.bf16 %v13742_v3  ;;  %v5586_v12 = vsel %vm5548_vm4, %v13728_v34, %v13729_v19  ;;  %v14595_v60 = vld [vmem:[%s21179_s6 + $0x2b4] ss:$8 sps:$4 sm:$0xff]   ;;  %6569 = vmatprep.subr.bf16.mxu1 %v14589_v41 }
 0x5b3   :  { %v5587_v59 = vsel %vm5548_vm4, %v13729_v19, %v13739_v4  ;;  %v19186_v46 = vmax.f32 %v21594_v55, %v5585_v16  ;;  %v6261_v22 = vrot.slane %v18814_v13, 4  ;;  %v21595_v34 = vmax.f32 %v18609_v10, 0.0  ;;  %6947 = vmatpush1.bf16.msra.mxu0 %v14584_v51 }
 0x5b4   :  { %v5584_v49 = vsel %vm5548_vm4, %v13724_v37, %v21284_v31  ;;  %v5558_v13 = vsel %vm5548_vm4, %v13744_v20, %v13743_v6  ;;  %v13747_v18 = vpop.permute.xlu1 %13746  ;;  %v21596_v27 = vmax.f32 %v18585_v58, 0.0  ;;  %v21597_v10 = vunpack.i.l.bf16 %v18793_v33  ;;  %v21601_v20 = vld [vmem:[#allocation71_spill] sm:$0xff]  ;;  %6191 = vmatmul.mubr.bf16.vlgmr.msra.gmra.mrb[96].mxu1 %v19155_v62  ;;  %6948 = vmatprep.subr.bf16.mxu0 %v14592_v40 }
 0x5b5   :  { %v19197_v44 = vmax.f32 %v21595_v34, %v5583_v42  ;;  %v21598_v3 = vmax.f32 %v18660_v39, 0.0  ;;  %v13749_v55 = vunpack.i.h.bf16 %v13747_v18  ;;  %v5541_v34 = vpop.permute.xlu0 %5540  ;;  %v21600_v19 = vmax.f32 %v21599_v43, 0.0  ;;  %v21603_v58 = vld [vmem:[#allocation75_spill] sm:$0xff]  ;;  %6570 = vmatpush1.bf16.msra.mxu1 %v14587_v1  ;;  %11934 = vmatprep.mubr.msk.bf16.mxu1 %vm6113_vm5, %v6261_v22  ;;  %v21607_v1 = vld [vmem:[#allocation76_spill] sm:$0xff] }
 0x5b6   :  { %v19209_v16 = vmax.f32 %v21596_v27, %v5584_v49  ;;  %v5559_v42 = vsel %vm5548_vm4, %v13743_v6, %v21597_v10  ;;  %v21602_v31 = vmax.f32 %v21601_v20, 0.0  ;;  %v21604_v49 = vmax.f32 %v21603_v58, 0.0  ;;  %v14590_v39 = vld [vmem:[%s21179_s6 + $0x3e0] ss:$8 sps:$4 sm:$0xff]   ;;  %v14593_v6 = vld [vmem:[%s21179_s6 + $0x2b0] ss:$8 sps:$4 sm:$0xff]   ;;  %6571 = vmatprep.subr.bf16.mxu1 %v14595_v60 }
 0x5b7   :  { %v5659_v35 = vmax.f32 %v21598_v3, %v5558_v13  ;;  %v19218_v37 = vmax.f32 %v21600_v19, %v5586_v12  ;;  %v13748_v33 = vunpack.i.l.bf16 %v13747_v18  ;;  %v5747_v51 = vmax.f32 %v19173_v53, %v19186_v46  ;;  %v14598_v19 = vld [vmem:[%s21179_s6 + $0x3f4] ss:$8 sps:$4 sm:$0xff]   ;;  %v14601_v13 = vld [vmem:[%s21179_s6 + $0x2c4] ss:$8 sps:$4 sm:$0xff]   ;;  %6949 = vmatpush1.bf16.msra.mxu0 %v14590_v39 }
 0x5b8   :  { %v19222_v41 = vmax.f32 %v21602_v31, %v13739_v4  ;;  %v5660_v27 = vmax.f32 %v21604_v49, %v5559_v42  ;;  %v5745_v12 = vmax.f32 %v19121_v0, %v19209_v16  ;;  %v21609_v20 = vld [vmem:[#allocation77_spill] sm:$0xff]  ;;  %v21612_v24 = vmax.f32 %v21611_v23, 0.0  ;;  %v14599_v23 = vld [vmem:[%s21179_s6 + $0x2c0] ss:$8 sps:$4 sm:$0xff]   ;;  %v21616_v60 = vld [vmem:[#allocation80_spill] sm:$0xff]  ;;  %6950 = vmatprep.subr.bf16.mxu0 %v14598_v19 }
 0x5b9   :  { %v5711_v4 = vmax.f32 %v18754_v8, %v5659_v35  ;;  %v5715_v31 = vmax.f32 %v5659_v35, %v18907_v21  ;;  %v5589_v18 = vsel %vm5548_vm4, %v13748_v33, %v13749_v55  ;;  %v5588_v10 = vsel %vm5548_vm4, %v5541_v34, %v13748_v33  ;;  %v5547_v8 = vpop.permute.xlu1 %5546  ;;  %v21605_v21 = vld [vmem:[#allocation70_spill] sm:$0xff]  ;;  %v21613_v34 = vld [vmem:[#allocation73_spill] sm:$0xff]  ;;  %6572 = vmatpush1.bf16.msra.mxu1 %v14593_v6 }
 0x5ba   :  { %v21606_v42 = vmax.f32 %v21605_v21, 0.0  ;;  %v21608_v35 = vmax.f32 %v21607_v1, 0.0  ;;  %v21610_v58 = vmax.f32 %v21609_v20, 0.0  ;;  %v5590_v52 = vsel %vm5548_vm4, %v13749_v55, %v5547_v8  ;;  %v21617_v39 = vld [vmem:[#allocation81_spill] sm:$0xff]  ;;  %6573 = vmatprep.subr.bf16.mxu1 %v14601_v13  ;;  %v14613_v13 = vld [vmem:[%s21179_s6 + $0x2e4] ss:$8 sps:$4 sm:$0xff]  }
 0x5bb   :  { %v5702_v26 = vmax.f32 %v21612_v24, %v5547_v8  ;;  %v21614_v22 = vmax.f32 %v21613_v34, 0.0  ;;  %v14604_v8 = vld [vmem:[%s21179_s6 + $0x404] ss:$8 sps:$4 sm:$0xff]   ;;  %v21618_v6 = vmax.f32 %v19040_v38, %v19093_v28  ;;  %v21619_v63 = vmax.f32 %v18986_v48, %v19079_v61  ;;  %v14610_v19 = vld [vmem:[%s21179_s6 + $0x414] ss:$8 sps:$4 sm:$0xff]  }
 0x5bc   :  { %v5697_v3 = vmax.f32 %v21606_v42, %v5587_v59  ;;  %v5700_v43 = vmax.f32 %v21608_v35, %v5589_v18  ;;  %v5699_v49 = vmax.f32 %v21610_v58, %v5588_v10  ;;  %v14596_v59 = vld [vmem:[%s21179_s6 + $0x3f0] ss:$8 sps:$4 sm:$0xff]   ;;  %v21615_v18 = vld [vmem:[#allocation79_spill] sm:$0xff]  ;;  %v5716_v10 = vmax.f32 %v5660_v27, %v18899_v7  ;;  %v14607_v7 = vld [vmem:[%s21179_s6 + $0x2d4] ss:$8 sps:$4 sm:$0xff]  }
 0x5bd   :  { %v5701_v40 = vmax.f32 %v21614_v22, %v5590_v52  ;;  %v5712_v21 = vmax.f32 %v21615_v18, %v5660_v27  ;;  %v5754_v52 = vmax.f32 %v19222_v41, %v5702_v26  ;;  %v19293_v20 = vpack.c.bf16 %v21618_v6, %v5728_v29  ;;  %6951 = vmatpush1.bf16.msra.mxu0 %v14596_v59  ;;  %v14641_v6 = vld [vmem:[%s21179_s6 + $0x330] ss:$8 sps:$4 sm:$0xff]  }
 0x5be   :  { %v5749_v33 = vmax.f32 %v19209_v16, %v5697_v3  ;;  %v5751_v24 = vmax.f32 %v19186_v46, %v5699_v49  ;;  %v5755_v55 = vmax.f32 %v5699_v49, %v21616_v60  ;;  %v5758_v16 = vmax.f32 %v5702_v26, %v21617_v39  ;;  %6574 = vmatpush1.bf16.msra.mxu1 %v14599_v23  ;;  %v14628_v23 = vld [vmem:[%s21179_s6 + $0x4e4] ss:$8 sps:$4 sm:$0xff]   ;;  %v14626_v60 = vld [vmem:[%s21179_s6 + $0x4e0] ss:$8 sps:$4 sm:$0xff]  }
 0x5bf   :  { %v5753_v27 = vmax.f32 %v5697_v3, %v5701_v40  ;;  %v5757_v42 = vmax.f32 %v5701_v40, %v19024_v56  ;;  %v19279_v46 = vpack.c.bf16 %v5716_v10, %v5712_v21  ;;  %v19285_v26 = vpack.c.bf16 %v5715_v31, %v5711_v4  ;;  %v14602_v56 = vld [vmem:[%s21179_s6 + $0x400] ss:$8 sps:$4 sm:$0xff]   ;;  %6952 = vmatprep.subr.bf16.mxu0 %v14604_v8  ;;  %v14605_v31 = vld [vmem:[%s21179_s6 + $0x2d0] ss:$8 sps:$4 sm:$0xff]   ;;  %v14637_v39 = vld [vmem:[%s21179_s6 + $0x324] ss:$8 sps:$4 sm:$0xff]  }
 0x5c0   :  { %v19281_v1 = vpack.c.bf16 %v5755_v55, %v5751_v24  ;;  %v19283_v35 = vpack.c.bf16 %v5758_v16, %v5754_v52  ;;  %v5740_v4 = vmax.f32 %v19097_v54, %v19166_v14  ;;  %v21620_v38 = vmax.f32 %v19079_v61, %v19071_v25  ;;  %6575 = vmatprep.subr.bf16.mxu1 %v14607_v7  ;;  %v14620_v21 = vld [vmem:[%s21179_s6 + $0x430] ss:$8 sps:$4 sm:$0xff]   ;;  %v14623_v10 = vld [vmem:[%s21179_s6 + $0x300] ss:$8 sps:$4 sm:$0xff]   ;;  %v14631_v24 = vld [vmem:[%s21179_s6 + $0x314] ss:$8 sps:$4 sm:$0xff]  }
 0x5c1   :  { %v19295_v3 = vpack.c.bf16 %v5757_v42, %v5753_v27  ;;  %6960 = vmatprep.mubr.bf16.mxu0 %v19279_v46  ;;  %v21621_v48 = vmax.f32 %v19036_v45, %v19117_v15  ;;  %v21622_v61 = vmax.f32 %v19117_v15, %v19121_v0  ;;  %v21623_v49 = vmax.f32 %v19093_v28, %v19097_v54  ;;  %v14608_v15 = vld [vmem:[%s21179_s6 + $0x410] ss:$8 sps:$4 sm:$0xff]   ;;  %v14611_v28 = vld [vmem:[%s21179_s6 + $0x2e0] ss:$8 sps:$4 sm:$0xff]   ;;  %v14634_v52 = vld [vmem:[%s21179_s6 + $0x4f4] ss:$8 sps:$4 sm:$0xff]  }
 0x5c2   :  { %v19309_v29 = vpack.c.bf16 %v21620_v38, %v21619_v63  ;;  %v5744_v22 = vmax.f32 %v19166_v14, %v19197_v44  ;;  %v5748_v40 = vmax.f32 %v19197_v44, %v19218_v37  ;;  %v21624_v45 = vmax.f32 %v19071_v25, %v19173_v53  ;;  %6953 = vmatpush1.bf16.msra.mxu0 %v14602_v56  ;;  %v14616_v25 = vld [vmem:[%s21179_s6 + $0x424] ss:$8 sps:$4 sm:$0xff]   ;;  %v14619_v53 = vld [vmem:[%s21179_s6 + $0x2f4] ss:$8 sps:$4 sm:$0xff]   ;;  %v14629_v55 = vld [vmem:[%s21179_s6 + $0x310] ss:$8 sps:$4 sm:$0xff]  }
 0x5c3   :  { %v19326_v58 = vpack.c.bf16 %v21622_v61, %v21621_v48  ;;  %v19331_v34 = vpack.c.bf16 %v5740_v4, %v21623_v49  ;;  %v19350_v0 = vpack.c.bf16 %v5749_v33, %v5745_v12  ;;  %v5752_v14 = vmax.f32 %v19218_v37, %v5700_v43  ;;  %6576 = vmatpush1.bf16.msra.mxu1 %v14605_v31  ;;  %v21625_v44 = vld [vmem:[#allocation78_spill] sm:$0xff]  ;;  %v14617_v12 = vld [vmem:[%s21179_s6 + $0x2f0] ss:$8 sps:$4 sm:$0xff]   ;;  %v14622_v33 = vld [vmem:[%s21179_s6 + $0x434] ss:$8 sps:$4 sm:$0xff]  }
 0x5c4   :  { %v19340_v59 = vpack.c.bf16 %v5747_v51, %v21624_v45  ;;  %v19348_v54 = vpack.c.bf16 %v5748_v40, %v5744_v22  ;;  %6954 = vmatprep.subr.bf16.mxu0 %v14610_v19  ;;  %v5756_v51 = vmax.f32 %v5700_v43, %v21625_v44  ;;  %6577 = vmatprep.subr.bf16.mxu1 %v14613_v13  ;;  %v14614_v37 = vld [vmem:[%s21179_s6 + $0x420] ss:$8 sps:$4 sm:$0xff]   ;;  %v14625_v43 = vld [vmem:[%s21179_s6 + $0x304] ss:$8 sps:$4 sm:$0xff]   ;;  %v7070_v16 = vrot.slane %v19279_v46, 4 }
 0x5c5   :  { %v14632_v8 = vld [vmem:[%s21179_s6 + $0x4f0] ss:$8 sps:$4 sm:$0xff]   ;;  %v14635_v7 = vld [vmem:[%s21179_s6 + $0x320] ss:$8 sps:$4 sm:$0xff]   ;;  %v14640_v27 = vld [vmem:[%s21179_s6 + $0x504] ss:$8 sps:$4 sm:$0xff]  }
 0x5c6   :  { %v19360_v18 = vpack.c.bf16 %v5756_v51, %v5752_v14  ;;  %6955 = vmatpush1.bf16.msra.mxu0 %v14608_v15  ;;  %v14643_v42 = vld [vmem:[%s21179_s6 + $0x334] ss:$8 sps:$4 sm:$0xff]   ;;  %v14638_v46 = vld [vmem:[%s21179_s6 + $0x500] ss:$8 sps:$4 sm:$0xff]   ;;  %v14649_v4 = vld [vmem:[%s21179_s6 + $0x444] ss:$8 sps:$4 sm:$0xff]  }
 0x5c7   :  { %6578 = vmatpush1.bf16.msra.mxu1 %v14611_v28  ;;  %6956 = vmatprep.subr.bf16.mxu0 %v14616_v25  ;;  %v14646_v56 = vld [vmem:[%s21179_s6 + $0x514] ss:$8 sps:$4 sm:$0xff]   ;;  %v14644_v63 = vld [vmem:[%s21179_s6 + $0x510] ss:$8 sps:$4 sm:$0xff]   ;;  %v14647_v38 = vld [vmem:[%s21179_s6 + $0x440] ss:$8 sps:$4 sm:$0xff]  }
 0x5c8   :  { %6579 = vmatprep.subr.bf16.mxu1 %v14619_v53  ;;  %v14652_v31 = vld [vmem:[%s21179_s6 + $0x524] ss:$8 sps:$4 sm:$0xff]   ;;  %v14655_v19 = vld [vmem:[%s21179_s6 + $0x454] ss:$8 sps:$4 sm:$0xff]   ;;  %v6260_v13 = vrot.slane %v19155_v62, 4 }
 0x5c9   :  { %v14650_v48 = vld [vmem:[%s21179_s6 + $0x520] ss:$8 sps:$4 sm:$0xff]   ;;  %v14653_v61 = vld [vmem:[%s21179_s6 + $0x450] ss:$8 sps:$4 sm:$0xff]   ;;  %v14658_v49 = vld [vmem:[%s21179_s6 + $0x534] ss:$8 sps:$4 sm:$0xff]  }
 0x5ca   :  { %6957 = vmatpush1.bf16.msra.mxu0 %v14614_v37  ;;  %v14661_v62 = vld [vmem:[%s21179_s6 + $0x464] ss:$8 sps:$4 sm:$0xff]   ;;  %v14656_v22 = vld [vmem:[%s21179_s6 + $0x530] ss:$8 sps:$4 sm:$0xff]   ;;  %v14659_v40 = vld [vmem:[%s21179_s6 + $0x460] ss:$8 sps:$4 sm:$0xff]  }
 0x5cb   :  { %6580 = vmatpush1.bf16.msra.mxu1 %v14617_v12  ;;  %6958 = vmatprep.subr.bf16.mxu0 %v14622_v33  ;;  %v14664_v45 = vld [vmem:[%s21179_s6 + $0x544] ss:$8 sps:$4 sm:$0xff]   ;;  %v14667_v15 = vld [vmem:[%s21179_s6 + $0x474] ss:$8 sps:$4 sm:$0xff]   ;;  %v14662_v28 = vld [vmem:[%s21179_s6 + $0x540] ss:$8 sps:$4 sm:$0xff]  }
 0x5cc   :  { %6581 = vmatprep.subr.bf16.mxu1 %v14625_v43  ;;  %v14665_v14 = vld [vmem:[%s21179_s6 + $0x470] ss:$8 sps:$4 sm:$0xff]   ;;  %v14670_v25 = vld [vmem:[%s21179_s6 + $0x554] ss:$8 sps:$4 sm:$0xff]   ;;  %v14673_v53 = vld [vmem:[%s21179_s6 + $0x484] ss:$8 sps:$4 sm:$0xff]  }
 0x5cd   :  { %v14668_v44 = vld [vmem:[%s21179_s6 + $0x550] ss:$8 sps:$4 sm:$0xff]   ;;  %v14671_v51 = vld [vmem:[%s21179_s6 + $0x480] ss:$8 sps:$4 sm:$0xff]   ;;  %v14676_v37 = vld [vmem:[%s21179_s6 + $0x564] ss:$8 sps:$4 sm:$0xff]  }
 0x5ce   :  { %6959 = vmatpush1.bf16.msra.mxu0 %v14620_v21  ;;  %v14679_v12 = vld [vmem:[%s21179_s6 + $0x494] ss:$8 sps:$4 sm:$0xff]   ;;  %v14674_v33 = vld [vmem:[%s21179_s6 + $0x560] ss:$8 sps:$4 sm:$0xff]   ;;  %v14677_v43 = vld [vmem:[%s21179_s6 + $0x490] ss:$8 sps:$4 sm:$0xff]  }
 0x5cf   :  { %6582 = vmatpush1.bf16.msra.mxu1 %v14623_v10  ;;  %7339 = vmatprep.subr.bf16.mxu0 %v14628_v23  ;;  %v14682_v21 = vld [vmem:[%s21179_s6 + $0x574] ss:$8 sps:$4 sm:$0xff]   ;;  %v14685_v10 = vld [vmem:[%s21179_s6 + $0x4a4] ss:$8 sps:$4 sm:$0xff]   ;;  %v14680_v23 = vld [vmem:[%s21179_s6 + $0x570] ss:$8 sps:$4 sm:$0xff]  }
 0x5d0   :  { %6583 = vmatprep.subr.bf16.mxu1 %v14631_v24  ;;  %v14683_v24 = vld [vmem:[%s21179_s6 + $0x4a0] ss:$8 sps:$4 sm:$0xff]  }
 0x5d1   :  { %6961 = vmatmul.mubr.bf16.vlgmr.msra.gmra.mrb[244].mxu0 %v19285_v26 }
 0x5d2   :  { %7340 = vmatpush1.bf16.msra.mxu0 %v14626_v60  ;;  %7371 = vmatprep.mubr.bf16.mxu0 %v7070_v16  ;;  %v14688_v60 = vld [vmem:[%s21179_s6 + $0x584] ss:$8 sps:$4 sm:$0xff]   ;;  %v14694_v16 = vld [vmem:[%s21179_s6 + $0x594] ss:$8 sps:$4 sm:$0xff]  }
 0x5d3   :  { %6584 = vmatpush1.bf16.msra.mxu1 %v14629_v55  ;;  %7341 = vmatprep.subr.bf16.mxu0 %v14634_v52  ;;  %v14691_v55 = vld [vmem:[%s21179_s6 + $0x4b4] ss:$8 sps:$4 sm:$0xff]   ;;  %v14686_v52 = vld [vmem:[%s21179_s6 + $0x580] ss:$8 sps:$4 sm:$0xff]  }
 0x5d4   :  { %6585 = vmatprep.subr.bf16.mxu1 %v14637_v39  ;;  %v14689_v39 = vld [vmem:[%s21179_s6 + $0x4b0] ss:$8 sps:$4 sm:$0xff]  }
 0x5d6   :  { %7342 = vmatpush1.bf16.msra.mxu0 %v14632_v8  ;;  %v14697_v8 = vld [vmem:[%s21179_s6 + $0x4c4] ss:$8 sps:$4 sm:$0xff]  }
 0x5d7   :  { %6586 = vmatpush1.bf16.msra.mxu1 %v14635_v7  ;;  %7343 = vmatprep.subr.bf16.mxu0 %v14640_v27  ;;  %v14692_v7 = vld [vmem:[%s21179_s6 + $0x590] ss:$8 sps:$4 sm:$0xff]   ;;  %v14695_v27 = vld [vmem:[%s21179_s6 + $0x4c0] ss:$8 sps:$4 sm:$0xff]  }
 0x5d8   :  { %6587 = vmatprep.subr.bf16.mxu1 %v14643_v42  ;;  %v14700_v42 = vld [vmem:[%s21179_s6 + $0x5a4] ss:$8 sps:$4 sm:$0xff]  }
 0x5da   :  { %7344 = vmatpush1.bf16.msra.mxu0 %v14638_v46  ;;  %v14703_v46 = vld [vmem:[%s21179_s6 + $0x4d4] ss:$8 sps:$4 sm:$0xff]  }
 0x5db   :  { %6588 = vmatpush1.bf16.msra.mxu1 %v14641_v6  ;;  %7345 = vmatprep.subr.bf16.mxu0 %v14646_v56  ;;  %v14698_v6 = vld [vmem:[%s21179_s6 + $0x5a0] ss:$8 sps:$4 sm:$0xff]   ;;  %v14701_v56 = vld [vmem:[%s21179_s6 + $0x4d0] ss:$8 sps:$4 sm:$0xff]  }
 0x5dc   :  { %6969 = vmatprep.subr.bf16.mxu1 %v14649_v4  ;;  %v14706_v4 = vld [vmem:[%s21179_s6 + $0x5b4] ss:$8 sps:$4 sm:$0xff]  }
 0x5de   :  { %7346 = vmatpush1.bf16.msra.mxu0 %v14644_v63  ;;  %6602 = vmatmul.mubr.bf16.vlgmr.msra.gmra.mrb[100].mxu1 %v6260_v13  ;;  %v14709_v63 = vld [vmem:[%s21179_s6 + $0x5e4] ss:$8 sps:$4 sm:$0xff]   ;;  %v14715_v13 = vld [vmem:[%s21179_s6 + $0x5f4] ss:$8 sps:$4 sm:$0xff]  }
 0x5df   :  { %6970 = vmatpush1.bf16.msra.mxu1 %v14647_v38  ;;  %12039 = vmatprep.mubr.msk.bf16.mxu1 %vm6113_vm5, %v18893_v30  ;;  %v14704_v38 = vld [vmem:[%s21179_s6 + $0x5b0] ss:$8 sps:$4 sm:$0xff]  }
 0x5e0   :  { %7347 = vmatprep.subr.bf16.mxu0 %v14652_v31  ;;  %6971 = vmatprep.subr.bf16.mxu1 %v14655_v19  ;;  %v14707_v31 = vld [vmem:[%s21179_s6 + $0x5e0] ss:$8 sps:$4 sm:$0xff]   ;;  %v14712_v19 = vld [vmem:[%s21179_s6 + $0x5c4] ss:$8 sps:$4 sm:$0xff]  }
 0x5e2   :  { %7348 = vmatpush1.bf16.msra.mxu0 %v14650_v48  ;;  %v14710_v48 = vld [vmem:[%s21179_s6 + $0x5c0] ss:$8 sps:$4 sm:$0xff]  }
 0x5e3   :  { %6972 = vmatpush1.bf16.msra.mxu1 %v14653_v61  ;;  %7349 = vmatprep.subr.bf16.mxu0 %v14658_v49  ;;  %v7072_v61 = vrot.slane %v18893_v30, 4  ;;  %v14713_v49 = vld [vmem:[%s21179_s6 + $0x5f0] ss:$8 sps:$4 sm:$0xff]   ;;  %v14721_v30 = vld [vmem:[%s21179_s6 + $0x604] ss:$8 sps:$4 sm:$0xff]  }
 0x5e4   :  { %6973 = vmatprep.subr.bf16.mxu1 %v14661_v62  ;;  %v14718_v62 = vld [vmem:[%s21179_s6 + $0x5d4] ss:$8 sps:$4 sm:$0xff]  }
 0x5e6   :  { %7350 = vmatpush1.bf16.msra.mxu0 %v14656_v22  ;;  %v14716_v22 = vld [vmem:[%s21179_s6 + $0x5d0] ss:$8 sps:$4 sm:$0xff]  }
 0x5e7   :  { %6974 = vmatpush1.bf16.msra.mxu1 %v14659_v40  ;;  %7351 = vmatprep.subr.bf16.mxu0 %v14664_v45  ;;  %v14719_v40 = vld [vmem:[%s21179_s6 + $0x600] ss:$8 sps:$4 sm:$0xff]   ;;  %v14724_v45 = vld [vmem:[%s21179_s6 + $0x684] ss:$8 sps:$4 sm:$0xff]  }
 0x5e8   :  { %6975 = vmatprep.subr.bf16.mxu1 %v14667_v15  ;;  %v14727_v15 = vld [vmem:[%s21179_s6 + $0x614] ss:$8 sps:$4 sm:$0xff]  }
 0x5ea   :  { %7352 = vmatpush1.bf16.msra.mxu0 %v14662_v28  ;;  %v14722_v28 = vld [vmem:[%s21179_s6 + $0x680] ss:$8 sps:$4 sm:$0xff]  }
 0x5eb   :  { %6976 = vmatpush1.bf16.msra.mxu1 %v14665_v14  ;;  %7353 = vmatprep.subr.bf16.mxu0 %v14670_v25  ;;  %v7069_v14 = vrot.slane %v19285_v26, 4  ;;  %v14725_v25 = vld [vmem:[%s21179_s6 + $0x610] ss:$8 sps:$4 sm:$0xff]  }
 0x5ec   :  { %6977 = vmatprep.subr.bf16.mxu1 %v14673_v53  ;;  %v14730_v53 = vld [vmem:[%s21179_s6 + $0x694] ss:$8 sps:$4 sm:$0xff]   ;;  %v14728_v26 = vld [vmem:[%s21179_s6 + $0x690] ss:$8 sps:$4 sm:$0xff]  }
 0x5ee   :  { %7354 = vmatpush1.bf16.msra.mxu0 %v14668_v44  ;;  %v14733_v44 = vld [vmem:[%s21179_s6 + $0x624] ss:$8 sps:$4 sm:$0xff]  }
 0x5ef   :  { %6978 = vmatpush1.bf16.msra.mxu1 %v14671_v51  ;;  %7355 = vmatprep.subr.bf16.mxu0 %v14676_v37  ;;  %v14731_v51 = vld [vmem:[%s21179_s6 + $0x620] ss:$8 sps:$4 sm:$0xff]   ;;  %v14736_v37 = vld [vmem:[%s21179_s6 + $0x6a4] ss:$8 sps:$4 sm:$0xff]  }
 0x5f0   :  { %6979 = vmatprep.subr.bf16.mxu1 %v14679_v12  ;;  %v14739_v12 = vld [vmem:[%s21179_s6 + $0x634] ss:$8 sps:$4 sm:$0xff]  }
 0x5f2   :  { %7356 = vmatpush1.bf16.msra.mxu0 %v14674_v33  ;;  %v14734_v33 = vld [vmem:[%s21179_s6 + $0x6a0] ss:$8 sps:$4 sm:$0xff]  }
 0x5f3   :  { %6980 = vmatpush1.bf16.msra.mxu1 %v14677_v43  ;;  %7357 = vmatprep.subr.bf16.mxu0 %v14682_v21  ;;  %v14737_v43 = vld [vmem:[%s21179_s6 + $0x630] ss:$8 sps:$4 sm:$0xff]   ;;  %v14742_v21 = vld [vmem:[%s21179_s6 + $0x6b4] ss:$8 sps:$4 sm:$0xff]  }
 0x5f4   :  { %6981 = vmatprep.subr.bf16.mxu1 %v14685_v10  ;;  %v14745_v10 = vld [vmem:[%s21179_s6 + $0x644] ss:$8 sps:$4 sm:$0xff]  }
 0x5f6   :  { %7358 = vmatpush1.bf16.msra.mxu0 %v14680_v23  ;;  %v14740_v23 = vld [vmem:[%s21179_s6 + $0x6b0] ss:$8 sps:$4 sm:$0xff]  }
 0x5f7   :  { %6982 = vmatpush1.bf16.msra.mxu1 %v14683_v24  ;;  %7359 = vmatprep.subr.bf16.mxu0 %v14688_v60  ;;  %v14743_v24 = vld [vmem:[%s21179_s6 + $0x640] ss:$8 sps:$4 sm:$0xff]   ;;  %v14748_v60 = vld [vmem:[%s21179_s6 + $0x6c4] ss:$8 sps:$4 sm:$0xff]  }
 0x5f8   :  { %6983 = vmatprep.subr.bf16.mxu1 %v14691_v55  ;;  %v14751_v55 = vld [vmem:[%s21179_s6 + $0x654] ss:$8 sps:$4 sm:$0xff]  }
 0x5fa   :  { %7360 = vmatpush1.bf16.msra.mxu0 %v14686_v52  ;;  %v14746_v52 = vld [vmem:[%s21179_s6 + $0x6c0] ss:$8 sps:$4 sm:$0xff]  }
 0x5fb   :  { %6984 = vmatpush1.bf16.msra.mxu1 %v14689_v39  ;;  %7361 = vmatprep.subr.bf16.mxu0 %v14694_v16  ;;  %v14749_v39 = vld [vmem:[%s21179_s6 + $0x650] ss:$8 sps:$4 sm:$0xff]   ;;  %v14754_v16 = vld [vmem:[%s21179_s6 + $0x6d4] ss:$8 sps:$4 sm:$0xff]  }
 0x5fc   :  { %6985 = vmatprep.subr.bf16.mxu1 %v14697_v8  ;;  %v14757_v8 = vld [vmem:[%s21179_s6 + $0x664] ss:$8 sps:$4 sm:$0xff]  }
 0x5fe   :  { %7362 = vmatpush1.bf16.msra.mxu0 %v14692_v7  ;;  %v14752_v7 = vld [vmem:[%s21179_s6 + $0x6d0] ss:$8 sps:$4 sm:$0xff]  }
 0x5ff   :  { %6986 = vmatpush1.bf16.msra.mxu1 %v14695_v27  ;;  %7363 = vmatprep.subr.bf16.mxu0 %v14700_v42  ;;  %v14755_v27 = vld [vmem:[%s21179_s6 + $0x660] ss:$8 sps:$4 sm:$0xff]   ;;  %v14760_v42 = vld [vmem:[%s21179_s6 + $0x6e4] ss:$8 sps:$4 sm:$0xff]  }
 0x600   :  { %6987 = vmatprep.subr.bf16.mxu1 %v14703_v46  ;;  %v14763_v46 = vld [vmem:[%s21179_s6 + $0x674] ss:$8 sps:$4 sm:$0xff]  }
 0x602   :  { %7364 = vmatpush1.bf16.msra.mxu0 %v14698_v6  ;;  %v14758_v6 = vld [vmem:[%s21179_s6 + $0x6e0] ss:$8 sps:$4 sm:$0xff]  }
 0x603   :  { %6988 = vmatpush1.bf16.msra.mxu1 %v14701_v56  ;;  %7365 = vmatprep.subr.bf16.mxu0 %v14706_v4  ;;  %v14761_v56 = vld [vmem:[%s21179_s6 + $0x670] ss:$8 sps:$4 sm:$0xff]   ;;  %v14766_v4 = vld [vmem:[%s21179_s6 + $0x6f4] ss:$8 sps:$4 sm:$0xff]  }
 0x604   :  { %7380 = vmatprep.subr.bf16.mxu1 %v14709_v63  ;;  %v14769_v63 = vld [vmem:[%s21179_s6 + $0x784] ss:$8 sps:$4 sm:$0xff]  }
 0x606   :  { %7366 = vmatpush1.bf16.msra.mxu0 %v14704_v38  ;;  %7002 = vmatmul.mubr.bf16.vlgmr.msra.gmra.mrb[104].mxu1 %v18919_v36  ;;  %v14764_v38 = vld [vmem:[%s21179_s6 + $0x6f0] ss:$8 sps:$4 sm:$0xff]  }
 0x607   :  { %7381 = vmatpush1.bf16.msra.mxu1 %v14707_v31  ;;  %12144 = vmatprep.mubr.msk.bf16.mxu1 %vm6113_vm5, %v7072_v61  ;;  %v14767_v31 = vld [vmem:[%s21179_s6 + $0x780] ss:$8 sps:$4 sm:$0xff]  }
 0x608   :  { %7367 = vmatprep.subr.bf16.mxu0 %v14712_v19  ;;  %7382 = vmatprep.subr.bf16.mxu1 %v14715_v13  ;;  %v7071_v19 = vrot.slane %v18919_v36, 4  ;;  %v14772_v13 = vld [vmem:[%s21179_s6 + $0x704] ss:$8 sps:$4 sm:$0xff]   ;;  %v14770_v61 = vld [vmem:[%s21179_s6 + $0x700] ss:$8 sps:$4 sm:$0xff]  }
 0x609   :  { %v14773_v36 = vld [vmem:[%s21179_s6 + $0x790] ss:$8 sps:$4 sm:$0xff]  }
 0x60a   :  { %7368 = vmatpush1.bf16.msra.mxu0 %v14710_v48  ;;  %v14775_v48 = vld [vmem:[%s21179_s6 + $0x794] ss:$8 sps:$4 sm:$0xff]  }
 0x60b   :  { %7383 = vmatpush1.bf16.msra.mxu1 %v14713_v49  ;;  %7369 = vmatprep.subr.bf16.mxu0 %v14718_v62  ;;  %v14778_v49 = vld [vmem:[%s21179_s6 + $0x714] ss:$8 sps:$4 sm:$0xff]   ;;  %v14781_v62 = vld [vmem:[%s21179_s6 + $0x7a4] ss:$8 sps:$4 sm:$0xff]  }
 0x60c   :  { %7384 = vmatprep.subr.bf16.mxu1 %v14721_v30  ;;  %v14776_v30 = vld [vmem:[%s21179_s6 + $0x710] ss:$8 sps:$4 sm:$0xff]  }
 0x60e   :  { %7370 = vmatpush1.bf16.msra.mxu0 %v14716_v22  ;;  %v14779_v22 = vld [vmem:[%s21179_s6 + $0x7a0] ss:$8 sps:$4 sm:$0xff]  }
 0x60f   :  { %7385 = vmatpush1.bf16.msra.mxu1 %v14719_v40  ;;  %7739 = vmatprep.subr.bf16.mxu0 %v14724_v45  ;;  %v14784_v40 = vld [vmem:[%s21179_s6 + $0x724] ss:$8 sps:$4 sm:$0xff]   ;;  %v14787_v45 = vld [vmem:[%s21179_s6 + $0x7b4] ss:$8 sps:$4 sm:$0xff]  }
 0x610   :  { %7386 = vmatprep.subr.bf16.mxu1 %v14727_v15  ;;  %v14782_v15 = vld [vmem:[%s21179_s6 + $0x720] ss:$8 sps:$4 sm:$0xff]  }
 0x611   :  { %7372 = vmatmul.mubr.bf16.vlgmr.msra.gmra.mrb[248].mxu0 %v7069_v14  ;;  %v14790_v14 = vld [vmem:[%s21179_s6 + $0x734] ss:$8 sps:$4 sm:$0xff]  }
 0x612   :  { %7740 = vmatpush1.bf16.msra.mxu0 %v14722_v28  ;;  %7771 = vmatprep.mubr.bf16.mxu0 %v18960_v5  ;;  %v14785_v28 = vld [vmem:[%s21179_s6 + $0x7b0] ss:$8 sps:$4 sm:$0xff]  }
 0x613   :  { %7387 = vmatpush1.bf16.msra.mxu1 %v14725_v25  ;;  %7741 = vmatprep.subr.bf16.mxu0 %v14730_v53  ;;  %v14793_v25 = vld [vmem:[%s21179_s6 + $0x7c4] ss:$8 sps:$4 sm:$0xff]   ;;  %v14788_v53 = vld [vmem:[%s21179_s6 + $0x730] ss:$8 sps:$4 sm:$0xff]  }
 0x614   :  { %7388 = vmatprep.subr.bf16.mxu1 %v14733_v44  ;;  %v14791_v44 = vld [vmem:[%s21179_s6 + $0x7c0] ss:$8 sps:$4 sm:$0xff]  }
 0x616   :  { %7742 = vmatpush1.bf16.msra.mxu0 %v14728_v26  ;;  %v14796_v26 = vld [vmem:[%s21179_s6 + $0x744] ss:$8 sps:$4 sm:$0xff]  }
 0x617   :  { %7389 = vmatpush1.bf16.msra.mxu1 %v14731_v51  ;;  %7743 = vmatprep.subr.bf16.mxu0 %v14736_v37  ;;  %v14799_v51 = vld [vmem:[%s21179_s6 + $0x7d4] ss:$8 sps:$4 sm:$0xff]   ;;  %v14794_v37 = vld [vmem:[%s21179_s6 + $0x740] ss:$8 sps:$4 sm:$0xff]  }
 0x618   :  { %7390 = vmatprep.subr.bf16.mxu1 %v14739_v12  ;;  %v14797_v12 = vld [vmem:[%s21179_s6 + $0x7d0] ss:$8 sps:$4 sm:$0xff]  }
 0x61a   :  { %7744 = vmatpush1.bf16.msra.mxu0 %v14734_v33  ;;  %v14802_v33 = vld [vmem:[%s21179_s6 + $0x754] ss:$8 sps:$4 sm:$0xff]  }
 0x61b   :  { %7391 = vmatpush1.bf16.msra.mxu1 %v14737_v43  ;;  %7745 = vmatprep.subr.bf16.mxu0 %v14742_v21  ;;  %v14805_v43 = vld [vmem:[%s21179_s6 + $0x7e4] ss:$8 sps:$4 sm:$0xff]   ;;  %v14800_v21 = vld [vmem:[%s21179_s6 + $0x750] ss:$8 sps:$4 sm:$0xff]  }
 0x61c   :  { %7392 = vmatprep.subr.bf16.mxu1 %v14745_v10  ;;  %v14803_v10 = vld [vmem:[%s21179_s6 + $0x7e0] ss:$8 sps:$4 sm:$0xff]  }
 0x61e   :  { %7746 = vmatpush1.bf16.msra.mxu0 %v14740_v23  ;;  %v14808_v23 = vld [vmem:[%s21179_s6 + $0x764] ss:$8 sps:$4 sm:$0xff]  }
 0x61f   :  { %7393 = vmatpush1.bf16.msra.mxu1 %v14743_v24  ;;  %7747 = vmatprep.subr.bf16.mxu0 %v14748_v60  ;;  %v14811_v24 = vld [vmem:[%s21179_s6 + $0x7f4] ss:$8 sps:$4 sm:$0xff]   ;;  %v14806_v60 = vld [vmem:[%s21179_s6 + $0x760] ss:$8 sps:$4 sm:$0xff]  }
 0x620   :  { %7394 = vmatprep.subr.bf16.mxu1 %v14751_v55  ;;  %v14809_v55 = vld [vmem:[%s21179_s6 + $0x7f0] ss:$8 sps:$4 sm:$0xff]  }
 0x622   :  { %7748 = vmatpush1.bf16.msra.mxu0 %v14746_v52  ;;  %v14814_v52 = vld [vmem:[%s21179_s6 + $0x774] ss:$8 sps:$4 sm:$0xff]  }
 0x623   :  { %7395 = vmatpush1.bf16.msra.mxu1 %v14749_v39  ;;  %7749 = vmatprep.subr.bf16.mxu0 %v14754_v16  ;;  %v14817_v39 = vld [vmem:[%s21179_s6 + $0x804] ss:$8 sps:$4 sm:$0xff]   ;;  %v14812_v16 = vld [vmem:[%s21179_s6 + $0x770] ss:$8 sps:$4 sm:$0xff]  }
 0x624   :  { %7396 = vmatprep.subr.bf16.mxu1 %v14757_v8  ;;  %v14815_v8 = vld [vmem:[%s21179_s6 + $0x800] ss:$8 sps:$4 sm:$0xff]  }
 0x626   :  { %7750 = vmatpush1.bf16.msra.mxu0 %v14752_v7  ;;  %v14820_v7 = vld [vmem:[%s21179_s6 + $0x814] ss:$8 sps:$4 sm:$0xff]  }
 0x627   :  { %7397 = vmatpush1.bf16.msra.mxu1 %v14755_v27  ;;  %7751 = vmatprep.subr.bf16.mxu0 %v14760_v42  ;;  %v14818_v27 = vld [vmem:[%s21179_s6 + $0x810] ss:$8 sps:$4 sm:$0xff]   ;;  %v14823_v42 = vld [vmem:[%s21179_s6 + $0x824] ss:$8 sps:$4 sm:$0xff]  }
 0x628   :  { %7398 = vmatprep.subr.bf16.mxu1 %v14763_v46  ;;  %v14821_v46 = vld [vmem:[%s21179_s6 + $0x820] ss:$8 sps:$4 sm:$0xff]  }
 0x62a   :  { %7752 = vmatpush1.bf16.msra.mxu0 %v14758_v6  ;;  %v14826_v6 = vld [vmem:[%s21179_s6 + $0x834] ss:$8 sps:$4 sm:$0xff]  }
 0x62b   :  { %7399 = vmatpush1.bf16.msra.mxu1 %v14761_v56  ;;  %7753 = vmatprep.subr.bf16.mxu0 %v14766_v4  ;;  %v7881_v56 = vrot.slane %v18960_v5, 4  ;;  %v14824_v4 = vld [vmem:[%s21179_s6 + $0x830] ss:$8 sps:$4 sm:$0xff]   ;;  %v14832_v5 = vld [vmem:[%s21179_s6 + $0x854] ss:$8 sps:$4 sm:$0xff]  }
 0x62c   :  { %7780 = vmatprep.subr.bf16.mxu1 %v14769_v63  ;;  %v14829_v63 = vld [vmem:[%s21179_s6 + $0x844] ss:$8 sps:$4 sm:$0xff]  }
 0x62e   :  { %7754 = vmatpush1.bf16.msra.mxu0 %v14764_v38  ;;  %7413 = vmatmul.mubr.bf16.vlgmr.msra.gmra.mrb[108].mxu1 %v7071_v19  ;;  %v14827_v38 = vld [vmem:[%s21179_s6 + $0x840] ss:$8 sps:$4 sm:$0xff]   ;;  %v14835_v19 = vld [vmem:[%s21179_s6 + $0x864] ss:$8 sps:$4 sm:$0xff]  }
 0x62f   :  { %7781 = vmatpush1.bf16.msra.mxu1 %v14767_v31  ;;  %12249 = vmatprep.mubr.msk.bf16.mxu1 %vm6113_vm5, %v18965_v17  ;;  %v14830_v31 = vld [vmem:[%s21179_s6 + $0x850] ss:$8 sps:$4 sm:$0xff]  }
 0x630   :  { %7755 = vmatprep.subr.bf16.mxu0 %v14772_v13  ;;  %7782 = vmatprep.subr.bf16.mxu1 %v14775_v48  ;;  %v14833_v13 = vld [vmem:[%s21179_s6 + $0x860] ss:$8 sps:$4 sm:$0xff]  }
 0x632   :  { %7756 = vmatpush1.bf16.msra.mxu0 %v14770_v61  ;;  %v14838_v61 = vld [vmem:[%s21179_s6 + $0x874] ss:$8 sps:$4 sm:$0xff]  }
 0x633   :  { %7783 = vmatpush1.bf16.msra.mxu1 %v14773_v36  ;;  %7757 = vmatprep.subr.bf16.mxu0 %v14778_v49 }
 0x634   :  { %7784 = vmatprep.subr.bf16.mxu1 %v14781_v62 }
 0x636   :  { %7758 = vmatpush1.bf16.msra.mxu0 %v14776_v30  ;;  %v14836_v30 = vld [vmem:[%s21179_s6 + $0x870] ss:$8 sps:$4 sm:$0xff]  }
 0x637   :  { %7785 = vmatpush1.bf16.msra.mxu1 %v14779_v22  ;;  %7759 = vmatprep.subr.bf16.mxu0 %v14784_v40  ;;  %v14841_v22 = vld [vmem:[%s21179_s6 + $0x884] ss:$8 sps:$4 sm:$0xff]   ;;  %v14839_v40 = vld [vmem:[%s21179_s6 + $0x880] ss:$8 sps:$4 sm:$0xff]  }
 0x638   :  { %7786 = vmatprep.subr.bf16.mxu1 %v14787_v45  ;;  %v14844_v45 = vld [vmem:[%s21179_s6 + $0x894] ss:$8 sps:$4 sm:$0xff]  }
 0x63a   :  { %7760 = vmatpush1.bf16.msra.mxu0 %v14782_v15  ;;  %v14842_v15 = vld [vmem:[%s21179_s6 + $0x890] ss:$8 sps:$4 sm:$0xff]  }
 0x63b   :  { %7787 = vmatpush1.bf16.msra.mxu1 %v14785_v28  ;;  %7761 = vmatprep.subr.bf16.mxu0 %v14790_v14  ;;  %v14847_v28 = vld [vmem:[%s21179_s6 + $0x8a4] ss:$8 sps:$4 sm:$0xff]   ;;  %v14845_v14 = vld [vmem:[%s21179_s6 + $0x8a0] ss:$8 sps:$4 sm:$0xff]  }
 0x63c   :  { %7788 = vmatprep.subr.bf16.mxu1 %v14793_v25  ;;  %v14850_v25 = vld [vmem:[%s21179_s6 + $0x8b4] ss:$8 sps:$4 sm:$0xff]  }
 0x63e   :  { %7762 = vmatpush1.bf16.msra.mxu0 %v14788_v53  ;;  %v14848_v53 = vld [vmem:[%s21179_s6 + $0x8b0] ss:$8 sps:$4 sm:$0xff]  }
 0x63f   :  { %7789 = vmatpush1.bf16.msra.mxu1 %v14791_v44  ;;  %7763 = vmatprep.subr.bf16.mxu0 %v14796_v26  ;;  %v14853_v44 = vld [vmem:[%s21179_s6 + $0x8c4] ss:$8 sps:$4 sm:$0xff]   ;;  %v14851_v26 = vld [vmem:[%s21179_s6 + $0x8c0] ss:$8 sps:$4 sm:$0xff]  }
 0x640   :  { %7790 = vmatprep.subr.bf16.mxu1 %v14799_v51  ;;  %v14856_v51 = vld [vmem:[%s21179_s6 + $0x8d4] ss:$8 sps:$4 sm:$0xff]  }
 0x642   :  { %7764 = vmatpush1.bf16.msra.mxu0 %v14794_v37  ;;  %v14854_v37 = vld [vmem:[%s21179_s6 + $0x8d0] ss:$8 sps:$4 sm:$0xff]  }
 0x643   :  { %7791 = vmatpush1.bf16.msra.mxu1 %v14797_v12  ;;  %7765 = vmatprep.subr.bf16.mxu0 %v14802_v33  ;;  %v14859_v12 = vld [vmem:[%s21179_s6 + $0x8e4] ss:$8 sps:$4 sm:$0xff]   ;;  %v14857_v33 = vld [vmem:[%s21179_s6 + $0x8e0] ss:$8 sps:$4 sm:$0xff]  }
 0x644   :  { %7792 = vmatprep.subr.bf16.mxu1 %v14805_v43  ;;  %v5787_v43 = vld [vmem:[%s21181_s7] sm:$0x3] }
 0x646   :  { %7766 = vmatpush1.bf16.msra.mxu0 %v14800_v21  ;;  %v14862_v21 = vld [vmem:[%s21179_s6 + $0x8f4] ss:$8 sps:$4 sm:$0xff]  }
 0x647   :  { %7793 = vmatpush1.bf16.msra.mxu1 %v14803_v10  ;;  %7767 = vmatprep.subr.bf16.mxu0 %v14808_v23  ;;  %v21626_v10 = vld [vmem:[#allocation3_spill] sm:$0xff] }
 0x648   :  { %7794 = vmatprep.subr.bf16.mxu1 %v14811_v24  ;;  %v5792_v23 = vrot.slane %v5787_v43, %v21626_v10  ;;  %v21627_v24 = vld [vmem:[#allocation4_spill] sm:$0xff] }
 0x64a   :  { %7768 = vmatpush1.bf16.msra.mxu0 %v14806_v60  ;;  %v5796_v60 = vrot.slane %v5787_v43, %v21627_v24 }
 0x64b   :  { %7795 = vmatpush1.bf16.msra.mxu1 %v14809_v55  ;;  %7769 = vmatprep.subr.bf16.mxu0 %v14814_v52  ;;  %v14860_v55 = vld [vmem:[%s21179_s6 + $0x8f0] ss:$8 sps:$4 sm:$0xff]   ;;  %v14865_v52 = vld [vmem:[%s21179_s6 + $0x904] ss:$8 sps:$4 sm:$0xff]  }
 0x64c   :  { %7796 = vmatprep.subr.bf16.mxu1 %v14817_v39 }
 0x64e   :  { %7770 = vmatpush1.bf16.msra.mxu0 %v14812_v16 }
 0x64f   :  { %7797 = vmatpush1.bf16.msra.mxu1 %v14815_v8 }
 0x650   :  { %7798 = vmatprep.subr.bf16.mxu1 %v14820_v7 }
 0x651   :  { %7772 = vmatmul.mubr.bf16.vlgmr.msra.gmra.mrb[252].mxu0 %v18978_v32 }
 0x653   :  { %7799 = vmatpush1.bf16.msra.mxu1 %v14818_v27 }
 0x654   :  { %8150 = vmatprep.subr.bf16.mxu1 %v14823_v42  ;;  %v14863_v42 = vld [vmem:[%s21179_s6 + $0x900] ss:$8 sps:$4 sm:$0xff]  }
 0x656   :  { %7813 = vmatmul.mubr.bf16.vlgmr.msra.gmra.mrb[112].mxu1 %v19003_v11 }
 0x657   :  { %8151 = vmatpush1.bf16.msra.mxu1 %v14821_v46  ;;  %8182 = vmatprep.mubr.bf16.mxu1 %v7881_v56 }
 0x658   :  { %8152 = vmatprep.subr.bf16.mxu1 %v14826_v6  ;;  %v14868_v6 = vld [vmem:[%s21179_s6 + $0x914] ss:$8 sps:$4 sm:$0xff]  }
 0x65b   :  { %8153 = vmatpush1.bf16.msra.mxu1 %v14824_v4 }
 0x65c   :  { %8154 = vmatprep.subr.bf16.mxu1 %v14829_v63  ;;  %v14866_v63 = vld [vmem:[%s21179_s6 + $0x910] ss:$8 sps:$4 sm:$0xff]  }
 0x65f   :  { %8155 = vmatpush1.bf16.msra.mxu1 %v14827_v38  ;;  %v14871_v38 = vld [vmem:[%s21179_s6 + $0x924] ss:$8 sps:$4 sm:$0xff]  }
 0x660   :  { %8156 = vmatprep.subr.bf16.mxu1 %v14832_v5  ;;  %v14869_v5 = vld [vmem:[%s21179_s6 + $0x920] ss:$8 sps:$4 sm:$0xff]  }
 0x661   :  { %v6562_v48 = vpop.f32.mrb[240].mxu0 }
 0x662   :  { %v6564_v36 = vpop.f32.mrb[241].mxu0 }
 0x663   :  { %8157 = vmatpush1.bf16.msra.mxu1 %v14830_v31  ;;  %v6566_v49 = vpop.f32.mrb[242].mxu0  ;;  %v7880_v31 = vrot.slane %v18978_v32, 4  ;;  %v14877_v32 = vld [vmem:[%s21179_s6 + $0x944] ss:$8 sps:$4 sm:$0xff]  }
 0x664   :  { %8158 = vmatprep.subr.bf16.mxu1 %v14835_v19  ;;  %v6567_v62 = vpop.f32.mrb[243].mxu0  ;;  %v14874_v19 = vld [vmem:[%s21179_s6 + $0x934] ss:$8 sps:$4 sm:$0xff]   ;;  %v14883_v49 = vld [vmem:[%s21179_s6 + $0x964] ss:$8 sps:$4 sm:$0xff]  }
 0x665   :  { %v14881_v62 = vld [vmem:[%s21179_s6 + $0x960] ss:$8 sps:$4 sm:$0xff]  }
 0x667   :  { %8159 = vmatpush1.bf16.msra.mxu1 %v14833_v13  ;;  %v7883_v13 = vrot.slane %v18965_v17, 4  ;;  %v14880_v17 = vld [vmem:[%s21179_s6 + $0x954] ss:$8 sps:$4 sm:$0xff]  }
 0x668   :  { %8160 = vmatprep.subr.bf16.mxu1 %v14838_v61  ;;  %v14875_v61 = vld [vmem:[%s21179_s6 + $0x940] ss:$8 sps:$4 sm:$0xff]  }
 0x66b   :  { %8161 = vmatpush1.bf16.msra.mxu1 %v14836_v30 }
 0x66c   :  { %8162 = vmatprep.subr.bf16.mxu1 %v14841_v22  ;;  %v14886_v22 = vld [vmem:[%s21179_s6 + $0x974] ss:$8 sps:$4 sm:$0xff]  }
 0x66f   :  { %8163 = vmatpush1.bf16.msra.mxu1 %v14839_v40 }
 0x670   :  { %8164 = vmatprep.subr.bf16.mxu1 %v14844_v45 }
 0x673   :  { %8165 = vmatpush1.bf16.msra.mxu1 %v14842_v15 }
 0x674   :  { %8166 = vmatprep.subr.bf16.mxu1 %v14847_v28  ;;  %v14884_v28 = vld [vmem:[%s21179_s6 + $0x970] ss:$8 sps:$4 sm:$0xff]  }
 0x677   :  { %8167 = vmatpush1.bf16.msra.mxu1 %v14845_v14  ;;  %v14889_v14 = vld [vmem:[%s21179_s6 + $0x984] ss:$8 sps:$4 sm:$0xff]  }
 0x678   :  { %8168 = vmatprep.subr.bf16.mxu1 %v14850_v25  ;;  %v14887_v25 = vld [vmem:[%s21179_s6 + $0x980] ss:$8 sps:$4 sm:$0xff]  }
 0x67b   :  { %8169 = vmatpush1.bf16.msra.mxu1 %v14848_v53  ;;  %v14892_v53 = vld [vmem:[%s21179_s6 + $0x994] ss:$8 sps:$4 sm:$0xff]  }
 0x67c   :  { %8170 = vmatprep.subr.bf16.mxu1 %v14853_v44  ;;  %v14890_v44 = vld [vmem:[%s21179_s6 + $0x990] ss:$8 sps:$4 sm:$0xff]  }
 0x67f   :  { %8171 = vmatpush1.bf16.msra.mxu1 %v14851_v26  ;;  %v14895_v26 = vld [vmem:[%s21179_s6 + $0x9a4] ss:$8 sps:$4 sm:$0xff]  }
 0x680   :  { %8172 = vmatprep.subr.bf16.mxu1 %v14856_v51 }
 0x683   :  { %8173 = vmatpush1.bf16.msra.mxu1 %v14854_v37 }
 0x684   :  { %8174 = vmatprep.subr.bf16.mxu1 %v14859_v12 }
 0x687   :  { %8175 = vmatpush1.bf16.msra.mxu1 %v14857_v33  ;;  %v6192_v39 = vpop.f32.mrb[96].mxu1 }
 0x688   :  { %8176 = vmatprep.subr.bf16.mxu1 %v14862_v21  ;;  %v13306_v16 = vadd.f32 %v6192_v39, %v5792_v23  ;;  %v6194_v8 = vpop.f32.mrb[97].mxu1  ;;  %v14893_v21 = vld [vmem:[%s21179_s6 + $0x9a0] ss:$8 sps:$4 sm:$0xff]   ;;  %v14898_v23 = vld [vmem:[%s21179_s6 + $0x9b4] ss:$8 sps:$4 sm:$0xff]  }
 0x689   :  { %v13315_v7 = vadd.f32 %v6194_v8, %v5796_v60  ;;  %v6196_v27 = vpop.f32.mrb[98].mxu1  ;;  %v14899_v39 = vld [vmem:[%s21179_s6 + $0x9c0] ss:$8 sps:$4 sm:$0xff]   ;;  %v14904_v8 = vld [vmem:[%s21179_s6 + $0x9d4] ss:$8 sps:$4 sm:$0xff]  }
 0x68a   :  { %v6197_v46 = vpop.f32.mrb[99].mxu1  ;;  %v13307_v56 = vadd.f32 %v13306_v16, %v6562_v48  ;;  %v14872_v48 = vld [vmem:[%s21179_s6 + $0x930] ss:$8 sps:$4 sm:$0xff]   ;;  %v7882_v16 = vrot.slane %v19003_v11, 4  ;;  %v14907_v27 = vld [vmem:[%s21179_s6 + $0x9e4] ss:$8 sps:$4 sm:$0xff]  }
 0x68b   :  { %8177 = vmatpush1.bf16.msra.mxu1 %v14860_v55  ;;  %v13316_v4 = vadd.f32 %v13315_v7, %v6564_v36  ;;  %v14878_v36 = vld [vmem:[%s21179_s6 + $0x950] ss:$8 sps:$4 sm:$0xff]   ;;  %v14905_v11 = vld [vmem:[%s21179_s6 + $0x9e0] ss:$8 sps:$4 sm:$0xff]  }
 0x68c   :  { %8178 = vmatprep.subr.bf16.mxu1 %v14865_v52  ;;  %v14896_v55 = vld [vmem:[%s21179_s6 + $0x9b0] ss:$8 sps:$4 sm:$0xff]   ;;  %v14901_v52 = vld [vmem:[%s21179_s6 + $0x9c4] ss:$8 sps:$4 sm:$0xff]  }
 0x68d   :  { %v14902_v7 = vld [vmem:[%s21179_s6 + $0x9d0] ss:$8 sps:$4 sm:$0xff]  }
 0x68e   :  { %v14908_v46 = vld [vmem:[%s21179_s6 + $0x9f0] ss:$8 sps:$4 sm:$0xff]  }
 0x68f   :  { %8179 = vmatpush1.bf16.msra.mxu1 %v14863_v42  ;;  %v14910_v42 = vld [vmem:[%s21179_s6 + $0x9f4] ss:$8 sps:$4 sm:$0xff]  }
 0x690   :  { %8180 = vmatprep.subr.bf16.mxu1 %v14868_v6  ;;  %v14913_v6 = vld [vmem:[%s21179_s6 + $0xa04] ss:$8 sps:$4 sm:$0xff]  }
 0x693   :  { %8181 = vmatpush1.bf16.msra.mxu1 %v14866_v63  ;;  %v14914_v63 = vld [vmem:[%s21179_s6 + $0xa10] ss:$8 sps:$4 sm:$0xff]  }
 0x694   :  { %8191 = vmatprep.subr.bf16.mxu1 %v14871_v38  ;;  %v14919_v38 = vld [vmem:[%s21179_s6 + $0xa24] ss:$8 sps:$4 sm:$0xff]  }
 0x696   :  { %8183 = vmatmul.mubr.bf16.vlgmr.msra.gmra.mrb[112].mxu1 %v7880_v31  ;;  %v14922_v31 = vld [vmem:[%s21179_s6 + $0xa34] ss:$8 sps:$4 sm:$0xff]  }
 0x697   :  { %8192 = vmatpush1.bf16.msra.mxu1 %v14869_v5  ;;  %12354 = vmatprep.mubr.msk.bf16.mxu1 %vm6113_vm5, %v7883_v13  ;;  %v14917_v5 = vld [vmem:[%s21179_s6 + $0xa20] ss:$8 sps:$4 sm:$0xff]   ;;  %v14925_v13 = vld [vmem:[%s21179_s6 + $0xa44] ss:$8 sps:$4 sm:$0xff]  }
 0x698   :  { %8193 = vmatprep.subr.bf16.mxu1 %v14874_v19  ;;  %v14920_v19 = vld [vmem:[%s21179_s6 + $0xa30] ss:$8 sps:$4 sm:$0xff]  }
 0x69b   :  { %8194 = vmatpush1.bf16.msra.mxu1 %v14872_v48 }
 0x69c   :  { %8195 = vmatprep.subr.bf16.mxu1 %v14877_v32 }
 0x69f   :  { %8196 = vmatpush1.bf16.msra.mxu1 %v14875_v61 }
 0x6a0   :  { %8197 = vmatprep.subr.bf16.mxu1 %v14880_v17 }
 0x6a3   :  { %8198 = vmatpush1.bf16.msra.mxu1 %v14878_v36 }
 0x6a4   :  { %v6962_v30 = vpop.f32.mrb[244].mxu0  ;;  %8199 = vmatprep.subr.bf16.mxu1 %v14883_v49  ;;  %v14923_v49 = vld [vmem:[%s21179_s6 + $0xa40] ss:$8 sps:$4 sm:$0xff]  }
 0x6a5   :  { %v6964_v40 = vpop.f32.mrb[245].mxu0 }
 0x6a6   :  { %v6966_v45 = vpop.f32.mrb[246].mxu0 }
 0x6a7   :  { %v6967_v15 = vpop.f32.mrb[247].mxu0  ;;  %8200 = vmatpush1.bf16.msra.mxu1 %v14881_v62  ;;  %v14929_v45 = vld [vmem:[%s21179_s6 + $0xa60] ss:$8 sps:$4 sm:$0xff]  }
 0x6a8   :  { %8201 = vmatprep.subr.bf16.mxu1 %v14886_v22  ;;  %v14926_v22 = vld [vmem:[%s21179_s6 + $0xa50] ss:$8 sps:$4 sm:$0xff]  }
 0x6ab   :  { %8202 = vmatpush1.bf16.msra.mxu1 %v14884_v28  ;;  %v14934_v28 = vld [vmem:[%s21179_s6 + $0xa74] ss:$8 sps:$4 sm:$0xff]  }
 0x6ac   :  { %8203 = vmatprep.subr.bf16.mxu1 %v14889_v14 }
 0x6af   :  { %8204 = vmatpush1.bf16.msra.mxu1 %v14887_v25 }
 0x6b0   :  { %8205 = vmatprep.subr.bf16.mxu1 %v14892_v53 }
 0x6b1   :  { %v6603_v51 = vpop.f32.mrb[100].mxu1 }
 0x6b2   :  { %v13308_v37 = vadd.f32 %v13307_v56, %v6603_v51  ;;  %v6605_v12 = vpop.f32.mrb[101].mxu1  ;;  %v14911_v56 = vld [vmem:[%s21179_s6 + $0xa00] ss:$8 sps:$4 sm:$0xff]   ;;  %v14932_v51 = vld [vmem:[%s21179_s6 + $0xa70] ss:$8 sps:$4 sm:$0xff]  }
 0x6b3   :  { %v13317_v33 = vadd.f32 %v13316_v4, %v6605_v12  ;;  %v6607_v43 = vpop.f32.mrb[102].mxu1  ;;  %8206 = vmatpush1.bf16.msra.mxu1 %v14890_v44  ;;  %v14916_v4 = vld [vmem:[%s21179_s6 + $0xa14] ss:$8 sps:$4 sm:$0xff]   ;;  %v14935_v12 = vld [vmem:[%s21179_s6 + $0xa80] ss:$8 sps:$4 sm:$0xff]  }
 0x6b4   :  { %v6608_v10 = vpop.f32.mrb[103].mxu1  ;;  %8207 = vmatprep.subr.bf16.mxu1 %v14895_v26  ;;  %v13309_v24 = vadd.f32 %v13308_v37, %v6962_v30  ;;  %v14928_v30 = vld [vmem:[%s21179_s6 + $0xa54] ss:$8 sps:$4 sm:$0xff]   ;;  %v14937_v37 = vld [vmem:[%s21179_s6 + $0xa84] ss:$8 sps:$4 sm:$0xff]  }
 0x6b5   :  { %v13318_v60 = vadd.f32 %v13317_v33, %v6964_v40  ;;  %v14931_v40 = vld [vmem:[%s21179_s6 + $0xa64] ss:$8 sps:$4 sm:$0xff]   ;;  %v14940_v33 = vld [vmem:[%s21179_s6 + $0xa94] ss:$8 sps:$4 sm:$0xff]   ;;  %v14938_v43 = vld [vmem:[%s21179_s6 + $0xa90] ss:$8 sps:$4 sm:$0xff]  }
 0x6b6   :  { %v14941_v10 = vld [vmem:[%s21179_s6 + $0xaa0] ss:$8 sps:$4 sm:$0xff]  }
 0x6b7   :  { %8208 = vmatpush1.bf16.msra.mxu1 %v14893_v21  ;;  %v14943_v21 = vld [vmem:[%s21179_s6 + $0xaa4] ss:$8 sps:$4 sm:$0xff]  }
 0x6b8   :  { %8209 = vmatprep.subr.bf16.mxu1 %v14898_v23  ;;  %v14946_v23 = vld [vmem:[%s21179_s6 + $0xab4] ss:$8 sps:$4 sm:$0xff]  }
 0x6bb   :  { %8210 = vmatpush1.bf16.msra.mxu1 %v14896_v55 }
 0x6bc   :  { %8550 = vmatprep.subr.bf16.mxu1 %v14901_v52 }
 0x6be   :  { %8224 = vmatmul.mubr.bf16.vlgmr.msra.gmra.mrb[112].mxu1 %v7882_v16  ;;  %v21632_v16 = vld [vmem:[#allocation65_spill] sm:$0xff] }
 0x6bf   :  { %8551 = vmatpush1.bf16.msra.mxu1 %v14899_v39  ;;  %8582 = vmatprep.mubr.bf16.mxu1 %v19293_v20  ;;  %v21631_v39 = vunpack.i.l.bf16 %v18976_v50 }
 0x6c0   :  { %8552 = vmatprep.subr.bf16.mxu1 %v14904_v8  ;;  %v21633_v8 = vmax.f32 %v21632_v16, 0.0  ;;  %v14986_v16 = vld [vmem:[%s21179_s6 + $0xb90] ss:$8 sps:$4 sm:$0xff]  }
 0x6c3   :  { %8553 = vmatpush1.bf16.msra.mxu1 %v14902_v7  ;;  %v5678_v7 = vmax.f32 %v21633_v8, %v21631_v39  ;;  %v14988_v39 = vld [vmem:[%s21179_s6 + $0xb94] ss:$8 sps:$4 sm:$0xff]   ;;  %v14991_v8 = vld [vmem:[%s21179_s6 + $0xba4] ss:$8 sps:$4 sm:$0xff]  }
 0x6c4   :  { %8554 = vmatprep.subr.bf16.mxu1 %v14907_v27  ;;  %v14944_v27 = vld [vmem:[%s21179_s6 + $0xab0] ss:$8 sps:$4 sm:$0xff]  }
 0x6c7   :  { %8555 = vmatpush1.bf16.msra.mxu1 %v14905_v11  ;;  %v14949_v11 = vld [vmem:[%s21179_s6 + $0xac4] ss:$8 sps:$4 sm:$0xff]  }
 0x6c8   :  { %8556 = vmatprep.subr.bf16.mxu1 %v14910_v42  ;;  %v21634_v42 = vld [vmem:[#allocation82_spill] sm:$0xff] }
 0x6cb   :  { %8557 = vmatpush1.bf16.msra.mxu1 %v14908_v46  ;;  %v5730_v46 = vmax.f32 %v21634_v42, %v5678_v7  ;;  %v14997_v42 = vld [vmem:[%s21179_s6 + $0xbc4] ss:$8 sps:$4 sm:$0xff]  }
 0x6cc   :  { %8558 = vmatprep.subr.bf16.mxu1 %v14913_v6 }
 0x6cf   :  { %8559 = vmatpush1.bf16.msra.mxu1 %v14911_v56  ;;  %v14952_v56 = vld [vmem:[%s21179_s6 + $0xad4] ss:$8 sps:$4 sm:$0xff]  }
 0x6d0   :  { %8560 = vmatprep.subr.bf16.mxu1 %v14916_v4 }
 0x6d3   :  { %8561 = vmatpush1.bf16.msra.mxu1 %v14914_v63  ;;  %v14950_v63 = vld [vmem:[%s21179_s6 + $0xad0] ss:$8 sps:$4 sm:$0xff]  }
 0x6d4   :  { %8562 = vmatprep.subr.bf16.mxu1 %v14919_v38  ;;  %v14955_v38 = vld [vmem:[%s21179_s6 + $0xae4] ss:$8 sps:$4 sm:$0xff]  }
 0x6d7   :  { %8563 = vmatpush1.bf16.msra.mxu1 %v14917_v5 }
 0x6d8   :  { %8564 = vmatprep.subr.bf16.mxu1 %v14922_v31 }
 0x6d9   :  { %v7003_v48 = vpop.f32.mrb[104].mxu1 }
 0x6da   :  { %v13310_v32 = vadd.f32 %v13309_v24, %v7003_v48  ;;  %v7005_v61 = vpop.f32.mrb[105].mxu1  ;;  %v21628_v24 = vunpack.i.h.bf16 %v18976_v50  ;;  %v14947_v50 = vld [vmem:[%s21179_s6 + $0xac0] ss:$8 sps:$4 sm:$0xff]  }
 0x6db   :  { %v13319_v17 = vadd.f32 %v13318_v60, %v7005_v61  ;;  %v7007_v36 = vpop.f32.mrb[106].mxu1  ;;  %8565 = vmatpush1.bf16.msra.mxu1 %v14920_v19  ;;  %v21629_v60 = vld [vmem:[#allocation66_spill] sm:$0xff] }
 0x6dc   :  { %v7008_v62 = vpop.f32.mrb[107].mxu1  ;;  %8566 = vmatprep.subr.bf16.mxu1 %v14925_v13  ;;  %v21630_v55 = vmax.f32 %v21629_v60, 0.0  ;;  %v14956_v36 = vld [vmem:[%s21179_s6 + $0xaf0] ss:$8 sps:$4 sm:$0xff]  }
 0x6dd   :  { %v14959_v62 = vld [vmem:[%s21179_s6 + $0xb00] ss:$8 sps:$4 sm:$0xff]   ;;  %v14980_v60 = vld [vmem:[%s21179_s6 + $0xb70] ss:$8 sps:$4 sm:$0xff]  }
 0x6de   :  { %v20049_v52 = vmax.f32 %v21630_v55, %v21628_v24  ;;  %v14985_v55 = vld [vmem:[%s21179_s6 + $0xb84] ss:$8 sps:$4 sm:$0xff]  }
 0x6df   :  { %8567 = vmatpush1.bf16.msra.mxu1 %v14923_v49  ;;  %v14961_v49 = vld [vmem:[%s21179_s6 + $0xb04] ss:$8 sps:$4 sm:$0xff]  }
 0x6e0   :  { %8568 = vmatprep.subr.bf16.mxu1 %v14928_v30  ;;  %v5734_v6 = vmax.f32 %v5678_v7, %v20049_v52  ;;  %v14964_v30 = vld [vmem:[%s21179_s6 + $0xb14] ss:$8 sps:$4 sm:$0xff]   ;;  %v14989_v7 = vld [vmem:[%s21179_s6 + $0xba0] ss:$8 sps:$4 sm:$0xff]  }
 0x6e2   :  { %v20069_v4 = vpack.c.bf16 %v5734_v6, %v5730_v46  ;;  %v14995_v46 = vld [vmem:[%s21179_s6 + $0xbc0] ss:$8 sps:$4 sm:$0xff]   ;;  %v15000_v6 = vld [vmem:[%s21179_s6 + $0xbd4] ss:$8 sps:$4 sm:$0xff]  }
 0x6e3   :  { %8569 = vmatpush1.bf16.msra.mxu1 %v14926_v22  ;;  %v14962_v22 = vld [vmem:[%s21179_s6 + $0xb10] ss:$8 sps:$4 sm:$0xff]  }
 0x6e4   :  { %v7373_v15 = vpop.f32.mrb[248].mxu0  ;;  %8570 = vmatprep.subr.bf16.mxu1 %v14931_v40  ;;  %v14967_v40 = vld [vmem:[%s21179_s6 + $0xb24] ss:$8 sps:$4 sm:$0xff]  }
 0x6e5   :  { %v13311_v14 = vadd.f32 %v13310_v32, %v7373_v15  ;;  %v7375_v25 = vpop.f32.mrb[249].mxu0  ;;  %v14953_v32 = vld [vmem:[%s21179_s6 + $0xae0] ss:$8 sps:$4 sm:$0xff]   ;;  %v14970_v15 = vld [vmem:[%s21179_s6 + $0xb34] ss:$8 sps:$4 sm:$0xff]  }
 0x6e6   :  { %v13320_v53 = vadd.f32 %v13319_v17, %v7375_v25  ;;  %v7377_v44 = vpop.f32.mrb[250].mxu0  ;;  %v14958_v17 = vld [vmem:[%s21179_s6 + $0xaf4] ss:$8 sps:$4 sm:$0xff]   ;;  %v14971_v25 = vld [vmem:[%s21179_s6 + $0xb40] ss:$8 sps:$4 sm:$0xff]  }
 0x6e7   :  { %v7378_v26 = vpop.f32.mrb[251].mxu0  ;;  %8571 = vmatpush1.bf16.msra.mxu1 %v14929_v45  ;;  %v14965_v45 = vld [vmem:[%s21179_s6 + $0xb20] ss:$8 sps:$4 sm:$0xff]   ;;  %v14974_v44 = vld [vmem:[%s21179_s6 + $0xb50] ss:$8 sps:$4 sm:$0xff]  }
 0x6e8   :  { %8572 = vmatprep.subr.bf16.mxu1 %v14934_v28  ;;  %v14968_v28 = vld [vmem:[%s21179_s6 + $0xb30] ss:$8 sps:$4 sm:$0xff]   ;;  %v14979_v26 = vld [vmem:[%s21179_s6 + $0xb64] ss:$8 sps:$4 sm:$0xff]  }
 0x6eb   :  { %8573 = vmatpush1.bf16.msra.mxu1 %v14932_v51  ;;  %v14977_v51 = vld [vmem:[%s21179_s6 + $0xb60] ss:$8 sps:$4 sm:$0xff]  }
 0x6ec   :  { %8574 = vmatprep.subr.bf16.mxu1 %v14937_v37 }
 0x6ef   :  { %8575 = vmatpush1.bf16.msra.mxu1 %v14935_v12  ;;  %v14982_v12 = vld [vmem:[%s21179_s6 + $0xb74] ss:$8 sps:$4 sm:$0xff]  }
 0x6f0   :  { %8576 = vmatprep.subr.bf16.mxu1 %v14940_v33 }
 0x6f3   :  { %8577 = vmatpush1.bf16.msra.mxu1 %v14938_v43 }
 0x6f4   :  { %8578 = vmatprep.subr.bf16.mxu1 %v14943_v21  ;;  %v8692_v21 = vrot.slane %v19293_v20, 4  ;;  %v14983_v20 = vld [vmem:[%s21179_s6 + $0xb80] ss:$8 sps:$4 sm:$0xff]  }
 0x6f7   :  { %8579 = vmatpush1.bf16.msra.mxu1 %v14941_v10 }
 0x6f8   :  { %8580 = vmatprep.subr.bf16.mxu1 %v14946_v23 }
 0x6fb   :  { %8581 = vmatpush1.bf16.msra.mxu1 %v14944_v27  ;;  %v14994_v27 = vld [vmem:[%s21179_s6 + $0xbb4] ss:$8 sps:$4 sm:$0xff]  }
 0x6fc   :  { %8591 = vmatprep.subr.bf16.mxu1 %v14949_v11  ;;  %v14992_v11 = vld [vmem:[%s21179_s6 + $0xbb0] ss:$8 sps:$4 sm:$0xff]  }
 0x6fe   :  { %8583 = vmatmul.mubr.bf16.vlgmr.msra.gmra.mrb[112].mxu1 %v19151_v57 }
 0x6ff   :  { %8592 = vmatpush1.bf16.msra.mxu1 %v14947_v50  ;;  %12459 = vmatprep.mubr.msk.bf16.mxu1 %vm6113_vm5, %v20069_v4  ;;  %v14998_v50 = vld [vmem:[%s21179_s6 + $0xbd0] ss:$8 sps:$4 sm:$0xff]  }
 0x700   :  { %8593 = vmatprep.subr.bf16.mxu1 %v14952_v56  ;;  %v15003_v56 = vld [vmem:[%s21179_s6 + $0xbe4] ss:$8 sps:$4 sm:$0xff]  }
 0x701   :  { %v7414_v5 = vpop.f32.mrb[108].mxu1 }
 0x702   :  { %v13312_v31 = vadd.f32 %v13311_v14, %v7414_v5  ;;  %v7416_v19 = vpop.f32.mrb[109].mxu1  ;;  %v14973_v14 = vld [vmem:[%s21179_s6 + $0xb44] ss:$8 sps:$4 sm:$0xff]   ;;  %v15004_v5 = vld [vmem:[%s21179_s6 + $0xbf0] ss:$8 sps:$4 sm:$0xff]  }
 0x703   :  { %v13321_v13 = vadd.f32 %v13320_v53, %v7416_v19  ;;  %v7418_v48 = vpop.f32.mrb[110].mxu1  ;;  %8594 = vmatpush1.bf16.msra.mxu1 %v14950_v63  ;;  %v14976_v53 = vld [vmem:[%s21179_s6 + $0xb54] ss:$8 sps:$4 sm:$0xff]   ;;  %v15001_v63 = vld [vmem:[%s21179_s6 + $0xbe0] ss:$8 sps:$4 sm:$0xff]  }
 0x704   :  { %v7419_v61 = vpop.f32.mrb[111].mxu1  ;;  %8595 = vmatprep.subr.bf16.mxu1 %v14955_v38  ;;  %v15006_v38 = vld [vmem:[%s21179_s6 + $0xbf4] ss:$8 sps:$4 sm:$0xff]   ;;  %v15007_v19 = vld [vmem:[%s21179_s6 + $0xc00] ss:$8 sps:$4 sm:$0xff]  }
 0x705   :  { %v15010_v48 = vld [vmem:[%s21179_s6 + $0xc10] ss:$8 sps:$4 sm:$0xff]   ;;  %v15013_v61 = vld [vmem:[%s21179_s6 + $0xc20] ss:$8 sps:$4 sm:$0xff]  }
 0x707   :  { %8596 = vmatpush1.bf16.msra.mxu1 %v14953_v32  ;;  %v15015_v32 = vld [vmem:[%s21179_s6 + $0xc24] ss:$8 sps:$4 sm:$0xff]  }
 0x708   :  { %8597 = vmatprep.subr.bf16.mxu1 %v14958_v17  ;;  %v15018_v17 = vld [vmem:[%s21179_s6 + $0xc34] ss:$8 sps:$4 sm:$0xff]  }
 0x70b   :  { %8598 = vmatpush1.bf16.msra.mxu1 %v14956_v36  ;;  %v15016_v36 = vld [vmem:[%s21179_s6 + $0xc30] ss:$8 sps:$4 sm:$0xff]  }
 0x70c   :  { %8599 = vmatprep.subr.bf16.mxu1 %v14961_v49  ;;  %v15021_v49 = vld [vmem:[%s21179_s6 + $0xc44] ss:$8 sps:$4 sm:$0xff]  }
 0x70f   :  { %8600 = vmatpush1.bf16.msra.mxu1 %v14959_v62  ;;  %v15019_v62 = vld [vmem:[%s21179_s6 + $0xc40] ss:$8 sps:$4 sm:$0xff]  }
 0x710   :  { %8601 = vmatprep.subr.bf16.mxu1 %v14964_v30  ;;  %v15024_v30 = vld [vmem:[%s21179_s6 + $0xc54] ss:$8 sps:$4 sm:$0xff]  }
 0x713   :  { %8602 = vmatpush1.bf16.msra.mxu1 %v14962_v22  ;;  %v15022_v22 = vld [vmem:[%s21179_s6 + $0xc50] ss:$8 sps:$4 sm:$0xff]  }
 0x714   :  { %8603 = vmatprep.subr.bf16.mxu1 %v14967_v40  ;;  %v15027_v40 = vld [vmem:[%s21179_s6 + $0xc64] ss:$8 sps:$4 sm:$0xff]  }
 0x717   :  { %8604 = vmatpush1.bf16.msra.mxu1 %v14965_v45  ;;  %v15025_v45 = vld [vmem:[%s21179_s6 + $0xc60] ss:$8 sps:$4 sm:$0xff]  }
 0x718   :  { %8605 = vmatprep.subr.bf16.mxu1 %v14970_v15  ;;  %v8691_v15 = vrot.slane %v19151_v57, 4  ;;  %v15033_v57 = vld [vmem:[%s21179_s6 + $0xc84] ss:$8 sps:$4 sm:$0xff]  }
 0x71b   :  { %8606 = vmatpush1.bf16.msra.mxu1 %v14968_v28  ;;  %v15030_v28 = vld [vmem:[%s21179_s6 + $0xc74] ss:$8 sps:$4 sm:$0xff]  }
 0x71c   :  { %8607 = vmatprep.subr.bf16.mxu1 %v14973_v14  ;;  %v8694_v14 = vrot.slane %v20069_v4, 4  ;;  %v15036_v4 = vld [vmem:[%s21179_s6 + $0xc94] ss:$8 sps:$4 sm:$0xff]  }
 0x71f   :  { %8608 = vmatpush1.bf16.msra.mxu1 %v14971_v25  ;;  %v15028_v25 = vld [vmem:[%s21179_s6 + $0xc70] ss:$8 sps:$4 sm:$0xff]  }
 0x720   :  { %8609 = vmatprep.subr.bf16.mxu1 %v14976_v53  ;;  %v15031_v53 = vld [vmem:[%s21179_s6 + $0xc80] ss:$8 sps:$4 sm:$0xff]  }
 0x723   :  { %8610 = vmatpush1.bf16.msra.mxu1 %v14974_v44  ;;  %v15034_v44 = vld [vmem:[%s21179_s6 + $0xc90] ss:$8 sps:$4 sm:$0xff]  }
 0x724   :  { %v7773_v37 = vpop.f32.mrb[252].mxu0  ;;  %8961 = vmatprep.subr.bf16.mxu1 %v14979_v26  ;;  %v15039_v26 = vld [vmem:[%s21179_s6 + $0xca4] ss:$8 sps:$4 sm:$0xff]  }
 0x725   :  { %v20134_v33 = vadd.f32 %v13312_v31, %v7773_v37  ;;  %v7775_v43 = vpop.f32.mrb[253].mxu0  ;;  %v15009_v31 = vld [vmem:[%s21179_s6 + $0xc04] ss:$8 sps:$4 sm:$0xff]   ;;  %v15042_v37 = vld [vmem:[%s21179_s6 + $0xcb4] ss:$8 sps:$4 sm:$0xff]  }
 0x726   :  { %v20137_v10 = vadd.f32 %v13321_v13, %v7775_v43  ;;  %v7777_v23 = vpop.f32.mrb[254].mxu0  ;;  %8624 = vmatmul.mubr.bf16.vlgmr.msra.gmra.mrb[112].mxu1 %v19160_v2  ;;  %v15012_v13 = vld [vmem:[%s21179_s6 + $0xc14] ss:$8 sps:$4 sm:$0xff]   ;;  %v15045_v43 = vld [vmem:[%s21179_s6 + $0xcc4] ss:$8 sps:$4 sm:$0xff]  }
 0x727   :  { %v7778_v24 = vpop.f32.mrb[255].mxu0  ;;  %8962 = vmatpush1.bf16.msra.mxu1 %v14977_v51  ;;  %8993 = vmatprep.mubr.bf16.mxu1 %v8692_v21  ;;  %v15037_v51 = vld [vmem:[%s21179_s6 + $0xca0] ss:$8 sps:$4 sm:$0xff]   ;;  %v15048_v23 = vld [vmem:[%s21179_s6 + $0xcd4] ss:$8 sps:$4 sm:$0xff]  }
 0x728   :  { %8963 = vmatprep.subr.bf16.mxu1 %v14982_v12  ;;  %v15040_v12 = vld [vmem:[%s21179_s6 + $0xcb0] ss:$8 sps:$4 sm:$0xff]   ;;  %v15043_v21 = vld [vmem:[%s21179_s6 + $0xcc0] ss:$8 sps:$4 sm:$0xff]  }
 0x729   :  { %v15046_v24 = vld [vmem:[%s21179_s6 + $0xcd0] ss:$8 sps:$4 sm:$0xff]  }
 0x72b   :  { %8964 = vmatpush1.bf16.msra.mxu1 %v14980_v60  ;;  %v15051_v60 = vld [vmem:[%s21179_s6 + $0xce4] ss:$8 sps:$4 sm:$0xff]  }
 0x72c   :  { %8965 = vmatprep.subr.bf16.mxu1 %v14985_v55  ;;  %v15049_v55 = vld [vmem:[%s21179_s6 + $0xce0] ss:$8 sps:$4 sm:$0xff]  }
 0x72f   :  { %8966 = vmatpush1.bf16.msra.mxu1 %v14983_v20  ;;  %v15054_v20 = vld [vmem:[%s21179_s6 + $0xcf4] ss:$8 sps:$4 sm:$0xff]  }
 0x730   :  { %8967 = vmatprep.subr.bf16.mxu1 %v14988_v39  ;;  %v15052_v39 = vld [vmem:[%s21179_s6 + $0xcf0] ss:$8 sps:$4 sm:$0xff]  }
 0x733   :  { %8968 = vmatpush1.bf16.msra.mxu1 %v14986_v16  ;;  %v15057_v16 = vld [vmem:[%s21179_s6 + $0xd04] ss:$8 sps:$4 sm:$0xff]  }
 0x734   :  { %8969 = vmatprep.subr.bf16.mxu1 %v14991_v8  ;;  %v15055_v8 = vld [vmem:[%s21179_s6 + $0xd00] ss:$8 sps:$4 sm:$0xff]  }
 0x737   :  { %8970 = vmatpush1.bf16.msra.mxu1 %v14989_v7  ;;  %v8693_v7 = vrot.slane %v19160_v2, 4  ;;  %v15061_v2 = vld [vmem:[%s21179_s6 + $0xd20] ss:$8 sps:$4 sm:$0xff]  }
 0x738   :  { %8971 = vmatprep.subr.bf16.mxu1 %v14994_v27  ;;  %v15060_v27 = vld [vmem:[%s21179_s6 + $0xd14] ss:$8 sps:$4 sm:$0xff]  }
 0x73b   :  { %8972 = vmatpush1.bf16.msra.mxu1 %v14992_v11  ;;  %v15058_v11 = vld [vmem:[%s21179_s6 + $0xd10] ss:$8 sps:$4 sm:$0xff]  }
 0x73c   :  { %8973 = vmatprep.subr.bf16.mxu1 %v14997_v42  ;;  %v15063_v42 = vld [vmem:[%s21179_s6 + $0xd24] ss:$8 sps:$4 sm:$0xff]  }
 0x73f   :  { %8974 = vmatpush1.bf16.msra.mxu1 %v14995_v46  ;;  %v15066_v46 = vld [vmem:[%s21179_s6 + $0xd34] ss:$8 sps:$4 sm:$0xff]  }
 0x740   :  { %8975 = vmatprep.subr.bf16.mxu1 %v15000_v6  ;;  %v15064_v6 = vld [vmem:[%s21179_s6 + $0xd30] ss:$8 sps:$4 sm:$0xff]  }
 0x743   :  { %8976 = vmatpush1.bf16.msra.mxu1 %v14998_v50  ;;  %v15069_v50 = vld [vmem:[%s21179_s6 + $0xd44] ss:$8 sps:$4 sm:$0xff]  }
 0x744   :  { %8977 = vmatprep.subr.bf16.mxu1 %v15003_v56  ;;  %v15067_v56 = vld [vmem:[%s21179_s6 + $0xd40] ss:$8 sps:$4 sm:$0xff]  }
 0x747   :  { %8978 = vmatpush1.bf16.msra.mxu1 %v15001_v63  ;;  %v15072_v63 = vld [vmem:[%s21179_s6 + $0xd54] ss:$8 sps:$4 sm:$0xff]  }
 0x748   :  { %8979 = vmatprep.subr.bf16.mxu1 %v15006_v38  ;;  %v15070_v38 = vld [vmem:[%s21179_s6 + $0xd50] ss:$8 sps:$4 sm:$0xff]  }
 0x74b   :  { %8980 = vmatpush1.bf16.msra.mxu1 %v15004_v5  ;;  %v15075_v5 = vld [vmem:[%s21179_s6 + $0xd64] ss:$8 sps:$4 sm:$0xff]  }
 0x74c   :  { %8981 = vmatprep.subr.bf16.mxu1 %v15009_v31  ;;  %v15073_v31 = vld [vmem:[%s21179_s6 + $0xd60] ss:$8 sps:$4 sm:$0xff]  }
 0x74f   :  { %8982 = vmatpush1.bf16.msra.mxu1 %v15007_v19  ;;  %v15078_v19 = vld [vmem:[%s21179_s6 + $0xd74] ss:$8 sps:$4 sm:$0xff]  }
 0x750   :  { %8983 = vmatprep.subr.bf16.mxu1 %v15012_v13  ;;  %v15076_v13 = vld [vmem:[%s21179_s6 + $0xd70] ss:$8 sps:$4 sm:$0xff]  }
 0x753   :  { %8984 = vmatpush1.bf16.msra.mxu1 %v15010_v48  ;;  %v15081_v48 = vld [vmem:[%s21179_s6 + $0xd84] ss:$8 sps:$4 sm:$0xff]  }
 0x754   :  { %8985 = vmatprep.subr.bf16.mxu1 %v15015_v32  ;;  %v15079_v32 = vld [vmem:[%s21179_s6 + $0xd80] ss:$8 sps:$4 sm:$0xff]  }
 0x757   :  { %8986 = vmatpush1.bf16.msra.mxu1 %v15013_v61  ;;  %v15084_v61 = vld [vmem:[%s21179_s6 + $0xd94] ss:$8 sps:$4 sm:$0xff]  }
 0x758   :  { %8987 = vmatprep.subr.bf16.mxu1 %v15018_v17  ;;  %v15082_v17 = vld [vmem:[%s21179_s6 + $0xd90] ss:$8 sps:$4 sm:$0xff]  }
 0x75b   :  { %8988 = vmatpush1.bf16.msra.mxu1 %v15016_v36  ;;  %v15087_v36 = vld [vmem:[%s21179_s6 + $0xda4] ss:$8 sps:$4 sm:$0xff]  }
 0x75c   :  { %8989 = vmatprep.subr.bf16.mxu1 %v15021_v49  ;;  %v15085_v49 = vld [vmem:[%s21179_s6 + $0xda0] ss:$8 sps:$4 sm:$0xff]  }
 0x75f   :  { %8990 = vmatpush1.bf16.msra.mxu1 %v15019_v62  ;;  %v15090_v62 = vld [vmem:[%s21179_s6 + $0xdb4] ss:$8 sps:$4 sm:$0xff]  }
 0x760   :  { %8991 = vmatprep.subr.bf16.mxu1 %v15024_v30  ;;  %v15088_v30 = vld [vmem:[%s21179_s6 + $0xdb0] ss:$8 sps:$4 sm:$0xff]  }
 0x763   :  { %8992 = vmatpush1.bf16.msra.mxu1 %v15022_v22  ;;  %v15093_v22 = vld [vmem:[%s21179_s6 + $0xdc4] ss:$8 sps:$4 sm:$0xff]  }
 0x764   :  { %9002 = vmatprep.subr.bf16.mxu1 %v15027_v40  ;;  %v15091_v40 = vld [vmem:[%s21179_s6 + $0xdc0] ss:$8 sps:$4 sm:$0xff]  }
 0x766   :  { %8994 = vmatmul.mubr.bf16.vlgmr.msra.gmra.mrb[112].mxu1 %v8691_v15  ;;  %v15094_v15 = vld [vmem:[%s21179_s6 + $0xdd0] ss:$8 sps:$4 sm:$0xff]  }
 0x767   :  { %9003 = vmatpush1.bf16.msra.mxu1 %v15025_v45  ;;  %12564 = vmatprep.mubr.msk.bf16.mxu1 %vm6113_vm5, %v8694_v14  ;;  %v15096_v45 = vld [vmem:[%s21179_s6 + $0xdd4] ss:$8 sps:$4 sm:$0xff]   ;;  %v15097_v14 = vld [vmem:[%s21179_s6 + $0xde0] ss:$8 sps:$4 sm:$0xff]  }
 0x768   :  { %9004 = vmatprep.subr.bf16.mxu1 %v15030_v28  ;;  %v15099_v28 = vld [vmem:[%s21179_s6 + $0xde4] ss:$8 sps:$4 sm:$0xff]  }
 0x76b   :  { %9005 = vmatpush1.bf16.msra.mxu1 %v15028_v25  ;;  %v15102_v25 = vld [vmem:[%s21179_s6 + $0xdf4] ss:$8 sps:$4 sm:$0xff]  }
 0x76c   :  { %9006 = vmatprep.subr.bf16.mxu1 %v15033_v57  ;;  %v21635_v57 = vunpack.i.h.bf16 %v19066_v47 }
 0x76f   :  { %9007 = vmatpush1.bf16.msra.mxu1 %v15031_v53  ;;  %v21636_v53 = vld [vmem:[#allocation68_spill] sm:$0xff] }
 0x770   :  { %9008 = vmatprep.subr.bf16.mxu1 %v15036_v4  ;;  %v21637_v4 = vmax.f32 %v21636_v53, 0.0  ;;  %v15160_v53 = vld [vmem:[%s21179_s6 + $0xf30] ss:$8 sps:$4 sm:$0xff]  }
 0x773   :  { %9009 = vmatpush1.bf16.msra.mxu1 %v15034_v44  ;;  %v20389_v44 = vmax.f32 %v21637_v4, %v21635_v57  ;;  %v15162_v57 = vld [vmem:[%s21179_s6 + $0xf34] ss:$8 sps:$4 sm:$0xff]   ;;  %v15165_v4 = vld [vmem:[%s21179_s6 + $0xf44] ss:$8 sps:$4 sm:$0xff]  }
 0x774   :  { %9010 = vmatprep.subr.bf16.mxu1 %v15039_v26  ;;  %v21638_v26 = vunpack.i.l.bf16 %v19066_v47  ;;  %v15103_v47 = vld [vmem:[%s21179_s6 + $0xe00] ss:$8 sps:$4 sm:$0xff]  }
 0x777   :  { %9011 = vmatpush1.bf16.msra.mxu1 %v15037_v51  ;;  %v21639_v51 = vld [vmem:[#allocation67_spill] sm:$0xff] }
 0x778   :  { %9012 = vmatprep.subr.bf16.mxu1 %v15042_v37  ;;  %v21640_v37 = vmax.f32 %v21639_v51, 0.0  ;;  %v15168_v51 = vld [vmem:[%s21179_s6 + $0xf54] ss:$8 sps:$4 sm:$0xff]  }
 0x77b   :  { %9013 = vmatpush1.bf16.msra.mxu1 %v15040_v12  ;;  %v5686_v12 = vmax.f32 %v21640_v37, %v21638_v26  ;;  %v15163_v26 = vld [vmem:[%s21179_s6 + $0xf40] ss:$8 sps:$4 sm:$0xff]   ;;  %v15166_v37 = vld [vmem:[%s21179_s6 + $0xf50] ss:$8 sps:$4 sm:$0xff]  }
 0x77c   :  { %9014 = vmatprep.subr.bf16.mxu1 %v15045_v43  ;;  %v15100_v43 = vld [vmem:[%s21179_s6 + $0xdf0] ss:$8 sps:$4 sm:$0xff]  }
 0x77f   :  { %9015 = vmatpush1.bf16.msra.mxu1 %v15043_v21  ;;  %v15105_v21 = vld [vmem:[%s21179_s6 + $0xe04] ss:$8 sps:$4 sm:$0xff]  }
 0x780   :  { %9016 = vmatprep.subr.bf16.mxu1 %v15048_v23  ;;  %v5738_v23 = vmax.f32 %v20049_v52, %v5686_v12  ;;  %v15106_v52 = vld [vmem:[%s21179_s6 + $0xe10] ss:$8 sps:$4 sm:$0xff]  }
 0x783   :  { %9017 = vmatpush1.bf16.msra.mxu1 %v15046_v24  ;;  %v5742_v24 = vmax.f32 %v5686_v12, %v20389_v44  ;;  %v15171_v12 = vld [vmem:[%s21179_s6 + $0xf64] ss:$8 sps:$4 sm:$0xff]  }
 0x784   :  { %9018 = vmatprep.subr.bf16.mxu1 %v15051_v60  ;;  %v15108_v60 = vld [vmem:[%s21179_s6 + $0xe14] ss:$8 sps:$4 sm:$0xff]  }
 0x787   :  { %9019 = vmatpush1.bf16.msra.mxu1 %v15049_v55  ;;  %v20409_v55 = vpack.c.bf16 %v5742_v24, %v5738_v23  ;;  %v15172_v23 = vld [vmem:[%s21179_s6 + $0xf70] ss:$8 sps:$4 sm:$0xff]   ;;  %v15177_v24 = vld [vmem:[%s21179_s6 + $0xf84] ss:$8 sps:$4 sm:$0xff]  }
 0x788   :  { %9020 = vmatprep.subr.bf16.mxu1 %v15054_v20  ;;  %v15111_v20 = vld [vmem:[%s21179_s6 + $0xe24] ss:$8 sps:$4 sm:$0xff]  }
 0x78b   :  { %9021 = vmatpush1.bf16.msra.mxu1 %v15052_v39  ;;  %v15109_v39 = vld [vmem:[%s21179_s6 + $0xe20] ss:$8 sps:$4 sm:$0xff]  }
 0x78c   :  { %9361 = vmatprep.subr.bf16.mxu1 %v15057_v16  ;;  %v15114_v16 = vld [vmem:[%s21179_s6 + $0xe34] ss:$8 sps:$4 sm:$0xff]  }
 0x78e   :  { %9035 = vmatmul.mubr.bf16.vlgmr.msra.gmra.mrb[112].mxu1 %v8693_v7  ;;  %v15117_v7 = vld [vmem:[%s21179_s6 + $0xe44] ss:$8 sps:$4 sm:$0xff]  }
 0x78f   :  { %9362 = vmatpush1.bf16.msra.mxu1 %v15055_v8  ;;  %9393 = vmatprep.mubr.bf16.mxu1 %v19331_v34  ;;  %v15112_v8 = vld [vmem:[%s21179_s6 + $0xe30] ss:$8 sps:$4 sm:$0xff]  }
 0x790   :  { %9363 = vmatprep.subr.bf16.mxu1 %v15060_v27  ;;  %v15115_v27 = vld [vmem:[%s21179_s6 + $0xe40] ss:$8 sps:$4 sm:$0xff]  }
 0x793   :  { %9364 = vmatpush1.bf16.msra.mxu1 %v15058_v11  ;;  %v15120_v11 = vld [vmem:[%s21179_s6 + $0xe54] ss:$8 sps:$4 sm:$0xff]  }
 0x794   :  { %9365 = vmatprep.subr.bf16.mxu1 %v15063_v42  ;;  %v15118_v42 = vld [vmem:[%s21179_s6 + $0xe50] ss:$8 sps:$4 sm:$0xff]  }
 0x797   :  { %9366 = vmatpush1.bf16.msra.mxu1 %v15061_v2  ;;  %v15123_v2 = vld [vmem:[%s21179_s6 + $0xe64] ss:$8 sps:$4 sm:$0xff]  }
 0x798   :  { %9367 = vmatprep.subr.bf16.mxu1 %v15066_v46  ;;  %v15121_v46 = vld [vmem:[%s21179_s6 + $0xe60] ss:$8 sps:$4 sm:$0xff]  }
 0x79b   :  { %9368 = vmatpush1.bf16.msra.mxu1 %v15064_v6  ;;  %v15126_v6 = vld [vmem:[%s21179_s6 + $0xe74] ss:$8 sps:$4 sm:$0xff]  }
 0x79c   :  { %9369 = vmatprep.subr.bf16.mxu1 %v15069_v50  ;;  %v15124_v50 = vld [vmem:[%s21179_s6 + $0xe70] ss:$8 sps:$4 sm:$0xff]  }
 0x79f   :  { %9370 = vmatpush1.bf16.msra.mxu1 %v15067_v56  ;;  %v15129_v56 = vld [vmem:[%s21179_s6 + $0xe84] ss:$8 sps:$4 sm:$0xff]  }
 0x7a0   :  { %9371 = vmatprep.subr.bf16.mxu1 %v15072_v63  ;;  %v15127_v63 = vld [vmem:[%s21179_s6 + $0xe80] ss:$8 sps:$4 sm:$0xff]  }
 0x7a3   :  { %9372 = vmatpush1.bf16.msra.mxu1 %v15070_v38  ;;  %v15132_v38 = vld [vmem:[%s21179_s6 + $0xe94] ss:$8 sps:$4 sm:$0xff]  }
 0x7a4   :  { %9373 = vmatprep.subr.bf16.mxu1 %v15075_v5  ;;  %v15130_v5 = vld [vmem:[%s21179_s6 + $0xe90] ss:$8 sps:$4 sm:$0xff]  }
 0x7a7   :  { %9374 = vmatpush1.bf16.msra.mxu1 %v15073_v31  ;;  %v15135_v31 = vld [vmem:[%s21179_s6 + $0xea4] ss:$8 sps:$4 sm:$0xff]  }
 0x7a8   :  { %9375 = vmatprep.subr.bf16.mxu1 %v15078_v19  ;;  %v15133_v19 = vld [vmem:[%s21179_s6 + $0xea0] ss:$8 sps:$4 sm:$0xff]  }
 0x7ab   :  { %9376 = vmatpush1.bf16.msra.mxu1 %v15076_v13  ;;  %v15138_v13 = vld [vmem:[%s21179_s6 + $0xeb4] ss:$8 sps:$4 sm:$0xff]  }
 0x7ac   :  { %9377 = vmatprep.subr.bf16.mxu1 %v15081_v48  ;;  %v9503_v48 = vrot.slane %v19331_v34, 4  ;;  %v15144_v34 = vld [vmem:[%s21179_s6 + $0xed4] ss:$8 sps:$4 sm:$0xff]  }
 0x7af   :  { %9378 = vmatpush1.bf16.msra.mxu1 %v15079_v32  ;;  %v15136_v32 = vld [vmem:[%s21179_s6 + $0xeb0] ss:$8 sps:$4 sm:$0xff]  }
 0x7b0   :  { %9379 = vmatprep.subr.bf16.mxu1 %v15084_v61  ;;  %v15141_v61 = vld [vmem:[%s21179_s6 + $0xec4] ss:$8 sps:$4 sm:$0xff]  }
 0x7b3   :  { %9380 = vmatpush1.bf16.msra.mxu1 %v15082_v17  ;;  %v15139_v17 = vld [vmem:[%s21179_s6 + $0xec0] ss:$8 sps:$4 sm:$0xff]  }
 0x7b4   :  { %9381 = vmatprep.subr.bf16.mxu1 %v15087_v36  ;;  %v15142_v36 = vld [vmem:[%s21179_s6 + $0xed0] ss:$8 sps:$4 sm:$0xff]  }
 0x7b7   :  { %9382 = vmatpush1.bf16.msra.mxu1 %v15085_v49  ;;  %v15147_v49 = vld [vmem:[%s21179_s6 + $0xee4] ss:$8 sps:$4 sm:$0xff]  }
 0x7b8   :  { %9383 = vmatprep.subr.bf16.mxu1 %v15090_v62  ;;  %v15145_v62 = vld [vmem:[%s21179_s6 + $0xee0] ss:$8 sps:$4 sm:$0xff]  }
 0x7bb   :  { %9384 = vmatpush1.bf16.msra.mxu1 %v15088_v30  ;;  %v15150_v30 = vld [vmem:[%s21179_s6 + $0xef4] ss:$8 sps:$4 sm:$0xff]  }
 0x7bc   :  { %9385 = vmatprep.subr.bf16.mxu1 %v15093_v22  ;;  %v15148_v22 = vld [vmem:[%s21179_s6 + $0xef0] ss:$8 sps:$4 sm:$0xff]  }
 0x7bf   :  { %9386 = vmatpush1.bf16.msra.mxu1 %v15091_v40  ;;  %v15153_v40 = vld [vmem:[%s21179_s6 + $0xf04] ss:$8 sps:$4 sm:$0xff]  }
 0x7c0   :  { %9387 = vmatprep.subr.bf16.mxu1 %v15096_v45  ;;  %v15151_v45 = vld [vmem:[%s21179_s6 + $0xf00] ss:$8 sps:$4 sm:$0xff]  }
 0x7c3   :  { %9388 = vmatpush1.bf16.msra.mxu1 %v15094_v15  ;;  %v15156_v15 = vld [vmem:[%s21179_s6 + $0xf14] ss:$8 sps:$4 sm:$0xff]  }
 0x7c4   :  { %9389 = vmatprep.subr.bf16.mxu1 %v15099_v28  ;;  %v15154_v28 = vld [vmem:[%s21179_s6 + $0xf10] ss:$8 sps:$4 sm:$0xff]  }
 0x7c7   :  { %9390 = vmatpush1.bf16.msra.mxu1 %v15097_v14  ;;  %v15159_v14 = vld [vmem:[%s21179_s6 + $0xf24] ss:$8 sps:$4 sm:$0xff]  }
 0x7c8   :  { %9391 = vmatprep.subr.bf16.mxu1 %v15102_v25  ;;  %v15157_v25 = vld [vmem:[%s21179_s6 + $0xf20] ss:$8 sps:$4 sm:$0xff]  }
 0x7cb   :  { %9392 = vmatpush1.bf16.msra.mxu1 %v15100_v43  ;;  %v15169_v43 = vld [vmem:[%s21179_s6 + $0xf60] ss:$8 sps:$4 sm:$0xff]  }
 0x7cc   :  { %9402 = vmatprep.subr.bf16.mxu1 %v15105_v21  ;;  %v15174_v21 = vld [vmem:[%s21179_s6 + $0xf74] ss:$8 sps:$4 sm:$0xff]  }
 0x7ce   :  { %9394 = vmatmul.mubr.bf16.vlgmr.msra.gmra.mrb[112].mxu1 %v19309_v29 }
 0x7cf   :  { %9403 = vmatpush1.bf16.msra.mxu1 %v15103_v47  ;;  %12669 = vmatprep.mubr.msk.bf16.mxu1 %vm6113_vm5, %v20409_v55  ;;  %v15175_v47 = vld [vmem:[%s21179_s6 + $0xf80] ss:$8 sps:$4 sm:$0xff]  }
 0x7d0   :  { %9404 = vmatprep.subr.bf16.mxu1 %v15108_v60  ;;  %v15180_v60 = vld [vmem:[%s21179_s6 + $0xf94] ss:$8 sps:$4 sm:$0xff]  }
 0x7d3   :  { %9405 = vmatpush1.bf16.msra.mxu1 %v15106_v52  ;;  %v15178_v52 = vld [vmem:[%s21179_s6 + $0xf90] ss:$8 sps:$4 sm:$0xff]  }
 0x7d4   :  { %9406 = vmatprep.subr.bf16.mxu1 %v15111_v20  ;;  %v15183_v20 = vld [vmem:[%s21179_s6 + $0xfa4] ss:$8 sps:$4 sm:$0xff]  }
 0x7d7   :  { %9407 = vmatpush1.bf16.msra.mxu1 %v15109_v39  ;;  %v15181_v39 = vld [vmem:[%s21179_s6 + $0xfa0] ss:$8 sps:$4 sm:$0xff]  }
 0x7d8   :  { %9408 = vmatprep.subr.bf16.mxu1 %v15114_v16  ;;  %v9502_v16 = vrot.slane %v19309_v29, 4  ;;  %v15189_v29 = vld [vmem:[%s21179_s6 + $0xfc4] ss:$8 sps:$4 sm:$0xff]  }
 0x7db   :  { %9409 = vmatpush1.bf16.msra.mxu1 %v15112_v8  ;;  %v15186_v8 = vld [vmem:[%s21179_s6 + $0xfb4] ss:$8 sps:$4 sm:$0xff]  }
 0x7dc   :  { %9410 = vmatprep.subr.bf16.mxu1 %v15117_v7  ;;  %v9505_v7 = vrot.slane %v20409_v55, 4  ;;  %v15192_v55 = vld [vmem:[%s21179_s6 + $0xfd4] ss:$8 sps:$4 sm:$0xff]  }
 0x7df   :  { %9411 = vmatpush1.bf16.msra.mxu1 %v15115_v27  ;;  %v15184_v27 = vld [vmem:[%s21179_s6 + $0xfb0] ss:$8 sps:$4 sm:$0xff]  }
 0x7e0   :  { %9412 = vmatprep.subr.bf16.mxu1 %v15120_v11  ;;  %v15187_v11 = vld [vmem:[%s21179_s6 + $0xfc0] ss:$8 sps:$4 sm:$0xff]  }
 0x7e3   :  { %9413 = vmatpush1.bf16.msra.mxu1 %v15118_v42  ;;  %v15190_v42 = vld [vmem:[%s21179_s6 + $0xfd0] ss:$8 sps:$4 sm:$0xff]  }
 0x7e4   :  { %9414 = vmatprep.subr.bf16.mxu1 %v15123_v2  ;;  %v15195_v2 = vld [vmem:[%s21179_s6 + $0xfe4] ss:$8 sps:$4 sm:$0xff]  }
 0x7e7   :  { %9415 = vmatpush1.bf16.msra.mxu1 %v15121_v46  ;;  %v15193_v46 = vld [vmem:[%s21179_s6 + $0xfe0] ss:$8 sps:$4 sm:$0xff]  }
 0x7e8   :  { %9416 = vmatprep.subr.bf16.mxu1 %v15126_v6  ;;  %v15198_v6 = vld [vmem:[%s21179_s6 + $0xff4] ss:$8 sps:$4 sm:$0xff]  }
 0x7eb   :  { %9417 = vmatpush1.bf16.msra.mxu1 %v15124_v50  ;;  %v15196_v50 = vld [vmem:[%s21179_s6 + $0xff0] ss:$8 sps:$4 sm:$0xff]  }
 0x7ec   :  { %9418 = vmatprep.subr.bf16.mxu1 %v15129_v56  ;;  %v15201_v56 = vld [vmem:[%s21179_s6 + $0x1004] ss:$8 sps:$4 sm:$0xff]  }
 0x7ef   :  { %9419 = vmatpush1.bf16.msra.mxu1 %v15127_v63  ;;  %v15199_v63 = vld [vmem:[%s21179_s6 + $0x1000] ss:$8 sps:$4 sm:$0xff]  }
 0x7f0   :  { %9420 = vmatprep.subr.bf16.mxu1 %v15132_v38  ;;  %v15204_v38 = vld [vmem:[%s21179_s6 + $0x1014] ss:$8 sps:$4 sm:$0xff]  }
 0x7f3   :  { %9421 = vmatpush1.bf16.msra.mxu1 %v15130_v5  ;;  %v15202_v5 = vld [vmem:[%s21179_s6 + $0x1010] ss:$8 sps:$4 sm:$0xff]  }
 0x7f4   :  { %9772 = vmatprep.subr.bf16.mxu1 %v15135_v31  ;;  %v15207_v31 = vld [vmem:[%s21179_s6 + $0x1024] ss:$8 sps:$4 sm:$0xff]  }
 0x7f6   :  { %9435 = vmatmul.mubr.bf16.vlgmr.msra.gmra.mrb[112].mxu1 %v19326_v58 }
 0x7f7   :  { %9773 = vmatpush1.bf16.msra.mxu1 %v15133_v19  ;;  %9804 = vmatprep.mubr.bf16.mxu1 %v9503_v48  ;;  %v15205_v19 = vld [vmem:[%s21179_s6 + $0x1020] ss:$8 sps:$4 sm:$0xff]   ;;  %v15208_v48 = vld [vmem:[%s21179_s6 + $0x1030] ss:$8 sps:$4 sm:$0xff]  }
 0x7f8   :  { %9774 = vmatprep.subr.bf16.mxu1 %v15138_v13  ;;  %v15210_v13 = vld [vmem:[%s21179_s6 + $0x1034] ss:$8 sps:$4 sm:$0xff]  }
 0x7fb   :  { %9775 = vmatpush1.bf16.msra.mxu1 %v15136_v32  ;;  %v15213_v32 = vld [vmem:[%s21179_s6 + $0x1044] ss:$8 sps:$4 sm:$0xff]  }
 0x7fc   :  { %9776 = vmatprep.subr.bf16.mxu1 %v15141_v61  ;;  %v15211_v61 = vld [vmem:[%s21179_s6 + $0x1040] ss:$8 sps:$4 sm:$0xff]  }
 0x7ff   :  { %9777 = vmatpush1.bf16.msra.mxu1 %v15139_v17  ;;  %v9504_v17 = vrot.slane %v19326_v58, 4  ;;  %v15217_v58 = vld [vmem:[%s21179_s6 + $0x1060] ss:$8 sps:$4 sm:$0xff]  }
 0x800   :  { %9778 = vmatprep.subr.bf16.mxu1 %v15144_v34  ;;  %v15216_v34 = vld [vmem:[%s21179_s6 + $0x1054] ss:$8 sps:$4 sm:$0xff]  }
 0x803   :  { %9779 = vmatpush1.bf16.msra.mxu1 %v15142_v36  ;;  %v15214_v36 = vld [vmem:[%s21179_s6 + $0x1050] ss:$8 sps:$4 sm:$0xff]  }
 0x804   :  { %9780 = vmatprep.subr.bf16.mxu1 %v15147_v49  ;;  %v15219_v49 = vld [vmem:[%s21179_s6 + $0x1064] ss:$8 sps:$4 sm:$0xff]  }
 0x807   :  { %9781 = vmatpush1.bf16.msra.mxu1 %v15145_v62  ;;  %v15222_v62 = vld [vmem:[%s21179_s6 + $0x1074] ss:$8 sps:$4 sm:$0xff]  }
 0x808   :  { %9782 = vmatprep.subr.bf16.mxu1 %v15150_v30  ;;  %v15220_v30 = vld [vmem:[%s21179_s6 + $0x1070] ss:$8 sps:$4 sm:$0xff]  }
 0x80b   :  { %9783 = vmatpush1.bf16.msra.mxu1 %v15148_v22  ;;  %v15225_v22 = vld [vmem:[%s21179_s6 + $0x1084] ss:$8 sps:$4 sm:$0xff]  }
 0x80c   :  { %9784 = vmatprep.subr.bf16.mxu1 %v15153_v40  ;;  %v15223_v40 = vld [vmem:[%s21179_s6 + $0x1080] ss:$8 sps:$4 sm:$0xff]  }
 0x80f   :  { %9785 = vmatpush1.bf16.msra.mxu1 %v15151_v45  ;;  %v15228_v45 = vld [vmem:[%s21179_s6 + $0x1094] ss:$8 sps:$4 sm:$0xff]  }
 0x810   :  { %9786 = vmatprep.subr.bf16.mxu1 %v15156_v15  ;;  %v15226_v15 = vld [vmem:[%s21179_s6 + $0x1090] ss:$8 sps:$4 sm:$0xff]  }
 0x813   :  { %9787 = vmatpush1.bf16.msra.mxu1 %v15154_v28  ;;  %v15231_v28 = vld [vmem:[%s21179_s6 + $0x10a4] ss:$8 sps:$4 sm:$0xff]  }
 0x814   :  { %9788 = vmatprep.subr.bf16.mxu1 %v15159_v14  ;;  %v15229_v14 = vld [vmem:[%s21179_s6 + $0x10a0] ss:$8 sps:$4 sm:$0xff]  }
 0x817   :  { %9789 = vmatpush1.bf16.msra.mxu1 %v15157_v25  ;;  %v15234_v25 = vld [vmem:[%s21179_s6 + $0x10b4] ss:$8 sps:$4 sm:$0xff]  }
 0x818   :  { %9790 = vmatprep.subr.bf16.mxu1 %v15162_v57  ;;  %v15232_v57 = vld [vmem:[%s21179_s6 + $0x10b0] ss:$8 sps:$4 sm:$0xff]  }
 0x81b   :  { %9791 = vmatpush1.bf16.msra.mxu1 %v15160_v53  ;;  %v15237_v53 = vld [vmem:[%s21179_s6 + $0x10c4] ss:$8 sps:$4 sm:$0xff]  }
 0x81c   :  { %9792 = vmatprep.subr.bf16.mxu1 %v15165_v4  ;;  %v15235_v4 = vld [vmem:[%s21179_s6 + $0x10c0] ss:$8 sps:$4 sm:$0xff]  }
 0x81f   :  { %9793 = vmatpush1.bf16.msra.mxu1 %v15163_v26  ;;  %v15240_v26 = vld [vmem:[%s21179_s6 + $0x10d4] ss:$8 sps:$4 sm:$0xff]  }
 0x820   :  { %9794 = vmatprep.subr.bf16.mxu1 %v15168_v51  ;;  %v15238_v51 = vld [vmem:[%s21179_s6 + $0x10d0] ss:$8 sps:$4 sm:$0xff]  }
 0x823   :  { %9795 = vmatpush1.bf16.msra.mxu1 %v15166_v37  ;;  %v15243_v37 = vld [vmem:[%s21179_s6 + $0x10e4] ss:$8 sps:$4 sm:$0xff]  }
 0x824   :  { %9796 = vmatprep.subr.bf16.mxu1 %v15171_v12  ;;  %v15241_v12 = vld [vmem:[%s21179_s6 + $0x10e0] ss:$8 sps:$4 sm:$0xff]  }
 0x827   :  { %9797 = vmatpush1.bf16.msra.mxu1 %v15169_v43  ;;  %v15246_v43 = vld [vmem:[%s21179_s6 + $0x10f4] ss:$8 sps:$4 sm:$0xff]  }
 0x828   :  { %9798 = vmatprep.subr.bf16.mxu1 %v15174_v21  ;;  %v15244_v21 = vld [vmem:[%s21179_s6 + $0x10f0] ss:$8 sps:$4 sm:$0xff]  }
 0x82b   :  { %9799 = vmatpush1.bf16.msra.mxu1 %v15172_v23  ;;  %v15249_v23 = vld [vmem:[%s21179_s6 + $0x1104] ss:$8 sps:$4 sm:$0xff]  }
 0x82c   :  { %9800 = vmatprep.subr.bf16.mxu1 %v15177_v24  ;;  %v15247_v24 = vld [vmem:[%s21179_s6 + $0x1100] ss:$8 sps:$4 sm:$0xff]  }
 0x82f   :  { %9801 = vmatpush1.bf16.msra.mxu1 %v15175_v47  ;;  %v15252_v47 = vld [vmem:[%s21179_s6 + $0x1114] ss:$8 sps:$4 sm:$0xff]  }
 0x830   :  { %9802 = vmatprep.subr.bf16.mxu1 %v15180_v60  ;;  %v15250_v60 = vld [vmem:[%s21179_s6 + $0x1110] ss:$8 sps:$4 sm:$0xff]  }
 0x833   :  { %9803 = vmatpush1.bf16.msra.mxu1 %v15178_v52  ;;  %v15255_v52 = vld [vmem:[%s21179_s6 + $0x1124] ss:$8 sps:$4 sm:$0xff]  }
 0x834   :  { %9813 = vmatprep.subr.bf16.mxu1 %v15183_v20  ;;  %v15253_v20 = vld [vmem:[%s21179_s6 + $0x1120] ss:$8 sps:$4 sm:$0xff]  }
 0x836   :  { %9805 = vmatmul.mubr.bf16.vlgmr.msra.gmra.mrb[112].mxu1 %v9502_v16  ;;  %v21641_v16 = vunpack.i.l.bf16 %v19153_v9  ;;  %v15259_v9 = vld [vmem:[%s21179_s6 + $0x1140] ss:$8 sps:$4 sm:$0xff]  }
 0x837   :  { %9814 = vmatpush1.bf16.msra.mxu1 %v15181_v39  ;;  %12774 = vmatprep.mubr.msk.bf16.mxu1 %vm6113_vm5, %v9505_v7  ;;  %v15258_v39 = vld [vmem:[%s21179_s6 + $0x1134] ss:$8 sps:$4 sm:$0xff]  }
 0x838   :  { %9815 = vmatprep.subr.bf16.mxu1 %v15186_v8  ;;  %v21642_v8 = vld [vmem:[#allocation69_spill] sm:$0xff] }
 0x839   :  { %v21643_v7 = vmax.f32 %v21642_v8, 0.0  ;;  %v15333_v8 = vld [vmem:[%s21179_s6 + $0x12c4] ss:$8 sps:$4 sm:$0xff]  }
 0x83b   :  { %9816 = vmatpush1.bf16.msra.mxu1 %v15184_v27  ;;  %v5694_v27 = vmax.f32 %v21643_v7, %v21641_v16  ;;  %v15328_v16 = vld [vmem:[%s21179_s6 + $0x12b0] ss:$8 sps:$4 sm:$0xff]   ;;  %v15331_v7 = vld [vmem:[%s21179_s6 + $0x12c0] ss:$8 sps:$4 sm:$0xff]  }
 0x83c   :  { %9817 = vmatprep.subr.bf16.mxu1 %v15189_v29  ;;  %v15256_v29 = vld [vmem:[%s21179_s6 + $0x1130] ss:$8 sps:$4 sm:$0xff]  }
 0x83f   :  { %9818 = vmatpush1.bf16.msra.mxu1 %v15187_v11  ;;  %v15261_v11 = vld [vmem:[%s21179_s6 + $0x1144] ss:$8 sps:$4 sm:$0xff]  }
 0x840   :  { %9819 = vmatprep.subr.bf16.mxu1 %v15192_v55  ;;  %v5746_v55 = vmax.f32 %v20389_v44, %v5694_v27  ;;  %v15267_v44 = vld [vmem:[%s21179_s6 + $0x1164] ss:$8 sps:$4 sm:$0xff]  }
 0x843   :  { %9820 = vmatpush1.bf16.msra.mxu1 %v15190_v42  ;;  %v5750_v42 = vmax.f32 %v5694_v27, %v19222_v41  ;;  %v15262_v41 = vld [vmem:[%s21179_s6 + $0x1150] ss:$8 sps:$4 sm:$0xff]   ;;  %v15336_v27 = vld [vmem:[%s21179_s6 + $0x12d4] ss:$8 sps:$4 sm:$0xff]  }
 0x844   :  { %9821 = vmatprep.subr.bf16.mxu1 %v15195_v2  ;;  %v15264_v2 = vld [vmem:[%s21179_s6 + $0x1154] ss:$8 sps:$4 sm:$0xff]  }
 0x847   :  { %9822 = vmatpush1.bf16.msra.mxu1 %v15193_v46  ;;  %v20739_v46 = vpack.c.bf16 %v5750_v42, %v5746_v55  ;;  %v15337_v55 = vld [vmem:[%s21179_s6 + $0x12e0] ss:$8 sps:$4 sm:$0xff]   ;;  %v10313_v42 = vrot.slane %v19340_v59, 4 }
 0x848   :  { %9823 = vmatprep.subr.bf16.mxu1 %v15198_v6  ;;  %v15265_v6 = vld [vmem:[%s21179_s6 + $0x1160] ss:$8 sps:$4 sm:$0xff]  }
 0x84b   :  { %9824 = vmatpush1.bf16.msra.mxu1 %v15196_v50  ;;  %v15270_v50 = vld [vmem:[%s21179_s6 + $0x1174] ss:$8 sps:$4 sm:$0xff]  }
 0x84c   :  { %9825 = vmatprep.subr.bf16.mxu1 %v15201_v56  ;;  %v15268_v56 = vld [vmem:[%s21179_s6 + $0x1170] ss:$8 sps:$4 sm:$0xff]  }
 0x84f   :  { %9826 = vmatpush1.bf16.msra.mxu1 %v15199_v63  ;;  %v15273_v63 = vld [vmem:[%s21179_s6 + $0x1184] ss:$8 sps:$4 sm:$0xff]  }
 0x850   :  { %9827 = vmatprep.subr.bf16.mxu1 %v15204_v38  ;;  %v15271_v38 = vld [vmem:[%s21179_s6 + $0x1180] ss:$8 sps:$4 sm:$0xff]  }
 0x853   :  { %9828 = vmatpush1.bf16.msra.mxu1 %v15202_v5  ;;  %v15276_v5 = vld [vmem:[%s21179_s6 + $0x1194] ss:$8 sps:$4 sm:$0xff]  }
 0x854   :  { %9829 = vmatprep.subr.bf16.mxu1 %v15207_v31  ;;  %v15274_v31 = vld [vmem:[%s21179_s6 + $0x1190] ss:$8 sps:$4 sm:$0xff]  }
 0x857   :  { %9830 = vmatpush1.bf16.msra.mxu1 %v15205_v19  ;;  %v15279_v19 = vld [vmem:[%s21179_s6 + $0x11a4] ss:$8 sps:$4 sm:$0xff]  }
 0x858   :  { %9831 = vmatprep.subr.bf16.mxu1 %v15210_v13  ;;  %v15277_v13 = vld [vmem:[%s21179_s6 + $0x11a0] ss:$8 sps:$4 sm:$0xff]  }
 0x85b   :  { %9832 = vmatpush1.bf16.msra.mxu1 %v15208_v48  ;;  %v15282_v48 = vld [vmem:[%s21179_s6 + $0x11b4] ss:$8 sps:$4 sm:$0xff]  }
 0x85c   :  { %10172 = vmatprep.subr.bf16.mxu1 %v15213_v32  ;;  %v15280_v32 = vld [vmem:[%s21179_s6 + $0x11b0] ss:$8 sps:$4 sm:$0xff]  }
 0x85e   :  { %9846 = vmatmul.mubr.bf16.vlgmr.msra.gmra.mrb[112].mxu1 %v9504_v17  ;;  %v15283_v17 = vld [vmem:[%s21179_s6 + $0x11c0] ss:$8 sps:$4 sm:$0xff]  }
 0x85f   :  { %10173 = vmatpush1.bf16.msra.mxu1 %v15211_v61  ;;  %10204 = vmatprep.mubr.bf16.mxu1 %v19348_v54  ;;  %v15285_v61 = vld [vmem:[%s21179_s6 + $0x11c4] ss:$8 sps:$4 sm:$0xff]  }
 0x860   :  { %10174 = vmatprep.subr.bf16.mxu1 %v15216_v34  ;;  %v15288_v34 = vld [vmem:[%s21179_s6 + $0x11d4] ss:$8 sps:$4 sm:$0xff]  }
 0x863   :  { %10175 = vmatpush1.bf16.msra.mxu1 %v15214_v36  ;;  %v15286_v36 = vld [vmem:[%s21179_s6 + $0x11d0] ss:$8 sps:$4 sm:$0xff]  }
 0x864   :  { %10176 = vmatprep.subr.bf16.mxu1 %v15219_v49  ;;  %v15291_v49 = vld [vmem:[%s21179_s6 + $0x11e4] ss:$8 sps:$4 sm:$0xff]  }
 0x867   :  { %10177 = vmatpush1.bf16.msra.mxu1 %v15217_v58  ;;  %v15289_v58 = vld [vmem:[%s21179_s6 + $0x11e0] ss:$8 sps:$4 sm:$0xff]  }
 0x868   :  { %10178 = vmatprep.subr.bf16.mxu1 %v15222_v62  ;;  %v15294_v62 = vld [vmem:[%s21179_s6 + $0x11f4] ss:$8 sps:$4 sm:$0xff]  }
 0x86b   :  { %10179 = vmatpush1.bf16.msra.mxu1 %v15220_v30  ;;  %v10314_v30 = vrot.slane %v19348_v54, 4  ;;  %v15300_v54 = vld [vmem:[%s21179_s6 + $0x1214] ss:$8 sps:$4 sm:$0xff]  }
 0x86c   :  { %10180 = vmatprep.subr.bf16.mxu1 %v15225_v22  ;;  %v15292_v22 = vld [vmem:[%s21179_s6 + $0x11f0] ss:$8 sps:$4 sm:$0xff]  }
 0x86f   :  { %10181 = vmatpush1.bf16.msra.mxu1 %v15223_v40  ;;  %v15297_v40 = vld [vmem:[%s21179_s6 + $0x1204] ss:$8 sps:$4 sm:$0xff]  }
 0x870   :  { %10182 = vmatprep.subr.bf16.mxu1 %v15228_v45  ;;  %v15295_v45 = vld [vmem:[%s21179_s6 + $0x1200] ss:$8 sps:$4 sm:$0xff]  }
 0x873   :  { %10183 = vmatpush1.bf16.msra.mxu1 %v15226_v15  ;;  %v15298_v15 = vld [vmem:[%s21179_s6 + $0x1210] ss:$8 sps:$4 sm:$0xff]  }
 0x874   :  { %10184 = vmatprep.subr.bf16.mxu1 %v15231_v28  ;;  %v15303_v28 = vld [vmem:[%s21179_s6 + $0x1224] ss:$8 sps:$4 sm:$0xff]  }
 0x877   :  { %10185 = vmatpush1.bf16.msra.mxu1 %v15229_v14  ;;  %v15301_v14 = vld [vmem:[%s21179_s6 + $0x1220] ss:$8 sps:$4 sm:$0xff]  }
 0x878   :  { %10186 = vmatprep.subr.bf16.mxu1 %v15234_v25  ;;  %v15306_v25 = vld [vmem:[%s21179_s6 + $0x1234] ss:$8 sps:$4 sm:$0xff]  }
 0x87b   :  { %10187 = vmatpush1.bf16.msra.mxu1 %v15232_v57  ;;  %v15304_v57 = vld [vmem:[%s21179_s6 + $0x1230] ss:$8 sps:$4 sm:$0xff]  }
 0x87c   :  { %10188 = vmatprep.subr.bf16.mxu1 %v15237_v53  ;;  %v15309_v53 = vld [vmem:[%s21179_s6 + $0x1244] ss:$8 sps:$4 sm:$0xff]  }
 0x87f   :  { %10189 = vmatpush1.bf16.msra.mxu1 %v15235_v4  ;;  %v15307_v4 = vld [vmem:[%s21179_s6 + $0x1240] ss:$8 sps:$4 sm:$0xff]  }
 0x880   :  { %10190 = vmatprep.subr.bf16.mxu1 %v15240_v26  ;;  %v15312_v26 = vld [vmem:[%s21179_s6 + $0x1254] ss:$8 sps:$4 sm:$0xff]  }
 0x883   :  { %10191 = vmatpush1.bf16.msra.mxu1 %v15238_v51  ;;  %v15310_v51 = vld [vmem:[%s21179_s6 + $0x1250] ss:$8 sps:$4 sm:$0xff]  }
 0x884   :  { %10192 = vmatprep.subr.bf16.mxu1 %v15243_v37  ;;  %v15315_v37 = vld [vmem:[%s21179_s6 + $0x1264] ss:$8 sps:$4 sm:$0xff]  }
 0x887   :  { %10193 = vmatpush1.bf16.msra.mxu1 %v15241_v12  ;;  %v15313_v12 = vld [vmem:[%s21179_s6 + $0x1260] ss:$8 sps:$4 sm:$0xff]  }
 0x888   :  { %10194 = vmatprep.subr.bf16.mxu1 %v15246_v43  ;;  %v15318_v43 = vld [vmem:[%s21179_s6 + $0x1274] ss:$8 sps:$4 sm:$0xff]  }
 0x88b   :  { %10195 = vmatpush1.bf16.msra.mxu1 %v15244_v21  ;;  %v15316_v21 = vld [vmem:[%s21179_s6 + $0x1270] ss:$8 sps:$4 sm:$0xff]  }
 0x88c   :  { %10196 = vmatprep.subr.bf16.mxu1 %v15249_v23  ;;  %v15321_v23 = vld [vmem:[%s21179_s6 + $0x1284] ss:$8 sps:$4 sm:$0xff]  }
 0x88f   :  { %10197 = vmatpush1.bf16.msra.mxu1 %v15247_v24  ;;  %v15319_v24 = vld [vmem:[%s21179_s6 + $0x1280] ss:$8 sps:$4 sm:$0xff]  }
 0x890   :  { %10198 = vmatprep.subr.bf16.mxu1 %v15252_v47  ;;  %v15324_v47 = vld [vmem:[%s21179_s6 + $0x1294] ss:$8 sps:$4 sm:$0xff]  }
 0x893   :  { %10199 = vmatpush1.bf16.msra.mxu1 %v15250_v60  ;;  %v15322_v60 = vld [vmem:[%s21179_s6 + $0x1290] ss:$8 sps:$4 sm:$0xff]  }
 0x894   :  { %10200 = vmatprep.subr.bf16.mxu1 %v15255_v52  ;;  %v15327_v52 = vld [vmem:[%s21179_s6 + $0x12a4] ss:$8 sps:$4 sm:$0xff]  }
 0x897   :  { %10201 = vmatpush1.bf16.msra.mxu1 %v15253_v20  ;;  %v15325_v20 = vld [vmem:[%s21179_s6 + $0x12a0] ss:$8 sps:$4 sm:$0xff]  }
 0x898   :  { %10202 = vmatprep.subr.bf16.mxu1 %v15258_v39  ;;  %v15330_v39 = vld [vmem:[%s21179_s6 + $0x12b4] ss:$8 sps:$4 sm:$0xff]  }
 0x89b   :  { %10203 = vmatpush1.bf16.msra.mxu1 %v15256_v29  ;;  %v15334_v29 = vld [vmem:[%s21179_s6 + $0x12d0] ss:$8 sps:$4 sm:$0xff]  }
 0x89c   :  { %10213 = vmatprep.subr.bf16.mxu1 %v15261_v11  ;;  %v15339_v11 = vld [vmem:[%s21179_s6 + $0x12e4] ss:$8 sps:$4 sm:$0xff]  }
 0x89e   :  { %10205 = vmatmul.mubr.bf16.vlgmr.msra.gmra.mrb[112].mxu1 %v19340_v59  ;;  %v15345_v59 = vld [vmem:[%s21179_s6 + $0x1304] ss:$8 sps:$4 sm:$0xff]  }
 0x89f   :  { %10214 = vmatpush1.bf16.msra.mxu1 %v15259_v9  ;;  %12879 = vmatprep.mubr.msk.bf16.mxu1 %vm6113_vm5, %v20739_v46  ;;  %v15342_v9 = vld [vmem:[%s21179_s6 + $0x12f4] ss:$8 sps:$4 sm:$0xff]  }
 0x8a0   :  { %10215 = vmatprep.subr.bf16.mxu1 %v15264_v2  ;;  %v10316_v2 = vrot.slane %v20739_v46, 4  ;;  %v15348_v46 = vld [vmem:[%s21179_s6 + $0x1314] ss:$8 sps:$4 sm:$0xff]  }
 0x8a3   :  { %10216 = vmatpush1.bf16.msra.mxu1 %v15262_v41  ;;  %v15340_v41 = vld [vmem:[%s21179_s6 + $0x12f0] ss:$8 sps:$4 sm:$0xff]  }
 0x8a4   :  { %10217 = vmatprep.subr.bf16.mxu1 %v15267_v44  ;;  %v15343_v44 = vld [vmem:[%s21179_s6 + $0x1300] ss:$8 sps:$4 sm:$0xff]  }
 0x8a7   :  { %10218 = vmatpush1.bf16.msra.mxu1 %v15265_v6  ;;  %v15346_v6 = vld [vmem:[%s21179_s6 + $0x1310] ss:$8 sps:$4 sm:$0xff]  }
 0x8a8   :  { %10219 = vmatprep.subr.bf16.mxu1 %v15270_v50  ;;  %v15351_v50 = vld [vmem:[%s21179_s6 + $0x1324] ss:$8 sps:$4 sm:$0xff]  }
 0x8ab   :  { %10220 = vmatpush1.bf16.msra.mxu1 %v15268_v56  ;;  %v15349_v56 = vld [vmem:[%s21179_s6 + $0x1320] ss:$8 sps:$4 sm:$0xff]  }
 0x8ac   :  { %10221 = vmatprep.subr.bf16.mxu1 %v15273_v63  ;;  %v15354_v63 = vld [vmem:[%s21179_s6 + $0x1334] ss:$8 sps:$4 sm:$0xff]  }
 0x8af   :  { %10222 = vmatpush1.bf16.msra.mxu1 %v15271_v38  ;;  %v15352_v38 = vld [vmem:[%s21179_s6 + $0x1330] ss:$8 sps:$4 sm:$0xff]  }
 0x8b0   :  { %10223 = vmatprep.subr.bf16.mxu1 %v15276_v5  ;;  %v15357_v5 = vld [vmem:[%s21179_s6 + $0x1344] ss:$8 sps:$4 sm:$0xff]  }
 0x8b3   :  { %10224 = vmatpush1.bf16.msra.mxu1 %v15274_v31  ;;  %v15445_v31 = vld [vmem:[%s21182_s8 + $0x40] sm:$0xff]  }
 0x8b4   :  { %10225 = vmatprep.subr.bf16.mxu1 %v15279_v19  ;;  %v15446_v19 = vld [vmem:[%s21182_s8] sm:$0xff]   ;;  %13120 = vmatprep.subr.bf16.mxu0 %v15445_v31 }
 0x8b5   :  { %13121 = vmatpush3.bf16.msra.mxu0 %v15446_v19  ;;  %v15433_v31 = vld [vmem:[%s21179_s6 + $0x14e0] ss:$8 sps:$4 sm:$0xff]   ;;  %v15438_v19 = vld [vmem:[%s21179_s6 + $0x14f4] ss:$8 sps:$4 sm:$0xff]  }
 0x8b7   :  { %10226 = vmatpush1.bf16.msra.mxu1 %v15277_v13  ;;  %v15355_v13 = vld [vmem:[%s21179_s6 + $0x1340] ss:$8 sps:$4 sm:$0xff]  }
 0x8b8   :  { %10227 = vmatprep.subr.bf16.mxu1 %v15282_v48  ;;  %v15447_v48 = vld [vmem:[%s21182_s8 + $0x48] sm:$0xff]  }
 0x8b9   :  { %13122 = vmatprep.subr.bf16.mxu0 %v15447_v48  ;;  %v15441_v48 = vld [vmem:[%s21179_s6 + $0x1504] ss:$8 sps:$4 sm:$0xff]  }
 0x8bb   :  { %10228 = vmatpush1.bf16.msra.mxu1 %v15280_v32  ;;  %v15448_v32 = vld [vmem:[%s21182_s8 + $0x8] sm:$0xff]  }
 0x8bc   :  { %10229 = vmatprep.subr.bf16.mxu1 %v15285_v61  ;;  %v15449_v61 = vld [vmem:[%s21182_s8 + $0x50] sm:$0xff]   ;;  %13123 = vmatpush3.bf16.msra.mxu0 %v15448_v32  ;;  %v15439_v32 = vld [vmem:[%s21179_s6 + $0x1500] ss:$8 sps:$4 sm:$0xff]  }
 0x8bd   :  { %13124 = vmatprep.subr.bf16.mxu0 %v15449_v61  ;;  %v15444_v61 = vld [vmem:[%s21179_s6 + $0x1514] ss:$8 sps:$4 sm:$0xff]  }
 0x8bf   :  { %10230 = vmatpush1.bf16.msra.mxu1 %v15283_v17  ;;  %v15360_v17 = vld [vmem:[%s21179_s6 + $0x1354] ss:$8 sps:$4 sm:$0xff]  }
 0x8c0   :  { %10231 = vmatprep.subr.bf16.mxu1 %v15288_v34  ;;  %v15358_v34 = vld [vmem:[%s21179_s6 + $0x1350] ss:$8 sps:$4 sm:$0xff]  }
 0x8c3   :  { %10232 = vmatpush1.bf16.msra.mxu1 %v15286_v36  ;;  %v15450_v36 = vld [vmem:[%s21182_s8 + $0x10] sm:$0xff]  }
 0x8c4   :  { %10583 = vmatprep.subr.bf16.mxu1 %v15291_v49  ;;  %v15363_v49 = vld [vmem:[%s21179_s6 + $0x1364] ss:$8 sps:$4 sm:$0xff]   ;;  %13125 = vmatpush3.bf16.msra.mxu0 %v15450_v36 }
 0x8c5   :  { %v15454_v36 = vld [vmem:[%s21182_s8 + $0x20] sm:$0xff]  }
 0x8c6   :  { %10246 = vmatmul.mubr.bf16.vlgmr.msra.gmra.mrb[112].mxu1 %v19350_v0 }
 0x8c7   :  { %10584 = vmatpush1.bf16.msra.mxu1 %v15289_v58  ;;  %10615 = vmatprep.mubr.bf16.mxu1 %v10314_v30  ;;  %v15451_v58 = vld [vmem:[%s21182_s8 + $0x58] sm:$0xff]   ;;  %v15361_v30 = vld [vmem:[%s21179_s6 + $0x1360] ss:$8 sps:$4 sm:$0xff]  }
 0x8c8   :  { %10585 = vmatprep.subr.bf16.mxu1 %v15294_v62  ;;  %v15452_v62 = vld [vmem:[%s21182_s8 + $0x18] sm:$0xff]   ;;  %13126 = vmatprep.subr.bf16.mxu0 %v15451_v58  ;;  %v15456_v58 = vld [vmem:[%s21182_s8 + $0x28] sm:$0xff]  }
 0x8c9   :  { %13127 = vmatpush3.bf16.msra.mxu0 %v15452_v62  ;;  %v15458_v62 = vld [vmem:[%s21182_s8 + $0x30] sm:$0xff]  }
 0x8cb   :  { %10586 = vmatpush1.bf16.msra.mxu1 %v15292_v22  ;;  %v15366_v22 = vld [vmem:[%s21179_s6 + $0x1374] ss:$8 sps:$4 sm:$0xff]  }
 0x8cc   :  { %10587 = vmatprep.subr.bf16.mxu1 %v15297_v40  ;;  %v15364_v40 = vld [vmem:[%s21179_s6 + $0x1370] ss:$8 sps:$4 sm:$0xff]  }
 0x8cf   :  { %10588 = vmatpush1.bf16.msra.mxu1 %v15295_v45  ;;  %v15369_v45 = vld [vmem:[%s21179_s6 + $0x1384] ss:$8 sps:$4 sm:$0xff]  }
 0x8d0   :  { %10589 = vmatprep.subr.bf16.mxu1 %v15300_v54  ;;  %v15367_v54 = vld [vmem:[%s21179_s6 + $0x1380] ss:$8 sps:$4 sm:$0xff]  }
 0x8d3   :  { %10590 = vmatpush1.bf16.msra.mxu1 %v15298_v15  ;;  %v10315_v15 = vrot.slane %v19350_v0, 4  ;;  %v15373_v0 = vld [vmem:[%s21179_s6 + $0x13a0] ss:$8 sps:$4 sm:$0xff]  }
 0x8d4   :  { %10591 = vmatprep.subr.bf16.mxu1 %v15303_v28  ;;  %v15372_v28 = vld [vmem:[%s21179_s6 + $0x1394] ss:$8 sps:$4 sm:$0xff]  }
 0x8d7   :  { %10592 = vmatpush1.bf16.msra.mxu1 %v15301_v14  ;;  %v15370_v14 = vld [vmem:[%s21179_s6 + $0x1390] ss:$8 sps:$4 sm:$0xff]  }
 0x8d8   :  { %10593 = vmatprep.subr.bf16.mxu1 %v15306_v25  ;;  %v15375_v25 = vld [vmem:[%s21179_s6 + $0x13a4] ss:$8 sps:$4 sm:$0xff]  }
 0x8db   :  { %10594 = vmatpush1.bf16.msra.mxu1 %v15304_v57  ;;  %v15378_v57 = vld [vmem:[%s21179_s6 + $0x13b4] ss:$8 sps:$4 sm:$0xff]  }
 0x8dc   :  { %10595 = vmatprep.subr.bf16.mxu1 %v15309_v53  ;;  %v15381_v53 = vld [vmem:[%s21179_s6 + $0x13c4] ss:$8 sps:$4 sm:$0xff]  }
 0x8df   :  { %10596 = vmatpush1.bf16.msra.mxu1 %v15307_v4  ;;  %v15379_v4 = vld [vmem:[%s21179_s6 + $0x13c0] ss:$8 sps:$4 sm:$0xff]  }
 0x8e0   :  { %10597 = vmatprep.subr.bf16.mxu1 %v15312_v26  ;;  %v15384_v26 = vld [vmem:[%s21179_s6 + $0x13d4] ss:$8 sps:$4 sm:$0xff]  }
 0x8e3   :  { %10598 = vmatpush1.bf16.msra.mxu1 %v15310_v51  ;;  %v15382_v51 = vld [vmem:[%s21179_s6 + $0x13d0] ss:$8 sps:$4 sm:$0xff]  }
 0x8e4   :  { %10599 = vmatprep.subr.bf16.mxu1 %v15315_v37  ;;  %v15387_v37 = vld [vmem:[%s21179_s6 + $0x13e4] ss:$8 sps:$4 sm:$0xff]  }
 0x8e7   :  { %10600 = vmatpush1.bf16.msra.mxu1 %v15313_v12  ;;  %v15385_v12 = vld [vmem:[%s21179_s6 + $0x13e0] ss:$8 sps:$4 sm:$0xff]  }
 0x8e8   :  { %10601 = vmatprep.subr.bf16.mxu1 %v15318_v43  ;;  %v15390_v43 = vld [vmem:[%s21179_s6 + $0x13f4] ss:$8 sps:$4 sm:$0xff]  }
 0x8eb   :  { %10602 = vmatpush1.bf16.msra.mxu1 %v15316_v21  ;;  %v15388_v21 = vld [vmem:[%s21179_s6 + $0x13f0] ss:$8 sps:$4 sm:$0xff]  }
 0x8ec   :  { %10603 = vmatprep.subr.bf16.mxu1 %v15321_v23  ;;  %v15393_v23 = vld [vmem:[%s21179_s6 + $0x1404] ss:$8 sps:$4 sm:$0xff]  }
 0x8ef   :  { %10604 = vmatpush1.bf16.msra.mxu1 %v15319_v24  ;;  %v15391_v24 = vld [vmem:[%s21179_s6 + $0x1400] ss:$8 sps:$4 sm:$0xff]  }
 0x8f0   :  { %10605 = vmatprep.subr.bf16.mxu1 %v15324_v47  ;;  %v15396_v47 = vld [vmem:[%s21179_s6 + $0x1414] ss:$8 sps:$4 sm:$0xff]  }
 0x8f3   :  { %10606 = vmatpush1.bf16.msra.mxu1 %v15322_v60  ;;  %v15394_v60 = vld [vmem:[%s21179_s6 + $0x1410] ss:$8 sps:$4 sm:$0xff]  }
 0x8f4   :  { %10607 = vmatprep.subr.bf16.mxu1 %v15327_v52  ;;  %v15399_v52 = vld [vmem:[%s21179_s6 + $0x1424] ss:$8 sps:$4 sm:$0xff]  }
 0x8f7   :  { %10608 = vmatpush1.bf16.msra.mxu1 %v15325_v20  ;;  %v15397_v20 = vld [vmem:[%s21179_s6 + $0x1420] ss:$8 sps:$4 sm:$0xff]  }
 0x8f8   :  { %10609 = vmatprep.subr.bf16.mxu1 %v15330_v39  ;;  %v15402_v39 = vld [vmem:[%s21179_s6 + $0x1434] ss:$8 sps:$4 sm:$0xff]  }
 0x8fb   :  { %10610 = vmatpush1.bf16.msra.mxu1 %v15328_v16  ;;  %v15400_v16 = vld [vmem:[%s21179_s6 + $0x1430] ss:$8 sps:$4 sm:$0xff]  }
 0x8fc   :  { %10611 = vmatprep.subr.bf16.mxu1 %v15333_v8  ;;  %v15405_v8 = vld [vmem:[%s21179_s6 + $0x1444] ss:$8 sps:$4 sm:$0xff]  }
 0x8ff   :  { %10612 = vmatpush1.bf16.msra.mxu1 %v15331_v7  ;;  %v15403_v7 = vld [vmem:[%s21179_s6 + $0x1440] ss:$8 sps:$4 sm:$0xff]  }
 0x900   :  { %10613 = vmatprep.subr.bf16.mxu1 %v15336_v27  ;;  %v15408_v27 = vld [vmem:[%s21179_s6 + $0x1454] ss:$8 sps:$4 sm:$0xff]  }
 0x903   :  { %10614 = vmatpush1.bf16.msra.mxu1 %v15334_v29  ;;  %v15406_v29 = vld [vmem:[%s21179_s6 + $0x1450] ss:$8 sps:$4 sm:$0xff]  }
 0x904   :  { %10624 = vmatprep.subr.bf16.mxu1 %v15339_v11  ;;  %v15411_v11 = vld [vmem:[%s21179_s6 + $0x1464] ss:$8 sps:$4 sm:$0xff]  }
 0x906   :  { %10616 = vmatmul.mubr.bf16.vlgmr.msra.gmra.mrb[112].mxu1 %v10313_v42  ;;  %v15414_v42 = vld [vmem:[%s21179_s6 + $0x1474] ss:$8 sps:$4 sm:$0xff]  }
 0x907   :  { %10625 = vmatpush1.bf16.msra.mxu1 %v15337_v55  ;;  %12984 = vmatprep.mubr.msk.bf16.mxu1 %vm6113_vm5, %v10316_v2  ;;  %v15409_v55 = vld [vmem:[%s21179_s6 + $0x1460] ss:$8 sps:$4 sm:$0xff]   ;;  %v15417_v2 = vld [vmem:[%s21179_s6 + $0x1484] ss:$8 sps:$4 sm:$0xff]  }
 0x908   :  { %10626 = vmatprep.subr.bf16.mxu1 %v15342_v9  ;;  %v15412_v9 = vld [vmem:[%s21179_s6 + $0x1470] ss:$8 sps:$4 sm:$0xff]  }
 0x90b   :  { %10627 = vmatpush1.bf16.msra.mxu1 %v15340_v41  ;;  %v15415_v41 = vld [vmem:[%s21179_s6 + $0x1480] ss:$8 sps:$4 sm:$0xff]  }
 0x90c   :  { %10628 = vmatprep.subr.bf16.mxu1 %v15345_v59  ;;  %v15420_v59 = vld [vmem:[%s21179_s6 + $0x1494] ss:$8 sps:$4 sm:$0xff]  }
 0x90f   :  { %10629 = vmatpush1.bf16.msra.mxu1 %v15343_v44  ;;  %v15418_v44 = vld [vmem:[%s21179_s6 + $0x1490] ss:$8 sps:$4 sm:$0xff]  }
 0x910   :  { %10630 = vmatprep.subr.bf16.mxu1 %v15348_v46  ;;  %v15423_v46 = vld [vmem:[%s21179_s6 + $0x14a4] ss:$8 sps:$4 sm:$0xff]  }
 0x913   :  { %10631 = vmatpush1.bf16.msra.mxu1 %v15346_v6  ;;  %v15421_v6 = vld [vmem:[%s21179_s6 + $0x14a0] ss:$8 sps:$4 sm:$0xff]  }
 0x914   :  { %10632 = vmatprep.subr.bf16.mxu1 %v15351_v50  ;;  %v15429_v50 = vld [vmem:[%s21179_s6 + $0x14c4] ss:$8 sps:$4 sm:$0xff]  }
 0x917   :  { %10633 = vmatpush1.bf16.msra.mxu1 %v15349_v56  ;;  %v15427_v56 = vld [vmem:[%s21179_s6 + $0x14c0] ss:$8 sps:$4 sm:$0xff]  }
 0x918   :  { %10634 = vmatprep.subr.bf16.mxu1 %v15354_v63  ;;  %v15432_v63 = vld [vmem:[%s21179_s6 + $0x14d4] ss:$8 sps:$4 sm:$0xff]  }
 0x91b   :  { %10635 = vmatpush1.bf16.msra.mxu1 %v15352_v38  ;;  %v15430_v38 = vld [vmem:[%s21179_s6 + $0x14d0] ss:$8 sps:$4 sm:$0xff]  }
 0x91c   :  { %10636 = vmatprep.subr.bf16.mxu1 %v15357_v5  ;;  %v15435_v5 = vld [vmem:[%s21179_s6 + $0x14e4] ss:$8 sps:$4 sm:$0xff]  }
 0x91f   :  { %10637 = vmatpush1.bf16.msra.mxu1 %v15355_v13  ;;  %v15436_v13 = vld [vmem:[%s21179_s6 + $0x14f0] ss:$8 sps:$4 sm:$0xff]  }
 0x920   :  { %10638 = vmatprep.subr.bf16.mxu1 %v15360_v17  ;;  %v15442_v17 = vld [vmem:[%s21179_s6 + $0x1510] ss:$8 sps:$4 sm:$0xff]  }
 0x923   :  { %10639 = vmatpush1.bf16.msra.mxu1 %v15358_v34  ;;  %v15453_v34 = vld [vmem:[%s21182_s8 + $0x60] sm:$0xff]  }
 0x924   :  { %10640 = vmatprep.subr.bf16.mxu1 %v15363_v49  ;;  %v15455_v49 = vld [vmem:[%s21182_s8 + $0x68] sm:$0xff]   ;;  %13128 = vmatprep.subr.bf16.mxu0 %v15453_v34 }
 0x925   :  { %13129 = vmatpush3.bf16.msra.mxu0 %v15454_v36 }
 0x926   :  { %13130 = vmatprep.subr.bf16.mxu0 %v15455_v49 }
 0x927   :  { %10641 = vmatpush1.bf16.msra.mxu1 %v15361_v30  ;;  %v15459_v30 = vld [vmem:[%s21182_s8 + $0x78] sm:$0xff]  }
 0x928   :  { %10642 = vmatprep.subr.bf16.mxu1 %v15366_v22  ;;  %v15460_v22 = vld [vmem:[%s21182_s8 + $0x38] sm:$0xff]  }
 0x929   :  { %13131 = vmatpush3.bf16.msra.mxu0 %v15456_v58 }
 0x92b   :  { %10643 = vmatpush1.bf16.msra.mxu1 %v15364_v40 }
 0x92c   :  { %10983 = vmatprep.subr.bf16.mxu1 %v15369_v45 }
 0x92e   :  { %10657 = vmatmul.mubr.bf16.vlgmr.msra.gmra.mrb[112].mxu1 %v10315_v15 }
 0x92f   :  { %10984 = vmatpush1.bf16.msra.mxu1 %v15367_v54  ;;  %11015 = vmatprep.mubr.bf16.mxu1 %v19360_v18  ;;  %v15376_v18 = vld [vmem:[%s21179_s6 + $0x13b0] ss:$8 sps:$4 sm:$0xff]  }
 0x930   :  { %10985 = vmatprep.subr.bf16.mxu1 %v15372_v28 }
 0x933   :  { %10986 = vmatpush1.bf16.msra.mxu1 %v15370_v14 }
 0x934   :  { %10987 = vmatprep.subr.bf16.mxu1 %v15375_v25 }
 0x937   :  { %10988 = vmatpush1.bf16.msra.mxu1 %v15373_v0 }
 0x938   :  { %10989 = vmatprep.subr.bf16.mxu1 %v15378_v57 }
 0x93b   :  { %10990 = vmatpush1.bf16.msra.mxu1 %v15376_v18 }
 0x93c   :  { %10991 = vmatprep.subr.bf16.mxu1 %v15381_v53 }
 0x93f   :  { %10992 = vmatpush1.bf16.msra.mxu1 %v15379_v4 }
 0x940   :  { %10993 = vmatprep.subr.bf16.mxu1 %v15384_v26  ;;  %v13090_v26 = vld [vmem:[%s21183_s9] ss:$0 sm:$0xff] }
 0x943   :  { %10994 = vmatpush1.bf16.msra.mxu1 %v15382_v51 }
 0x944   :  { %10995 = vmatprep.subr.bf16.mxu1 %v15387_v37 }
 0x947   :  { %10996 = vmatpush1.bf16.msra.mxu1 %v15385_v12 }
 0x948   :  { %10997 = vmatprep.subr.bf16.mxu1 %v15390_v43 }
 0x94b   :  { %10998 = vmatpush1.bf16.msra.mxu1 %v15388_v21 }
 0x94c   :  { %10999 = vmatprep.subr.bf16.mxu1 %v15393_v23 }
 0x94f   :  { %11000 = vmatpush1.bf16.msra.mxu1 %v15391_v24 }
 0x950   :  { %11001 = vmatprep.subr.bf16.mxu1 %v15396_v47 }
 0x953   :  { %11002 = vmatpush1.bf16.msra.mxu1 %v15394_v60 }
 0x954   :  { %11003 = vmatprep.subr.bf16.mxu1 %v15399_v52 }
 0x957   :  { %11004 = vmatpush1.bf16.msra.mxu1 %v15397_v20 }
 0x958   :  { %11005 = vmatprep.subr.bf16.mxu1 %v15402_v39 }
 0x95b   :  { %11006 = vmatpush1.bf16.msra.mxu1 %v15400_v16 }
 0x95c   :  { %11007 = vmatprep.subr.bf16.mxu1 %v15405_v8 }
 0x95f   :  { %11008 = vmatpush1.bf16.msra.mxu1 %v15403_v7 }
 0x960   :  { %11009 = vmatprep.subr.bf16.mxu1 %v15408_v27 }
 0x963   :  { %11010 = vmatpush1.bf16.msra.mxu1 %v15406_v29 }
 0x964   :  { %11011 = vmatprep.subr.bf16.mxu1 %v15411_v11 }
 0x967   :  { %11012 = vmatpush1.bf16.msra.mxu1 %v15409_v55 }
 0x968   :  { %11013 = vmatprep.subr.bf16.mxu1 %v15414_v42 }
 0x96b   :  { %11014 = vmatpush1.bf16.msra.mxu1 %v15412_v9 }
 0x96c   :  { %11024 = vmatprep.subr.bf16.mxu1 %v15417_v2 }
 0x96e   :  { %11016 = vmatmul.mubr.bf16.vlgmr.msra.gmra.mrb[112].mxu1 %v19281_v1  ;;  %v15426_v1 = vld [vmem:[%s21179_s6 + $0x14b4] ss:$8 sps:$4 sm:$0xff]  }
 0x96f   :  { %11025 = vmatpush1.bf16.msra.mxu1 %v15415_v41  ;;  %13089 = vmatprep.mubr.msk.bf16.mxu1 %vm6113_vm5, %v19283_v35  ;;  %v15424_v35 = vld [vmem:[%s21179_s6 + $0x14b0] ss:$8 sps:$4 sm:$0xff]  }
 0x970   :  { %11026 = vmatprep.subr.bf16.mxu1 %v15420_v59 }
 0x973   :  { %11027 = vmatpush1.bf16.msra.mxu1 %v15418_v44 }
 0x974   :  { %11028 = vmatprep.subr.bf16.mxu1 %v15423_v46 }
 0x977   :  { %11029 = vmatpush1.bf16.msra.mxu1 %v15421_v6 }
 0x978   :  { %11030 = vmatprep.subr.bf16.mxu1 %v15426_v1 }
 0x97b   :  { %11031 = vmatpush1.bf16.msra.mxu1 %v15424_v35 }
 0x97c   :  { %11032 = vmatprep.subr.bf16.mxu1 %v15429_v50 }
 0x97f   :  { %11033 = vmatpush1.bf16.msra.mxu1 %v15427_v56 }
 0x980   :  { %11034 = vmatprep.subr.bf16.mxu1 %v15432_v63 }
 0x983   :  { %11035 = vmatpush1.bf16.msra.mxu1 %v15430_v38 }
 0x984   :  { %11036 = vmatprep.subr.bf16.mxu1 %v15435_v5 }
 0x987   :  { %11037 = vmatpush1.bf16.msra.mxu1 %v15433_v31 }
 0x988   :  { %11038 = vmatprep.subr.bf16.mxu1 %v15438_v19 }
 0x98b   :  { %11039 = vmatpush1.bf16.msra.mxu1 %v15436_v13 }
 0x98c   :  { %11040 = vmatprep.subr.bf16.mxu1 %v15441_v48 }
 0x98f   :  { %11041 = vmatpush1.bf16.msra.mxu1 %v15439_v32 }
 0x990   :  { %11042 = vmatprep.subr.bf16.mxu1 %v15444_v61 }
 0x993   :  { %11043 = vmatpush1.bf16.msra.mxu1 %v15442_v17 }
 0x996   :  { %11057 = vmatmul.mubr.bf16.vlgmr.msra.gmra.mrb[112].mxu1 %v19295_v3  ;;  %v15457_v3 = vld [vmem:[%s21182_s8 + $0x70] sm:$0xff]  }
 0x997   :  { %13132 = vmatprep.subr.bf16.mxu0 %v15457_v3 }
 0x998   :  { %13133 = vmatpush3.bf16.msra.mxu0 %v15458_v62 }
 0x999   :  { %13134 = vmatprep.subr.bf16.mxu0 %v15459_v30 }
 0x99c   :  { %13135 = vmatpush3.bf16.msra.mxu0 %v15460_v22 }
 0xa69   :  { %v11058_v40 = vpop.f32.mrb[112].mxu1 }
 0xa6a   :  { %v13314_v45 = vadd.f32 %v20134_v33, %v11058_v40  ;;  %v11060_v54 = vpop.f32.mrb[113].mxu1 }
 0xa6b   :  { %v13323_v15 = vadd.f32 %v20137_v10, %v11060_v54  ;;  %v11062_v28 = vpop.f32.mrb[114].mxu1 }
 0xa6c   :  { %15461 = vtanh.f32 %v13314_v45  ;;  %v11063_v14 = vpop.f32.mrb[115].mxu1 }
 0xa6d   :  { %15463 = vtanh.f32 %v13323_v15 }
 0xa76   :  { %v15462_v25 = vpop.eup %15461 }
 0xa77   :  { %v15464_v0 = vpop.eup %15463  ;;  %v11069_v18 = vpack.c.bf16 %v15462_v25, %v15462_v25 }
 0xa78   :  { %v11070_v57 = vpack.c.bf16 %v15464_v0, %v15464_v0 }
 0xa7a   :  { %11238 = vmatprep.mubr.bf16.mxu0 %v11070_v57 }
 0xa7b   :  { %11239 = vmatmul.mubr.bf16.vlgmr.msra.gmra.mrb[0].mxu0 %v11069_v18 }
 0xb4e   :  { %v13136_v53 = vpop.f32.mrb[0].mxu0 }
 0xb4f   :  { %v13137_v4 = vpop.f32.mrb[1].mxu0 }
 0xb50   :  { %v13138_v33 = vadd.f32 %v13137_v4, %v13136_v53  ;;  %v13139_v51 = vpop.f32.mrb[2].mxu0 }
 0xb51   :  { %v13140_v37 = vpop.f32.mrb[3].mxu0 }
 0xb52   :  { %v11241_v10 = vadd.f32 %v13138_v33, %v13090_v26 }
 0xb54   :  { %11246 = vmax.xlane.f32.xlu0 %v11241_v10 }
 0xbe1   :  { %v11247_v12 = vpop.xlane.xlu0 %11246 }
 0xbe2   :  { %v11248_v43 = vsub.f32 %v11241_v10, %v11247_v12 }
 0xbe4   :  { %v11249_v21 = vmul.f32 1.442695, %v11248_v43 }
 0xbe6   :  { %15465 = vpow2.f32 %v11249_v21 }
 0xbf0   :  { %v15466_v23 = vpop.eup %15465 }
 0xbf1   :  { %11251 = vadd.xlane.f32.xlu1 %v15466_v23 }
 0xc7e   :  { %v11252_v24 = vpop.xlane.xlu1 %11251 }
 0xc7f   :  { %15467 = vrcp.f32 %v11252_v24 }
 0xc89   :  { %v15468_v47 = vpop.eup %15467 }
 0xc8a   :  { %v11254_v60 = vmul.f32 %v15468_v47, %v15466_v23 }
 0xc8c   :  { %11255 = vst [vmem:[%s21184_s10] sm:$0xff] %v11254_v60 }

</bundles_post_ra>
